<compile_context>
chip_gen: v7x
topology: tpu7x:2x2x1
jax: 0.10.0
libtpu: 0.0.40
codegen_flags: <defaults>
</compile_context>

<pallas_src>
import jax
import jax.numpy as jnp
from jax import lax
from jax.experimental import pallas as pl
from jax.experimental.pallas import tpu as pltpu


# Fixed LeNet geometry bookkeeping (input 3x32x32).
_C1_ROWS = 200   # 14*14 = 196 pooled conv1 positions, padded to 200 rows
_C2_ROWS = 140   # conv2 rows laid out as t = 14*i2 + j2 (valid for i2, j2 < 10)
_P2_ROWS = 121   # pool2 window rows; row u = 28*a + 2*b holds pooled2[a, b]


# ------------------------------ fused kernel ---------------------------------

def _lenet_kernel(p1_ref, w1_ref, w2_ref, wf1_ref, wf2_ref, wf3_ref, b_ref,
                  o_ref, pool1_scr, y2_scr, p2_scr):
    """Fused forward for ONE image (grid axis = batch).

    Row layouts (channels always live in the 128-lane axis):
      * p1_ref: 4 corner blocks of 200 rows; block k = 2*di+dj, row i*14+j is
        the im2col patch of conv1 output pixel (2i+di, 2j+dj) (rows 196..199
        are zero pad) -> the 2x2 max-pool is an elementwise max of the 4
        conv1-matmul result blocks.
      * pool1_scr: row i*14+j = pooled conv1 activation at (i, j) (14x14 map).
      * conv2 rows: t = 14*i2 + j2, produced by 25 shifted matmuls
        pool1_scr[14*ky+kx : +140] @ W2[ky,kx]; rows with j2 >= 10 are junk
        that never feeds a valid output.
      * pool2: elementwise max over row offsets {0, 1, 14, 15}; row 28a+2b of
        the result is pooled2[a, b].
    """
    f32 = jnp.float32
    bf16 = jnp.bfloat16

    # ---- conv1 (one lane-dense matmul per pool corner) + fused 2x2 max-pool --
    w1 = w1_ref[...]
    m = None
    for k in range(4):
        y = jnp.dot(p1_ref[pl.ds(k * 200, 200), :], w1,
                    preferred_element_type=f32)                  # (200, 128) f32
        m = y if m is None else jnp.maximum(m, y)
    # bias + ReLU commute with the max (monotone), so apply them once.
    pool1_scr[...] = jnp.maximum(m + b_ref[0:1, :], 0.0)          # (200, 128) f32

    # ---- conv2: 25 shifted matmuls over the VMEM-resident 14x14 map ----------
    acc2 = jnp.zeros((_C2_ROWS, 128), f32)
    for idx in range(25):
        ky, kx = idx // 5, idx % 5
        lhs = pool1_scr[pl.ds(14 * ky + kx, _C2_ROWS), :].astype(bf16)
        acc2 = acc2 + jnp.dot(lhs, w2_ref[idx], preferred_element_type=f32)
    y2_scr[...] = jnp.maximum(acc2 + b_ref[1:2, :], 0.0)          # (140, 128) f32

    # ---- 2x2 max-pool of conv2 via 4 shifted row windows ---------------------
    p2 = jnp.maximum(
        jnp.maximum(y2_scr[pl.ds(0, _P2_ROWS), :], y2_scr[pl.ds(1, _P2_ROWS), :]),
        jnp.maximum(y2_scr[pl.ds(14, _P2_ROWS), :], y2_scr[pl.ds(15, _P2_ROWS), :]))
    p2_scr[pl.ds(0, _P2_ROWS), :] = p2                            # row 28a+2b = pooled2[a,b]

    # ---- fc1: contraction over 25 pooled positions x (padded) channels -------
    h = jnp.zeros((1, 128), f32)
    for t in range(25):
        a, b = t // 5, t % 5
        row = p2_scr[pl.ds(28 * a + 2 * b, 1), :].astype(bf16)    # (1, 128)
        h = h + jnp.dot(row, wf1_ref[t], preferred_element_type=f32)
    h = jnp.maximum(h + b_ref[2:3, :], 0.0)

    # ---- fc2 (+ReLU) and fc3 -------------------------------------------------
    h = jnp.dot(h.astype(bf16), wf2_ref[...], preferred_element_type=f32)
    h = jnp.maximum(h + b_ref[3:4, :], 0.0)
    h = jnp.dot(h.astype(bf16), wf3_ref[...], preferred_element_type=f32)
    o_ref[0] = h + b_ref[4:5, :]


# ------------------------------ wrappers --------------------------------------

def _build_conv1_patches(x):
    """im2col for conv1 in a pool-friendly, lane-dense bf16 layout.

    Returns (N*800, 128) bf16.  Per image: 4 corner blocks of 200 rows; block
    k = 2*di+dj, row i*14+j is the 75-long patch (zero-padded to 128 lanes) of
    conv1 output pixel (2i+di, 2j+dj).  Patch K ordering is (ky, kx, c).
    NOTE: at large batch this im2col could be replaced by in-kernel shifted
    matmuls to avoid the 25x HBM replication; at LeNet scale it is negligible.
    """
    n = x.shape[0]
    xh = x.transpose(0, 2, 3, 1)                                  # NCHW -> NHWC once
    cols = [xh[:, ky:ky + 28, kx:kx + 28, :]
            for ky in range(5) for kx in range(5)]
    p = jnp.concatenate(cols, axis=-1)                            # (N, 28, 28, 75)
    p = p.reshape(n, 14, 2, 14, 2, 75).transpose(0, 2, 4, 1, 3, 5)
    p = p.reshape(n, 4, 196, 75)
    p = jnp.pad(p, ((0, 0), (0, 0), (0, 4), (0, 53)))             # rows -> 200, K -> 128
    return p.reshape(n * 800, 128).astype(jnp.bfloat16)


@jax.jit
def net_forward(prepped, x):
    """x: (N, 3, 32, 32) float32 NCHW (PyTorch layout) -> (N, 10) float32."""
    n = x.shape[0]
    patches = _build_conv1_patches(x)
    out = pl.pallas_call(
        _lenet_kernel,
        out_shape=jax.ShapeDtypeStruct((n, 1, 128), jnp.float32),
        grid_spec=pltpu.PrefetchScalarGridSpec(
            num_scalar_prefetch=0,
            grid=(n,),
            in_specs=[
                pl.BlockSpec((800, 128), lambda i: (i, 0)),         # conv1 patches
                pl.BlockSpec((128, 128), lambda i: (0, 0)),         # conv1 weights
                pl.BlockSpec((25, 128, 128), lambda i: (0, 0, 0)),  # conv2 weights
                pl.BlockSpec((25, 128, 128), lambda i: (0, 0, 0)),  # fc1 weights
                pl.BlockSpec((128, 128), lambda i: (0, 0)),         # fc2 weights
                pl.BlockSpec((128, 128), lambda i: (0, 0)),         # fc3 weights
                pl.BlockSpec((8, 128), lambda i: (0, 0)),           # biases
            ],
            out_specs=pl.BlockSpec((1, 1, 128), lambda i: (i, 0, 0)),
            scratch_shapes=[
                pltpu.VMEM((_C1_ROWS, 128), jnp.float32),   # pooled conv1 map
                pltpu.VMEM((_C2_ROWS, 128), jnp.float32),   # conv2 activation
                pltpu.VMEM((128, 128), jnp.float32),        # pooled conv2 (spread rows)
            ],
        ),
        compiler_params=pltpu.CompilerParams(
            dimension_semantics=("parallel",)),
    )(patches, prepped["w1"], prepped["w2"], prepped["wf1"],
      prepped["wf2"], prepped["wf3"], prepped["bias"])
    return out[:, 0, :10]


# ------------------------------ parameters ------------------------------------

def init_params(key):
    ks = jax.random.split(key, 10)
    scale = 0.1
    return {
        "conv1_w": scale * jax.random.normal(ks[0], (6, 3, 5, 5), jnp.float32),
        "conv1_b": scale * jax.random.normal(ks[1], (6,), jnp.float32),
        "conv2_w": scale * jax.random.normal(ks[2], (16, 6, 5, 5), jnp.float32),
        "conv2_b": scale * jax.random.normal(ks[3], (16,), jnp.float32),
        "fc1_w": scale * jax.random.normal(ks[4], (120, 400), jnp.float32),
        "fc1_b": scale * jax.random.normal(ks[5], (120,), jnp.float32),
        "fc2_w": scale * jax.random.normal(ks[6], (84, 120), jnp.float32),
        "fc2_b": scale * jax.random.normal(ks[7], (84,), jnp.float32),
        "fc3_w": scale * jax.random.normal(ks[8], (10, 84), jnp.float32),
        "fc3_b": scale * jax.random.normal(ks[9], (10,), jnp.float32),
    }


def prepare_params(params):
    """One-time weight prep: transpose, zero-pad to 128 lanes, cast to bf16."""
    bf16 = jnp.bfloat16
    # conv1: (6,3,5,5) -> (75,6) with K order (ky,kx,c) -> (128,128)
    w1 = params["conv1_w"].transpose(2, 3, 1, 0).reshape(75, 6)
    w1 = jnp.pad(w1, ((0, 53), (0, 122))).astype(bf16)
    # conv2: (16,6,5,5) -> (25, 6, 16) [tap, c_in, c_out] -> (25,128,128)
    w2 = params["conv2_w"].transpose(2, 3, 1, 0).reshape(25, 6, 16)
    w2 = jnp.pad(w2, ((0, 0), (0, 122), (0, 112))).astype(bf16)
    # fc1: (120,400); PyTorch flatten index = c*25 + a*5 + b -> (25,16,120)
    wf1 = params["fc1_w"].reshape(120, 16, 25).transpose(2, 1, 0)
    wf1 = jnp.pad(wf1, ((0, 0), (0, 112), (0, 8))).astype(bf16)
    wf2 = jnp.pad(params["fc2_w"].T, ((0, 8), (0, 44))).astype(bf16)    # (128,128)
    wf3 = jnp.pad(params["fc3_w"].T, ((0, 44), (0, 118))).astype(bf16)  # (128,128)
    bias = jnp.zeros((8, 128), jnp.float32)
    bias = bias.at[0, :6].set(params["conv1_b"])
    bias = bias.at[1, :16].set(params["conv2_b"])
    bias = bias.at[2, :120].set(params["fc1_b"])
    bias = bias.at[3, :84].set(params["fc2_b"])
    bias = bias.at[4, :10].set(params["fc3_b"])
    return {"w1": w1, "w2": w2, "wf1": wf1, "wf2": wf2, "wf3": wf3,
            "bias": bias}


# ------------------------------ pure-JAX reference -----------------------------

def net_forward_reference(params, x):
    dn = ("NCHW", "OIHW", "NCHW")
    y = lax.conv_general_dilated(x, params["conv1_w"], (1, 1), "VALID",
                                 dimension_numbers=dn)
    y = jax.nn.relu(y + params["conv1_b"][None, :, None, None])
    y = lax.reduce_window(y, -jnp.inf, lax.max, (1, 1, 2, 2), (1, 1, 2, 2), "VALID")
    y = lax.conv_general_dilated(y, params["conv2_w"], (1, 1), "VALID",
                                 dimension_numbers=dn)
    y = jax.nn.relu(y + params["conv2_b"][None, :, None, None])
    y = lax.reduce_window(y, -jnp.inf, lax.max, (1, 1, 2, 2), (1, 1, 2, 2), "VALID")
    y = y.reshape(y.shape[0], 400)
    y = jax.nn.relu(y @ params["fc1_w"].T + params["fc1_b"])
    y = jax.nn.relu(y @ params["fc2_w"].T + params["fc2_b"])
    return y @ params["fc3_w"].T + params["fc3_b"]


# ------------------------------ main -------------------------------------------

if __name__ == "__main__":
    key = jax.random.PRNGKey(0)
    k_param, k_x = jax.random.split(key)
    params = init_params(k_param)
    prepped = prepare_params(params)

    # Module architecture implies 3x32x32 inputs (16*5*5 flatten after two
    # valid 5x5 convs + two 2x2 pools). Batch = 2.
    x = jax.random.normal(k_x, (2, 3, 32, 32), jnp.float32)

    out = net_forward(prepped, x)
    out = jax.block_until_ready(out)
    assert out.shape == (2, 10) and out.dtype == jnp.float32

    ref = net_forward_reference(params, x)
    err = float(jnp.max(jnp.abs(out - ref)))
    assert err < 0.2, f"mismatch vs f32 reference (bf16 MXU path): {err}"

    print("KERNEL_OK")
</pallas_src>

<mosaic_0001>
module attributes {stable_mosaic.version = 11 : i64} {
  func.func @_lenet_kernel(%arg0: i32, %arg1: memref<800x128xbf16, #tpu.memory_space<vmem>>, %arg2: memref<128x128xbf16, #tpu.memory_space<vmem>>, %arg3: memref<25x128x128xbf16, #tpu.memory_space<vmem>>, %arg4: memref<25x128x128xbf16, #tpu.memory_space<vmem>>, %arg5: memref<128x128xbf16, #tpu.memory_space<vmem>>, %arg6: memref<128x128xbf16, #tpu.memory_space<vmem>>, %arg7: memref<8x128xf32, #tpu.memory_space<vmem>>, %arg8: memref<1x1x128xf32, #tpu.memory_space<vmem>>, %arg9: memref<200x128xf32, #tpu.memory_space<vmem>>, %arg10: memref<140x128xf32, #tpu.memory_space<vmem>>, %arg11: memref<128x128xf32, #tpu.memory_space<vmem>>) attributes {dimension_semantics = [#tpu.dimension_semantics<parallel>], iteration_bounds = array<i64: 2>, scalar_prefetch = 0 : i64, scratch_operands = 3 : i64, tpu.core_type = #tpu.core_type<tc>, window_params = [{transform_indices = @transform_0, window_bounds = array<i64: 800, 128>}, {pipeline_mode = #tpu.pipeline_mode<synchronous>, transform_indices = @transform_1, window_bounds = array<i64: 128, 128>}, {pipeline_mode = #tpu.pipeline_mode<synchronous>, transform_indices = @transform_2, window_bounds = array<i64: 25, 128, 128>}, {pipeline_mode = #tpu.pipeline_mode<synchronous>, transform_indices = @transform_3, window_bounds = array<i64: 25, 128, 128>}, {pipeline_mode = #tpu.pipeline_mode<synchronous>, transform_indices = @transform_4, window_bounds = array<i64: 128, 128>}, {pipeline_mode = #tpu.pipeline_mode<synchronous>, transform_indices = @transform_5, window_bounds = array<i64: 128, 128>}, {pipeline_mode = #tpu.pipeline_mode<synchronous>, transform_indices = @transform_6, window_bounds = array<i64: 8, 128>}, {transform_indices = @transform_7, window_bounds = array<i64: 1, 1, 128>}]} {
    %c0 = arith.constant 0 : index
    %c0_0 = arith.constant 0 : index
    %0 = vector.load %arg2[%c0, %c0_0] : memref<128x128xbf16, #tpu.memory_space<vmem>>, vector<128x128xbf16>
    %c0_1 = arith.constant 0 : index
    %c0_2 = arith.constant 0 : index
    %1 = vector.load %arg1[%c0_1, %c0_2] : memref<800x128xbf16, #tpu.memory_space<vmem>>, vector<200x128xbf16>
    %cst = arith.constant dense<0.000000e+00> : vector<200x128xf32>
    %2 = tpu.matmul %1, %0, %cst {dimension_numbers = #tpu.dot_dimension_numbers<[1], [0], [0], [1], [0, 0, 1, 1], [], []>} : vector<200x128xbf16>, vector<128x128xbf16>, vector<200x128xf32> -> vector<200x128xf32>
    %c200 = arith.constant 200 : index
    %c0_3 = arith.constant 0 : index
    %3 = vector.load %arg1[%c200, %c0_3] : memref<800x128xbf16, #tpu.memory_space<vmem>>, vector<200x128xbf16>
    %cst_4 = arith.constant dense<0.000000e+00> : vector<200x128xf32>
    %4 = tpu.matmul %3, %0, %cst_4 {dimension_numbers = #tpu.dot_dimension_numbers<[1], [0], [0], [1], [0, 0, 1, 1], [], []>} : vector<200x128xbf16>, vector<128x128xbf16>, vector<200x128xf32> -> vector<200x128xf32>
    %5 = arith.maximumf %2, %4 : vector<200x128xf32>
    %c400 = arith.constant 400 : index
    %c0_5 = arith.constant 0 : index
    %6 = vector.load %arg1[%c400, %c0_5] : memref<800x128xbf16, #tpu.memory_space<vmem>>, vector<200x128xbf16>
    %cst_6 = arith.constant dense<0.000000e+00> : vector<200x128xf32>
    %7 = tpu.matmul %6, %0, %cst_6 {dimension_numbers = #tpu.dot_dimension_numbers<[1], [0], [0], [1], [0, 0, 1, 1], [], []>} : vector<200x128xbf16>, vector<128x128xbf16>, vector<200x128xf32> -> vector<200x128xf32>
    %8 = arith.maximumf %5, %7 : vector<200x128xf32>
    %c600 = arith.constant 600 : index
    %c0_7 = arith.constant 0 : index
    %9 = vector.load %arg1[%c600, %c0_7] : memref<800x128xbf16, #tpu.memory_space<vmem>>, vector<200x128xbf16>
    %cst_8 = arith.constant dense<0.000000e+00> : vector<200x128xf32>
    %10 = tpu.matmul %9, %0, %cst_8 {dimension_numbers = #tpu.dot_dimension_numbers<[1], [0], [0], [1], [0, 0, 1, 1], [], []>} : vector<200x128xbf16>, vector<128x128xbf16>, vector<200x128xf32> -> vector<200x128xf32>
    %11 = arith.maximumf %8, %10 : vector<200x128xf32>
    %c0_9 = arith.constant 0 : index
    %c0_10 = arith.constant 0 : index
    %12 = vector.load %arg7[%c0_9, %c0_10] : memref<8x128xf32, #tpu.memory_space<vmem>>, vector<1x128xf32>
    %13 = vector.broadcast %12 : vector<1x128xf32> to vector<200x128xf32>
    %14 = arith.addf %11, %13 : vector<200x128xf32>
    %cst_11 = arith.constant 0.000000e+00 : f32
    %15 = vector.broadcast %cst_11 : f32 to vector<200x128xf32>
    %16 = arith.maximumf %14, %15 : vector<200x128xf32>
    %c0_12 = arith.constant 0 : index
    %c0_13 = arith.constant 0 : index
    %17 = vector.load %arg9[%c0_12, %c0_13] : memref<200x128xf32, #tpu.memory_space<vmem>>, vector<200x128xf32>
    tpu.vector_store %arg9[%c0_12, %c0_13], %16 {strides = array<i32>} : memref<200x128xf32, #tpu.memory_space<vmem>>, vector<200x128xf32>,
    %cst_14 = arith.constant 0.000000e+00 : f32
    %18 = vector.broadcast %cst_14 : f32 to vector<140x128xf32>
    %c0_15 = arith.constant 0 : index
    %c0_16 = arith.constant 0 : index
    %19 = vector.load %arg9[%c0_15, %c0_16] : memref<200x128xf32, #tpu.memory_space<vmem>>, vector<140x128xf32>
    %20 = arith.truncf %19 : vector<140x128xf32> to vector<140x128xbf16>
    %c0_17 = arith.constant 0 : index
    %c0_18 = arith.constant 0 : index
    %c0_19 = arith.constant 0 : index
    %21 = vector.load %arg3[%c0_17, %c0_18, %c0_19] : memref<25x128x128xbf16, #tpu.memory_space<vmem>>, vector<1x128x128xbf16>
    %22 = vector.shape_cast %21 : vector<1x128x128xbf16> to vector<128x128xbf16>
    %cst_20 = arith.constant dense<0.000000e+00> : vector<140x128xf32>
    %23 = tpu.matmul %20, %22, %cst_20 {dimension_numbers = #tpu.dot_dimension_numbers<[1], [0], [0], [1], [0, 0, 1, 1], [], []>} : vector<140x128xbf16>, vector<128x128xbf16>, vector<140x128xf32> -> vector<140x128xf32>
    %24 = arith.addf %18, %23 : vector<140x128xf32>
    %c1 = arith.constant 1 : index
    %c0_21 = arith.constant 0 : index
    %25 = vector.load %arg9[%c1, %c0_21] : memref<200x128xf32, #tpu.memory_space<vmem>>, vector<140x128xf32>
    %26 = arith.truncf %25 : vector<140x128xf32> to vector<140x128xbf16>
    %c1_22 = arith.constant 1 : index
    %c0_23 = arith.constant 0 : index
    %c0_24 = arith.constant 0 : index
    %27 = vector.load %arg3[%c1_22, %c0_23, %c0_24] : memref<25x128x128xbf16, #tpu.memory_space<vmem>>, vector<1x128x128xbf16>
    %28 = vector.shape_cast %27 : vector<1x128x128xbf16> to vector<128x128xbf16>
    %cst_25 = arith.constant dense<0.000000e+00> : vector<140x128xf32>
    %29 = tpu.matmul %26, %28, %cst_25 {dimension_numbers = #tpu.dot_dimension_numbers<[1], [0], [0], [1], [0, 0, 1, 1], [], []>} : vector<140x128xbf16>, vector<128x128xbf16>, vector<140x128xf32> -> vector<140x128xf32>
    %30 = arith.addf %24, %29 : vector<140x128xf32>
    %c2 = arith.constant 2 : index
    %c0_26 = arith.constant 0 : index
    %31 = vector.load %arg9[%c2, %c0_26] : memref<200x128xf32, #tpu.memory_space<vmem>>, vector<140x128xf32>
    %32 = arith.truncf %31 : vector<140x128xf32> to vector<140x128xbf16>
    %c2_27 = arith.constant 2 : index
    %c0_28 = arith.constant 0 : index
    %c0_29 = arith.constant 0 : index
    %33 = vector.load %arg3[%c2_27, %c0_28, %c0_29] : memref<25x128x128xbf16, #tpu.memory_space<vmem>>, vector<1x128x128xbf16>
    %34 = vector.shape_cast %33 : vector<1x128x128xbf16> to vector<128x128xbf16>
    %cst_30 = arith.constant dense<0.000000e+00> : vector<140x128xf32>
    %35 = tpu.matmul %32, %34, %cst_30 {dimension_numbers = #tpu.dot_dimension_numbers<[1], [0], [0], [1], [0, 0, 1, 1], [], []>} : vector<140x128xbf16>, vector<128x128xbf16>, vector<140x128xf32> -> vector<140x128xf32>
    %36 = arith.addf %30, %35 : vector<140x128xf32>
    %c3 = arith.constant 3 : index
    %c0_31 = arith.constant 0 : index
    %37 = vector.load %arg9[%c3, %c0_31] : memref<200x128xf32, #tpu.memory_space<vmem>>, vector<140x128xf32>
    %38 = arith.truncf %37 : vector<140x128xf32> to vector<140x128xbf16>
    %c3_32 = arith.constant 3 : index
    %c0_33 = arith.constant 0 : index
    %c0_34 = arith.constant 0 : index
    %39 = vector.load %arg3[%c3_32, %c0_33, %c0_34] : memref<25x128x128xbf16, #tpu.memory_space<vmem>>, vector<1x128x128xbf16>
    %40 = vector.shape_cast %39 : vector<1x128x128xbf16> to vector<128x128xbf16>
    %cst_35 = arith.constant dense<0.000000e+00> : vector<140x128xf32>
    %41 = tpu.matmul %38, %40, %cst_35 {dimension_numbers = #tpu.dot_dimension_numbers<[1], [0], [0], [1], [0, 0, 1, 1], [], []>} : vector<140x128xbf16>, vector<128x128xbf16>, vector<140x128xf32> -> vector<140x128xf32>
    %42 = arith.addf %36, %41 : vector<140x128xf32>
    %c4 = arith.constant 4 : index
    %c0_36 = arith.constant 0 : index
    %43 = vector.load %arg9[%c4, %c0_36] : memref<200x128xf32, #tpu.memory_space<vmem>>, vector<140x128xf32>
    %44 = arith.truncf %43 : vector<140x128xf32> to vector<140x128xbf16>
    %c4_37 = arith.constant 4 : index
    %c0_38 = arith.constant 0 : index
    %c0_39 = arith.constant 0 : index
    %45 = vector.load %arg3[%c4_37, %c0_38, %c0_39] : memref<25x128x128xbf16, #tpu.memory_space<vmem>>, vector<1x128x128xbf16>
    %46 = vector.shape_cast %45 : vector<1x128x128xbf16> to vector<128x128xbf16>
    %cst_40 = arith.constant dense<0.000000e+00> : vector<140x128xf32>
    %47 = tpu.matmul %44, %46, %cst_40 {dimension_numbers = #tpu.dot_dimension_numbers<[1], [0], [0], [1], [0, 0, 1, 1], [], []>} : vector<140x128xbf16>, vector<128x128xbf16>, vector<140x128xf32> -> vector<140x128xf32>
    %48 = arith.addf %42, %47 : vector<140x128xf32>
    %c14 = arith.constant 14 : index
    %c0_41 = arith.constant 0 : index
    %49 = vector.load %arg9[%c14, %c0_41] : memref<200x128xf32, #tpu.memory_space<vmem>>, vector<140x128xf32>
    %50 = arith.truncf %49 : vector<140x128xf32> to vector<140x128xbf16>
    %c5 = arith.constant 5 : index
    %c0_42 = arith.constant 0 : index
    %c0_43 = arith.constant 0 : index
    %51 = vector.load %arg3[%c5, %c0_42, %c0_43] : memref<25x128x128xbf16, #tpu.memory_space<vmem>>, vector<1x128x128xbf16>
    %52 = vector.shape_cast %51 : vector<1x128x128xbf16> to vector<128x128xbf16>
    %cst_44 = arith.constant dense<0.000000e+00> : vector<140x128xf32>
    %53 = tpu.matmul %50, %52, %cst_44 {dimension_numbers = #tpu.dot_dimension_numbers<[1], [0], [0], [1], [0, 0, 1, 1], [], []>} : vector<140x128xbf16>, vector<128x128xbf16>, vector<140x128xf32> -> vector<140x128xf32>
    %54 = arith.addf %48, %53 : vector<140x128xf32>
    %c15 = arith.constant 15 : index
    %c0_45 = arith.constant 0 : index
    %55 = vector.load %arg9[%c15, %c0_45] : memref<200x128xf32, #tpu.memory_space<vmem>>, vector<140x128xf32>
    %56 = arith.truncf %55 : vector<140x128xf32> to vector<140x128xbf16>
    %c6 = arith.constant 6 : index
    %c0_46 = arith.constant 0 : index
    %c0_47 = arith.constant 0 : index
    %57 = vector.load %arg3[%c6, %c0_46, %c0_47] : memref<25x128x128xbf16, #tpu.memory_space<vmem>>, vector<1x128x128xbf16>
    %58 = vector.shape_cast %57 : vector<1x128x128xbf16> to vector<128x128xbf16>
    %cst_48 = arith.constant dense<0.000000e+00> : vector<140x128xf32>
    %59 = tpu.matmul %56, %58, %cst_48 {dimension_numbers = #tpu.dot_dimension_numbers<[1], [0], [0], [1], [0, 0, 1, 1], [], []>} : vector<140x128xbf16>, vector<128x128xbf16>, vector<140x128xf32> -> vector<140x128xf32>
    %60 = arith.addf %54, %59 : vector<140x128xf32>
    %c16 = arith.constant 16 : index
    %c0_49 = arith.constant 0 : index
    %61 = vector.load %arg9[%c16, %c0_49] : memref<200x128xf32, #tpu.memory_space<vmem>>, vector<140x128xf32>
    %62 = arith.truncf %61 : vector<140x128xf32> to vector<140x128xbf16>
    %c7 = arith.constant 7 : index
    %c0_50 = arith.constant 0 : index
    %c0_51 = arith.constant 0 : index
    %63 = vector.load %arg3[%c7, %c0_50, %c0_51] : memref<25x128x128xbf16, #tpu.memory_space<vmem>>, vector<1x128x128xbf16>
    %64 = vector.shape_cast %63 : vector<1x128x128xbf16> to vector<128x128xbf16>
    %cst_52 = arith.constant dense<0.000000e+00> : vector<140x128xf32>
    %65 = tpu.matmul %62, %64, %cst_52 {dimension_numbers = #tpu.dot_dimension_numbers<[1], [0], [0], [1], [0, 0, 1, 1], [], []>} : vector<140x128xbf16>, vector<128x128xbf16>, vector<140x128xf32> -> vector<140x128xf32>
    %66 = arith.addf %60, %65 : vector<140x128xf32>
    %c17 = arith.constant 17 : index
    %c0_53 = arith.constant 0 : index
    %67 = vector.load %arg9[%c17, %c0_53] : memref<200x128xf32, #tpu.memory_space<vmem>>, vector<140x128xf32>
    %68 = arith.truncf %67 : vector<140x128xf32> to vector<140x128xbf16>
    %c8 = arith.constant 8 : index
    %c0_54 = arith.constant 0 : index
    %c0_55 = arith.constant 0 : index
    %69 = vector.load %arg3[%c8, %c0_54, %c0_55] : memref<25x128x128xbf16, #tpu.memory_space<vmem>>, vector<1x128x128xbf16>
    %70 = vector.shape_cast %69 : vector<1x128x128xbf16> to vector<128x128xbf16>
    %cst_56 = arith.constant dense<0.000000e+00> : vector<140x128xf32>
    %71 = tpu.matmul %68, %70, %cst_56 {dimension_numbers = #tpu.dot_dimension_numbers<[1], [0], [0], [1], [0, 0, 1, 1], [], []>} : vector<140x128xbf16>, vector<128x128xbf16>, vector<140x128xf32> -> vector<140x128xf32>
    %72 = arith.addf %66, %71 : vector<140x128xf32>
    %c18 = arith.constant 18 : index
    %c0_57 = arith.constant 0 : index
    %73 = vector.load %arg9[%c18, %c0_57] : memref<200x128xf32, #tpu.memory_space<vmem>>, vector<140x128xf32>
    %74 = arith.truncf %73 : vector<140x128xf32> to vector<140x128xbf16>
    %c9 = arith.constant 9 : index
    %c0_58 = arith.constant 0 : index
    %c0_59 = arith.constant 0 : index
    %75 = vector.load %arg3[%c9, %c0_58, %c0_59] : memref<25x128x128xbf16, #tpu.memory_space<vmem>>, vector<1x128x128xbf16>
    %76 = vector.shape_cast %75 : vector<1x128x128xbf16> to vector<128x128xbf16>
    %cst_60 = arith.constant dense<0.000000e+00> : vector<140x128xf32>
    %77 = tpu.matmul %74, %76, %cst_60 {dimension_numbers = #tpu.dot_dimension_numbers<[1], [0], [0], [1], [0, 0, 1, 1], [], []>} : vector<140x128xbf16>, vector<128x128xbf16>, vector<140x128xf32> -> vector<140x128xf32>
    %78 = arith.addf %72, %77 : vector<140x128xf32>
    %c28 = arith.constant 28 : index
    %c0_61 = arith.constant 0 : index
    %79 = vector.load %arg9[%c28, %c0_61] : memref<200x128xf32, #tpu.memory_space<vmem>>, vector<140x128xf32>
    %80 = arith.truncf %79 : vector<140x128xf32> to vector<140x128xbf16>
    %c10 = arith.constant 10 : index
    %c0_62 = arith.constant 0 : index
    %c0_63 = arith.constant 0 : index
    %81 = vector.load %arg3[%c10, %c0_62, %c0_63] : memref<25x128x128xbf16, #tpu.memory_space<vmem>>, vector<1x128x128xbf16>
    %82 = vector.shape_cast %81 : vector<1x128x128xbf16> to vector<128x128xbf16>
    %cst_64 = arith.constant dense<0.000000e+00> : vector<140x128xf32>
    %83 = tpu.matmul %80, %82, %cst_64 {dimension_numbers = #tpu.dot_dimension_numbers<[1], [0], [0], [1], [0, 0, 1, 1], [], []>} : vector<140x128xbf16>, vector<128x128xbf16>, vector<140x128xf32> -> vector<140x128xf32>
    %84 = arith.addf %78, %83 : vector<140x128xf32>
    %c29 = arith.constant 29 : index
    %c0_65 = arith.constant 0 : index
    %85 = vector.load %arg9[%c29, %c0_65] : memref<200x128xf32, #tpu.memory_space<vmem>>, vector<140x128xf32>
    %86 = arith.truncf %85 : vector<140x128xf32> to vector<140x128xbf16>
    %c11 = arith.constant 11 : index
    %c0_66 = arith.constant 0 : index
    %c0_67 = arith.constant 0 : index
    %87 = vector.load %arg3[%c11, %c0_66, %c0_67] : memref<25x128x128xbf16, #tpu.memory_space<vmem>>, vector<1x128x128xbf16>
    %88 = vector.shape_cast %87 : vector<1x128x128xbf16> to vector<128x128xbf16>
    %cst_68 = arith.constant dense<0.000000e+00> : vector<140x128xf32>
    %89 = tpu.matmul %86, %88, %cst_68 {dimension_numbers = #tpu.dot_dimension_numbers<[1], [0], [0], [1], [0, 0, 1, 1], [], []>} : vector<140x128xbf16>, vector<128x128xbf16>, vector<140x128xf32> -> vector<140x128xf32>
    %90 = arith.addf %84, %89 : vector<140x128xf32>
    %c30 = arith.constant 30 : index
    %c0_69 = arith.constant 0 : index
    %91 = vector.load %arg9[%c30, %c0_69] : memref<200x128xf32, #tpu.memory_space<vmem>>, vector<140x128xf32>
    %92 = arith.truncf %91 : vector<140x128xf32> to vector<140x128xbf16>
    %c12 = arith.constant 12 : index
    %c0_70 = arith.constant 0 : index
    %c0_71 = arith.constant 0 : index
    %93 = vector.load %arg3[%c12, %c0_70, %c0_71] : memref<25x128x128xbf16, #tpu.memory_space<vmem>>, vector<1x128x128xbf16>
    %94 = vector.shape_cast %93 : vector<1x128x128xbf16> to vector<128x128xbf16>
    %cst_72 = arith.constant dense<0.000000e+00> : vector<140x128xf32>
    %95 = tpu.matmul %92, %94, %cst_72 {dimension_numbers = #tpu.dot_dimension_numbers<[1], [0], [0], [1], [0, 0, 1, 1], [], []>} : vector<140x128xbf16>, vector<128x128xbf16>, vector<140x128xf32> -> vector<140x128xf32>
    %96 = arith.addf %90, %95 : vector<140x128xf32>
    %c31 = arith.constant 31 : index
    %c0_73 = arith.constant 0 : index
    %97 = vector.load %arg9[%c31, %c0_73] : memref<200x128xf32, #tpu.memory_space<vmem>>, vector<140x128xf32>
    %98 = arith.truncf %97 : vector<140x128xf32> to vector<140x128xbf16>
    %c13 = arith.constant 13 : index
    %c0_74 = arith.constant 0 : index
    %c0_75 = arith.constant 0 : index
    %99 = vector.load %arg3[%c13, %c0_74, %c0_75] : memref<25x128x128xbf16, #tpu.memory_space<vmem>>, vector<1x128x128xbf16>
    %100 = vector.shape_cast %99 : vector<1x128x128xbf16> to vector<128x128xbf16>
    %cst_76 = arith.constant dense<0.000000e+00> : vector<140x128xf32>
    %101 = tpu.matmul %98, %100, %cst_76 {dimension_numbers = #tpu.dot_dimension_numbers<[1], [0], [0], [1], [0, 0, 1, 1], [], []>} : vector<140x128xbf16>, vector<128x128xbf16>, vector<140x128xf32> -> vector<140x128xf32>
    %102 = arith.addf %96, %101 : vector<140x128xf32>
    %c32 = arith.constant 32 : index
    %c0_77 = arith.constant 0 : index
    %103 = vector.load %arg9[%c32, %c0_77] : memref<200x128xf32, #tpu.memory_space<vmem>>, vector<140x128xf32>
    %104 = arith.truncf %103 : vector<140x128xf32> to vector<140x128xbf16>
    %c14_78 = arith.constant 14 : index
    %c0_79 = arith.constant 0 : index
    %c0_80 = arith.constant 0 : index
    %105 = vector.load %arg3[%c14_78, %c0_79, %c0_80] : memref<25x128x128xbf16, #tpu.memory_space<vmem>>, vector<1x128x128xbf16>
    %106 = vector.shape_cast %105 : vector<1x128x128xbf16> to vector<128x128xbf16>
    %cst_81 = arith.constant dense<0.000000e+00> : vector<140x128xf32>
    %107 = tpu.matmul %104, %106, %cst_81 {dimension_numbers = #tpu.dot_dimension_numbers<[1], [0], [0], [1], [0, 0, 1, 1], [], []>} : vector<140x128xbf16>, vector<128x128xbf16>, vector<140x128xf32> -> vector<140x128xf32>
    %108 = arith.addf %102, %107 : vector<140x128xf32>
    %c42 = arith.constant 42 : index
    %c0_82 = arith.constant 0 : index
    %109 = vector.load %arg9[%c42, %c0_82] : memref<200x128xf32, #tpu.memory_space<vmem>>, vector<140x128xf32>
    %110 = arith.truncf %109 : vector<140x128xf32> to vector<140x128xbf16>
    %c15_83 = arith.constant 15 : index
    %c0_84 = arith.constant 0 : index
    %c0_85 = arith.constant 0 : index
    %111 = vector.load %arg3[%c15_83, %c0_84, %c0_85] : memref<25x128x128xbf16, #tpu.memory_space<vmem>>, vector<1x128x128xbf16>
    %112 = vector.shape_cast %111 : vector<1x128x128xbf16> to vector<128x128xbf16>
    %cst_86 = arith.constant dense<0.000000e+00> : vector<140x128xf32>
    %113 = tpu.matmul %110, %112, %cst_86 {dimension_numbers = #tpu.dot_dimension_numbers<[1], [0], [0], [1], [0, 0, 1, 1], [], []>} : vector<140x128xbf16>, vector<128x128xbf16>, vector<140x128xf32> -> vector<140x128xf32>
    %114 = arith.addf %108, %113 : vector<140x128xf32>
    %c43 = arith.constant 43 : index
    %c0_87 = arith.constant 0 : index
    %115 = vector.load %arg9[%c43, %c0_87] : memref<200x128xf32, #tpu.memory_space<vmem>>, vector<140x128xf32>
    %116 = arith.truncf %115 : vector<140x128xf32> to vector<140x128xbf16>
    %c16_88 = arith.constant 16 : index
    %c0_89 = arith.constant 0 : index
    %c0_90 = arith.constant 0 : index
    %117 = vector.load %arg3[%c16_88, %c0_89, %c0_90] : memref<25x128x128xbf16, #tpu.memory_space<vmem>>, vector<1x128x128xbf16>
    %118 = vector.shape_cast %117 : vector<1x128x128xbf16> to vector<128x128xbf16>
    %cst_91 = arith.constant dense<0.000000e+00> : vector<140x128xf32>
    %119 = tpu.matmul %116, %118, %cst_91 {dimension_numbers = #tpu.dot_dimension_numbers<[1], [0], [0], [1], [0, 0, 1, 1], [], []>} : vector<140x128xbf16>, vector<128x128xbf16>, vector<140x128xf32> -> vector<140x128xf32>
    %120 = arith.addf %114, %119 : vector<140x128xf32>
    %c44 = arith.constant 44 : index
    %c0_92 = arith.constant 0 : index
    %121 = vector.load %arg9[%c44, %c0_92] : memref<200x128xf32, #tpu.memory_space<vmem>>, vector<140x128xf32>
    %122 = arith.truncf %121 : vector<140x128xf32> to vector<140x128xbf16>
    %c17_93 = arith.constant 17 : index
    %c0_94 = arith.constant 0 : index
    %c0_95 = arith.constant 0 : index
    %123 = vector.load %arg3[%c17_93, %c0_94, %c0_95] : memref<25x128x128xbf16, #tpu.memory_space<vmem>>, vector<1x128x128xbf16>
    %124 = vector.shape_cast %123 : vector<1x128x128xbf16> to vector<128x128xbf16>
    %cst_96 = arith.constant dense<0.000000e+00> : vector<140x128xf32>
    %125 = tpu.matmul %122, %124, %cst_96 {dimension_numbers = #tpu.dot_dimension_numbers<[1], [0], [0], [1], [0, 0, 1, 1], [], []>} : vector<140x128xbf16>, vector<128x128xbf16>, vector<140x128xf32> -> vector<140x128xf32>
    %126 = arith.addf %120, %125 : vector<140x128xf32>
    %c45 = arith.constant 45 : index
    %c0_97 = arith.constant 0 : index
    %127 = vector.load %arg9[%c45, %c0_97] : memref<200x128xf32, #tpu.memory_space<vmem>>, vector<140x128xf32>
    %128 = arith.truncf %127 : vector<140x128xf32> to vector<140x128xbf16>
    %c18_98 = arith.constant 18 : index
    %c0_99 = arith.constant 0 : index
    %c0_100 = arith.constant 0 : index
    %129 = vector.load %arg3[%c18_98, %c0_99, %c0_100] : memref<25x128x128xbf16, #tpu.memory_space<vmem>>, vector<1x128x128xbf16>
    %130 = vector.shape_cast %129 : vector<1x128x128xbf16> to vector<128x128xbf16>
    %cst_101 = arith.constant dense<0.000000e+00> : vector<140x128xf32>
    %131 = tpu.matmul %128, %130, %cst_101 {dimension_numbers = #tpu.dot_dimension_numbers<[1], [0], [0], [1], [0, 0, 1, 1], [], []>} : vector<140x128xbf16>, vector<128x128xbf16>, vector<140x128xf32> -> vector<140x128xf32>
    %132 = arith.addf %126, %131 : vector<140x128xf32>
    %c46 = arith.constant 46 : index
    %c0_102 = arith.constant 0 : index
    %133 = vector.load %arg9[%c46, %c0_102] : memref<200x128xf32, #tpu.memory_space<vmem>>, vector<140x128xf32>
    %134 = arith.truncf %133 : vector<140x128xf32> to vector<140x128xbf16>
    %c19 = arith.constant 19 : index
    %c0_103 = arith.constant 0 : index
    %c0_104 = arith.constant 0 : index
    %135 = vector.load %arg3[%c19, %c0_103, %c0_104] : memref<25x128x128xbf16, #tpu.memory_space<vmem>>, vector<1x128x128xbf16>
    %136 = vector.shape_cast %135 : vector<1x128x128xbf16> to vector<128x128xbf16>
    %cst_105 = arith.constant dense<0.000000e+00> : vector<140x128xf32>
    %137 = tpu.matmul %134, %136, %cst_105 {dimension_numbers = #tpu.dot_dimension_numbers<[1], [0], [0], [1], [0, 0, 1, 1], [], []>} : vector<140x128xbf16>, vector<128x128xbf16>, vector<140x128xf32> -> vector<140x128xf32>
    %138 = arith.addf %132, %137 : vector<140x128xf32>
    %c56 = arith.constant 56 : index
    %c0_106 = arith.constant 0 : index
    %139 = vector.load %arg9[%c56, %c0_106] : memref<200x128xf32, #tpu.memory_space<vmem>>, vector<140x128xf32>
    %140 = arith.truncf %139 : vector<140x128xf32> to vector<140x128xbf16>
    %c20 = arith.constant 20 : index
    %c0_107 = arith.constant 0 : index
    %c0_108 = arith.constant 0 : index
    %141 = vector.load %arg3[%c20, %c0_107, %c0_108] : memref<25x128x128xbf16, #tpu.memory_space<vmem>>, vector<1x128x128xbf16>
    %142 = vector.shape_cast %141 : vector<1x128x128xbf16> to vector<128x128xbf16>
    %cst_109 = arith.constant dense<0.000000e+00> : vector<140x128xf32>
    %143 = tpu.matmul %140, %142, %cst_109 {dimension_numbers = #tpu.dot_dimension_numbers<[1], [0], [0], [1], [0, 0, 1, 1], [], []>} : vector<140x128xbf16>, vector<128x128xbf16>, vector<140x128xf32> -> vector<140x128xf32>
    %144 = arith.addf %138, %143 : vector<140x128xf32>
    %c57 = arith.constant 57 : index
    %c0_110 = arith.constant 0 : index
    %145 = vector.load %arg9[%c57, %c0_110] : memref<200x128xf32, #tpu.memory_space<vmem>>, vector<140x128xf32>
    %146 = arith.truncf %145 : vector<140x128xf32> to vector<140x128xbf16>
    %c21 = arith.constant 21 : index
    %c0_111 = arith.constant 0 : index
    %c0_112 = arith.constant 0 : index
    %147 = vector.load %arg3[%c21, %c0_111, %c0_112] : memref<25x128x128xbf16, #tpu.memory_space<vmem>>, vector<1x128x128xbf16>
    %148 = vector.shape_cast %147 : vector<1x128x128xbf16> to vector<128x128xbf16>
    %cst_113 = arith.constant dense<0.000000e+00> : vector<140x128xf32>
    %149 = tpu.matmul %146, %148, %cst_113 {dimension_numbers = #tpu.dot_dimension_numbers<[1], [0], [0], [1], [0, 0, 1, 1], [], []>} : vector<140x128xbf16>, vector<128x128xbf16>, vector<140x128xf32> -> vector<140x128xf32>
    %150 = arith.addf %144, %149 : vector<140x128xf32>
    %c58 = arith.constant 58 : index
    %c0_114 = arith.constant 0 : index
    %151 = vector.load %arg9[%c58, %c0_114] : memref<200x128xf32, #tpu.memory_space<vmem>>, vector<140x128xf32>
    %152 = arith.truncf %151 : vector<140x128xf32> to vector<140x128xbf16>
    %c22 = arith.constant 22 : index
    %c0_115 = arith.constant 0 : index
    %c0_116 = arith.constant 0 : index
    %153 = vector.load %arg3[%c22, %c0_115, %c0_116] : memref<25x128x128xbf16, #tpu.memory_space<vmem>>, vector<1x128x128xbf16>
    %154 = vector.shape_cast %153 : vector<1x128x128xbf16> to vector<128x128xbf16>
    %cst_117 = arith.constant dense<0.000000e+00> : vector<140x128xf32>
    %155 = tpu.matmul %152, %154, %cst_117 {dimension_numbers = #tpu.dot_dimension_numbers<[1], [0], [0], [1], [0, 0, 1, 1], [], []>} : vector<140x128xbf16>, vector<128x128xbf16>, vector<140x128xf32> -> vector<140x128xf32>
    %156 = arith.addf %150, %155 : vector<140x128xf32>
    %c59 = arith.constant 59 : index
    %c0_118 = arith.constant 0 : index
    %157 = vector.load %arg9[%c59, %c0_118] : memref<200x128xf32, #tpu.memory_space<vmem>>, vector<140x128xf32>
    %158 = arith.truncf %157 : vector<140x128xf32> to vector<140x128xbf16>
    %c23 = arith.constant 23 : index
    %c0_119 = arith.constant 0 : index
    %c0_120 = arith.constant 0 : index
    %159 = vector.load %arg3[%c23, %c0_119, %c0_120] : memref<25x128x128xbf16, #tpu.memory_space<vmem>>, vector<1x128x128xbf16>
    %160 = vector.shape_cast %159 : vector<1x128x128xbf16> to vector<128x128xbf16>
    %cst_121 = arith.constant dense<0.000000e+00> : vector<140x128xf32>
    %161 = tpu.matmul %158, %160, %cst_121 {dimension_numbers = #tpu.dot_dimension_numbers<[1], [0], [0], [1], [0, 0, 1, 1], [], []>} : vector<140x128xbf16>, vector<128x128xbf16>, vector<140x128xf32> -> vector<140x128xf32>
    %162 = arith.addf %156, %161 : vector<140x128xf32>
    %c60 = arith.constant 60 : index
    %c0_122 = arith.constant 0 : index
    %163 = vector.load %arg9[%c60, %c0_122] : memref<200x128xf32, #tpu.memory_space<vmem>>, vector<140x128xf32>
    %164 = arith.truncf %163 : vector<140x128xf32> to vector<140x128xbf16>
    %c24 = arith.constant 24 : index
    %c0_123 = arith.constant 0 : index
    %c0_124 = arith.constant 0 : index
    %165 = vector.load %arg3[%c24, %c0_123, %c0_124] : memref<25x128x128xbf16, #tpu.memory_space<vmem>>, vector<1x128x128xbf16>
    %166 = vector.shape_cast %165 : vector<1x128x128xbf16> to vector<128x128xbf16>
    %cst_125 = arith.constant dense<0.000000e+00> : vector<140x128xf32>
    %167 = tpu.matmul %164, %166, %cst_125 {dimension_numbers = #tpu.dot_dimension_numbers<[1], [0], [0], [1], [0, 0, 1, 1], [], []>} : vector<140x128xbf16>, vector<128x128xbf16>, vector<140x128xf32> -> vector<140x128xf32>
    %168 = arith.addf %162, %167 : vector<140x128xf32>
    %c1_126 = arith.constant 1 : index
    %c0_127 = arith.constant 0 : index
    %169 = vector.load %arg7[%c1_126, %c0_127] : memref<8x128xf32, #tpu.memory_space<vmem>>, vector<1x128xf32>
    %170 = vector.broadcast %169 : vector<1x128xf32> to vector<140x128xf32>
    %171 = arith.addf %168, %170 : vector<140x128xf32>
    %cst_128 = arith.constant 0.000000e+00 : f32
    %172 = vector.broadcast %cst_128 : f32 to vector<140x128xf32>
    %173 = arith.maximumf %171, %172 : vector<140x128xf32>
    %c0_129 = arith.constant 0 : index
    %c0_130 = arith.constant 0 : index
    %174 = vector.load %arg10[%c0_129, %c0_130] : memref<140x128xf32, #tpu.memory_space<vmem>>, vector<140x128xf32>
    tpu.vector_store %arg10[%c0_129, %c0_130], %173 {strides = array<i32>} : memref<140x128xf32, #tpu.memory_space<vmem>>, vector<140x128xf32>,
    %c0_131 = arith.constant 0 : index
    %c0_132 = arith.constant 0 : index
    %175 = vector.load %arg10[%c0_131, %c0_132] : memref<140x128xf32, #tpu.memory_space<vmem>>, vector<121x128xf32>
    %c1_133 = arith.constant 1 : index
    %c0_134 = arith.constant 0 : index
    %176 = vector.load %arg10[%c1_133, %c0_134] : memref<140x128xf32, #tpu.memory_space<vmem>>, vector<121x128xf32>
    %177 = arith.maximumf %175, %176 : vector<121x128xf32>
    %c14_135 = arith.constant 14 : index
    %c0_136 = arith.constant 0 : index
    %178 = vector.load %arg10[%c14_135, %c0_136] : memref<140x128xf32, #tpu.memory_space<vmem>>, vector<121x128xf32>
    %c15_137 = arith.constant 15 : index
    %c0_138 = arith.constant 0 : index
    %179 = vector.load %arg10[%c15_137, %c0_138] : memref<140x128xf32, #tpu.memory_space<vmem>>, vector<121x128xf32>
    %180 = arith.maximumf %178, %179 : vector<121x128xf32>
    %181 = arith.maximumf %177, %180 : vector<121x128xf32>
    %c0_139 = arith.constant 0 : index
    %c0_140 = arith.constant 0 : index
    %182 = vector.load %arg11[%c0_139, %c0_140] : memref<128x128xf32, #tpu.memory_space<vmem>>, vector<121x128xf32>
    tpu.vector_store %arg11[%c0_139, %c0_140], %181 {strides = array<i32>} : memref<128x128xf32, #tpu.memory_space<vmem>>, vector<121x128xf32>,
    %cst_141 = arith.constant 0.000000e+00 : f32
    %183 = vector.broadcast %cst_141 : f32 to vector<1x128xf32>
    %c0_142 = arith.constant 0 : index
    %c0_143 = arith.constant 0 : index
    %184 = vector.load %arg11[%c0_142, %c0_143] : memref<128x128xf32, #tpu.memory_space<vmem>>, vector<1x128xf32>
    %185 = arith.truncf %184 : vector<1x128xf32> to vector<1x128xbf16>
    %c0_144 = arith.constant 0 : index
    %c0_145 = arith.constant 0 : index
    %c0_146 = arith.constant 0 : index
    %186 = vector.load %arg4[%c0_144, %c0_145, %c0_146] : memref<25x128x128xbf16, #tpu.memory_space<vmem>>, vector<1x128x128xbf16>
    %187 = vector.shape_cast %186 : vector<1x128x128xbf16> to vector<128x128xbf16>
    %cst_147 = arith.constant dense<0.000000e+00> : vector<1x128xf32>
    %188 = tpu.matmul %185, %187, %cst_147 {dimension_numbers = #tpu.dot_dimension_numbers<[1], [0], [0], [1], [0, 0, 1, 1], [], []>} : vector<1x128xbf16>, vector<128x128xbf16>, vector<1x128xf32> -> vector<1x128xf32>
    %189 = arith.addf %183, %188 : vector<1x128xf32>
    %c2_148 = arith.constant 2 : index
    %c0_149 = arith.constant 0 : index
    %190 = vector.load %arg11[%c2_148, %c0_149] : memref<128x128xf32, #tpu.memory_space<vmem>>, vector<1x128xf32>
    %191 = arith.truncf %190 : vector<1x128xf32> to vector<1x128xbf16>
    %c1_150 = arith.constant 1 : index
    %c0_151 = arith.constant 0 : index
    %c0_152 = arith.constant 0 : index
    %192 = vector.load %arg4[%c1_150, %c0_151, %c0_152] : memref<25x128x128xbf16, #tpu.memory_space<vmem>>, vector<1x128x128xbf16>
    %193 = vector.shape_cast %192 : vector<1x128x128xbf16> to vector<128x128xbf16>
    %cst_153 = arith.constant dense<0.000000e+00> : vector<1x128xf32>
    %194 = tpu.matmul %191, %193, %cst_153 {dimension_numbers = #tpu.dot_dimension_numbers<[1], [0], [0], [1], [0, 0, 1, 1], [], []>} : vector<1x128xbf16>, vector<128x128xbf16>, vector<1x128xf32> -> vector<1x128xf32>
    %195 = arith.addf %189, %194 : vector<1x128xf32>
    %c4_154 = arith.constant 4 : index
    %c0_155 = arith.constant 0 : index
    %196 = vector.load %arg11[%c4_154, %c0_155] : memref<128x128xf32, #tpu.memory_space<vmem>>, vector<1x128xf32>
    %197 = arith.truncf %196 : vector<1x128xf32> to vector<1x128xbf16>
    %c2_156 = arith.constant 2 : index
    %c0_157 = arith.constant 0 : index
    %c0_158 = arith.constant 0 : index
    %198 = vector.load %arg4[%c2_156, %c0_157, %c0_158] : memref<25x128x128xbf16, #tpu.memory_space<vmem>>, vector<1x128x128xbf16>
    %199 = vector.shape_cast %198 : vector<1x128x128xbf16> to vector<128x128xbf16>
    %cst_159 = arith.constant dense<0.000000e+00> : vector<1x128xf32>
    %200 = tpu.matmul %197, %199, %cst_159 {dimension_numbers = #tpu.dot_dimension_numbers<[1], [0], [0], [1], [0, 0, 1, 1], [], []>} : vector<1x128xbf16>, vector<128x128xbf16>, vector<1x128xf32> -> vector<1x128xf32>
    %201 = arith.addf %195, %200 : vector<1x128xf32>
    %c6_160 = arith.constant 6 : index
    %c0_161 = arith.constant 0 : index
    %202 = vector.load %arg11[%c6_160, %c0_161] : memref<128x128xf32, #tpu.memory_space<vmem>>, vector<1x128xf32>
    %203 = arith.truncf %202 : vector<1x128xf32> to vector<1x128xbf16>
    %c3_162 = arith.constant 3 : index
    %c0_163 = arith.constant 0 : index
    %c0_164 = arith.constant 0 : index
    %204 = vector.load %arg4[%c3_162, %c0_163, %c0_164] : memref<25x128x128xbf16, #tpu.memory_space<vmem>>, vector<1x128x128xbf16>
    %205 = vector.shape_cast %204 : vector<1x128x128xbf16> to vector<128x128xbf16>
    %cst_165 = arith.constant dense<0.000000e+00> : vector<1x128xf32>
    %206 = tpu.matmul %203, %205, %cst_165 {dimension_numbers = #tpu.dot_dimension_numbers<[1], [0], [0], [1], [0, 0, 1, 1], [], []>} : vector<1x128xbf16>, vector<128x128xbf16>, vector<1x128xf32> -> vector<1x128xf32>
    %207 = arith.addf %201, %206 : vector<1x128xf32>
    %c8_166 = arith.constant 8 : index
    %c0_167 = arith.constant 0 : index
    %208 = vector.load %arg11[%c8_166, %c0_167] : memref<128x128xf32, #tpu.memory_space<vmem>>, vector<1x128xf32>
    %209 = arith.truncf %208 : vector<1x128xf32> to vector<1x128xbf16>
    %c4_168 = arith.constant 4 : index
    %c0_169 = arith.constant 0 : index
    %c0_170 = arith.constant 0 : index
    %210 = vector.load %arg4[%c4_168, %c0_169, %c0_170] : memref<25x128x128xbf16, #tpu.memory_space<vmem>>, vector<1x128x128xbf16>
    %211 = vector.shape_cast %210 : vector<1x128x128xbf16> to vector<128x128xbf16>
    %cst_171 = arith.constant dense<0.000000e+00> : vector<1x128xf32>
    %212 = tpu.matmul %209, %211, %cst_171 {dimension_numbers = #tpu.dot_dimension_numbers<[1], [0], [0], [1], [0, 0, 1, 1], [], []>} : vector<1x128xbf16>, vector<128x128xbf16>, vector<1x128xf32> -> vector<1x128xf32>
    %213 = arith.addf %207, %212 : vector<1x128xf32>
    %c28_172 = arith.constant 28 : index
    %c0_173 = arith.constant 0 : index
    %214 = vector.load %arg11[%c28_172, %c0_173] : memref<128x128xf32, #tpu.memory_space<vmem>>, vector<1x128xf32>
    %215 = arith.truncf %214 : vector<1x128xf32> to vector<1x128xbf16>
    %c5_174 = arith.constant 5 : index
    %c0_175 = arith.constant 0 : index
    %c0_176 = arith.constant 0 : index
    %216 = vector.load %arg4[%c5_174, %c0_175, %c0_176] : memref<25x128x128xbf16, #tpu.memory_space<vmem>>, vector<1x128x128xbf16>
    %217 = vector.shape_cast %216 : vector<1x128x128xbf16> to vector<128x128xbf16>
    %cst_177 = arith.constant dense<0.000000e+00> : vector<1x128xf32>
    %218 = tpu.matmul %215, %217, %cst_177 {dimension_numbers = #tpu.dot_dimension_numbers<[1], [0], [0], [1], [0, 0, 1, 1], [], []>} : vector<1x128xbf16>, vector<128x128xbf16>, vector<1x128xf32> -> vector<1x128xf32>
    %219 = arith.addf %213, %218 : vector<1x128xf32>
    %c30_178 = arith.constant 30 : index
    %c0_179 = arith.constant 0 : index
    %220 = vector.load %arg11[%c30_178, %c0_179] : memref<128x128xf32, #tpu.memory_space<vmem>>, vector<1x128xf32>
    %221 = arith.truncf %220 : vector<1x128xf32> to vector<1x128xbf16>
    %c6_180 = arith.constant 6 : index
    %c0_181 = arith.constant 0 : index
    %c0_182 = arith.constant 0 : index
    %222 = vector.load %arg4[%c6_180, %c0_181, %c0_182] : memref<25x128x128xbf16, #tpu.memory_space<vmem>>, vector<1x128x128xbf16>
    %223 = vector.shape_cast %222 : vector<1x128x128xbf16> to vector<128x128xbf16>
    %cst_183 = arith.constant dense<0.000000e+00> : vector<1x128xf32>
    %224 = tpu.matmul %221, %223, %cst_183 {dimension_numbers = #tpu.dot_dimension_numbers<[1], [0], [0], [1], [0, 0, 1, 1], [], []>} : vector<1x128xbf16>, vector<128x128xbf16>, vector<1x128xf32> -> vector<1x128xf32>
    %225 = arith.addf %219, %224 : vector<1x128xf32>
    %c32_184 = arith.constant 32 : index
    %c0_185 = arith.constant 0 : index
    %226 = vector.load %arg11[%c32_184, %c0_185] : memref<128x128xf32, #tpu.memory_space<vmem>>, vector<1x128xf32>
    %227 = arith.truncf %226 : vector<1x128xf32> to vector<1x128xbf16>
    %c7_186 = arith.constant 7 : index
    %c0_187 = arith.constant 0 : index
    %c0_188 = arith.constant 0 : index
    %228 = vector.load %arg4[%c7_186, %c0_187, %c0_188] : memref<25x128x128xbf16, #tpu.memory_space<vmem>>, vector<1x128x128xbf16>
    %229 = vector.shape_cast %228 : vector<1x128x128xbf16> to vector<128x128xbf16>
    %cst_189 = arith.constant dense<0.000000e+00> : vector<1x128xf32>
    %230 = tpu.matmul %227, %229, %cst_189 {dimension_numbers = #tpu.dot_dimension_numbers<[1], [0], [0], [1], [0, 0, 1, 1], [], []>} : vector<1x128xbf16>, vector<128x128xbf16>, vector<1x128xf32> -> vector<1x128xf32>
    %231 = arith.addf %225, %230 : vector<1x128xf32>
    %c34 = arith.constant 34 : index
    %c0_190 = arith.constant 0 : index
    %232 = vector.load %arg11[%c34, %c0_190] : memref<128x128xf32, #tpu.memory_space<vmem>>, vector<1x128xf32>
    %233 = arith.truncf %232 : vector<1x128xf32> to vector<1x128xbf16>
    %c8_191 = arith.constant 8 : index
    %c0_192 = arith.constant 0 : index
    %c0_193 = arith.constant 0 : index
    %234 = vector.load %arg4[%c8_191, %c0_192, %c0_193] : memref<25x128x128xbf16, #tpu.memory_space<vmem>>, vector<1x128x128xbf16>
    %235 = vector.shape_cast %234 : vector<1x128x128xbf16> to vector<128x128xbf16>
    %cst_194 = arith.constant dense<0.000000e+00> : vector<1x128xf32>
    %236 = tpu.matmul %233, %235, %cst_194 {dimension_numbers = #tpu.dot_dimension_numbers<[1], [0], [0], [1], [0, 0, 1, 1], [], []>} : vector<1x128xbf16>, vector<128x128xbf16>, vector<1x128xf32> -> vector<1x128xf32>
    %237 = arith.addf %231, %236 : vector<1x128xf32>
    %c36 = arith.constant 36 : index
    %c0_195 = arith.constant 0 : index
    %238 = vector.load %arg11[%c36, %c0_195] : memref<128x128xf32, #tpu.memory_space<vmem>>, vector<1x128xf32>
    %239 = arith.truncf %238 : vector<1x128xf32> to vector<1x128xbf16>
    %c9_196 = arith.constant 9 : index
    %c0_197 = arith.constant 0 : index
    %c0_198 = arith.constant 0 : index
    %240 = vector.load %arg4[%c9_196, %c0_197, %c0_198] : memref<25x128x128xbf16, #tpu.memory_space<vmem>>, vector<1x128x128xbf16>
    %241 = vector.shape_cast %240 : vector<1x128x128xbf16> to vector<128x128xbf16>
    %cst_199 = arith.constant dense<0.000000e+00> : vector<1x128xf32>
    %242 = tpu.matmul %239, %241, %cst_199 {dimension_numbers = #tpu.dot_dimension_numbers<[1], [0], [0], [1], [0, 0, 1, 1], [], []>} : vector<1x128xbf16>, vector<128x128xbf16>, vector<1x128xf32> -> vector<1x128xf32>
    %243 = arith.addf %237, %242 : vector<1x128xf32>
    %c56_200 = arith.constant 56 : index
    %c0_201 = arith.constant 0 : index
    %244 = vector.load %arg11[%c56_200, %c0_201] : memref<128x128xf32, #tpu.memory_space<vmem>>, vector<1x128xf32>
    %245 = arith.truncf %244 : vector<1x128xf32> to vector<1x128xbf16>
    %c10_202 = arith.constant 10 : index
    %c0_203 = arith.constant 0 : index
    %c0_204 = arith.constant 0 : index
    %246 = vector.load %arg4[%c10_202, %c0_203, %c0_204] : memref<25x128x128xbf16, #tpu.memory_space<vmem>>, vector<1x128x128xbf16>
    %247 = vector.shape_cast %246 : vector<1x128x128xbf16> to vector<128x128xbf16>
    %cst_205 = arith.constant dense<0.000000e+00> : vector<1x128xf32>
    %248 = tpu.matmul %245, %247, %cst_205 {dimension_numbers = #tpu.dot_dimension_numbers<[1], [0], [0], [1], [0, 0, 1, 1], [], []>} : vector<1x128xbf16>, vector<128x128xbf16>, vector<1x128xf32> -> vector<1x128xf32>
    %249 = arith.addf %243, %248 : vector<1x128xf32>
    %c58_206 = arith.constant 58 : index
    %c0_207 = arith.constant 0 : index
    %250 = vector.load %arg11[%c58_206, %c0_207] : memref<128x128xf32, #tpu.memory_space<vmem>>, vector<1x128xf32>
    %251 = arith.truncf %250 : vector<1x128xf32> to vector<1x128xbf16>
    %c11_208 = arith.constant 11 : index
    %c0_209 = arith.constant 0 : index
    %c0_210 = arith.constant 0 : index
    %252 = vector.load %arg4[%c11_208, %c0_209, %c0_210] : memref<25x128x128xbf16, #tpu.memory_space<vmem>>, vector<1x128x128xbf16>
    %253 = vector.shape_cast %252 : vector<1x128x128xbf16> to vector<128x128xbf16>
    %cst_211 = arith.constant dense<0.000000e+00> : vector<1x128xf32>
    %254 = tpu.matmul %251, %253, %cst_211 {dimension_numbers = #tpu.dot_dimension_numbers<[1], [0], [0], [1], [0, 0, 1, 1], [], []>} : vector<1x128xbf16>, vector<128x128xbf16>, vector<1x128xf32> -> vector<1x128xf32>
    %255 = arith.addf %249, %254 : vector<1x128xf32>
    %c60_212 = arith.constant 60 : index
    %c0_213 = arith.constant 0 : index
    %256 = vector.load %arg11[%c60_212, %c0_213] : memref<128x128xf32, #tpu.memory_space<vmem>>, vector<1x128xf32>
    %257 = arith.truncf %256 : vector<1x128xf32> to vector<1x128xbf16>
    %c12_214 = arith.constant 12 : index
    %c0_215 = arith.constant 0 : index
    %c0_216 = arith.constant 0 : index
    %258 = vector.load %arg4[%c12_214, %c0_215, %c0_216] : memref<25x128x128xbf16, #tpu.memory_space<vmem>>, vector<1x128x128xbf16>
    %259 = vector.shape_cast %258 : vector<1x128x128xbf16> to vector<128x128xbf16>
    %cst_217 = arith.constant dense<0.000000e+00> : vector<1x128xf32>
    %260 = tpu.matmul %257, %259, %cst_217 {dimension_numbers = #tpu.dot_dimension_numbers<[1], [0], [0], [1], [0, 0, 1, 1], [], []>} : vector<1x128xbf16>, vector<128x128xbf16>, vector<1x128xf32> -> vector<1x128xf32>
    %261 = arith.addf %255, %260 : vector<1x128xf32>
    %c62 = arith.constant 62 : index
    %c0_218 = arith.constant 0 : index
    %262 = vector.load %arg11[%c62, %c0_218] : memref<128x128xf32, #tpu.memory_space<vmem>>, vector<1x128xf32>
    %263 = arith.truncf %262 : vector<1x128xf32> to vector<1x128xbf16>
    %c13_219 = arith.constant 13 : index
    %c0_220 = arith.constant 0 : index
    %c0_221 = arith.constant 0 : index
    %264 = vector.load %arg4[%c13_219, %c0_220, %c0_221] : memref<25x128x128xbf16, #tpu.memory_space<vmem>>, vector<1x128x128xbf16>
    %265 = vector.shape_cast %264 : vector<1x128x128xbf16> to vector<128x128xbf16>
    %cst_222 = arith.constant dense<0.000000e+00> : vector<1x128xf32>
    %266 = tpu.matmul %263, %265, %cst_222 {dimension_numbers = #tpu.dot_dimension_numbers<[1], [0], [0], [1], [0, 0, 1, 1], [], []>} : vector<1x128xbf16>, vector<128x128xbf16>, vector<1x128xf32> -> vector<1x128xf32>
    %267 = arith.addf %261, %266 : vector<1x128xf32>
    %c64 = arith.constant 64 : index
    %c0_223 = arith.constant 0 : index
    %268 = vector.load %arg11[%c64, %c0_223] : memref<128x128xf32, #tpu.memory_space<vmem>>, vector<1x128xf32>
    %269 = arith.truncf %268 : vector<1x128xf32> to vector<1x128xbf16>
    %c14_224 = arith.constant 14 : index
    %c0_225 = arith.constant 0 : index
    %c0_226 = arith.constant 0 : index
    %270 = vector.load %arg4[%c14_224, %c0_225, %c0_226] : memref<25x128x128xbf16, #tpu.memory_space<vmem>>, vector<1x128x128xbf16>
    %271 = vector.shape_cast %270 : vector<1x128x128xbf16> to vector<128x128xbf16>
    %cst_227 = arith.constant dense<0.000000e+00> : vector<1x128xf32>
    %272 = tpu.matmul %269, %271, %cst_227 {dimension_numbers = #tpu.dot_dimension_numbers<[1], [0], [0], [1], [0, 0, 1, 1], [], []>} : vector<1x128xbf16>, vector<128x128xbf16>, vector<1x128xf32> -> vector<1x128xf32>
    %273 = arith.addf %267, %272 : vector<1x128xf32>
    %c84 = arith.constant 84 : index
    %c0_228 = arith.constant 0 : index
    %274 = vector.load %arg11[%c84, %c0_228] : memref<128x128xf32, #tpu.memory_space<vmem>>, vector<1x128xf32>
    %275 = arith.truncf %274 : vector<1x128xf32> to vector<1x128xbf16>
    %c15_229 = arith.constant 15 : index
    %c0_230 = arith.constant 0 : index
    %c0_231 = arith.constant 0 : index
    %276 = vector.load %arg4[%c15_229, %c0_230, %c0_231] : memref<25x128x128xbf16, #tpu.memory_space<vmem>>, vector<1x128x128xbf16>
    %277 = vector.shape_cast %276 : vector<1x128x128xbf16> to vector<128x128xbf16>
    %cst_232 = arith.constant dense<0.000000e+00> : vector<1x128xf32>
    %278 = tpu.matmul %275, %277, %cst_232 {dimension_numbers = #tpu.dot_dimension_numbers<[1], [0], [0], [1], [0, 0, 1, 1], [], []>} : vector<1x128xbf16>, vector<128x128xbf16>, vector<1x128xf32> -> vector<1x128xf32>
    %279 = arith.addf %273, %278 : vector<1x128xf32>
    %c86 = arith.constant 86 : index
    %c0_233 = arith.constant 0 : index
    %280 = vector.load %arg11[%c86, %c0_233] : memref<128x128xf32, #tpu.memory_space<vmem>>, vector<1x128xf32>
    %281 = arith.truncf %280 : vector<1x128xf32> to vector<1x128xbf16>
    %c16_234 = arith.constant 16 : index
    %c0_235 = arith.constant 0 : index
    %c0_236 = arith.constant 0 : index
    %282 = vector.load %arg4[%c16_234, %c0_235, %c0_236] : memref<25x128x128xbf16, #tpu.memory_space<vmem>>, vector<1x128x128xbf16>
    %283 = vector.shape_cast %282 : vector<1x128x128xbf16> to vector<128x128xbf16>
    %cst_237 = arith.constant dense<0.000000e+00> : vector<1x128xf32>
    %284 = tpu.matmul %281, %283, %cst_237 {dimension_numbers = #tpu.dot_dimension_numbers<[1], [0], [0], [1], [0, 0, 1, 1], [], []>} : vector<1x128xbf16>, vector<128x128xbf16>, vector<1x128xf32> -> vector<1x128xf32>
    %285 = arith.addf %279, %284 : vector<1x128xf32>
    %c88 = arith.constant 88 : index
    %c0_238 = arith.constant 0 : index
    %286 = vector.load %arg11[%c88, %c0_238] : memref<128x128xf32, #tpu.memory_space<vmem>>, vector<1x128xf32>
    %287 = arith.truncf %286 : vector<1x128xf32> to vector<1x128xbf16>
    %c17_239 = arith.constant 17 : index
    %c0_240 = arith.constant 0 : index
    %c0_241 = arith.constant 0 : index
    %288 = vector.load %arg4[%c17_239, %c0_240, %c0_241] : memref<25x128x128xbf16, #tpu.memory_space<vmem>>, vector<1x128x128xbf16>
    %289 = vector.shape_cast %288 : vector<1x128x128xbf16> to vector<128x128xbf16>
    %cst_242 = arith.constant dense<0.000000e+00> : vector<1x128xf32>
    %290 = tpu.matmul %287, %289, %cst_242 {dimension_numbers = #tpu.dot_dimension_numbers<[1], [0], [0], [1], [0, 0, 1, 1], [], []>} : vector<1x128xbf16>, vector<128x128xbf16>, vector<1x128xf32> -> vector<1x128xf32>
    %291 = arith.addf %285, %290 : vector<1x128xf32>
    %c90 = arith.constant 90 : index
    %c0_243 = arith.constant 0 : index
    %292 = vector.load %arg11[%c90, %c0_243] : memref<128x128xf32, #tpu.memory_space<vmem>>, vector<1x128xf32>
    %293 = arith.truncf %292 : vector<1x128xf32> to vector<1x128xbf16>
    %c18_244 = arith.constant 18 : index
    %c0_245 = arith.constant 0 : index
    %c0_246 = arith.constant 0 : index
    %294 = vector.load %arg4[%c18_244, %c0_245, %c0_246] : memref<25x128x128xbf16, #tpu.memory_space<vmem>>, vector<1x128x128xbf16>
    %295 = vector.shape_cast %294 : vector<1x128x128xbf16> to vector<128x128xbf16>
    %cst_247 = arith.constant dense<0.000000e+00> : vector<1x128xf32>
    %296 = tpu.matmul %293, %295, %cst_247 {dimension_numbers = #tpu.dot_dimension_numbers<[1], [0], [0], [1], [0, 0, 1, 1], [], []>} : vector<1x128xbf16>, vector<128x128xbf16>, vector<1x128xf32> -> vector<1x128xf32>
    %297 = arith.addf %291, %296 : vector<1x128xf32>
    %c92 = arith.constant 92 : index
    %c0_248 = arith.constant 0 : index
    %298 = vector.load %arg11[%c92, %c0_248] : memref<128x128xf32, #tpu.memory_space<vmem>>, vector<1x128xf32>
    %299 = arith.truncf %298 : vector<1x128xf32> to vector<1x128xbf16>
    %c19_249 = arith.constant 19 : index
    %c0_250 = arith.constant 0 : index
    %c0_251 = arith.constant 0 : index
    %300 = vector.load %arg4[%c19_249, %c0_250, %c0_251] : memref<25x128x128xbf16, #tpu.memory_space<vmem>>, vector<1x128x128xbf16>
    %301 = vector.shape_cast %300 : vector<1x128x128xbf16> to vector<128x128xbf16>
    %cst_252 = arith.constant dense<0.000000e+00> : vector<1x128xf32>
    %302 = tpu.matmul %299, %301, %cst_252 {dimension_numbers = #tpu.dot_dimension_numbers<[1], [0], [0], [1], [0, 0, 1, 1], [], []>} : vector<1x128xbf16>, vector<128x128xbf16>, vector<1x128xf32> -> vector<1x128xf32>
    %303 = arith.addf %297, %302 : vector<1x128xf32>
    %c112 = arith.constant 112 : index
    %c0_253 = arith.constant 0 : index
    %304 = vector.load %arg11[%c112, %c0_253] : memref<128x128xf32, #tpu.memory_space<vmem>>, vector<1x128xf32>
    %305 = arith.truncf %304 : vector<1x128xf32> to vector<1x128xbf16>
    %c20_254 = arith.constant 20 : index
    %c0_255 = arith.constant 0 : index
    %c0_256 = arith.constant 0 : index
    %306 = vector.load %arg4[%c20_254, %c0_255, %c0_256] : memref<25x128x128xbf16, #tpu.memory_space<vmem>>, vector<1x128x128xbf16>
    %307 = vector.shape_cast %306 : vector<1x128x128xbf16> to vector<128x128xbf16>
    %cst_257 = arith.constant dense<0.000000e+00> : vector<1x128xf32>
    %308 = tpu.matmul %305, %307, %cst_257 {dimension_numbers = #tpu.dot_dimension_numbers<[1], [0], [0], [1], [0, 0, 1, 1], [], []>} : vector<1x128xbf16>, vector<128x128xbf16>, vector<1x128xf32> -> vector<1x128xf32>
    %309 = arith.addf %303, %308 : vector<1x128xf32>
    %c114 = arith.constant 114 : index
    %c0_258 = arith.constant 0 : index
    %310 = vector.load %arg11[%c114, %c0_258] : memref<128x128xf32, #tpu.memory_space<vmem>>, vector<1x128xf32>
    %311 = arith.truncf %310 : vector<1x128xf32> to vector<1x128xbf16>
    %c21_259 = arith.constant 21 : index
    %c0_260 = arith.constant 0 : index
    %c0_261 = arith.constant 0 : index
    %312 = vector.load %arg4[%c21_259, %c0_260, %c0_261] : memref<25x128x128xbf16, #tpu.memory_space<vmem>>, vector<1x128x128xbf16>
    %313 = vector.shape_cast %312 : vector<1x128x128xbf16> to vector<128x128xbf16>
    %cst_262 = arith.constant dense<0.000000e+00> : vector<1x128xf32>
    %314 = tpu.matmul %311, %313, %cst_262 {dimension_numbers = #tpu.dot_dimension_numbers<[1], [0], [0], [1], [0, 0, 1, 1], [], []>} : vector<1x128xbf16>, vector<128x128xbf16>, vector<1x128xf32> -> vector<1x128xf32>
    %315 = arith.addf %309, %314 : vector<1x128xf32>
    %c116 = arith.constant 116 : index
    %c0_263 = arith.constant 0 : index
    %316 = vector.load %arg11[%c116, %c0_263] : memref<128x128xf32, #tpu.memory_space<vmem>>, vector<1x128xf32>
    %317 = arith.truncf %316 : vector<1x128xf32> to vector<1x128xbf16>
    %c22_264 = arith.constant 22 : index
    %c0_265 = arith.constant 0 : index
    %c0_266 = arith.constant 0 : index
    %318 = vector.load %arg4[%c22_264, %c0_265, %c0_266] : memref<25x128x128xbf16, #tpu.memory_space<vmem>>, vector<1x128x128xbf16>
    %319 = vector.shape_cast %318 : vector<1x128x128xbf16> to vector<128x128xbf16>
    %cst_267 = arith.constant dense<0.000000e+00> : vector<1x128xf32>
    %320 = tpu.matmul %317, %319, %cst_267 {dimension_numbers = #tpu.dot_dimension_numbers<[1], [0], [0], [1], [0, 0, 1, 1], [], []>} : vector<1x128xbf16>, vector<128x128xbf16>, vector<1x128xf32> -> vector<1x128xf32>
    %321 = arith.addf %315, %320 : vector<1x128xf32>
    %c118 = arith.constant 118 : index
    %c0_268 = arith.constant 0 : index
    %322 = vector.load %arg11[%c118, %c0_268] : memref<128x128xf32, #tpu.memory_space<vmem>>, vector<1x128xf32>
    %323 = arith.truncf %322 : vector<1x128xf32> to vector<1x128xbf16>
    %c23_269 = arith.constant 23 : index
    %c0_270 = arith.constant 0 : index
    %c0_271 = arith.constant 0 : index
    %324 = vector.load %arg4[%c23_269, %c0_270, %c0_271] : memref<25x128x128xbf16, #tpu.memory_space<vmem>>, vector<1x128x128xbf16>
    %325 = vector.shape_cast %324 : vector<1x128x128xbf16> to vector<128x128xbf16>
    %cst_272 = arith.constant dense<0.000000e+00> : vector<1x128xf32>
    %326 = tpu.matmul %323, %325, %cst_272 {dimension_numbers = #tpu.dot_dimension_numbers<[1], [0], [0], [1], [0, 0, 1, 1], [], []>} : vector<1x128xbf16>, vector<128x128xbf16>, vector<1x128xf32> -> vector<1x128xf32>
    %327 = arith.addf %321, %326 : vector<1x128xf32>
    %c120 = arith.constant 120 : index
    %c0_273 = arith.constant 0 : index
    %328 = vector.load %arg11[%c120, %c0_273] : memref<128x128xf32, #tpu.memory_space<vmem>>, vector<1x128xf32>
    %329 = arith.truncf %328 : vector<1x128xf32> to vector<1x128xbf16>
    %c24_274 = arith.constant 24 : index
    %c0_275 = arith.constant 0 : index
    %c0_276 = arith.constant 0 : index
    %330 = vector.load %arg4[%c24_274, %c0_275, %c0_276] : memref<25x128x128xbf16, #tpu.memory_space<vmem>>, vector<1x128x128xbf16>
    %331 = vector.shape_cast %330 : vector<1x128x128xbf16> to vector<128x128xbf16>
    %cst_277 = arith.constant dense<0.000000e+00> : vector<1x128xf32>
    %332 = tpu.matmul %329, %331, %cst_277 {dimension_numbers = #tpu.dot_dimension_numbers<[1], [0], [0], [1], [0, 0, 1, 1], [], []>} : vector<1x128xbf16>, vector<128x128xbf16>, vector<1x128xf32> -> vector<1x128xf32>
    %333 = arith.addf %327, %332 : vector<1x128xf32>
    %c2_278 = arith.constant 2 : index
    %c0_279 = arith.constant 0 : index
    %334 = vector.load %arg7[%c2_278, %c0_279] : memref<8x128xf32, #tpu.memory_space<vmem>>, vector<1x128xf32>
    %335 = arith.addf %333, %334 : vector<1x128xf32>
    %cst_280 = arith.constant 0.000000e+00 : f32
    %336 = vector.broadcast %cst_280 : f32 to vector<1x128xf32>
    %337 = arith.maximumf %335, %336 : vector<1x128xf32>
    %338 = arith.truncf %337 : vector<1x128xf32> to vector<1x128xbf16>
    %c0_281 = arith.constant 0 : index
    %c0_282 = arith.constant 0 : index
    %339 = vector.load %arg5[%c0_281, %c0_282] : memref<128x128xbf16, #tpu.memory_space<vmem>>, vector<128x128xbf16>
    %cst_283 = arith.constant dense<0.000000e+00> : vector<1x128xf32>
    %340 = tpu.matmul %338, %339, %cst_283 {dimension_numbers = #tpu.dot_dimension_numbers<[1], [0], [0], [1], [0, 0, 1, 1], [], []>} : vector<1x128xbf16>, vector<128x128xbf16>, vector<1x128xf32> -> vector<1x128xf32>
    %c3_284 = arith.constant 3 : index
    %c0_285 = arith.constant 0 : index
    %341 = vector.load %arg7[%c3_284, %c0_285] : memref<8x128xf32, #tpu.memory_space<vmem>>, vector<1x128xf32>
    %342 = arith.addf %340, %341 : vector<1x128xf32>
    %cst_286 = arith.constant 0.000000e+00 : f32
    %343 = vector.broadcast %cst_286 : f32 to vector<1x128xf32>
    %344 = arith.maximumf %342, %343 : vector<1x128xf32>
    %345 = arith.truncf %344 : vector<1x128xf32> to vector<1x128xbf16>
    %c0_287 = arith.constant 0 : index
    %c0_288 = arith.constant 0 : index
    %346 = vector.load %arg6[%c0_287, %c0_288] : memref<128x128xbf16, #tpu.memory_space<vmem>>, vector<128x128xbf16>
    %cst_289 = arith.constant dense<0.000000e+00> : vector<1x128xf32>
    %347 = tpu.matmul %345, %346, %cst_289 {dimension_numbers = #tpu.dot_dimension_numbers<[1], [0], [0], [1], [0, 0, 1, 1], [], []>} : vector<1x128xbf16>, vector<128x128xbf16>, vector<1x128xf32> -> vector<1x128xf32>
    %c4_290 = arith.constant 4 : index
    %c0_291 = arith.constant 0 : index
    %348 = vector.load %arg7[%c4_290, %c0_291] : memref<8x128xf32, #tpu.memory_space<vmem>>, vector<1x128xf32>
    %349 = arith.addf %347, %348 : vector<1x128xf32>
    %c0_292 = arith.constant 0 : index
    %c0_293 = arith.constant 0 : index
    %c0_294 = arith.constant 0 : index
    %350 = vector.load %arg8[%c0_292, %c0_293, %c0_294] : memref<1x1x128xf32, #tpu.memory_space<vmem>>, vector<1x1x128xf32>
    %351 = vector.shape_cast %350 : vector<1x1x128xf32> to vector<1x128xf32>
    %352 = vector.shape_cast %349 : vector<1x128xf32> to vector<1x1x128xf32>
    tpu.vector_store %arg8[%c0_292, %c0_293, %c0_294], %352 {strides = array<i32>} : memref<1x1x128xf32, #tpu.memory_space<vmem>>, vector<1x1x128xf32>,
    return
  }
  func.func @transform_0(%arg0: i32) -> (i32, i32) {
    %c0_i32 = arith.constant 0 : i32
    %c0_i32_0 = arith.constant 0 : i32
    return %arg0, %c0_i32 : i32, i32
  }
  func.func @transform_1(%arg0: i32) -> (i32, i32) {
    %c0_i32 = arith.constant 0 : i32
    %c0_i32_0 = arith.constant 0 : i32
    %c0_i32_1 = arith.constant 0 : i32
    return %c0_i32, %c0_i32_0 : i32, i32
  }
  func.func @transform_2(%arg0: i32) -> (i32, i32, i32) {
    %c0_i32 = arith.constant 0 : i32
    %c0_i32_0 = arith.constant 0 : i32
    %c0_i32_1 = arith.constant 0 : i32
    %c0_i32_2 = arith.constant 0 : i32
    return %c0_i32, %c0_i32_0, %c0_i32_1 : i32, i32, i32
  }
  func.func @transform_3(%arg0: i32) -> (i32, i32, i32) {
    %c0_i32 = arith.constant 0 : i32
    %c0_i32_0 = arith.constant 0 : i32
    %c0_i32_1 = arith.constant 0 : i32
    %c0_i32_2 = arith.constant 0 : i32
    return %c0_i32, %c0_i32_0, %c0_i32_1 : i32, i32, i32
  }
  func.func @transform_4(%arg0: i32) -> (i32, i32) {
    %c0_i32 = arith.constant 0 : i32
    %c0_i32_0 = arith.constant 0 : i32
    %c0_i32_1 = arith.constant 0 : i32
    return %c0_i32, %c0_i32_0 : i32, i32
  }
  func.func @transform_5(%arg0: i32) -> (i32, i32) {
    %c0_i32 = arith.constant 0 : i32
    %c0_i32_0 = arith.constant 0 : i32
    %c0_i32_1 = arith.constant 0 : i32
    return %c0_i32, %c0_i32_0 : i32, i32
  }
  func.func @transform_6(%arg0: i32) -> (i32, i32) {
    %c0_i32 = arith.constant 0 : i32
    %c0_i32_0 = arith.constant 0 : i32
    %c0_i32_1 = arith.constant 0 : i32
    return %c0_i32, %c0_i32_0 : i32, i32
  }
  func.func @transform_7(%arg0: i32) -> (i32, i32, i32) {
    %c0_i32 = arith.constant 0 : i32
    %c0_i32_0 = arith.constant 0 : i32
    %c0_i32_1 = arith.constant 0 : i32
    return %arg0, %c0_i32, %c0_i32_0 : i32, i32, i32
  }
}

</mosaic_0001>

<bundles_post_ra>
// kernel: net_forward.1
= control target key start
LH: loop header
LB: loop body
LE: loop exit
PB: predicated region body
PF: predicated region fallthrough
CT: control target
= control target key end

     0   :  { %12 = vsyncpa [#allocation6], 0  ;;  %s18143_s0 = inlined_call_operand.vmem [shape: bf16[1600,128], index: 0, kind: input, shape index: {}]   ;;  %s18144_s1 = inlined_call_operand.vmem [shape: bf16[128,128], index: 1, kind: input, shape index: {}]   ;;  %s18145_s2 = inlined_call_operand.vmem [shape: bf16[25,128,128], index: 2, kind: input, shape index: {}]   ;;  %s18146_s3 = inlined_call_operand.vmem [shape: bf16[25,128,128], index: 3, kind: input, shape index: {}]   ;;  %s18147_s4 = inlined_call_operand.vmem [shape: bf16[128,128], index: 4, kind: input, shape index: {}]   ;;  %s18148_s5 = inlined_call_operand.vmem [shape: bf16[128,128], index: 5, kind: input, shape index: {}]   ;;  %s18149_s6 = inlined_call_operand.vmem [shape: f32[8,128], index: 6, kind: input, shape index: {}]   ;;  %s18150_s7 = inlined_call_operand.hbm [shape: f32[2,1,128], index: 7, kind: output, shape index: {}]  }
   0x1   :  { %14 = vsyncpa [#allocation6 + $0x1], 0  ;;  %s14695_s24 = smov 0   ;;  %s14697_s25 = smov 0  }
   0x2   :  { %s14699_s26 = smov 0   ;;  %s14701_s27 = smov 0  }
   0x3 LB: > { %s14716_s28 = sadd.s32 4294967295, %s14650_s27   ;;  %s9953_s29 = sadd.s32 4294967294, %s14650_s27   ;;  %s14650_s27 = sphi %s14701_s27, %s18198_s27   ;;  %s14646_s26 = sphi %s14699_s26, %s18197_s26   ;;  %s14642_s25 = sphi %s14697_s25, %s18196_s25   ;;  %s14638_s24 = sphi %s14695_s24, %s18195_s24  }
   0x4   : > { %s14720_s30 = sadd.s32 1, %s14650_s27   ;;  %s179_s8 = sadd.s32 1, %s14646_s26 }
   0x5   : > { %s176_s9 = ssub.s32 %s14650_s27, %s14720_s30  ;;  %p189_p0 = scmp.ne.s32.totalorder %s14646_s26, %s14642_s25 }
   0x6   : > { %p177_p1 = scmp.eq.s32.totalorder %s176_s9, 0  ;;  %p190_p2 = scmp.eq.s32.totalorder %s14716_s28, 1 }
   0x7   : > { %p195_p3 = scmp.ne.s32.totalorder %s14642_s25, %s14638_s24  ;;  %p196_p4 = scmp.eq.s32.totalorder %s9953_s29, 1 }
   0x8   : > { %s14731_s10 = scalar_select %p177_p1, %s14646_s26, %s179_s8  }
   0x9   : > { %p14733_p5 = por %p190_p2, %p189_p0  ;;  %p14737_p6 = por %p196_p4, %p195_p3 }
   0xa   : > { %p9956_p7 = scmp.ge.s32.totalorder %s14650_s27, 1  ;;  %p241_p8 = scmp.lt.s32.totalorder %s14650_s27, 3 }
   0xc   : > { %p242_p9 = pnand %p9956_p7, %p241_p8 }
   0xe   : > { %245 = sbr.rel (%p242_p9) target bundleno = 2592 (0xa20), region = 48 }
  0x15   : > { %v14112_v0 = vld [vmem:[%s18144_s1] sm:$0xff]   ;;  %v18151_v1 = vmov 0.0   ;;  %v14113_v2 = vld [vmem:[%s18144_s1 + $0x8] sm:$0xff]   ;;  %s272_s17 = smul.u32 100, %s14716_s28  ;;  %vm14653_vm0 = vmmov 0   ;;  %v14114_v3 = vld [vmem:[%s18144_s1 + $0x10] sm:$0xff]  }
  0x16   : > { %11959 = vmatprep.subr.bf16.mxu0 %v18151_v1  ;;  %12027 = vmatprep.subr.bf16.mxu1 %v18151_v1  ;;  %v14115_v4 = vld [vmem:[%s18144_s1 + $0x18] sm:$0xff]   ;;  %v14116_v5 = vld [vmem:[%s18144_s1 + $0x20] sm:$0xff]   ;;  %v14117_v6 = vld [vmem:[%s18144_s1 + $0x28] sm:$0xff]   ;;  %s270_s22 = sand.u32 1, %s14642_s25   ;;  %s11204_s8 = sshll.u32 %s14716_s28, 4 }
  0x17   : > { %11960 = vmatpush3.bf16.msra.mxu0 %v14112_v0  ;;  %12028 = vmatpush3.bf16.msra.mxu1 %v14112_v0  ;;  %p273_p10 = scmp.lt.s32.totalorder %s272_s17, 199  ;;  %v14118_v7 = vld [vmem:[%s18144_s1 + $0x30] sm:$0xff]   ;;  %v14119_v8 = vld [vmem:[%s18144_s1 + $0x38] sm:$0xff]   ;;  %v14172_v39 = vld [vmem:[%s18145_s2 + $0x40] sm:$0xff]   ;;  %s271_s9 = scalar_lea.vmem [#allocation5], %s270_s22 }
  0x18   : > { %11961 = vmatprep.subr.bf16.mxu0 %v18151_v1  ;;  %12029 = vmatprep.subr.bf16.mxu1 %v18151_v1  ;;  %v14173_v44 = vld [vmem:[%s18145_s2 + $0x48] sm:$0xff]   ;;  %v14174_v47 = vld [vmem:[%s18145_s2 + $0x50] sm:$0xff]   ;;  %v14175_v52 = vld [vmem:[%s18145_s2 + $0x58] sm:$0xff]   ;;  %s9898_s13 = sshll.u32 %s271_s9, 4  ;;  %s18101_s16 = scalar_lea.hbm %s18150_s7, %s11204_s8  ;;  %s18103_s13 = int_to_ptr.vmem [resolvable:$true] %s9898_s13 }
  0x19   : > { %11975 = vmatprep.mubr.msk.bf16.mxu0 %vm14653_vm0, %v18151_v1  ;;  %12043 = vmatprep.mubr.msk.bf16.mxu1 %vm14653_vm0, %v18151_v1  ;;  %s18200_s17 = smov (!%p273_p10, %s272_s17), 199  ;;  %v14176_v57 = vld [vmem:[%s18145_s2 + $0x60] sm:$0xff]   ;;  %v14179_v61 = vld [vmem:[%s18145_s2 + $0x8] sm:$0xff]   ;;  %v14180_v63 = vld [vmem:[%s18145_s2 + $0x10] sm:$0xff]   ;;  %s14588_s28 = scalar_lea.vmem %s18103_s13, 16 }
  0x1a   : > { %s9957_s20 = sshll.u32 %s18200_s17, 2  ;;  %v14178_v58 = vld [vmem:[%s18145_s2] sm:$0xff]   ;;  %v14177_v62 = vld [vmem:[%s18145_s2 + $0x68] sm:$0xff]   ;;  %s9886_s17 = scalar_lea.sflag [#allocation6], %s270_s22 }
  0x1b   : > { %11962 = vmatpush3.bf16.msra.mxu0 %v14113_v2  ;;  %12030 = vmatpush3.bf16.msra.mxu1 %v14113_v2  ;;  %s14766_s23 = scalar_lea.vmem %s18143_s0, %s9957_s20  ;;  %p14589_p11 = scmp.ne.s32.totalorder %s18103_s13, %s14588_s28 }
  0x1c   : > { %11963 = vmatprep.subr.bf16.mxu0 %v18151_v1  ;;  %12031 = vmatprep.subr.bf16.mxu1 %v18151_v1  ;;  %v14120_v9 = vld [vmem:[%s14766_s23] sm:$0xff]   ;;  %v14122_v11 = vld [vmem:[%s14766_s23 + $0x8] sm:$0xff]   ;;  %v14124_v13 = vld [vmem:[%s14766_s23 + $0x10] sm:$0xff]   ;;  %s14654_s18 = smov [#allocation5]  }
  0x1d   : > { %v14121_v10 = vld [vmem:[%s14766_s23 + $0x64] sm:$0xff]   ;;  %v14123_v12 = vld [vmem:[%s14766_s23 + $0x6c] sm:$0xff]   ;;  %v14125_v14 = vld [vmem:[%s14766_s23 + $0x74] sm:$0xff]   ;;  %p14590_p12 = pnand %p14589_p11, %p14733_p5  ;;  %s14592_s19 = sshll.u32 %s14654_s18, 4  ;;  %s14593_s19 = int_to_ptr.vmem [resolvable:$false] %s14592_s19 }
  0x1e   : > { %v14126_v15 = vld [vmem:[%s14766_s23 + $0x18] sm:$0xff]   ;;  %v14128_v17 = vld [vmem:[%s14766_s23 + $0x20] sm:$0xff]   ;;  %v14130_v19 = vld [vmem:[%s14766_s23 + $0x28] sm:$0xff]   ;;  %s14594_s20 = scalar_lea.vmem %s14593_s19, 32  ;;  %p14595_p0 = scmp.lt.s32.totalorder %s18103_s13, %s14593_s19 }
  0x1f   : > { %11964 = vmatpush3.bf16.msra.mxu0 %v14114_v3  ;;  %12032 = vmatpush3.bf16.msra.mxu1 %v14114_v3  ;;  %v14127_v16 = vld [vmem:[%s14766_s23 + $0x7c] sm:$0xff]   ;;  %v14129_v18 = vld [vmem:[%s14766_s23 + $0x84] sm:$0xff]   ;;  %v14131_v20 = vld [vmem:[%s14766_s23 + $0x8c] sm:$0xff]   ;;  %p14591_p13 = pneg %p14590_p12  ;;  %p14596_p1 = scmp.lt.s32.totalorder %s14594_s20, %s14588_s28 }
  0x20   : > { %11965 = vmatprep.subr.bf16.mxu0 %v18151_v1  ;;  %12033 = vmatprep.subr.bf16.mxu1 %v18151_v1  ;;  %v14132_v21 = vld [vmem:[%s14766_s23 + $0x30] sm:$0xff]   ;;  %v14134_v23 = vld [vmem:[%s14766_s23 + $0x38] sm:$0xff]   ;;  %v14136_v25 = vld [vmem:[%s14766_s23 + $0x40] sm:$0xff]  }
  0x21   : > { %v14133_v22 = vld [vmem:[%s14766_s23 + $0x94] sm:$0xff]   ;;  %v14135_v24 = vld [vmem:[%s14766_s23 + $0x9c] sm:$0xff]   ;;  %v14137_v26 = vld [vmem:[%s14766_s23 + $0xa4] sm:$0xff]   ;;  %p14597_p2 = por %p14596_p1, %p14595_p0 }
  0x22   : > { %v14138_v27 = vld [vmem:[%s14766_s23 + $0x48] sm:$0xff]   ;;  %v14140_v29 = vld [vmem:[%s14766_s23 + $0x50] sm:$0xff]   ;;  %v14142_v31 = vld [vmem:[%s14766_s23 + $0x58] sm:$0xff]  }
  0x23   : > { %11966 = vmatpush3.bf16.msra.mxu0 %v14115_v4  ;;  %12034 = vmatpush3.bf16.msra.mxu1 %v14115_v4  ;;  %v14139_v28 = vld [vmem:[%s14766_s23 + $0xac] sm:$0xff]   ;;  %v14141_v30 = vld [vmem:[%s14766_s23 + $0xb4] sm:$0xff]   ;;  %v14143_v32 = vld [vmem:[%s14766_s23 + $0xbc] sm:$0xff]   ;;  %p14598_p3 = pnand %p14597_p2, %p14591_p13 }
  0x24   : > { %11967 = vmatprep.subr.bf16.mxu0 %v18151_v1  ;;  %12035 = vmatprep.subr.bf16.mxu1 %v18151_v1  ;;  %v14144_v33 = vld [vmem:[%s14766_s23 + $0x60] ss:$0 sps:$4 sm:$0xff]   ;;  %v14145_v34 = vld [vmem:[%s14766_s23 + $0xc4] ss:$0 sps:$4 sm:$0xff]   ;;  %v14146_v35 = vld [vmem:[%s14766_s23 + $0xc8] sm:$0xff]  }
  0x25   : > { %v14147_v36 = vld [vmem:[%s14766_s23 + $0x12c] sm:$0xff]   ;;  %v14149_v38 = vld [vmem:[%s14766_s23 + $0x134] sm:$0xff]   ;;  %v14151_v41 = vld [vmem:[%s14766_s23 + $0x13c] sm:$0xff]  }
  0x26   : > { %v14148_v37 = vld [vmem:[%s14766_s23 + $0xd0] sm:$0xff]   ;;  %v14150_v40 = vld [vmem:[%s14766_s23 + $0xd8] sm:$0xff]   ;;  %v14152_v42 = vld [vmem:[%s14766_s23 + $0xe0] sm:$0xff]  }
  0x27   : > { %11968 = vmatpush3.bf16.msra.mxu0 %v14116_v5  ;;  %12036 = vmatpush3.bf16.msra.mxu1 %v14116_v5  ;;  %v14153_v43 = vld [vmem:[%s14766_s23 + $0x144] sm:$0xff]   ;;  %v14155_v46 = vld [vmem:[%s14766_s23 + $0x14c] sm:$0xff]   ;;  %v14157_v49 = vld [vmem:[%s14766_s23 + $0x154] sm:$0xff]  }
  0x28   : > { %11969 = vmatprep.subr.bf16.mxu0 %v18151_v1  ;;  %12037 = vmatprep.subr.bf16.mxu1 %v18151_v1  ;;  %v14154_v45 = vld [vmem:[%s14766_s23 + $0xe8] sm:$0xff]   ;;  %v14156_v48 = vld [vmem:[%s14766_s23 + $0xf0] sm:$0xff]   ;;  %v14158_v50 = vld [vmem:[%s14766_s23 + $0xf8] sm:$0xff]  }
  0x29   : > { %v14159_v51 = vld [vmem:[%s14766_s23 + $0x15c] sm:$0xff]   ;;  %v14161_v54 = vld [vmem:[%s14766_s23 + $0x164] sm:$0xff]   ;;  %v14163_v56 = vld [vmem:[%s14766_s23 + $0x16c] sm:$0xff]  }
  0x2a   : > { %v14160_v53 = vld [vmem:[%s14766_s23 + $0x100] sm:$0xff]   ;;  %v14162_v55 = vld [vmem:[%s14766_s23 + $0x108] sm:$0xff]   ;;  %v14164_v59 = vld [vmem:[%s14766_s23 + $0x110] sm:$0xff]  }
  0x2b   : > { %11970 = vmatpush3.bf16.msra.mxu0 %v14117_v6  ;;  %12038 = vmatpush3.bf16.msra.mxu1 %v14117_v6  ;;  %v14165_v60 = vld [vmem:[%s14766_s23 + $0x174] sm:$0xff]  }
  0x2c   : > { %11971 = vmatprep.subr.bf16.mxu0 %v18151_v1  ;;  %12039 = vmatprep.subr.bf16.mxu1 %v18151_v1 }
  0x2f   : > { %11972 = vmatpush3.bf16.msra.mxu0 %v14118_v7  ;;  %12040 = vmatpush3.bf16.msra.mxu1 %v14118_v7 }
  0x30   : > { %11973 = vmatprep.subr.bf16.mxu0 %v18151_v1  ;;  %12041 = vmatprep.subr.bf16.mxu1 %v18151_v1 }
  0x33   : > { %11974 = vmatpush3.bf16.msra.mxu0 %v14119_v8  ;;  %12042 = vmatpush3.bf16.msra.mxu1 %v14119_v8 }
  0x34   : > { %12095 = vmatprep.subr.bf16.mxu0 %v18151_v1  ;;  %12163 = vmatprep.subr.bf16.mxu1 %v18151_v1 }
  0x36   : > { %11976 = vmatmul.mubr.bf16.vlgmr.msra.gmra.mrb[0].mxu0 %v14120_v9  ;;  %12044 = vmatmul.mubr.bf16.vlgmr.msra.gmra.mrb[0].mxu1 %v14121_v10  ;;  %v14170_v9 = vld [vmem:[%s14766_s23 + $0x128] ss:$0 sps:$4 sm:$0xff]   ;;  %v14171_v10 = vld [vmem:[%s14766_s23 + $0x18c] ss:$0 sps:$4 sm:$0xff]  }
  0x37   : > { %12096 = vmatpush3.bf16.msra.mxu0 %v14112_v0  ;;  %12164 = vmatpush3.bf16.msra.mxu1 %v14112_v0  ;;  %v14166_v0 = vld [vmem:[%s14766_s23 + $0x118] sm:$0xff]  }
  0x38   : > { %11979 = vmatprep.mubr.msk.bf16.mxu0 %vm14653_vm0, %v18151_v1  ;;  %12047 = vmatprep.mubr.msk.bf16.mxu1 %vm14653_vm0, %v18151_v1 }
  0x39   : > { %12097 = vmatprep.subr.bf16.mxu0 %v18151_v1  ;;  %12165 = vmatprep.subr.bf16.mxu1 %v18151_v1 }
  0x3b   : > { %12098 = vmatpush3.bf16.msra.mxu0 %v14113_v2  ;;  %12166 = vmatpush3.bf16.msra.mxu1 %v14113_v2  ;;  %v14167_v2 = vld [vmem:[%s14766_s23 + $0x17c] sm:$0xff]  }
  0x3c   : > { %12099 = vmatprep.subr.bf16.mxu0 %v18151_v1  ;;  %12167 = vmatprep.subr.bf16.mxu1 %v18151_v1 }
  0x3e   : > { %11980 = vmatmul.mubr.bf16.gmra.mrb[4].mxu0 %v14122_v11  ;;  %12048 = vmatmul.mubr.bf16.gmra.mrb[4].mxu1 %v14123_v12  ;;  %v14187_v11 = vld [vmem:[%s18145_s2 + $0x38] sm:$0xff]   ;;  %v14181_v12 = vld [vmem:[%s18145_s2 + $0x70] sm:$0xff]  }
  0x3f   : > { %11983 = vmatprep.mubr.msk.bf16.mxu0 %vm14653_vm0, %v18151_v1  ;;  %12051 = vmatprep.mubr.msk.bf16.mxu1 %vm14653_vm0, %v18151_v1 }
  0x40   : > { %12100 = vmatpush3.bf16.msra.mxu0 %v14114_v3  ;;  %12168 = vmatpush3.bf16.msra.mxu1 %v14114_v3  ;;  %v14182_v3 = vld [vmem:[%s18145_s2 + $0x18] sm:$0xff]  }
  0x41   : > { %12101 = vmatprep.subr.bf16.mxu0 %v18151_v1  ;;  %12169 = vmatprep.subr.bf16.mxu1 %v18151_v1 }
  0x44   : > { %12102 = vmatpush3.bf16.msra.mxu0 %v14115_v4  ;;  %12170 = vmatpush3.bf16.msra.mxu1 %v14115_v4  ;;  %v14183_v4 = vld [vmem:[%s18145_s2 + $0x20] sm:$0xff]  }
  0x45   : > { %12103 = vmatprep.subr.bf16.mxu0 %v18151_v1  ;;  %12171 = vmatprep.subr.bf16.mxu1 %v18151_v1 }
  0x46   : > { %11984 = vmatmul.mubr.bf16.gmra.mrb[8].mxu0 %v14124_v13  ;;  %12052 = vmatmul.mubr.bf16.gmra.mrb[8].mxu1 %v14125_v14  ;;  %v14186_v13 = vld [vmem:[%s18145_s2 + $0x78] sm:$0xff]  }
  0x47   : > { %11987 = vmatprep.mubr.msk.bf16.mxu0 %vm14653_vm0, %v18151_v1  ;;  %12055 = vmatprep.mubr.msk.bf16.mxu1 %vm14653_vm0, %v18151_v1 }
  0x48   : > { %12104 = vmatpush3.bf16.msra.mxu0 %v14116_v5  ;;  %12172 = vmatpush3.bf16.msra.mxu1 %v14116_v5  ;;  %v14168_v5 = vld [vmem:[%s14766_s23 + $0x120] sm:$0xff]  }
  0x49   : > { %12105 = vmatprep.subr.bf16.mxu0 %v18151_v1  ;;  %12173 = vmatprep.subr.bf16.mxu1 %v18151_v1 }
  0x4c   : > { %12106 = vmatpush3.bf16.msra.mxu0 %v14117_v6  ;;  %12174 = vmatpush3.bf16.msra.mxu1 %v14117_v6  ;;  %v14169_v6 = vld [vmem:[%s14766_s23 + $0x184] sm:$0xff]  }
  0x4d   : > { %12107 = vmatprep.subr.bf16.mxu0 %v18151_v1  ;;  %12175 = vmatprep.subr.bf16.mxu1 %v18151_v1 }
  0x4e   : > { %11988 = vmatmul.mubr.bf16.gmra.mrb[12].mxu0 %v14126_v15  ;;  %12056 = vmatmul.mubr.bf16.gmra.mrb[12].mxu1 %v14127_v16 }
  0x4f   : > { %11991 = vmatprep.mubr.msk.bf16.mxu0 %vm14653_vm0, %v18151_v1  ;;  %12059 = vmatprep.mubr.msk.bf16.mxu1 %vm14653_vm0, %v18151_v1 }
  0x50   : > { %12108 = vmatpush3.bf16.msra.mxu0 %v14118_v7  ;;  %12176 = vmatpush3.bf16.msra.mxu1 %v14118_v7  ;;  %v14184_v7 = vld [vmem:[%s18145_s2 + $0x28] sm:$0xff]  }
  0x51   : > { %12109 = vmatprep.subr.bf16.mxu0 %v18151_v1  ;;  %12177 = vmatprep.subr.bf16.mxu1 %v18151_v1 }
  0x54   : > { %12110 = vmatpush3.bf16.msra.mxu0 %v14119_v8  ;;  %12178 = vmatpush3.bf16.msra.mxu1 %v14119_v8  ;;  %v14185_v8 = vld [vmem:[%s18145_s2 + $0x30] sm:$0xff]  }
  0x55   : > { %12231 = vmatprep.subr.bf16.mxu0 %v18151_v1  ;;  %12283 = vmatprep.subr.bf16.mxu1 %v18151_v1 }
  0x56   : > { %11992 = vmatmul.mubr.bf16.gmra.mrb[16].mxu0 %v14128_v17  ;;  %12060 = vmatmul.mubr.bf16.gmra.mrb[16].mxu1 %v14129_v18 }
  0x57   : > { %11995 = vmatprep.mubr.msk.bf16.mxu0 %vm14653_vm0, %v18151_v1  ;;  %12063 = vmatprep.mubr.msk.bf16.mxu1 %vm14653_vm0, %v18151_v1 }
  0x5e   : > { %11996 = vmatmul.mubr.bf16.gmra.mrb[20].mxu0 %v14130_v19  ;;  %12064 = vmatmul.mubr.bf16.gmra.mrb[20].mxu1 %v14131_v20 }
  0x5f   : > { %11999 = vmatprep.mubr.msk.bf16.mxu0 %vm14653_vm0, %v18151_v1  ;;  %12067 = vmatprep.mubr.msk.bf16.mxu1 %vm14653_vm0, %v18151_v1 }
  0x66   : > { %12000 = vmatmul.mubr.bf16.gmra.mrb[24].mxu0 %v14132_v21  ;;  %12068 = vmatmul.mubr.bf16.gmra.mrb[24].mxu1 %v14133_v22 }
  0x67   : > { %12003 = vmatprep.mubr.msk.bf16.mxu0 %vm14653_vm0, %v18151_v1  ;;  %12071 = vmatprep.mubr.msk.bf16.mxu1 %vm14653_vm0, %v18151_v1 }
  0x6e   : > { %12004 = vmatmul.mubr.bf16.gmra.mrb[28].mxu0 %v14134_v23  ;;  %12072 = vmatmul.mubr.bf16.gmra.mrb[28].mxu1 %v14135_v24 }
  0x6f   : > { %12007 = vmatprep.mubr.msk.bf16.mxu0 %vm14653_vm0, %v18151_v1  ;;  %12075 = vmatprep.mubr.msk.bf16.mxu1 %vm14653_vm0, %v18151_v1 }
  0x76   : > { %12008 = vmatmul.mubr.bf16.gmra.mrb[32].mxu0 %v14136_v25  ;;  %12076 = vmatmul.mubr.bf16.gmra.mrb[32].mxu1 %v14137_v26 }
  0x77   : > { %12011 = vmatprep.mubr.msk.bf16.mxu0 %vm14653_vm0, %v18151_v1  ;;  %12079 = vmatprep.mubr.msk.bf16.mxu1 %vm14653_vm0, %v18151_v1 }
  0x7e   : > { %12012 = vmatmul.mubr.bf16.gmra.mrb[36].mxu0 %v14138_v27  ;;  %12080 = vmatmul.mubr.bf16.gmra.mrb[36].mxu1 %v14139_v28 }
  0x7f   : > { %12015 = vmatprep.mubr.msk.bf16.mxu0 %vm14653_vm0, %v18151_v1  ;;  %12083 = vmatprep.mubr.msk.bf16.mxu1 %vm14653_vm0, %v18151_v1 }
  0x86   : > { %12016 = vmatmul.mubr.bf16.gmra.mrb[40].mxu0 %v14140_v29  ;;  %12084 = vmatmul.mubr.bf16.gmra.mrb[40].mxu1 %v14141_v30 }
  0x87   : > { %12019 = vmatprep.mubr.msk.bf16.mxu0 %vm14653_vm0, %v18151_v1  ;;  %12087 = vmatprep.mubr.msk.bf16.mxu1 %vm14653_vm0, %v18151_v1 }
  0x8e   : > { %12020 = vmatmul.mubr.bf16.gmra.mrb[44].mxu0 %v14142_v31  ;;  %12088 = vmatmul.mubr.bf16.gmra.mrb[44].mxu1 %v14143_v32 }
  0x8f   : > { %12023 = vmatprep.mubr.msk.bf16.mxu0 %vm14653_vm0, %v18151_v1  ;;  %12091 = vmatprep.mubr.msk.bf16.mxu1 %vm14653_vm0, %v18151_v1 }
  0x96   : > { %12024 = vmatmul.mubr.bf16.gmra.mrb[48].mxu0 %v14144_v33  ;;  %12092 = vmatmul.mubr.bf16.gmra.mrb[48].mxu1 %v14145_v34 }
  0x97   : > { %12111 = vmatprep.mubr.msk.bf16.mxu0 %vm14653_vm0, %v18151_v1  ;;  %12179 = vmatprep.mubr.msk.bf16.mxu1 %vm14653_vm0, %v18151_v1 }
  0x9e   : > { %12112 = vmatmul.mubr.bf16.vlgmr.msra.gmra.mrb[52].mxu0 %v14146_v35  ;;  %12180 = vmatmul.mubr.bf16.vlgmr.msra.gmra.mrb[52].mxu1 %v14147_v36 }
  0x9f   : > { %12115 = vmatprep.mubr.msk.bf16.mxu0 %vm14653_vm0, %v18151_v1  ;;  %12183 = vmatprep.mubr.msk.bf16.mxu1 %vm14653_vm0, %v18151_v1 }
  0xa0   : > { %12232 = vmatpush3.bf16.msra.mxu0 %v14172_v39  ;;  %12284 = vmatpush3.bf16.msra.mxu1 %v14178_v58 }
  0xa1   : > { %12233 = vmatprep.subr.bf16.mxu0 %v18151_v1  ;;  %12285 = vmatprep.subr.bf16.mxu1 %v18151_v1 }
  0xa4   : > { %12234 = vmatpush3.bf16.msra.mxu0 %v14173_v44  ;;  %12286 = vmatpush3.bf16.msra.mxu1 %v14179_v61 }
  0xa5   : > { %12235 = vmatprep.subr.bf16.mxu0 %v18151_v1  ;;  %12287 = vmatprep.subr.bf16.mxu1 %v18151_v1 }
  0xa6   : > { %12116 = vmatmul.mubr.bf16.gmra.mrb[56].mxu0 %v14148_v37  ;;  %12184 = vmatmul.mubr.bf16.gmra.mrb[56].mxu1 %v14149_v38 }
  0xa7   : > { %12119 = vmatprep.mubr.msk.bf16.mxu0 %vm14653_vm0, %v18151_v1  ;;  %12187 = vmatprep.mubr.msk.bf16.mxu1 %vm14653_vm0, %v18151_v1 }
  0xa8   : > { %12236 = vmatpush3.bf16.msra.mxu0 %v14174_v47  ;;  %12288 = vmatpush3.bf16.msra.mxu1 %v14180_v63 }
  0xa9   : > { %12237 = vmatprep.subr.bf16.mxu0 %v18151_v1  ;;  %12289 = vmatprep.subr.bf16.mxu1 %v18151_v1 }
  0xac   : > { %12238 = vmatpush3.bf16.msra.mxu0 %v14175_v52  ;;  %12290 = vmatpush3.bf16.msra.mxu1 %v14182_v3 }
  0xad   : > { %12239 = vmatprep.subr.bf16.mxu0 %v18151_v1  ;;  %12291 = vmatprep.subr.bf16.mxu1 %v18151_v1 }
  0xae   : > { %12120 = vmatmul.mubr.bf16.gmra.mrb[60].mxu0 %v14150_v40  ;;  %12188 = vmatmul.mubr.bf16.gmra.mrb[60].mxu1 %v14151_v41 }
  0xaf   : > { %12123 = vmatprep.mubr.msk.bf16.mxu0 %vm14653_vm0, %v18151_v1  ;;  %12191 = vmatprep.mubr.msk.bf16.mxu1 %vm14653_vm0, %v18151_v1 }
  0xb0   : > { %12240 = vmatpush3.bf16.msra.mxu0 %v14176_v57  ;;  %12292 = vmatpush3.bf16.msra.mxu1 %v14183_v4 }
  0xb1   : > { %12241 = vmatprep.subr.bf16.mxu0 %v18151_v1  ;;  %12293 = vmatprep.subr.bf16.mxu1 %v18151_v1 }
  0xb4   : > { %12242 = vmatpush3.bf16.msra.mxu0 %v14177_v62  ;;  %12294 = vmatpush3.bf16.msra.mxu1 %v14184_v7 }
  0xb5   : > { %12243 = vmatprep.subr.bf16.mxu0 %v18151_v1  ;;  %12295 = vmatprep.subr.bf16.mxu1 %v18151_v1 }
  0xb6   : > { %12124 = vmatmul.mubr.bf16.gmra.mrb[64].mxu0 %v14152_v42  ;;  %12192 = vmatmul.mubr.bf16.gmra.mrb[64].mxu1 %v14153_v43 }
  0xb7   : > { %12127 = vmatprep.mubr.msk.bf16.mxu0 %vm14653_vm0, %v18151_v1  ;;  %12195 = vmatprep.mubr.msk.bf16.mxu1 %vm14653_vm0, %v18151_v1 }
  0xb8   : > { %12296 = vmatpush3.bf16.msra.mxu1 %v14185_v8  ;;  %12244 = vmatpush3.bf16.msra.mxu0 %v14181_v12 }
  0xb9   : > { %12297 = vmatprep.subr.bf16.mxu1 %v18151_v1  ;;  %12245 = vmatprep.subr.bf16.mxu0 %v18151_v1 }
  0xbc   : > { %12298 = vmatpush3.bf16.msra.mxu1 %v14187_v11  ;;  %12246 = vmatpush3.bf16.msra.mxu0 %v14186_v13 }
  0xbd   : > { %12387 = vmatprep.subr.bf16.mxu1 %v18151_v1  ;;  %12335 = vmatprep.subr.bf16.mxu0 %v18151_v1 }
  0xbe   : > { %12128 = vmatmul.mubr.bf16.gmra.mrb[68].mxu0 %v14154_v45  ;;  %12196 = vmatmul.mubr.bf16.gmra.mrb[68].mxu1 %v14155_v46 }
  0xbf   : > { %12131 = vmatprep.mubr.msk.bf16.mxu0 %vm14653_vm0, %v18151_v1  ;;  %12199 = vmatprep.mubr.msk.bf16.mxu1 %vm14653_vm0, %v18151_v1 }
  0xc6   : > { %12132 = vmatmul.mubr.bf16.gmra.mrb[72].mxu0 %v14156_v48  ;;  %12200 = vmatmul.mubr.bf16.gmra.mrb[72].mxu1 %v14157_v49 }
  0xc7   : > { %12135 = vmatprep.mubr.msk.bf16.mxu0 %vm14653_vm0, %v18151_v1  ;;  %12203 = vmatprep.mubr.msk.bf16.mxu1 %vm14653_vm0, %v18151_v1 }
  0xce   : > { %12136 = vmatmul.mubr.bf16.gmra.mrb[76].mxu0 %v14158_v50  ;;  %12204 = vmatmul.mubr.bf16.gmra.mrb[76].mxu1 %v14159_v51 }
  0xcf   : > { %12139 = vmatprep.mubr.msk.bf16.mxu0 %vm14653_vm0, %v18151_v1  ;;  %12207 = vmatprep.mubr.msk.bf16.mxu1 %vm14653_vm0, %v18151_v1 }
  0xd6   : > { %12140 = vmatmul.mubr.bf16.gmra.mrb[80].mxu0 %v14160_v53  ;;  %12208 = vmatmul.mubr.bf16.gmra.mrb[80].mxu1 %v14161_v54 }
  0xd7   : > { %12143 = vmatprep.mubr.msk.bf16.mxu0 %vm14653_vm0, %v18151_v1  ;;  %12211 = vmatprep.mubr.msk.bf16.mxu1 %vm14653_vm0, %v18151_v1 }
  0xde   : > { %12144 = vmatmul.mubr.bf16.gmra.mrb[84].mxu0 %v14162_v55  ;;  %12212 = vmatmul.mubr.bf16.gmra.mrb[84].mxu1 %v14163_v56 }
  0xdf   : > { %12147 = vmatprep.mubr.msk.bf16.mxu0 %vm14653_vm0, %v18151_v1  ;;  %12215 = vmatprep.mubr.msk.bf16.mxu1 %vm14653_vm0, %v18151_v1 }
  0xe6   : > { %12148 = vmatmul.mubr.bf16.gmra.mrb[88].mxu0 %v14164_v59  ;;  %12216 = vmatmul.mubr.bf16.gmra.mrb[88].mxu1 %v14165_v60 }
  0xe7   : > { %12151 = vmatprep.mubr.msk.bf16.mxu0 %vm14653_vm0, %v18151_v1  ;;  %12219 = vmatprep.mubr.msk.bf16.mxu1 %vm14653_vm0, %v18151_v1 }
  0xee   : > { %12152 = vmatmul.mubr.bf16.gmra.mrb[92].mxu0 %v14166_v0  ;;  %12220 = vmatmul.mubr.bf16.gmra.mrb[92].mxu1 %v14167_v2 }
  0xef   : > { %12155 = vmatprep.mubr.msk.bf16.mxu0 %vm14653_vm0, %v18151_v1  ;;  %12223 = vmatprep.mubr.msk.bf16.mxu1 %vm14653_vm0, %v18151_v1 }
  0xf6   : > { %12156 = vmatmul.mubr.bf16.gmra.mrb[96].mxu0 %v14168_v5  ;;  %12224 = vmatmul.mubr.bf16.gmra.mrb[96].mxu1 %v14169_v6 }
  0xf7   : > { %12159 = vmatprep.mubr.msk.bf16.mxu0 %vm14653_vm0, %v18151_v1  ;;  %12227 = vmatprep.mubr.msk.bf16.mxu1 %vm14653_vm0, %v18151_v1 }
  0xfe   : > { %12160 = vmatmul.mubr.bf16.gmra.mrb[100].mxu0 %v14170_v9  ;;  %12228 = vmatmul.mubr.bf16.gmra.mrb[100].mxu1 %v14171_v10 }
  0xff   : > { %12299 = vmatprep.mubr.msk.bf16.mxu1 %vm14653_vm0, %v18151_v1  ;;  %12247 = vmatprep.mubr.msk.bf16.mxu0 %vm14653_vm0, %v18151_v1 }
 0x109   : > { %v15031_v14 = vpop.f32.mrb[0].mxu0  ;;  %v15033_v15 = vpop.f32.mrb[0].mxu1 }
 0x10a   : > { %v817_v16 = vmax.f32 %v15031_v14, %v15033_v15  ;;  %v11977_v17 = vpop.f32.mrb[1].mxu0  ;;  %v12045_v18 = vpop.f32.mrb[1].mxu1 }
 0x10b   : > { %v15037_v19 = vpop.f32.mrb[2].mxu0  ;;  %v15039_v20 = vpop.f32.mrb[2].mxu1 }
 0x10c   : > { %v11978_v22 = vpop.f32.mrb[3].mxu0  ;;  %v12046_v23 = vpop.f32.mrb[3].mxu1 }
 0x111   : > { %v15043_v24 = vpop.f32.mrb[4].mxu0  ;;  %v15045_v25 = vpop.f32.mrb[4].mxu1 }
 0x112   : > { %v11981_v27 = vpop.f32.mrb[5].mxu0  ;;  %v12049_v28 = vpop.f32.mrb[5].mxu1 }
 0x113   : > { %v15049_v29 = vpop.f32.mrb[6].mxu0  ;;  %v15051_v30 = vpop.f32.mrb[6].mxu1 }
 0x114   : > { %v11982_v32 = vpop.f32.mrb[7].mxu0  ;;  %v12050_v33 = vpop.f32.mrb[7].mxu1 }
 0x119   : > { %v15055_v34 = vpop.f32.mrb[8].mxu0  ;;  %v15057_v35 = vpop.f32.mrb[8].mxu1 }
 0x11a   : > { %v11985_v37 = vpop.f32.mrb[9].mxu0  ;;  %v12053_v38 = vpop.f32.mrb[9].mxu1 }
 0x11b   : > { %v15061_v39 = vpop.f32.mrb[10].mxu0  ;;  %v15063_v40 = vpop.f32.mrb[10].mxu1 }
 0x11c   : > { %v11986_v42 = vpop.f32.mrb[11].mxu0  ;;  %v12054_v43 = vpop.f32.mrb[11].mxu1 }
 0x121   : > { %v15067_v44 = vpop.f32.mrb[12].mxu0  ;;  %v15069_v45 = vpop.f32.mrb[12].mxu1 }
 0x122   : > { %v11989_v47 = vpop.f32.mrb[13].mxu0  ;;  %v12057_v48 = vpop.f32.mrb[13].mxu1 }
 0x123   : > { %v15073_v49 = vpop.f32.mrb[14].mxu0  ;;  %v15075_v50 = vpop.f32.mrb[14].mxu1 }
 0x124   : > { %v11990_v52 = vpop.f32.mrb[15].mxu0  ;;  %v12058_v53 = vpop.f32.mrb[15].mxu1 }
 0x129   : > { %v15079_v54 = vpop.f32.mrb[16].mxu0  ;;  %v15081_v55 = vpop.f32.mrb[16].mxu1 }
 0x12a   : > { %v11993_v57 = vpop.f32.mrb[17].mxu0  ;;  %v12061_v58 = vpop.f32.mrb[17].mxu1 }
 0x12b   : > { %v15085_v59 = vpop.f32.mrb[18].mxu0  ;;  %v15087_v60 = vpop.f32.mrb[18].mxu1 }
 0x12c   : > { %v11994_v62 = vpop.f32.mrb[19].mxu0  ;;  %v12062_v63 = vpop.f32.mrb[19].mxu1 }
 0x131   : > { %v15091_v0 = vpop.f32.mrb[20].mxu0  ;;  %v15093_v2 = vpop.f32.mrb[20].mxu1 }
 0x132   : > { %v11997_v4 = vpop.f32.mrb[21].mxu0  ;;  %v12065_v5 = vpop.f32.mrb[21].mxu1 }
 0x133   : > { %v15097_v6 = vpop.f32.mrb[22].mxu0  ;;  %v15099_v7 = vpop.f32.mrb[22].mxu1 }
 0x134   : > { %v11998_v9 = vpop.f32.mrb[23].mxu0  ;;  %v12066_v10 = vpop.f32.mrb[23].mxu1 }
 0x139   : > { %v15103_v11 = vpop.f32.mrb[24].mxu0  ;;  %v15105_v12 = vpop.f32.mrb[24].mxu1 }
 0x13a   : > { %v12001_v17 = vpop.f32.mrb[25].mxu0  ;;  %v12069_v18 = vpop.f32.mrb[25].mxu1 }
 0x13b   : > { %v15109_v22 = vpop.f32.mrb[26].mxu0  ;;  %v15111_v23 = vpop.f32.mrb[26].mxu1 }
 0x13c   : > { %v12002_v28 = vpop.f32.mrb[27].mxu0  ;;  %v12070_v32 = vpop.f32.mrb[27].mxu1 }
 0x141   : > { %v15115_v33 = vpop.f32.mrb[28].mxu0  ;;  %v15117_v37 = vpop.f32.mrb[28].mxu1 }
 0x142   : > { %v12005_v42 = vpop.f32.mrb[29].mxu0  ;;  %v12073_v43 = vpop.f32.mrb[29].mxu1 }
 0x143   : > { %v15121_v47 = vpop.f32.mrb[30].mxu0  ;;  %v15123_v48 = vpop.f32.mrb[30].mxu1 }
 0x144   : > { %v12006_v53 = vpop.f32.mrb[31].mxu0  ;;  %v12074_v57 = vpop.f32.mrb[31].mxu1 }
 0x149   : > { %v15127_v58 = vpop.f32.mrb[32].mxu0  ;;  %v15129_v62 = vpop.f32.mrb[32].mxu1 }
 0x14a   : > { %v12009_v4 = vpop.f32.mrb[33].mxu0  ;;  %v12077_v5 = vpop.f32.mrb[33].mxu1 }
 0x14b   : > { %v15133_v9 = vpop.f32.mrb[34].mxu0  ;;  %v15135_v10 = vpop.f32.mrb[34].mxu1 }
 0x14c   : > { %v12010_v18 = vpop.f32.mrb[35].mxu0  ;;  %v12078_v28 = vpop.f32.mrb[35].mxu1 }
 0x151   : > { %v15139_v32 = vpop.f32.mrb[36].mxu0  ;;  %v15141_v42 = vpop.f32.mrb[36].mxu1 }
 0x152   : > { %v12013_v53 = vpop.f32.mrb[37].mxu0  ;;  %v12081_v57 = vpop.f32.mrb[37].mxu1 }
 0x153   : > { %v15145_v4 = vpop.f32.mrb[38].mxu0  ;;  %v15147_v5 = vpop.f32.mrb[38].mxu1 }
 0x154   : > { %v12014_v52 = vpop.f32.mrb[39].mxu0  ;;  %v12082_v17 = vpop.f32.mrb[39].mxu1 }
 0x159   : > { %v15151_v18 = vpop.f32.mrb[40].mxu0  ;;  %v15153_v28 = vpop.f32.mrb[40].mxu1 }
 0x15a   : > { %v12017_v27 = vpop.f32.mrb[41].mxu0  ;;  %v12085_v43 = vpop.f32.mrb[41].mxu1 }
 0x15b   : > { %v15157_v53 = vpop.f32.mrb[42].mxu0  ;;  %v15159_v57 = vpop.f32.mrb[42].mxu1 }
 0x15c   : > { %v12018_v8 = vpop.f32.mrb[43].mxu0  ;;  %v12086_v63 = vpop.f32.mrb[43].mxu1 }
 0x161   : > { %v15163_v52 = vpop.f32.mrb[44].mxu0  ;;  %v15165_v17 = vpop.f32.mrb[44].mxu1 }
 0x162   : > { %18160 = vst [vmem:[#allocation8_spill] sm:$0xff] %v15165_v17  ;;  %v12021_v61 = vpop.f32.mrb[45].mxu0  ;;  %v12089_v38 = vpop.f32.mrb[45].mxu1 }
 0x163   : > { %v15169_v27 = vpop.f32.mrb[46].mxu0  ;;  %v15171_v43 = vpop.f32.mrb[46].mxu1 }
 0x164   : > { %18161 = vst [vmem:[#allocation9_spill] sm:$0xff] %v15169_v27  ;;  %18162 = vst [vmem:[#allocation10_spill] sm:$0xff] %v15171_v43  ;;  %v12022_v51 = vpop.f32.mrb[47].mxu0  ;;  %v12090_v13 = vpop.f32.mrb[47].mxu1 }
 0x165   : > { %v15184_v51 = vld [vmem:[%s18149_s6] ss:$0 sm:$0xff] }
 0x169   : > { %v15175_v8 = vpop.f32.mrb[48].mxu0  ;;  %v15177_v63 = vpop.f32.mrb[48].mxu1 }
 0x16a   : > { %18163 = vst [vmem:[#allocation11_spill] sm:$0xff] %v15175_v8  ;;  %18164 = vst [vmem:[#allocation12_spill] sm:$0xff] %v15177_v63  ;;  %v12025_v41 = vpop.f32.mrb[49].mxu0  ;;  %v12093_v3 = vpop.f32.mrb[49].mxu1 }
 0x16b   : > { %v577_v61 = vpop.f32.mrb[50].mxu0  ;;  %v814_v38 = vpop.f32.mrb[50].mxu1 }
 0x16c   : > { %v12026_v36 = vpop.f32.mrb[51].mxu0  ;;  %v12094_v1 = vpop.f32.mrb[51].mxu1 }
 0x16d   : > { %v18165_v36 = vmax.f32 %v15037_v19, %v15039_v20  ;;  %v14192_v19 = vld [vmem:[%s18145_s2 + $0xc0] sm:$0xff]  }
 0x171   : > { %v977_v31 = vpop.f32.mrb[52].mxu0  ;;  %v1239_v26 = vpop.f32.mrb[52].mxu1 }
 0x172   : > { %v1079_v13 = vmax.f32 %v817_v16, %v977_v31  ;;  %v12113_v56 = vpop.f32.mrb[53].mxu0  ;;  %v12181_v21 = vpop.f32.mrb[53].mxu1  ;;  %v18166_v16 = vmax.f32 %v15043_v24, %v15045_v25 }
 0x173   : > { %v980_v46 = vpop.f32.mrb[54].mxu0  ;;  %v1242_v41 = vpop.f32.mrb[54].mxu1 }
 0x174   : > { %v1341_v3 = vmax.f32 %v1079_v13, %v1239_v26  ;;  %v1080_v1 = vmax.f32 %v18165_v36, %v980_v46  ;;  %v12114_v61 = vpop.f32.mrb[55].mxu0  ;;  %v12182_v38 = vpop.f32.mrb[55].mxu1 }
 0x175   : > { %v18169_v61 = vmax.f32 %v15055_v34, %v15057_v35 }
 0x176   : > { %v1371_v63 = vadd.f32 %v15184_v51, %v1341_v3  ;;  %v1342_v8 = vmax.f32 %v1080_v1, %v1242_v41  ;;  %v18168_v3 = vmov 0.0  }
 0x178   : > { %v1396_v43 = vmax.f32 %v1371_v63, 0.0  ;;  %v1372_v27 = vadd.f32 %v15184_v51, %v1342_v8  ;;  %v18167_v8 = vmax.f32 %v15049_v29, %v15051_v30 }
 0x179   : > { %v985_v17 = vpop.f32.mrb[56].mxu0  ;;  %v1247_v14 = vpop.f32.mrb[56].mxu1 }
 0x17a   : > { %1421 = vst [vmem:[#allocation2] sm:$0xff] %v1396_v43  ;;  %v1397_v15 = vmax.f32 %v1372_v27, 0.0  ;;  %v1081_v21 = vmax.f32 %v18166_v16, %v985_v17  ;;  %v12117_v26 = vpop.f32.mrb[57].mxu0  ;;  %v12185_v31 = vpop.f32.mrb[57].mxu1  ;;  %v14194_v17 = vld [vmem:[%s18145_s2 + $0xc8] sm:$0xff]  }
 0x17b   : > { %v988_v20 = vpop.f32.mrb[58].mxu0  ;;  %v1250_v46 = vpop.f32.mrb[58].mxu1  ;;  %v14195_v26 = vld [vmem:[%s18145_s2 + $0xd0] sm:$0xff]  }
 0x17c   : > { %1422 = vst [vmem:[#allocation2 + $0x8] sm:$0xff] %v1397_v15  ;;  %v1343_v56 = vmax.f32 %v1081_v21, %v1247_v14  ;;  %v1082_v63 = vmax.f32 %v18167_v8, %v988_v20  ;;  %v12118_v13 = vpop.f32.mrb[59].mxu0  ;;  %v12186_v27 = vpop.f32.mrb[59].mxu1  ;;  %v1464_v41 = vpack.c.bf16 %v1397_v15, %v1396_v43 }
 0x17e   : > { %v1373_v24 = vadd.f32 %v15184_v51, %v1343_v56  ;;  %v1344_v25 = vmax.f32 %v1082_v63, %v1250_v46  ;;  %12300 = vmatmul.mubr.bf16.vlgmr.msra.gmra.mrb[104].mxu1 %v1464_v41  ;;  %v14197_v63 = vld [vmem:[%s18145_s2 + $0xd8] sm:$0xff]  }
 0x17f   : > { %12303 = vmatprep.mubr.msk.bf16.mxu1 %vm14653_vm0, %v18168_v3  ;;  %12388 = vmatpush3.bf16.msra.mxu1 %v14192_v19  ;;  %v18170_v19 = vmax.f32 %v15061_v39, %v15063_v40 }
 0x180   : > { %v1398_v36 = vmax.f32 %v1373_v24, 0.0  ;;  %v1374_v1 = vadd.f32 %v15184_v51, %v1344_v25  ;;  %12389 = vmatprep.subr.bf16.mxu1 %v18168_v3  ;;  %v14188_v25 = vld [vmem:[%s18145_s2 + $0x80] sm:$0xff]  }
 0x181   : > { %v993_v29 = vpop.f32.mrb[60].mxu0  ;;  %v1255_v30 = vpop.f32.mrb[60].mxu1 }
 0x182   : > { %1423 = vst [vmem:[#allocation2 + $0x10] sm:$0xff] %v1398_v36  ;;  %v1399_v43 = vmax.f32 %v1374_v1, 0.0  ;;  %v1083_v38 = vmax.f32 %v18169_v61, %v993_v29  ;;  %v12121_v14 = vpop.f32.mrb[61].mxu0  ;;  %v12189_v15 = vpop.f32.mrb[61].mxu1 }
 0x183   : > { %v996_v16 = vpop.f32.mrb[62].mxu0  ;;  %v1258_v21 = vpop.f32.mrb[62].mxu1  ;;  %12390 = vmatpush3.bf16.msra.mxu1 %v14194_v17  ;;  %v1489_v41 = vld [vmem:[#allocation2 + $0x1] sm:$0xff] }
 0x184   : > { %1424 = vst [vmem:[#allocation2 + $0x18] sm:$0xff] %v1399_v43  ;;  %v1345_v31 = vmax.f32 %v1083_v38, %v1255_v30  ;;  %v1084_v20 = vmax.f32 %v18170_v19, %v996_v16  ;;  %v12122_v46 = vpop.f32.mrb[63].mxu0  ;;  %v12190_v56 = vpop.f32.mrb[63].mxu1  ;;  %v1465_v8 = vpack.c.bf16 %v1399_v43, %v1398_v36  ;;  %12391 = vmatprep.subr.bf16.mxu1 %v18168_v3  ;;  %v14198_v14 = vld [vmem:[%s18145_s2 + $0xe0] sm:$0xff]  }
 0x185   : > { %v18171_v36 = vmax.f32 %v15067_v44, %v15069_v45 }
 0x186   : > { %v1375_v34 = vadd.f32 %v15184_v51, %v1345_v31  ;;  %v1346_v35 = vmax.f32 %v1084_v20, %v1258_v21  ;;  %12304 = vmatmul.mubr.bf16.gmra.mrb[108].mxu1 %v1465_v8  ;;  %v18172_v21 = vmax.f32 %v15073_v49, %v15075_v50  ;;  %v14189_v31 = vld [vmem:[%s18145_s2 + $0x88] sm:$0xff]  }
 0x187   : > { %12307 = vmatprep.mubr.msk.bf16.mxu1 %vm14653_vm0, %v18168_v3  ;;  %12392 = vmatpush3.bf16.msra.mxu1 %v14195_v26  ;;  %v14200_v49 = vld [vmem:[%s18145_s2 + $0xe8] sm:$0xff]  }
 0x188   : > { %v1400_v13 = vmax.f32 %v1375_v34, 0.0  ;;  %v1376_v39 = vadd.f32 %v15184_v51, %v1346_v35  ;;  %12393 = vmatprep.subr.bf16.mxu1 %v18168_v3  ;;  %v18173_v35 = vmax.f32 %v15079_v54, %v15081_v55  ;;  %v14201_v54 = vld [vmem:[%s18145_s2 + $0xf0] sm:$0xff]   ;;  %v18174_v55 = vmax.f32 %v15085_v59, %v15087_v60  ;;  %v14202_v59 = vld [vmem:[%s18145_s2 + $0xf8] sm:$0xff]  }
 0x189   : > { %v1001_v40 = vpop.f32.mrb[64].mxu0  ;;  %v1263_v27 = vpop.f32.mrb[64].mxu1  ;;  %v1490_v24 = vld [vmem:[#allocation2 + $0x9] sm:$0xff] }
 0x18a   : > { %1425 = vst [vmem:[#allocation2 + $0x20] sm:$0xff] %v1400_v13  ;;  %v1401_v17 = vmax.f32 %v1376_v39, 0.0  ;;  %v1085_v1 = vmax.f32 %v18171_v36, %v1001_v40  ;;  %v12125_v29 = vpop.f32.mrb[65].mxu0  ;;  %v12193_v30 = vpop.f32.mrb[65].mxu1  ;;  %v1507_v43 = vpack.c.bf16 %v1490_v24, %v1489_v41  ;;  %v14190_v41 = vld [vmem:[%s18145_s2 + $0x90] sm:$0xff]  }
 0x18b   : > { %v1004_v61 = vpop.f32.mrb[66].mxu0  ;;  %v1266_v38 = vpop.f32.mrb[66].mxu1  ;;  %12394 = vmatpush3.bf16.msra.mxu1 %v14197_v63  ;;  %v1491_v40 = vld [vmem:[#allocation2 + $0x11] sm:$0xff] }
 0x18c   : > { %1426 = vst [vmem:[#allocation2 + $0x28] sm:$0xff] %v1401_v17  ;;  %v15238_v15 = vpack.c.bf16 %v1401_v17, %v1400_v13  ;;  %v1347_v16 = vmax.f32 %v1085_v1, %v1263_v27  ;;  %v1086_v26 = vmax.f32 %v18172_v21, %v1004_v61  ;;  %v12126_v44 = vpop.f32.mrb[67].mxu0  ;;  %v12194_v45 = vpop.f32.mrb[67].mxu1  ;;  %12248 = vmatmul.mubr.bf16.vlgmr.msra.gmra.mrb[104].mxu0 %v1507_v43 }
 0x18d   : > { %12395 = vmatprep.subr.bf16.mxu1 %v18168_v3  ;;  %12336 = vmatpush3.bf16.msra.mxu0 %v14188_v25 }
 0x18e   : > { %12251 = vmatprep.mubr.msk.bf16.mxu0 %vm14653_vm0, %v18168_v3  ;;  %v1377_v19 = vadd.f32 %v15184_v51, %v1347_v16  ;;  %v1348_v20 = vmax.f32 %v1086_v26, %v1266_v38  ;;  %12337 = vmatprep.subr.bf16.mxu0 %v18168_v3  ;;  %v14191_v38 = vld [vmem:[%s18145_s2 + $0x98] sm:$0xff]  }
 0x18f   : > { %12308 = vmatmul.mubr.bf16.gmra.mrb[112].mxu1 %v15238_v15 }
 0x190   : > { %12311 = vmatprep.mubr.msk.bf16.mxu1 %vm14653_vm0, %v18168_v3  ;;  %12396 = vmatpush3.bf16.msra.mxu1 %v14198_v14  ;;  %v1402_v50 = vmax.f32 %v1377_v19, 0.0  ;;  %v1378_v46 = vadd.f32 %v15184_v51, %v1348_v20 }
 0x191   : > { %12397 = vmatprep.subr.bf16.mxu1 %v18168_v3  ;;  %v1009_v56 = vpop.f32.mrb[68].mxu0  ;;  %v1271_v8 = vpop.f32.mrb[68].mxu1  ;;  %12338 = vmatpush3.bf16.msra.mxu0 %v14189_v31  ;;  %v1492_v27 = vld [vmem:[#allocation2 + $0x19] sm:$0xff]  ;;  %v18175_v31 = vmax.f32 %v15091_v0, %v15093_v2 }
 0x192   : > { %1427 = vst [vmem:[#allocation2 + $0x30] sm:$0xff] %v1402_v50  ;;  %v1403_v34 = vmax.f32 %v1378_v46, 0.0  ;;  %v1087_v63 = vmax.f32 %v18173_v35, %v1009_v56  ;;  %v12129_v13 = vpop.f32.mrb[69].mxu0  ;;  %v12197_v39 = vpop.f32.mrb[69].mxu1  ;;  %12339 = vmatprep.subr.bf16.mxu0 %v18168_v3  ;;  %v1508_v17 = vpack.c.bf16 %v1492_v27, %v1491_v40  ;;  %v14193_v46 = vld [vmem:[%s18145_s2 + $0xa0] sm:$0xff]  }
 0x193   : > { %v1012_v24 = vpop.f32.mrb[70].mxu0  ;;  %v1274_v25 = vpop.f32.mrb[70].mxu1  ;;  %v1493_v44 = vld [vmem:[#allocation2 + $0x21] sm:$0xff] }
 0x194   : > { %12398 = vmatpush3.bf16.msra.mxu1 %v14200_v49  ;;  %1428 = vst [vmem:[#allocation2 + $0x38] sm:$0xff] %v1403_v34  ;;  %v1349_v36 = vmax.f32 %v1087_v63, %v1271_v8  ;;  %v12130_v1 = vpop.f32.mrb[71].mxu0  ;;  %v12198_v29 = vpop.f32.mrb[71].mxu1  ;;  %v1088_v30 = vmax.f32 %v18174_v55, %v1012_v24  ;;  %12252 = vmatmul.mubr.bf16.gmra.mrb[108].mxu0 %v1508_v17 }
 0x195   : > { %12399 = vmatprep.subr.bf16.mxu1 %v18168_v3  ;;  %v1467_v43 = vpack.c.bf16 %v1403_v34, %v1402_v50  ;;  %12255 = vmatprep.mubr.msk.bf16.mxu0 %vm14653_vm0, %v18168_v3  ;;  %v18176_v63 = vmax.f32 %v15097_v6, %v15099_v7  ;;  %v14196_v6 = vld [vmem:[%s18145_s2 + $0xa8] sm:$0xff]   ;;  %v18177_v29 = vmax.f32 %v15103_v11, %v15105_v12 }
 0x196   : > { %v1379_v61 = vadd.f32 %v15184_v51, %v1349_v36  ;;  %12340 = vmatpush3.bf16.msra.mxu0 %v14190_v41  ;;  %v1350_v14 = vmax.f32 %v1088_v30, %v1274_v25 }
 0x197   : > { %12312 = vmatmul.mubr.bf16.gmra.mrb[116].mxu1 %v1467_v43  ;;  %12341 = vmatprep.subr.bf16.mxu0 %v18168_v3 }
 0x198   : > { %v1404_v16 = vmax.f32 %v1379_v61, 0.0  ;;  %12315 = vmatprep.mubr.msk.bf16.mxu1 %vm14653_vm0, %v18168_v3  ;;  %12400 = vmatpush3.bf16.msra.mxu1 %v14201_v54  ;;  %v1380_v60 = vadd.f32 %v15184_v51, %v1350_v14  ;;  %v14199_v61 = vld [vmem:[%s18145_s2 + $0xb0] sm:$0xff]  }
 0x199   : > { %v1017_v21 = vpop.f32.mrb[72].mxu0  ;;  %v1279_v26 = vpop.f32.mrb[72].mxu1  ;;  %v1494_v45 = vld [vmem:[#allocation2 + $0x29] sm:$0xff]  ;;  %12401 = vmatprep.subr.bf16.mxu1 %v18168_v3 }
 0x19a   : > { %1429 = vst [vmem:[#allocation2 + $0x40] sm:$0xff] %v1404_v16  ;;  %v1089_v19 = vmax.f32 %v18175_v31, %v1017_v21  ;;  %v12133_v20 = vpop.f32.mrb[73].mxu0  ;;  %v12201_v49 = vpop.f32.mrb[73].mxu1  ;;  %v1509_v50 = vpack.c.bf16 %v1494_v45, %v1493_v44  ;;  %12342 = vmatpush3.bf16.msra.mxu0 %v14191_v38  ;;  %v1405_v56 = vmax.f32 %v1380_v60, 0.0  ;;  %v14203_v45 = vld [vmem:[%s18145_s2 + $0xb8] sm:$0xff]  }
 0x19b   : > { %v1020_v8 = vpop.f32.mrb[74].mxu0  ;;  %v1282_v34 = vpop.f32.mrb[74].mxu1  ;;  %12343 = vmatprep.subr.bf16.mxu0 %v18168_v3  ;;  %v1495_v17 = vld [vmem:[#allocation2 + $0x31] sm:$0xff] }
 0x19c   : > { %v1351_v35 = vmax.f32 %v1089_v19, %v1279_v26  ;;  %v1090_v13 = vmax.f32 %v18176_v63, %v1020_v8  ;;  %v12134_v0 = vpop.f32.mrb[75].mxu0  ;;  %v12202_v2 = vpop.f32.mrb[75].mxu1  ;;  %12402 = vmatpush3.bf16.msra.mxu1 %v14202_v59  ;;  %1430 = vst [vmem:[#allocation2 + $0x48] sm:$0xff] %v1405_v56  ;;  %12256 = vmatmul.mubr.bf16.gmra.mrb[112].mxu0 %v1509_v50 }
 0x19d   : > { %v1468_v39 = vpack.c.bf16 %v1405_v56, %v1404_v16  ;;  %12491 = vmatprep.subr.bf16.mxu1 %v18168_v3  ;;  %12259 = vmatprep.mubr.msk.bf16.mxu0 %vm14653_vm0, %v18168_v3  ;;  %v18178_v59 = vmax.f32 %v15109_v22, %v15111_v23  ;;  %v18180_v2 = vmax.f32 %v15121_v47, %v15123_v48 }
 0x19e   : > { %v1381_v40 = vadd.f32 %v15184_v51, %v1351_v35  ;;  %v1352_v27 = vmax.f32 %v1090_v13, %v1282_v34  ;;  %12344 = vmatpush3.bf16.msra.mxu0 %v14193_v46  ;;  %v18179_v46 = vmax.f32 %v15115_v33, %v15117_v37 }
 0x19f   : > { %12316 = vmatmul.mubr.bf16.gmra.mrb[120].mxu1 %v1468_v39  ;;  %12345 = vmatprep.subr.bf16.mxu0 %v18168_v3 }
 0x1a0   : > { %v1406_v7 = vmax.f32 %v1381_v40, 0.0  ;;  %v1382_v41 = vadd.f32 %v15184_v51, %v1352_v27  ;;  %12319 = vmatprep.mubr.msk.bf16.mxu1 %vm14653_vm0, %v18168_v3 }
 0x1a1   : > { %v1025_v24 = vpop.f32.mrb[76].mxu0  ;;  %v1287_v25 = vpop.f32.mrb[76].mxu1  ;;  %v1496_v36 = vld [vmem:[#allocation2 + $0x39] sm:$0xff] }
 0x1a2   : > { %1431 = vst [vmem:[#allocation2 + $0x50] sm:$0xff] %v1406_v7  ;;  %v1407_v1 = vmax.f32 %v1382_v41, 0.0  ;;  %v1091_v54 = vmax.f32 %v18177_v29, %v1025_v24  ;;  %v12137_v55 = vpop.f32.mrb[77].mxu0  ;;  %v12205_v30 = vpop.f32.mrb[77].mxu1  ;;  %v1510_v43 = vpack.c.bf16 %v1496_v36, %v1495_v17  ;;  %12346 = vmatpush3.bf16.msra.mxu0 %v14196_v6  ;;  %v18181_v36 = vmax.f32 %v15127_v58, %v15129_v62 }
 0x1a3   : > { %v1028_v38 = vpop.f32.mrb[78].mxu0  ;;  %v1290_v14 = vpop.f32.mrb[78].mxu1  ;;  %12347 = vmatprep.subr.bf16.mxu0 %v18168_v3  ;;  %v1497_v20 = vld [vmem:[#allocation2 + $0x41] sm:$0xff] }
 0x1a4   : > { %1432 = vst [vmem:[#allocation2 + $0x58] sm:$0xff] %v1407_v1  ;;  %v1353_v16 = vmax.f32 %v1091_v54, %v1287_v25  ;;  %v1092_v60 = vmax.f32 %v18178_v59, %v1028_v38  ;;  %v12138_v11 = vpop.f32.mrb[79].mxu0  ;;  %v12206_v12 = vpop.f32.mrb[79].mxu1  ;;  %v1469_v21 = vpack.c.bf16 %v1407_v1, %v1406_v7  ;;  %12260 = vmatmul.mubr.bf16.gmra.mrb[116].mxu0 %v1510_v43 }
 0x1a5   : > { %12263 = vmatprep.mubr.msk.bf16.mxu0 %vm14653_vm0, %v18168_v3  ;;  %v18182_v38 = vmax.f32 %v15133_v9, %v15135_v10 }
 0x1a6   : > { %v1383_v26 = vadd.f32 %v15184_v51, %v1353_v16  ;;  %v1354_v44 = vmax.f32 %v1092_v60, %v1290_v14  ;;  %12348 = vmatpush3.bf16.msra.mxu0 %v14199_v61 }
 0x1a7   : > { %12320 = vmatmul.mubr.bf16.gmra.mrb[124].mxu1 %v1469_v21  ;;  %12349 = vmatprep.subr.bf16.mxu0 %v18168_v3 }
 0x1a8   : > { %v1408_v22 = vmax.f32 %v1383_v26, 0.0  ;;  %v1384_v23 = vadd.f32 %v15184_v51, %v1354_v44  ;;  %12323 = vmatprep.mubr.msk.bf16.mxu1 %vm14653_vm0, %v18168_v3 }
 0x1a9   : > { %v1033_v31 = vpop.f32.mrb[80].mxu0  ;;  %v1295_v19 = vpop.f32.mrb[80].mxu1  ;;  %v1498_v49 = vld [vmem:[#allocation2 + $0x49] sm:$0xff] }
 0x1aa   : > { %1433 = vst [vmem:[#allocation2 + $0x60] sm:$0xff] %v1408_v22  ;;  %v1409_v50 = vmax.f32 %v1384_v23, 0.0  ;;  %v1093_v56 = vmax.f32 %v18179_v46, %v1033_v31  ;;  %v12141_v8 = vpop.f32.mrb[81].mxu0  ;;  %v12209_v34 = vpop.f32.mrb[81].mxu1  ;;  %v1511_v35 = vpack.c.bf16 %v1498_v49, %v1497_v20  ;;  %12350 = vmatpush3.bf16.msra.mxu0 %v14203_v45  ;;  %v18183_v45 = vmax.f32 %v15139_v32, %v15141_v42 }
 0x1ab   : > { %v1036_v63 = vpop.f32.mrb[82].mxu0  ;;  %v1298_v13 = vpop.f32.mrb[82].mxu1  ;;  %12439 = vmatprep.subr.bf16.mxu0 %v18168_v3  ;;  %v1499_v48 = vld [vmem:[#allocation2 + $0x51] sm:$0xff] }
 0x1ac   : > { %1434 = vst [vmem:[#allocation2 + $0x68] sm:$0xff] %v1409_v50  ;;  %v1355_v0 = vmax.f32 %v1093_v56, %v1295_v19  ;;  %v1094_v39 = vmax.f32 %v18180_v2, %v1036_v63  ;;  %v12142_v40 = vpop.f32.mrb[83].mxu0  ;;  %v12210_v27 = vpop.f32.mrb[83].mxu1  ;;  %v1470_v6 = vpack.c.bf16 %v1409_v50, %v1408_v22  ;;  %12264 = vmatmul.mubr.bf16.gmra.mrb[120].mxu0 %v1511_v35 }
 0x1ad   : > { %12267 = vmatprep.mubr.msk.bf16.mxu0 %vm14653_vm0, %v18168_v3  ;;  %v18184_v50 = vmax.f32 %v15145_v4, %v15147_v5  ;;  %v18185_v5 = vmax.f32 %v15151_v18, %v15153_v28 }
 0x1ae   : > { %v1385_v33 = vadd.f32 %v15184_v51, %v1355_v0  ;;  %v1356_v37 = vmax.f32 %v1094_v39, %v1298_v13 }
 0x1af   : > { %12324 = vmatmul.mubr.bf16.gmra.mrb[128].mxu1 %v1470_v6 }
 0x1b0   : > { %v1410_v7 = vmax.f32 %v1385_v33, 0.0  ;;  %v1386_v41 = vadd.f32 %v15184_v51, %v1356_v37  ;;  %12327 = vmatprep.mubr.msk.bf16.mxu1 %vm14653_vm0, %v18168_v3 }
 0x1b1   : > { %v1041_v24 = vpop.f32.mrb[84].mxu0  ;;  %v1303_v47 = vpop.f32.mrb[84].mxu1  ;;  %v1500_v25 = vld [vmem:[#allocation2 + $0x59] sm:$0xff] }
 0x1b2   : > { %1435 = vst [vmem:[#allocation2 + $0x70] sm:$0xff] %v1410_v7  ;;  %v1411_v17 = vmax.f32 %v1386_v41, 0.0  ;;  %v1095_v1 = vmax.f32 %v18181_v36, %v1041_v24  ;;  %v12145_v29 = vpop.f32.mrb[85].mxu0  ;;  %v12213_v54 = vpop.f32.mrb[85].mxu1  ;;  %v1512_v55 = vpack.c.bf16 %v1500_v25, %v1499_v48  ;;  %v18186_v24 = vmax.f32 %v15157_v53, %v15159_v57 }
 0x1b3   : > { %v1044_v30 = vpop.f32.mrb[86].mxu0  ;;  %v1306_v43 = vpop.f32.mrb[86].mxu1  ;;  %v1501_v10 = vld [vmem:[#allocation2 + $0x61] sm:$0xff] }
 0x1b4   : > { %1436 = vst [vmem:[#allocation2 + $0x78] sm:$0xff] %v1411_v17  ;;  %v1357_v61 = vmax.f32 %v1095_v1, %v1303_v47  ;;  %v1096_v14 = vmax.f32 %v18182_v38, %v1044_v30  ;;  %v12146_v16 = vpop.f32.mrb[87].mxu0  ;;  %v12214_v59 = vpop.f32.mrb[87].mxu1  ;;  %v1471_v60 = vpack.c.bf16 %v1411_v17, %v1410_v7  ;;  %12268 = vmatmul.mubr.bf16.gmra.mrb[124].mxu0 %v1512_v55  ;;  %v2055_v30 = vld [vmem:[#allocation2 + $0xb] sm:$0xff] }
 0x1b5   : > { %12271 = vmatprep.mubr.msk.bf16.mxu0 %vm14653_vm0, %v18168_v3 }
 0x1b6   : > { %v1387_v11 = vadd.f32 %v15184_v51, %v1357_v61  ;;  %v1358_v12 = vmax.f32 %v1096_v14, %v1306_v43  ;;  %v18187_v61 = vld [vmem:[#allocation8_spill] sm:$0xff] }
 0x1b7   : > { %12328 = vmatmul.mubr.bf16.gmra.mrb[132].mxu1 %v1471_v60  ;;  %v18188_v38 = vmax.f32 %v15163_v52, %v18187_v61 }
 0x1b8   : > { %v1412_v58 = vmax.f32 %v1387_v11, 0.0  ;;  %v1388_v62 = vadd.f32 %v15184_v51, %v1358_v12  ;;  %12331 = vmatprep.mubr.msk.bf16.mxu1 %vm14653_vm0, %v18168_v3 }
 0x1b9   : > { %v1049_v21 = vpop.f32.mrb[88].mxu0  ;;  %v1311_v9 = vpop.f32.mrb[88].mxu1  ;;  %v1502_v26 = vld [vmem:[#allocation2 + $0x69] sm:$0xff] }
 0x1ba   : > { %1437 = vst [vmem:[#allocation2 + $0x80] sm:$0xff] %v1412_v58  ;;  %v1413_v44 = vmax.f32 %v1388_v62, 0.0  ;;  %v1097_v22 = vmax.f32 %v18183_v45, %v1049_v21  ;;  %v12149_v23 = vpop.f32.mrb[89].mxu0  ;;  %v12217_v31 = vpop.f32.mrb[89].mxu1  ;;  %v1513_v19 = vpack.c.bf16 %v1502_v26, %v1501_v10  ;;  %v14208_v62 = vld [vmem:[%s18145_s2 + $0x140] sm:$0xff]  }
 0x1bb   : > { %v1052_v20 = vpop.f32.mrb[90].mxu0  ;;  %v1314_v49 = vpop.f32.mrb[90].mxu1  ;;  %v1503_v2 = vld [vmem:[#allocation2 + $0x71] sm:$0xff]  ;;  %v18189_v21 = vld [vmem:[#allocation9_spill] sm:$0xff] }
 0x1bc   : > { %1438 = vst [vmem:[#allocation2 + $0x88] sm:$0xff] %v1413_v44  ;;  %v1098_v46 = vmax.f32 %v18184_v50, %v1052_v20  ;;  %v1359_v56 = vmax.f32 %v1097_v22, %v1311_v9  ;;  %v12150_v8 = vpop.f32.mrb[91].mxu0  ;;  %v12218_v34 = vpop.f32.mrb[91].mxu1  ;;  %12272 = vmatmul.mubr.bf16.gmra.mrb[128].mxu0 %v1513_v19  ;;  %v18190_v9 = vld [vmem:[#allocation10_spill] sm:$0xff] }
 0x1bd   : > { %12275 = vmatprep.mubr.msk.bf16.mxu0 %vm14653_vm0, %v18168_v3  ;;  %v18191_v10 = vmax.f32 %v18189_v21, %v18190_v9  ;;  %v14210_v19 = vld [vmem:[%s18145_s2 + $0x148] sm:$0xff]   ;;  %v2057_v8 = vld [vmem:[#allocation2 + $0x1b] sm:$0xff] }
 0x1be   : > { %v1389_v35 = vadd.f32 %v15184_v51, %v1359_v56  ;;  %v1360_v63 = vmax.f32 %v1098_v46, %v1314_v49  ;;  %v1840_v50 = vld [vmem:[#allocation2 + $0xa] sm:$0xff] }
 0x1bf   : > { %v2062_v9 = vld [vmem:[#allocation2 + $0x43] sm:$0xff] }
 0x1c0   : > { %v1414_v32 = vmax.f32 %v1389_v35, 0.0  ;;  %v1390_v42 = vadd.f32 %v15184_v51, %v1360_v63  ;;  %v18192_v35 = vld [vmem:[#allocation11_spill] sm:$0xff]  ;;  %v18193_v63 = vld [vmem:[#allocation12_spill] sm:$0xff] }
 0x1c1   : > { %v1057_v13 = vpop.f32.mrb[92].mxu0  ;;  %v1319_v0 = vpop.f32.mrb[92].mxu1  ;;  %v1504_v39 = vld [vmem:[#allocation2 + $0x79] sm:$0xff] }
 0x1c2   : > { %1439 = vst [vmem:[#allocation2 + $0x90] sm:$0xff] %v1414_v32  ;;  %v1415_v4 = vmax.f32 %v1390_v42, 0.0  ;;  %v1099_v40 = vmax.f32 %v18185_v5, %v1057_v13  ;;  %v12153_v27 = vpop.f32.mrb[93].mxu0  ;;  %v12221_v6 = vpop.f32.mrb[93].mxu1  ;;  %v1514_v33 = vpack.c.bf16 %v1504_v39, %v1503_v2  ;;  %v18194_v32 = vmax.f32 %v18192_v35, %v18193_v63  ;;  %v1839_v13 = vld [vmem:[#allocation2 + $0x2] sm:$0xff]  ;;  %v2056_v5 = vld [vmem:[#allocation2 + $0x13] sm:$0xff] }
 0x1c3   : > { %v1060_v37 = vpop.f32.mrb[94].mxu0  ;;  %v1322_v7 = vpop.f32.mrb[94].mxu1  ;;  %v1463_v41 = vld [vmem:[#allocation2 + $0x88] sm:$0xf]  ;;  %v2069_v35 = vld [vmem:[#allocation2 + $0x7b] sm:$0xff] }
 0x1c4   : > { %1440 = vst [vmem:[#allocation2 + $0x98] sm:$0xff] %v1415_v4  ;;  %v1100_v47 = vmax.f32 %v18186_v24, %v1060_v37  ;;  %v1361_v48 = vmax.f32 %v1099_v40, %v1319_v0  ;;  %v1472_v25 = vpack.c.bf16 %v1463_v41, %v1412_v58  ;;  %v12154_v17 = vpop.f32.mrb[95].mxu0  ;;  %v12222_v36 = vpop.f32.mrb[95].mxu1  ;;  %12276 = vmatmul.mubr.bf16.gmra.mrb[132].mxu0 %v1514_v33  ;;  %v1505_v53 = vld [vmem:[#allocation2 + $0x81] sm:$0xff]  ;;  %v1506_v57 = vld [vmem:[#allocation2 + $0x89] sm:$0xf] }
 0x1c5   : > { %12279 = vmatprep.mubr.msk.bf16.mxu0 %vm14653_vm0, %v18168_v3  ;;  %v1515_v11 = vpack.c.bf16 %v1506_v57, %v1505_v53  ;;  %v2054_v58 = vld [vmem:[#allocation2 + $0x3] sm:$0xff]  ;;  %v1857_v4 = vpack.c.bf16 %v1840_v50, %v1839_v13  ;;  %v2073_v33 = vpack.c.bf16 %v2057_v8, %v2056_v5  ;;  %v14211_v37 = vld [vmem:[%s18145_s2 + $0x150] sm:$0xff]   ;;  %v14207_v57 = vld [vmem:[%s18145_s2 + $0x118] sm:$0xff]  }
 0x1c6   : > { %v1391_v1 = vadd.f32 %v15184_v51, %v1361_v48  ;;  %v1362_v18 = vmax.f32 %v1100_v47, %v1322_v7  ;;  %12332 = vmatmul.mubr.bf16.gmra.mrb[136].mxu1 %v1472_v25  ;;  %v2072_v45 = vpack.c.bf16 %v2055_v30, %v2054_v58  ;;  %v14204_v0 = vld [vmem:[%s18145_s2 + $0x100] sm:$0xff]   ;;  %v14205_v47 = vld [vmem:[%s18145_s2 + $0x108] sm:$0xff]   ;;  %v1841_v36 = vld [vmem:[#allocation2 + $0x12] sm:$0xff] }
 0x1c7   : > { %12403 = vmatprep.mubr.msk.bf16.mxu1 %vm14653_vm0, %v18168_v3  ;;  %v1842_v25 = vld [vmem:[#allocation2 + $0x1a] sm:$0xff]  ;;  %v2059_v17 = vld [vmem:[#allocation2 + $0x2b] sm:$0xff]  ;;  %v1851_v63 = vld [vmem:[#allocation2 + $0x62] sm:$0xff] }
 0x1c8   : > { %v1416_v28 = vmax.f32 %v1391_v1, 0.0  ;;  %v1392_v29 = vadd.f32 %v15184_v51, %v1362_v18  ;;  %v1858_v1 = vpack.c.bf16 %v1842_v25, %v1841_v36  ;;  %v2058_v18 = vld [vmem:[#allocation2 + $0x23] sm:$0xff]  ;;  %v2061_v30 = vld [vmem:[#allocation2 + $0x3b] sm:$0xff]  ;;  %v2063_v58 = vld [vmem:[#allocation2 + $0x4b] sm:$0xff] }
 0x1c9   : > { %v1065_v54 = vpop.f32.mrb[96].mxu0  ;;  %v1327_v55 = vpop.f32.mrb[96].mxu1  ;;  %v14214_v53 = vld [vmem:[%s18145_s2 + $0x160] sm:$0xff]   ;;  %v1849_v50 = vld [vmem:[#allocation2 + $0x52] sm:$0xff] }
 0x1ca   : > { %1441 = vst [vmem:[#allocation2 + $0xa0] sm:$0xff] %v1416_v28  ;;  %v1417_v43 = vmax.f32 %v1392_v29, 0.0  ;;  %v1101_v14 = vmax.f32 %v18188_v38, %v1065_v54  ;;  %v12157_v16 = vpop.f32.mrb[97].mxu0  ;;  %v12225_v59 = vpop.f32.mrb[97].mxu1  ;;  %v14206_v28 = vld [vmem:[%s18145_s2 + $0x110] sm:$0xff]   ;;  %v2074_v29 = vpack.c.bf16 %v2059_v17, %v2058_v18  ;;  %v2487_v25 = vld [vmem:[#allocation2 + $0x26] sm:$0xff] }
 0x1cb   : > { %v1068_v60 = vpop.f32.mrb[98].mxu0  ;;  %v1330_v12 = vpop.f32.mrb[98].mxu1  ;;  %v1844_v54 = vld [vmem:[#allocation2 + $0x2a] sm:$0xff]  ;;  %v2060_v38 = vld [vmem:[#allocation2 + $0x33] sm:$0xff]  ;;  %v14220_v17 = vld [vmem:[%s18145_s2 + $0x180] sm:$0xff]  }
 0x1cc   : > { %1442 = vst [vmem:[#allocation2 + $0xa8] sm:$0xff] %v1417_v43  ;;  %v1102_v26 = vmax.f32 %v18191_v10, %v1068_v60  ;;  %v1363_v44 = vmax.f32 %v1101_v14, %v1327_v55  ;;  %v12158_v22 = vpop.f32.mrb[99].mxu0  ;;  %v12226_v52 = vpop.f32.mrb[99].mxu1  ;;  %12280 = vmatmul.mubr.bf16.gmra.mrb[136].mxu0 %v1515_v11  ;;  %v14216_v55 = vld [vmem:[%s18145_s2 + $0x168] sm:$0xff]   ;;  %v14209_v14 = vld [vmem:[%s18145_s2 + $0x120] sm:$0xff]   ;;  %v2075_v16 = vpack.c.bf16 %v2061_v30, %v2060_v38  ;;  %v14217_v59 = vld [vmem:[%s18145_s2 + $0x170] sm:$0xff]  }
 0x1cd   : > { %12351 = vmatprep.mubr.msk.bf16.mxu0 %vm14653_vm0, %v18168_v3  ;;  %v1843_v43 = vld [vmem:[#allocation2 + $0x22] sm:$0xff]  ;;  %v1846_v11 = vld [vmem:[#allocation2 + $0x3a] sm:$0xff]  ;;  %v14215_v10 = vld [vmem:[%s18145_s2 + $0x130] sm:$0xff]  }
 0x1ce   : > { %v1393_v23 = vadd.f32 %v15184_v51, %v1363_v44  ;;  %v1364_v31 = vmax.f32 %v1102_v26, %v1330_v12  ;;  %12404 = vmatmul.mubr.bf16.vlgmr.msra.gmra.mrb[140].mxu1 %v2072_v45  ;;  %v1859_v61 = vpack.c.bf16 %v1844_v54, %v1843_v43  ;;  %v14212_v60 = vld [vmem:[%s18145_s2 + $0x128] sm:$0xff]   ;;  %v14218_v12 = vld [vmem:[%s18145_s2 + $0x178] sm:$0xff]   ;;  %v2076_v26 = vpack.c.bf16 %v2063_v58, %v2062_v9 }
 0x1cf   : > { %12407 = vmatprep.mubr.msk.bf16.mxu1 %vm14653_vm0, %v18168_v3  ;;  %12492 = vmatpush3.bf16.msra.mxu1 %v14208_v62  ;;  %v1845_v62 = vld [vmem:[#allocation2 + $0x32] sm:$0xff]  ;;  %v1848_v45 = vld [vmem:[#allocation2 + $0x4a] sm:$0xff]  ;;  %v2065_v22 = vld [vmem:[#allocation2 + $0x5b] sm:$0xff] }
 0x1d0   : > { %v1418_v20 = vmax.f32 %v1393_v23, 0.0  ;;  %v1394_v49 = vadd.f32 %v15184_v51, %v1364_v31  ;;  %12493 = vmatprep.subr.bf16.mxu1 %v18168_v3  ;;  %v1860_v21 = vpack.c.bf16 %v1846_v11, %v1845_v62  ;;  %v14219_v44 = vld [vmem:[%s18145_s2 + $0x138] sm:$0xff]   ;;  %v1847_v52 = vld [vmem:[#allocation2 + $0x42] sm:$0xff]  ;;  %v2488_v43 = vld [vmem:[#allocation2 + $0x2e] sm:$0xff] }
 0x1d1   : > { %v1073_v46 = vpop.f32.mrb[100].mxu0  ;;  %v1335_v56 = vpop.f32.mrb[100].mxu1  ;;  %v1861_v23 = vpack.c.bf16 %v1848_v45, %v1847_v52  ;;  %v2064_v31 = vld [vmem:[#allocation2 + $0x53] sm:$0xff]  ;;  %v2491_v11 = vld [vmem:[#allocation2 + $0x46] sm:$0xff]  ;;  %v2490_v62 = vld [vmem:[#allocation2 + $0x3e] sm:$0xff] }
 0x1d2   : > { %1443 = vst [vmem:[#allocation2 + $0xb0] sm:$0xff] %v1418_v20  ;;  %v1419_v34 = vmax.f32 %v1394_v49, 0.0  ;;  %v1103_v42 = vmax.f32 %v18194_v32, %v1073_v46  ;;  %v12161_v2 = vpop.f32.mrb[101].mxu0  ;;  %v12229_v39 = vpop.f32.mrb[101].mxu1  ;;  %v1850_v20 = vld [vmem:[#allocation2 + $0x5a] sm:$0xff]  ;;  %v2067_v49 = vld [vmem:[#allocation2 + $0x6b] sm:$0xff]  ;;  %v2505_v9 = vpack.c.bf16 %v2491_v11, %v2490_v62 }
 0x1d3   : > { %12494 = vmatpush3.bf16.msra.mxu1 %v14210_v19  ;;  %v1076_v40 = vpop.f32.mrb[102].mxu0  ;;  %v1338_v27 = vpop.f32.mrb[102].mxu1  ;;  %v2077_v19 = vpack.c.bf16 %v2065_v22, %v2064_v31  ;;  %v1862_v46 = vpack.c.bf16 %v1850_v20, %v1849_v50  ;;  %v2070_v2 = vld [vmem:[#allocation2 + $0x83] sm:$0xff]  ;;  %v2071_v39 = vld [vmem:[#allocation2 + $0x8b] sm:$0xf]  ;;  %v2489_v54 = vld [vmem:[#allocation2 + $0x36] sm:$0xff] }
 0x1d4   : > { %1444 = vst [vmem:[#allocation2 + $0xb8] sm:$0xff] %v1419_v34  ;;  %v1365_v6 = vmax.f32 %v1103_v42, %v1335_v56  ;;  %12495 = vmatprep.subr.bf16.mxu1 %v18168_v3  ;;  %v12162_v7 = vpop.f32.mrb[103].mxu0  ;;  %v12230_v41 = vpop.f32.mrb[103].mxu1  ;;  %12352 = vmatmul.mubr.bf16.vlgmr.msra.gmra.mrb[140].mxu0 %v1857_v4  ;;  %v2066_v56 = vld [vmem:[#allocation2 + $0x63] sm:$0xff]  ;;  %v2068_v42 = vld [vmem:[#allocation2 + $0x73] sm:$0xff]  ;;  %v2080_v40 = vpack.c.bf16 %v2071_v39, %v2070_v2 }
 0x1d5   : > { %12440 = vmatpush3.bf16.msra.mxu0 %v14204_v0  ;;  %12355 = vmatprep.mubr.msk.bf16.mxu0 %vm14653_vm0, %v18168_v3  ;;  %v2078_v8 = vpack.c.bf16 %v2067_v49, %v2066_v56  ;;  %v1852_v34 = vld [vmem:[#allocation2 + $0x6a] sm:$0xff]  ;;  %v2079_v13 = vpack.c.bf16 %v2069_v35, %v2068_v42  ;;  %v1854_v0 = vld [vmem:[#allocation2 + $0x7a] sm:$0xff]  ;;  %v1853_v4 = vld [vmem:[#allocation2 + $0x72] sm:$0xff]  ;;  %v2504_v38 = vpack.c.bf16 %v2489_v54, %v2488_v43 }
 0x1d6   : > { %v1395_v24 = vadd.f32 %v15184_v51, %v1365_v6  ;;  %12408 = vmatmul.mubr.bf16.gmra.mrb[144].mxu1 %v2073_v33  ;;  %12441 = vmatprep.subr.bf16.mxu0 %v18168_v3  ;;  %v14213_v51 = vld [vmem:[%s18145_s2 + $0x158] sm:$0xff]   ;;  %v1863_v32 = vpack.c.bf16 %v1852_v34, %v1851_v63  ;;  %v1864_v5 = vpack.c.bf16 %v1854_v0, %v1853_v4  ;;  %v1855_v27 = vld [vmem:[#allocation2 + $0x82] sm:$0xff]  ;;  %v1856_v6 = vld [vmem:[#allocation2 + $0x8a] sm:$0xf] }
 0x1d7   : > { %12411 = vmatprep.mubr.msk.bf16.mxu1 %vm14653_vm0, %v18168_v3  ;;  %12496 = vmatpush3.bf16.msra.mxu1 %v14211_v37  ;;  %v2485_v33 = vld [vmem:[#allocation2 + $0x16] sm:$0xff]  ;;  %v1865_v37 = vpack.c.bf16 %v1856_v6, %v1855_v27  ;;  %v2484_v7 = vld [vmem:[#allocation2 + $0xe] sm:$0xff]  ;;  %v14224_v41 = vld [vmem:[%s18145_s2 + $0x1c0] sm:$0xff]  }
 0x1d8   : > { %v1420_v48 = vmax.f32 %v1395_v24, 0.0  ;;  %12497 = vmatprep.subr.bf16.mxu1 %v18168_v3  ;;  %v2502_v24 = vpack.c.bf16 %v2485_v33, %v2484_v7  ;;  %v14234_v45 = vld [vmem:[%s18145_s2 + $0x1f8] sm:$0xff]   ;;  %v2492_v31 = vld [vmem:[#allocation2 + $0x4e] sm:$0xff]  ;;  %v2277_v56 = vld [vmem:[#allocation2 + $0x44] sm:$0xff] }
 0x1d9   : > { %12442 = vmatpush3.bf16.msra.mxu0 %v14205_v47  ;;  %v14226_v47 = vld [vmem:[%s18145_s2 + $0x1c8] sm:$0xff]   ;;  %v2493_v22 = vld [vmem:[#allocation2 + $0x56] sm:$0xff]  ;;  %v2494_v34 = vld [vmem:[#allocation2 + $0x5e] sm:$0xff] }
 0x1da   : > { %1445 = vst [vmem:[#allocation2 + $0xc0] sm:$0xff] %v1420_v48  ;;  %12443 = vmatprep.subr.bf16.mxu0 %v18168_v3  ;;  %v2270_v48 = vld [vmem:[#allocation2 + $0xc] sm:$0xff]  ;;  %v2275_v52 = vld [vmem:[#allocation2 + $0x34] sm:$0xff]  ;;  %v2506_v20 = vpack.c.bf16 %v2493_v22, %v2492_v31  ;;  %v2280_v63 = vld [vmem:[#allocation2 + $0x5c] sm:$0xff] }
 0x1db   : > { %12498 = vmatpush3.bf16.msra.mxu1 %v14213_v51  ;;  %v2269_v51 = vld [vmem:[#allocation2 + $0x4] sm:$0xff]  ;;  %v14235_v49 = vld [vmem:[%s18145_s2 + $0x1b8] sm:$0xff]   ;;  %v2278_v50 = vld [vmem:[#allocation2 + $0x4c] sm:$0xff] }
 0x1dc   : > { %12356 = vmatmul.mubr.bf16.gmra.mrb[144].mxu0 %v1858_v1  ;;  %12499 = vmatprep.subr.bf16.mxu1 %v18168_v3  ;;  %v2287_v36 = vpack.c.bf16 %v2270_v48, %v2269_v51  ;;  %v2486_v1 = vld [vmem:[#allocation2 + $0x1e] sm:$0xff]  ;;  %v2279_v42 = vld [vmem:[#allocation2 + $0x54] sm:$0xff]  ;;  %v2282_v39 = vld [vmem:[#allocation2 + $0x6c] sm:$0xff] }
 0x1dd   : > { %12359 = vmatprep.mubr.msk.bf16.mxu0 %vm14653_vm0, %v18168_v3  ;;  %12444 = vmatpush3.bf16.msra.mxu0 %v14206_v28  ;;  %v2503_v18 = vpack.c.bf16 %v2487_v25, %v2486_v1  ;;  %v14227_v28 = vld [vmem:[%s18145_s2 + $0x1d0] sm:$0xff]   ;;  %v2499_v4 = vld [vmem:[#allocation2 + $0x86] sm:$0xff]  ;;  %v2498_v27 = vld [vmem:[#allocation2 + $0x7e] sm:$0xff] }
 0x1de   : > { %12412 = vmatmul.mubr.bf16.gmra.mrb[148].mxu1 %v2074_v29  ;;  %12445 = vmatprep.subr.bf16.mxu0 %v18168_v3  ;;  %v14221_v29 = vld [vmem:[%s18145_s2 + $0x188] sm:$0xff]   ;;  %v2509_v6 = vpack.c.bf16 %v2499_v4, %v2498_v27  ;;  %v2284_v33 = vld [vmem:[#allocation2 + $0x7c] sm:$0xff] }
 0x1df   : > { %12415 = vmatprep.mubr.msk.bf16.mxu1 %vm14653_vm0, %v18168_v3  ;;  %12500 = vmatpush3.bf16.msra.mxu1 %v14214_v53  ;;  %v2272_v53 = vld [vmem:[#allocation2 + $0x1c] sm:$0xff]  ;;  %v2496_v0 = vld [vmem:[#allocation2 + $0x6e] sm:$0xff] }
 0x1e0   : > { %12501 = vmatprep.subr.bf16.mxu1 %v18168_v3  ;;  %v2500_v48 = vld [vmem:[#allocation2 + $0x8e] sm:$0xff]  ;;  %v14239_v27 = vld [vmem:[%s18145_s2 + $0x218] sm:$0xff]  }
 0x1e1   : > { %12446 = vmatpush3.bf16.msra.mxu0 %v14207_v57  ;;  %v14229_v57 = vld [vmem:[%s18145_s2 + $0x1d8] sm:$0xff]   ;;  %v2286_v1 = vld [vmem:[#allocation2 + $0x8c] sm:$0xf] }
 0x1e2   : > { %12447 = vmatprep.subr.bf16.mxu0 %v18168_v3  ;;  %v2917_v11 = vld [vmem:[#allocation2 + $0x28] sm:$0xff] }
 0x1e3   : > { %12502 = vmatpush3.bf16.msra.mxu1 %v14216_v55  ;;  %v2271_v55 = vld [vmem:[#allocation2 + $0x14] sm:$0xff]  ;;  %v14237_v31 = vld [vmem:[%s18145_s2 + $0x208] sm:$0xff]  }
 0x1e4   : > { %12360 = vmatmul.mubr.bf16.gmra.mrb[148].mxu0 %v1859_v61  ;;  %12503 = vmatprep.subr.bf16.mxu1 %v18168_v3  ;;  %v2288_v30 = vpack.c.bf16 %v2272_v53, %v2271_v55  ;;  %v14222_v61 = vld [vmem:[%s18145_s2 + $0x190] sm:$0xff]   ;;  %v14240_v55 = vld [vmem:[%s18145_s2 + $0x240] sm:$0xff]  }
 0x1e5   : > { %12363 = vmatprep.mubr.msk.bf16.mxu0 %vm14653_vm0, %v18168_v3  ;;  %12448 = vmatpush3.bf16.msra.mxu0 %v14209_v14  ;;  %v14230_v14 = vld [vmem:[%s18145_s2 + $0x1e0] sm:$0xff]  }
 0x1e6   : > { %12416 = vmatmul.mubr.bf16.gmra.mrb[152].mxu1 %v2075_v16  ;;  %12449 = vmatprep.subr.bf16.mxu0 %v18168_v3  ;;  %v14223_v16 = vld [vmem:[%s18145_s2 + $0x198] sm:$0xff]  }
 0x1e7   : > { %12419 = vmatprep.mubr.msk.bf16.mxu1 %vm14653_vm0, %v18168_v3  ;;  %12504 = vmatpush3.bf16.msra.mxu1 %v14217_v59  ;;  %v2274_v59 = vld [vmem:[#allocation2 + $0x2c] sm:$0xff] }
 0x1e8   : > { %12505 = vmatprep.subr.bf16.mxu1 %v18168_v3 }
 0x1e9   : > { %12450 = vmatpush3.bf16.msra.mxu0 %v14212_v60  ;;  %v14232_v60 = vld [vmem:[%s18145_s2 + $0x1e8] sm:$0xff]  }
 0x1ea   : > { %12451 = vmatprep.subr.bf16.mxu0 %v18168_v3 }
 0x1eb   : > { %12506 = vmatpush3.bf16.msra.mxu1 %v14218_v12  ;;  %v2273_v12 = vld [vmem:[#allocation2 + $0x24] sm:$0xff] }
 0x1ec   : > { %12364 = vmatmul.mubr.bf16.gmra.mrb[152].mxu0 %v1860_v21  ;;  %12595 = vmatprep.subr.bf16.mxu1 %v18168_v3  ;;  %v2289_v58 = vpack.c.bf16 %v2274_v59, %v2273_v12  ;;  %v14225_v21 = vld [vmem:[%s18145_s2 + $0x1a0] sm:$0xff]   ;;  %v2700_v59 = vld [vmem:[#allocation2 + $0x17] sm:$0xff] }
 0x1ed   : > { %12367 = vmatprep.mubr.msk.bf16.mxu0 %vm14653_vm0, %v18168_v3  ;;  %12452 = vmatpush3.bf16.msra.mxu0 %v14215_v10  ;;  %v14233_v10 = vld [vmem:[%s18145_s2 + $0x1f0] sm:$0xff]  }
 0x1ee   : > { %12420 = vmatmul.mubr.bf16.gmra.mrb[156].mxu1 %v2076_v26  ;;  %12453 = vmatprep.subr.bf16.mxu0 %v18168_v3  ;;  %v14228_v26 = vld [vmem:[%s18145_s2 + $0x1a8] sm:$0xff]  }
 0x1ef   : > { %12423 = vmatprep.mubr.msk.bf16.mxu1 %vm14653_vm0, %v18168_v3 }
 0x1f1   : > { %12454 = vmatpush3.bf16.msra.mxu0 %v14219_v44  ;;  %v2276_v44 = vld [vmem:[#allocation2 + $0x3c] sm:$0xff] }
 0x1f2   : > { %12543 = vmatprep.subr.bf16.mxu0 %v18168_v3 }
 0x1f4   : > { %12368 = vmatmul.mubr.bf16.gmra.mrb[156].mxu0 %v1861_v23  ;;  %v2290_v23 = vpack.c.bf16 %v2276_v44, %v2275_v52  ;;  %v2916_v44 = vld [vmem:[#allocation2 + $0x20] sm:$0xff] }
 0x1f5   : > { %12371 = vmatprep.mubr.msk.bf16.mxu0 %vm14653_vm0, %v18168_v3  ;;  %v2933_v22 = vpack.c.bf16 %v2917_v11, %v2916_v44  ;;  %v2705_v11 = vld [vmem:[#allocation2 + $0x3f] sm:$0xff]  ;;  %v14247_v44 = vld [vmem:[%s18145_s2 + $0x230] sm:$0xff]  }
 0x1f6   : > { %12424 = vmatmul.mubr.bf16.gmra.mrb[160].mxu1 %v2077_v19  ;;  %v14231_v19 = vld [vmem:[%s18145_s2 + $0x1b0] sm:$0xff]  }
 0x1f7   : > { %12427 = vmatprep.mubr.msk.bf16.mxu1 %vm14653_vm0, %v18168_v3 }
 0x1fc   : > { %12372 = vmatmul.mubr.bf16.gmra.mrb[160].mxu0 %v1862_v46  ;;  %v2495_v46 = vld [vmem:[#allocation2 + $0x66] sm:$0xff] }
 0x1fd   : > { %12375 = vmatprep.mubr.msk.bf16.mxu0 %vm14653_vm0, %v18168_v3  ;;  %v2507_v35 = vpack.c.bf16 %v2495_v46, %v2494_v34  ;;  %v2701_v34 = vld [vmem:[#allocation2 + $0x1f] sm:$0xff] }
 0x1fe   : > { %12428 = vmatmul.mubr.bf16.gmra.mrb[164].mxu1 %v2078_v8  ;;  %v2291_v8 = vpack.c.bf16 %v2278_v50, %v2277_v56  ;;  %v2919_v56 = vld [vmem:[#allocation2 + $0x38] sm:$0xff] }
 0x1ff   : > { %12431 = vmatprep.mubr.msk.bf16.mxu1 %vm14653_vm0, %v18168_v3 }
 0x204   : > { %12376 = vmatmul.mubr.bf16.gmra.mrb[164].mxu0 %v1863_v32  ;;  %v2497_v32 = vld [vmem:[#allocation2 + $0x76] sm:$0xff] }
 0x205   : > { %12379 = vmatprep.mubr.msk.bf16.mxu0 %vm14653_vm0, %v18168_v3  ;;  %v2508_v2 = vpack.c.bf16 %v2497_v32, %v2496_v0 }
 0x206   : > { %12432 = vmatmul.mubr.bf16.gmra.mrb[168].mxu1 %v2079_v13  ;;  %v2292_v13 = vpack.c.bf16 %v2280_v63, %v2279_v42 }
 0x207   : > { %12435 = vmatprep.mubr.msk.bf16.mxu1 %vm14653_vm0, %v18168_v3 }
 0x20c   : > { %12380 = vmatmul.mubr.bf16.gmra.mrb[168].mxu0 %v1864_v5  ;;  %v2281_v5 = vld [vmem:[#allocation2 + $0x64] sm:$0xff] }
 0x20d   : > { %12383 = vmatprep.mubr.msk.bf16.mxu0 %vm14653_vm0, %v18168_v3 }
 0x20e   : > { %12436 = vmatmul.mubr.bf16.gmra.mrb[172].mxu1 %v2080_v40  ;;  %v2293_v40 = vpack.c.bf16 %v2282_v39, %v2281_v5  ;;  %v14246_v5 = vld [vmem:[%s18145_s2 + $0x260] sm:$0xff]  }
 0x20f   : > { %12507 = vmatprep.mubr.msk.bf16.mxu1 %vm14653_vm0, %v18168_v3 }
 0x214   : > { %12384 = vmatmul.mubr.bf16.gmra.mrb[172].mxu0 %v1865_v37  ;;  %v2501_v37 = vld [vmem:[#allocation2 + $0x96] sm:$0xf] }
 0x215   : > { %12455 = vmatprep.mubr.msk.bf16.mxu0 %vm14653_vm0, %v18168_v3  ;;  %v2510_v51 = vpack.c.bf16 %v2501_v37, %v2500_v48  ;;  %v14248_v37 = vld [vmem:[%s18145_s2 + $0x268] sm:$0xff]  }
 0x216   : > { %12508 = vmatmul.mubr.bf16.vlgmr.msra.gmra.mrb[176].mxu1 %v2502_v24  ;;  %v2703_v48 = vld [vmem:[#allocation2 + $0x2f] sm:$0xff] }
 0x217   : > { %12511 = vmatprep.mubr.msk.bf16.mxu1 %vm14653_vm0, %v18168_v3  ;;  %12596 = vmatpush3.bf16.msra.mxu1 %v14224_v41  ;;  %v2283_v41 = vld [vmem:[#allocation2 + $0x74] sm:$0xff] }
 0x218   : > { %12597 = vmatprep.subr.bf16.mxu1 %v18168_v3 }
 0x21b   : > { %12598 = vmatpush3.bf16.msra.mxu1 %v14226_v47  ;;  %v2294_v47 = vpack.c.bf16 %v2284_v33, %v2283_v41  ;;  %v2704_v33 = vld [vmem:[#allocation2 + $0x37] sm:$0xff] }
 0x21c   : > { %12599 = vmatprep.subr.bf16.mxu1 %v18168_v3  ;;  %12456 = vmatmul.mubr.bf16.vlgmr.msra.gmra.mrb[176].mxu0 %v2287_v36  ;;  %v2285_v36 = vld [vmem:[#allocation2 + $0x84] sm:$0xff] }
 0x21d   : > { %12544 = vmatpush3.bf16.msra.mxu0 %v14220_v17  ;;  %12459 = vmatprep.mubr.msk.bf16.mxu0 %vm14653_vm0, %v18168_v3  ;;  %v2295_v53 = vpack.c.bf16 %v2286_v1, %v2285_v36  ;;  %v2719_v36 = vpack.c.bf16 %v2704_v33, %v2703_v48  ;;  %v2920_v1 = vld [vmem:[#allocation2 + $0x40] sm:$0xff]  ;;  %v2927_v33 = vld [vmem:[#allocation2 + $0x78] sm:$0xff] }
 0x21e   : > { %12512 = vmatmul.mubr.bf16.gmra.mrb[180].mxu1 %v2503_v18  ;;  %12545 = vmatprep.subr.bf16.mxu0 %v18168_v3  ;;  %v2915_v18 = vld [vmem:[#allocation2 + $0x18] sm:$0xff] }
 0x21f   : > { %12515 = vmatprep.mubr.msk.bf16.mxu1 %vm14653_vm0, %v18168_v3  ;;  %12600 = vmatpush3.bf16.msra.mxu1 %v14227_v28 }
 0x220   : > { %12601 = vmatprep.subr.bf16.mxu1 %v18168_v3 }
 0x221   : > { %12546 = vmatpush3.bf16.msra.mxu0 %v14221_v29 }
 0x222   : > { %12547 = vmatprep.subr.bf16.mxu0 %v18168_v3 }
 0x223   : > { %12602 = vmatpush3.bf16.msra.mxu1 %v14229_v57  ;;  %v2914_v57 = vld [vmem:[#allocation2 + $0x10] sm:$0xff] }
 0x224   : > { %12460 = vmatmul.mubr.bf16.gmra.mrb[180].mxu0 %v2288_v30  ;;  %12603 = vmatprep.subr.bf16.mxu1 %v18168_v3  ;;  %v2932_v30 = vpack.c.bf16 %v2915_v18, %v2914_v57  ;;  %v14249_v57 = vld [vmem:[%s18145_s2 + $0x270] sm:$0xff]  }
 0x225   : > { %12463 = vmatprep.mubr.msk.bf16.mxu0 %vm14653_vm0, %v18168_v3  ;;  %12548 = vmatpush3.bf16.msra.mxu0 %v14222_v61 }
 0x226   : > { %12516 = vmatmul.mubr.bf16.gmra.mrb[184].mxu1 %v2504_v38  ;;  %12549 = vmatprep.subr.bf16.mxu0 %v18168_v3  ;;  %v14242_v38 = vld [vmem:[%s18145_s2 + $0x248] sm:$0xff]  }
 0x227   : > { %12519 = vmatprep.mubr.msk.bf16.mxu1 %vm14653_vm0, %v18168_v3  ;;  %12604 = vmatpush3.bf16.msra.mxu1 %v14230_v14 }
 0x228   : > { %12605 = vmatprep.subr.bf16.mxu1 %v18168_v3 }
 0x229   : > { %12550 = vmatpush3.bf16.msra.mxu0 %v14223_v16 }
 0x22a   : > { %12551 = vmatprep.subr.bf16.mxu0 %v18168_v3 }
 0x22b   : > { %12606 = vmatpush3.bf16.msra.mxu1 %v14232_v60 }
 0x22c   : > { %12464 = vmatmul.mubr.bf16.gmra.mrb[184].mxu0 %v2289_v58  ;;  %12607 = vmatprep.subr.bf16.mxu1 %v18168_v3 }
 0x22d   : > { %12467 = vmatprep.mubr.msk.bf16.mxu0 %vm14653_vm0, %v18168_v3  ;;  %12552 = vmatpush3.bf16.msra.mxu0 %v14225_v21  ;;  %v2699_v21 = vld [vmem:[#allocation2 + $0xf] sm:$0xff] }
 0x22e   : > { %12520 = vmatmul.mubr.bf16.gmra.mrb[188].mxu1 %v2505_v9  ;;  %12553 = vmatprep.subr.bf16.mxu0 %v18168_v3  ;;  %v14236_v9 = vld [vmem:[%s18145_s2 + $0x200] sm:$0xff]  }
 0x22f   : > { %12523 = vmatprep.mubr.msk.bf16.mxu1 %vm14653_vm0, %v18168_v3  ;;  %12608 = vmatpush3.bf16.msra.mxu1 %v14233_v10 }
 0x230   : > { %12609 = vmatprep.subr.bf16.mxu1 %v18168_v3 }
 0x231   : > { %12554 = vmatpush3.bf16.msra.mxu0 %v14228_v26  ;;  %v2717_v26 = vpack.c.bf16 %v2700_v59, %v2699_v21  ;;  %v2923_v59 = vld [vmem:[#allocation2 + $0x58] sm:$0xff] }
 0x232   : > { %12555 = vmatprep.subr.bf16.mxu0 %v18168_v3 }
 0x233   : > { %12610 = vmatpush3.bf16.msra.mxu1 %v14234_v45 }
 0x234   : > { %12468 = vmatmul.mubr.bf16.gmra.mrb[188].mxu0 %v2290_v23  ;;  %12699 = vmatprep.subr.bf16.mxu1 %v18168_v3  ;;  %v14243_v23 = vld [vmem:[%s18145_s2 + $0x250] sm:$0xff]  }
 0x235   : > { %12471 = vmatprep.mubr.msk.bf16.mxu0 %vm14653_vm0, %v18168_v3  ;;  %12556 = vmatpush3.bf16.msra.mxu0 %v14231_v19 }
 0x236   : > { %12524 = vmatmul.mubr.bf16.gmra.mrb[192].mxu1 %v2506_v20  ;;  %12557 = vmatprep.subr.bf16.mxu0 %v18168_v3  ;;  %v2702_v20 = vld [vmem:[#allocation2 + $0x27] sm:$0xff] }
 0x237   : > { %12527 = vmatprep.mubr.msk.bf16.mxu1 %vm14653_vm0, %v18168_v3  ;;  %v2718_v42 = vpack.c.bf16 %v2702_v20, %v2701_v34 }
 0x239   : > { %12558 = vmatpush3.bf16.msra.mxu0 %v14235_v49  ;;  %v14245_v49 = vld [vmem:[%s18145_s2 + $0x258] sm:$0xff]  }
 0x23a   : > { %12647 = vmatprep.subr.bf16.mxu0 %v18168_v3 }
 0x23c   : > { %12472 = vmatmul.mubr.bf16.gmra.mrb[192].mxu0 %v2291_v8 }
 0x23d   : > { %12475 = vmatprep.mubr.msk.bf16.mxu0 %vm14653_vm0, %v18168_v3 }
 0x23e   : > { %12528 = vmatmul.mubr.bf16.gmra.mrb[196].mxu1 %v2507_v35 }
 0x23f   : > { %12531 = vmatprep.mubr.msk.bf16.mxu1 %vm14653_vm0, %v18168_v3 }
 0x244   : > { %12476 = vmatmul.mubr.bf16.gmra.mrb[196].mxu0 %v2292_v13  ;;  %v2918_v13 = vld [vmem:[#allocation2 + $0x30] sm:$0xff] }
 0x245   : > { %12479 = vmatprep.mubr.msk.bf16.mxu0 %vm14653_vm0, %v18168_v3  ;;  %v2934_v39 = vpack.c.bf16 %v2919_v56, %v2918_v13  ;;  %v2924_v13 = vld [vmem:[#allocation2 + $0x60] sm:$0xff] }
 0x246   : > { %12532 = vmatmul.mubr.bf16.gmra.mrb[200].mxu1 %v2508_v2  ;;  %v14238_v2 = vld [vmem:[%s18145_s2 + $0x210] sm:$0xff]  }
 0x247   : > { %12535 = vmatprep.mubr.msk.bf16.mxu1 %vm14653_vm0, %v18168_v3 }
 0x24c   : > { %12480 = vmatmul.mubr.bf16.gmra.mrb[200].mxu0 %v2293_v40 }
 0x24d   : > { %12483 = vmatprep.mubr.msk.bf16.mxu0 %vm14653_vm0, %v18168_v3 }
 0x24e   : > { %12536 = vmatmul.mubr.bf16.gmra.mrb[204].mxu1 %v2509_v6 }
 0x24f   : > { %12539 = vmatprep.mubr.msk.bf16.mxu1 %vm14653_vm0, %v18168_v3 }
 0x251   : > { %v1768_v7 = vpop.f32.mrb[104].mxu1 }
 0x252   : > { %v12301_v24 = vpop.f32.mrb[105].mxu1 }
 0x253   : > { %v1771_v25 = vpop.f32.mrb[106].mxu1  ;;  %v2921_v24 = vld [vmem:[#allocation2 + $0x48] sm:$0xff] }
 0x254   : > { %v12302_v17 = vpop.f32.mrb[107].mxu1  ;;  %12484 = vmatmul.mubr.bf16.gmra.mrb[204].mxu0 %v2294_v47 }
 0x255   : > { %12487 = vmatprep.mubr.msk.bf16.mxu0 %vm14653_vm0, %v18168_v3 }
 0x256   : > { %12540 = vmatmul.mubr.bf16.gmra.mrb[208].mxu1 %v2510_v51 }
 0x257   : > { %12611 = vmatprep.mubr.msk.bf16.mxu1 %vm14653_vm0, %v18168_v3 }
 0x259   : > { %v1776_v28 = vpop.f32.mrb[108].mxu1 }
 0x25a   : > { %v12305_v29 = vpop.f32.mrb[109].mxu1 }
 0x25b   : > { %v1779_v54 = vpop.f32.mrb[110].mxu1  ;;  %v2935_v29 = vpack.c.bf16 %v2921_v24, %v2920_v1 }
 0x25c   : > { %v12306_v43 = vpop.f32.mrb[111].mxu1  ;;  %12488 = vmatmul.mubr.bf16.gmra.mrb[208].mxu0 %v2295_v53 }
 0x25d   : > { %12559 = vmatprep.mubr.msk.bf16.mxu0 %vm14653_vm0, %v18168_v3  ;;  %v2706_v43 = vld [vmem:[#allocation2 + $0x47] sm:$0xff] }
 0x25e   : > { %12612 = vmatmul.mubr.bf16.vlgmr.msra.gmra.mrb[212].mxu1 %v2932_v30 }
 0x25f   : > { %v1615_v61 = vpop.f32.mrb[104].mxu0  ;;  %12615 = vmatprep.mubr.msk.bf16.mxu1 %vm14653_vm0, %v18168_v3  ;;  %12700 = vmatpush3.bf16.msra.mxu1 %v14240_v55  ;;  %v14244_v55 = vld [vmem:[%s18145_s2 + $0x228] sm:$0xff]  }
 0x260   : > { %v15597_v14 = vadd.f32 %v1768_v7, %v1615_v61  ;;  %v12249_v16 = vpop.f32.mrb[105].mxu0  ;;  %12701 = vmatprep.subr.bf16.mxu1 %v18168_v3  ;;  %v14250_v61 = vld [vmem:[%s18145_s2 + $0x278] sm:$0xff]  }
 0x261   : > { %v1618_v60 = vpop.f32.mrb[106].mxu0 }
 0x262   : > { %v1784_v12 = vpop.f32.mrb[112].mxu1  ;;  %v15600_v58 = vadd.f32 %v1771_v25, %v1618_v60  ;;  %v12250_v62 = vpop.f32.mrb[107].mxu0 }
 0x263   : > { %v12309_v10 = vpop.f32.mrb[113].mxu1  ;;  %12702 = vmatpush3.bf16.msra.mxu1 %v14242_v38 }
 0x264   : > { %v1787_v45 = vpop.f32.mrb[114].mxu1  ;;  %12703 = vmatprep.subr.bf16.mxu1 %v18168_v3  ;;  %12560 = vmatmul.mubr.bf16.vlgmr.msra.gmra.mrb[212].mxu0 %v2717_v26  ;;  %v2922_v10 = vld [vmem:[#allocation2 + $0x50] sm:$0xff] }
 0x265   : > { %v12310_v52 = vpop.f32.mrb[115].mxu1  ;;  %12648 = vmatpush3.bf16.msra.mxu0 %v14236_v9  ;;  %12563 = vmatprep.mubr.msk.bf16.mxu0 %vm14653_vm0, %v18168_v3  ;;  %v2720_v9 = vpack.c.bf16 %v2706_v43, %v2705_v11  ;;  %v2711_v43 = vld [vmem:[#allocation2 + $0x6f] sm:$0xff] }
 0x266   : > { %12616 = vmatmul.mubr.bf16.gmra.mrb[216].mxu1 %v2933_v22  ;;  %12649 = vmatprep.subr.bf16.mxu0 %v18168_v3 }
 0x267   : > { %12619 = vmatprep.mubr.msk.bf16.mxu1 %vm14653_vm0, %v18168_v3  ;;  %v1623_v19 = vpop.f32.mrb[108].mxu0  ;;  %12704 = vmatpush3.bf16.msra.mxu1 %v14243_v23  ;;  %v14251_v23 = vld [vmem:[%s18145_s2 + $0x238] sm:$0xff]  }
 0x268   : > { %v15620_v50 = vadd.f32 %v1776_v28, %v1623_v19  ;;  %v12253_v46 = vpop.f32.mrb[109].mxu0  ;;  %12705 = vmatprep.subr.bf16.mxu1 %v18168_v3  ;;  %v14241_v28 = vld [vmem:[%s18145_s2 + $0x220] sm:$0xff]   ;;  %v2708_v19 = vld [vmem:[#allocation2 + $0x57] sm:$0xff] }
 0x269   : > { %v1626_v8 = vpop.f32.mrb[110].mxu0  ;;  %12650 = vmatpush3.bf16.msra.mxu0 %v14237_v31  ;;  %v2925_v46 = vld [vmem:[#allocation2 + $0x68] sm:$0xff] }
 0x26a   : > { %v1792_v35 = vpop.f32.mrb[116].mxu1  ;;  %v15623_v63 = vadd.f32 %v1779_v54, %v1626_v8  ;;  %v12254_v32 = vpop.f32.mrb[111].mxu0  ;;  %12651 = vmatprep.subr.bf16.mxu0 %v18168_v3  ;;  %v2707_v8 = vld [vmem:[#allocation2 + $0x4f] sm:$0xff] }
 0x26b   : > { %v12313_v0 = vpop.f32.mrb[117].mxu1  ;;  %12706 = vmatpush3.bf16.msra.mxu1 %v14245_v49 }
 0x26c   : > { %v1795_v4 = vpop.f32.mrb[118].mxu1  ;;  %12564 = vmatmul.mubr.bf16.gmra.mrb[216].mxu0 %v2718_v42  ;;  %12707 = vmatprep.subr.bf16.mxu1 %v18168_v3  ;;  %v2721_v42 = vpack.c.bf16 %v2708_v19, %v2707_v8 }
 0x26d   : > { %v12314_v40 = vpop.f32.mrb[119].mxu1  ;;  %12567 = vmatprep.mubr.msk.bf16.mxu0 %vm14653_vm0, %v18168_v3  ;;  %12652 = vmatpush3.bf16.msra.mxu0 %v14238_v2  ;;  %v2937_v2 = vpack.c.bf16 %v2925_v46, %v2924_v13  ;;  %v2930_v46 = vld [vmem:[#allocation2 + $0x90] sm:$0xff] }
 0x26e   : > { %12620 = vmatmul.mubr.bf16.gmra.mrb[220].mxu1 %v2934_v39  ;;  %12653 = vmatprep.subr.bf16.mxu0 %v18168_v3  ;;  %v2710_v40 = vld [vmem:[#allocation2 + $0x67] sm:$0xff] }
 0x26f   : > { %12623 = vmatprep.mubr.msk.bf16.mxu1 %vm14653_vm0, %v18168_v3  ;;  %v1631_v6 = vpop.f32.mrb[112].mxu0  ;;  %12708 = vmatpush3.bf16.msra.mxu1 %v14246_v5 }
 0x270   : > { %v15644_v7 = vadd.f32 %v1784_v12, %v1631_v6  ;;  %v12257_v41 = vpop.f32.mrb[113].mxu0  ;;  %12709 = vmatprep.subr.bf16.mxu1 %v18168_v3 }
 0x271   : > { %v1634_v47 = vpop.f32.mrb[114].mxu0  ;;  %12654 = vmatpush3.bf16.msra.mxu0 %v14239_v27  ;;  %v2709_v41 = vld [vmem:[#allocation2 + $0x5f] sm:$0xff] }
 0x272   : > { %v1800_v25 = vpop.f32.mrb[120].mxu1  ;;  %v15647_v51 = vadd.f32 %v1787_v45, %v1634_v47  ;;  %v12258_v17 = vpop.f32.mrb[115].mxu0  ;;  %12655 = vmatprep.subr.bf16.mxu0 %v18168_v3  ;;  %v2936_v45 = vpack.c.bf16 %v2923_v59, %v2922_v10 }
 0x273   : > { %v12317_v18 = vpop.f32.mrb[121].mxu1  ;;  %12710 = vmatpush3.bf16.msra.mxu1 %v14248_v37  ;;  %v2926_v17 = vld [vmem:[#allocation2 + $0x70] sm:$0xff] }
 0x274   : > { %v1803_v53 = vpop.f32.mrb[122].mxu1  ;;  %12568 = vmatmul.mubr.bf16.gmra.mrb[220].mxu0 %v2719_v36  ;;  %12711 = vmatprep.subr.bf16.mxu1 %v18168_v3  ;;  %v2938_v1 = vpack.c.bf16 %v2927_v33, %v2926_v17 }
 0x275   : > { %v12318_v54 = vpop.f32.mrb[123].mxu1  ;;  %12571 = vmatprep.mubr.msk.bf16.mxu0 %vm14653_vm0, %v18168_v3  ;;  %12656 = vmatpush3.bf16.msra.mxu0 %v14241_v28 }
 0x276   : > { %12624 = vmatmul.mubr.bf16.gmra.mrb[224].mxu1 %v2935_v29  ;;  %12657 = vmatprep.subr.bf16.mxu0 %v18168_v3 }
 0x277   : > { %12627 = vmatprep.mubr.msk.bf16.mxu1 %vm14653_vm0, %v18168_v3  ;;  %v1639_v30 = vpop.f32.mrb[116].mxu0  ;;  %12712 = vmatpush3.bf16.msra.mxu1 %v14249_v57 }
 0x278   : > { %v15668_v38 = vadd.f32 %v1792_v35, %v1639_v30  ;;  %v12261_v16 = vpop.f32.mrb[117].mxu0  ;;  %12713 = vmatprep.subr.bf16.mxu1 %v18168_v3 }
 0x279   : > { %v1642_v60 = vpop.f32.mrb[118].mxu0  ;;  %12658 = vmatpush3.bf16.msra.mxu0 %v14244_v55  ;;  %v2929_v55 = vld [vmem:[#allocation2 + $0x88] sm:$0xff] }
 0x27a   : > { %v1808_v12 = vpop.f32.mrb[124].mxu1  ;;  %v15671_v62 = vadd.f32 %v1795_v4, %v1642_v60  ;;  %v12262_v21 = vpop.f32.mrb[119].mxu0  ;;  %12659 = vmatprep.subr.bf16.mxu0 %v18168_v3  ;;  %v2928_v60 = vld [vmem:[#allocation2 + $0x80] sm:$0xff] }
 0x27b   : > { %v12321_v26 = vpop.f32.mrb[125].mxu1  ;;  %12714 = vmatpush3.bf16.msra.mxu1 %v14250_v61  ;;  %v2939_v11 = vpack.c.bf16 %v2929_v55, %v2928_v60  ;;  %v2714_v21 = vld [vmem:[#allocation2 + $0x87] sm:$0xff]  ;;  %v3129_v55 = vld [vmem:[#allocation2 + $0x11] sm:$0xff] }
 0x27c   : > { %v1811_v22 = vpop.f32.mrb[126].mxu1  ;;  %12572 = vmatmul.mubr.bf16.gmra.mrb[224].mxu0 %v2720_v9  ;;  %12803 = vmatprep.subr.bf16.mxu1 %v18168_v3 }
 0x27d   : > { %v12322_v52 = vpop.f32.mrb[127].mxu1  ;;  %12575 = vmatprep.mubr.msk.bf16.mxu0 %vm14653_vm0, %v18168_v3  ;;  %12660 = vmatpush3.bf16.msra.mxu0 %v14247_v44  ;;  %v2931_v44 = vld [vmem:[#allocation2 + $0x98] sm:$0xf] }
 0x27e   : > { %12628 = vmatmul.mubr.bf16.gmra.mrb[228].mxu1 %v2936_v45  ;;  %12661 = vmatprep.subr.bf16.mxu0 %v18168_v3  ;;  %v2713_v52 = vld [vmem:[#allocation2 + $0x7f] sm:$0xff]  ;;  %v2940_v8 = vpack.c.bf16 %v2931_v44, %v2930_v46 }
 0x27f   : > { %12631 = vmatprep.mubr.msk.bf16.mxu1 %vm14653_vm0, %v18168_v3  ;;  %v1647_v31 = vpop.f32.mrb[120].mxu0 }
 0x280   : > { %v15686_v20 = vadd.f32 %v1800_v25, %v1647_v31  ;;  %v12265_v49 = vpop.f32.mrb[121].mxu0  ;;  %v2722_v25 = vpack.c.bf16 %v2710_v40, %v2709_v41  ;;  %v14256_v41 = vld [vmem:[%s18145_s2 + $0x2c0] sm:$0xff]  }
 0x281   : > { %v1650_v56 = vpop.f32.mrb[122].mxu0  ;;  %12662 = vmatpush3.bf16.msra.mxu0 %v14251_v23  ;;  %v2724_v49 = vpack.c.bf16 %v2714_v21, %v2713_v52 }
 0x282   : > { %v1816_v34 = vpop.f32.mrb[128].mxu1  ;;  %v15688_v35 = vadd.f32 %v1803_v53, %v1650_v56  ;;  %v12266_v32 = vpop.f32.mrb[123].mxu0  ;;  %12751 = vmatprep.subr.bf16.mxu0 %v18168_v3  ;;  %v2712_v53 = vld [vmem:[#allocation2 + $0x77] sm:$0xff] }
 0x283   : > { %v12325_v0 = vpop.f32.mrb[129].mxu1  ;;  %v2723_v59 = vpack.c.bf16 %v2712_v53, %v2711_v43  ;;  %v2716_v32 = vld [vmem:[#allocation2 + $0x97] sm:$0xf] }
 0x284   : > { %v1819_v39 = vpop.f32.mrb[130].mxu1  ;;  %12576 = vmatmul.mubr.bf16.gmra.mrb[228].mxu0 %v2721_v42 }
 0x285   : > { %v12326_v4 = vpop.f32.mrb[131].mxu1  ;;  %12579 = vmatprep.mubr.msk.bf16.mxu0 %vm14653_vm0, %v18168_v3 }
 0x286   : > { %12632 = vmatmul.mubr.bf16.gmra.mrb[232].mxu1 %v2937_v2  ;;  %v3345_v2 = vld [vmem:[#allocation2 + $0x1a] sm:$0xff] }
 0x287   : > { %12635 = vmatprep.mubr.msk.bf16.mxu1 %vm14653_vm0, %v18168_v3  ;;  %v1655_v5 = vpop.f32.mrb[124].mxu0 }
 0x288   : > { %v15695_v27 = vadd.f32 %v1808_v12, %v1655_v5  ;;  %v12269_v6 = vpop.f32.mrb[125].mxu0  ;;  %v2715_v5 = vld [vmem:[#allocation2 + $0x8f] sm:$0xff] }
 0x289   : > { %v1658_v37 = vpop.f32.mrb[126].mxu0  ;;  %v2725_v33 = vpack.c.bf16 %v2716_v32, %v2715_v5 }
 0x28a   : > { %v1824_v24 = vpop.f32.mrb[132].mxu1  ;;  %v15697_v47 = vadd.f32 %v1811_v22, %v1658_v37  ;;  %v12270_v48 = vpop.f32.mrb[127].mxu0  ;;  %v3344_v37 = vld [vmem:[#allocation2 + $0x12] sm:$0xff] }
 0x28b   : > { %v12329_v36 = vpop.f32.mrb[133].mxu1  ;;  %v3362_v48 = vpack.c.bf16 %v3345_v2, %v3344_v37  ;;  %v3348_v2 = vld [vmem:[#allocation2 + $0x32] sm:$0xff] }
 0x28c   : > { %v1827_v18 = vpop.f32.mrb[134].mxu1  ;;  %12580 = vmatmul.mubr.bf16.gmra.mrb[232].mxu0 %v2722_v25  ;;  %v14258_v25 = vld [vmem:[%s18145_s2 + $0x2c8] sm:$0xff]   ;;  %v3130_v36 = vld [vmem:[#allocation2 + $0x19] sm:$0xff] }
 0x28d   : > { %v12330_v28 = vpop.f32.mrb[135].mxu1  ;;  %12583 = vmatprep.mubr.msk.bf16.mxu0 %vm14653_vm0, %v18168_v3  ;;  %v3147_v60 = vpack.c.bf16 %v3130_v36, %v3129_v55  ;;  %v3134_v37 = vld [vmem:[#allocation2 + $0x39] sm:$0xff]  ;;  %v3350_v55 = vld [vmem:[#allocation2 + $0x42] sm:$0xff] }
 0x28e   : > { %12636 = vmatmul.mubr.bf16.gmra.mrb[236].mxu1 %v2938_v1 }
 0x28f   : > { %12639 = vmatprep.mubr.msk.bf16.mxu1 %vm14653_vm0, %v18168_v3  ;;  %v1663_v29 = vpop.f32.mrb[128].mxu0 }
 0x290   : > { %v15703_v57 = vadd.f32 %v1816_v34, %v1663_v29  ;;  %v12273_v54 = vpop.f32.mrb[129].mxu0  ;;  %v3347_v29 = vld [vmem:[#allocation2 + $0x2a] sm:$0xff] }
 0x291   : > { %v1666_v30 = vpop.f32.mrb[130].mxu0 }
 0x292   : > { %v15705_v61 = vadd.f32 %v1819_v39, %v1666_v30  ;;  %v12274_v16 = vpop.f32.mrb[131].mxu0  ;;  %v14252_v30 = vld [vmem:[%s18145_s2 + $0x280] sm:$0xff]  }
 0x294   : > { %12584 = vmatmul.mubr.bf16.gmra.mrb[236].mxu0 %v2723_v59 }
 0x295   : > { %12587 = vmatprep.mubr.msk.bf16.mxu0 %vm14653_vm0, %v18168_v3 }
 0x296   : > { %12640 = vmatmul.mubr.bf16.gmra.mrb[240].mxu1 %v2939_v11  ;;  %v3346_v11 = vld [vmem:[#allocation2 + $0x22] sm:$0xff] }
 0x297   : > { %12643 = vmatprep.mubr.msk.bf16.mxu1 %vm14653_vm0, %v18168_v3  ;;  %v1671_v12 = vpop.f32.mrb[132].mxu0  ;;  %v3363_v21 = vpack.c.bf16 %v3347_v29, %v3346_v11 }
 0x298   : > { %v15711_v9 = vadd.f32 %v1824_v24, %v1671_v12  ;;  %v12277_v10 = vpop.f32.mrb[133].mxu0 }
 0x299   : > { %v1832_v26 = vpop.f32.mrb[136].mxu1  ;;  %v1674_v45 = vpop.f32.mrb[134].mxu0  ;;  %v14259_v10 = vld [vmem:[%s18145_s2 + $0x2d0] sm:$0xff]  }
 0x29a   : > { %v12333_v22 = vpop.f32.mrb[137].mxu1  ;;  %v15713_v23 = vadd.f32 %v1827_v18, %v1674_v45  ;;  %v12278_v31 = vpop.f32.mrb[135].mxu0  ;;  %v3132_v45 = vld [vmem:[#allocation2 + $0x29] sm:$0xff] }
 0x29b   : > { %v1835_v19 = vpop.f32.mrb[138].mxu1  ;;  %v14261_v22 = vld [vmem:[%s18145_s2 + $0x2d8] sm:$0xff]  }
 0x29c   : > { %v12334_v56 = vpop.f32.mrb[139].mxu1  ;;  %12588 = vmatmul.mubr.bf16.gmra.mrb[240].mxu0 %v2724_v49  ;;  %v3349_v49 = vld [vmem:[#allocation2 + $0x3a] sm:$0xff] }
 0x29d   : > { %12591 = vmatprep.mubr.msk.bf16.mxu0 %vm14653_vm0, %v18168_v3  ;;  %v3364_v5 = vpack.c.bf16 %v3349_v49, %v3348_v2 }
 0x29e   : > { %12644 = vmatmul.mubr.bf16.gmra.mrb[244].mxu1 %v2940_v8  ;;  %v3131_v8 = vld [vmem:[#allocation2 + $0x21] sm:$0xff] }
 0x29f   : > { %12715 = vmatprep.mubr.msk.bf16.mxu1 %vm14653_vm0, %v18168_v3  ;;  %v1679_v34 = vpop.f32.mrb[136].mxu0 }
 0x2a0   : > { %v15719_v42 = vadd.f32 %v1832_v26, %v1679_v34  ;;  %v12281_v13 = vpop.f32.mrb[137].mxu0 }
 0x2a1   : > { %v2180_v0 = vpop.f32.mrb[140].mxu1  ;;  %v1682_v39 = vpop.f32.mrb[138].mxu0 }
 0x2a2   : > { %v12405_v4 = vpop.f32.mrb[141].mxu1  ;;  %v12282_v40 = vpop.f32.mrb[139].mxu0 }
 0x2a3   : > { %v2183_v6 = vpop.f32.mrb[142].mxu1  ;;  %v14262_v40 = vld [vmem:[%s18145_s2 + $0x2e0] sm:$0xff]  }
 0x2a4   : > { %v12406_v24 = vpop.f32.mrb[143].mxu1  ;;  %12592 = vmatmul.mubr.bf16.gmra.mrb[244].mxu0 %v2725_v33 }
 0x2a5   : > { %12663 = vmatprep.mubr.msk.bf16.mxu0 %vm14653_vm0, %v18168_v3 }
 0x2a6   : > { %12716 = vmatmul.mubr.bf16.vlgmr.msra.gmra.mrb[248].mxu1 %v3362_v48 }
 0x2a7   : > { %12719 = vmatprep.mubr.msk.bf16.mxu1 %vm14653_vm0, %v18168_v3  ;;  %12804 = vmatpush3.bf16.msra.mxu1 %v14256_v41  ;;  %v1965_v17 = vpop.f32.mrb[140].mxu0  ;;  %v14264_v41 = vld [vmem:[%s18145_s2 + $0x2e8] sm:$0xff]  }
 0x2a8   : > { %12805 = vmatprep.subr.bf16.mxu1 %v18168_v3  ;;  %v2036_v1 = vadd.f32 %v1965_v17, %v15597_v14  ;;  %v12353_v18 = vpop.f32.mrb[141].mxu0  ;;  %v3351_v17 = vld [vmem:[#allocation2 + $0x4a] sm:$0xff] }
 0x2a9   : > { %v2188_v28 = vpop.f32.mrb[144].mxu1  ;;  %v1968_v53 = vpop.f32.mrb[142].mxu0  ;;  %v3133_v18 = vld [vmem:[#allocation2 + $0x31] sm:$0xff] }
 0x2aa   : > { %v12409_v54 = vpop.f32.mrb[145].mxu1  ;;  %v2037_v43 = vadd.f32 %v1968_v53, %v15600_v58  ;;  %v12354_v16 = vpop.f32.mrb[143].mxu0  ;;  %v15737_v12 = vadd.f32 %v2180_v0, %v2036_v1  ;;  %v14253_v58 = vld [vmem:[%s18145_s2 + $0x288] sm:$0xff]   ;;  %v3148_v0 = vpack.c.bf16 %v3132_v45, %v3131_v8  ;;  %v3353_v45 = vld [vmem:[#allocation2 + $0x5a] sm:$0xff]  ;;  %v3352_v8 = vld [vmem:[#allocation2 + $0x52] sm:$0xff] }
 0x2ab   : > { %v2191_v59 = vpop.f32.mrb[146].mxu1  ;;  %12806 = vmatpush3.bf16.msra.mxu1 %v14258_v25  ;;  %v3149_v54 = vpack.c.bf16 %v3134_v37, %v3133_v18  ;;  %v3365_v16 = vpack.c.bf16 %v3351_v17, %v3350_v55 }
 0x2ac   : > { %v12410_v14 = vpop.f32.mrb[147].mxu1  ;;  %12807 = vmatprep.subr.bf16.mxu1 %v18168_v3  ;;  %12664 = vmatmul.mubr.bf16.vlgmr.msra.gmra.mrb[248].mxu0 %v3147_v60  ;;  %v15743_v26 = vadd.f32 %v2183_v6, %v2037_v43  ;;  %v14255_v6 = vld [vmem:[%s18145_s2 + $0x298] sm:$0xff]   ;;  %v14260_v60 = vld [vmem:[%s18145_s2 + $0x2a8] sm:$0xff]  }
 0x2ad   : > { %12752 = vmatpush3.bf16.msra.mxu0 %v14252_v30  ;;  %12667 = vmatprep.mubr.msk.bf16.mxu0 %vm14653_vm0, %v18168_v3  ;;  %v14257_v30 = vld [vmem:[%s18145_s2 + $0x2a0] sm:$0xff]   ;;  %v3136_v14 = vld [vmem:[#allocation2 + $0x49] sm:$0xff] }
 0x2ae   : > { %12720 = vmatmul.mubr.bf16.gmra.mrb[252].mxu1 %v3363_v21  ;;  %12753 = vmatprep.subr.bf16.mxu0 %v18168_v3  ;;  %v14266_v21 = vld [vmem:[%s18145_s2 + $0x2f8] sm:$0xff]  }
 0x2af   : > { %12723 = vmatprep.mubr.msk.bf16.mxu1 %vm14653_vm0, %v18168_v3  ;;  %v1973_v44 = vpop.f32.mrb[144].mxu0  ;;  %12808 = vmatpush3.bf16.msra.mxu1 %v14259_v10 }
 0x2b0   : > { %v2038_v52 = vadd.f32 %v1973_v44, %v15620_v50  ;;  %v12357_v31 = vpop.f32.mrb[145].mxu0  ;;  %12809 = vmatprep.subr.bf16.mxu1 %v18168_v3  ;;  %v14254_v50 = vld [vmem:[%s18145_s2 + $0x290] sm:$0xff]  }
 0x2b1   : > { %v2196_v19 = vpop.f32.mrb[148].mxu1  ;;  %v1976_v46 = vpop.f32.mrb[146].mxu0  ;;  %12754 = vmatpush3.bf16.msra.mxu0 %v14253_v58  ;;  %v3135_v31 = vld [vmem:[#allocation2 + $0x41] sm:$0xff] }
 0x2b2   : > { %v12413_v56 = vpop.f32.mrb[149].mxu1  ;;  %v2039_v34 = vadd.f32 %v1976_v46, %v15623_v63  ;;  %v12358_v32 = vpop.f32.mrb[147].mxu0  ;;  %12755 = vmatprep.subr.bf16.mxu0 %v18168_v3  ;;  %v15763_v39 = vadd.f32 %v2188_v28, %v2038_v52 }
 0x2b3   : > { %v2199_v13 = vpop.f32.mrb[150].mxu1  ;;  %12810 = vmatpush3.bf16.msra.mxu1 %v14261_v22  ;;  %v3150_v56 = vpack.c.bf16 %v3136_v14, %v3135_v31 }
 0x2b4   : > { %v12414_v4 = vpop.f32.mrb[151].mxu1  ;;  %12668 = vmatmul.mubr.bf16.gmra.mrb[252].mxu0 %v3148_v0  ;;  %12811 = vmatprep.subr.bf16.mxu1 %v18168_v3  ;;  %v15769_v63 = vadd.f32 %v2191_v59, %v2039_v34  ;;  %v14263_v34 = vld [vmem:[%s18145_s2 + $0x2b0] sm:$0xff]  }
 0x2b5   : > { %12671 = vmatprep.mubr.msk.bf16.mxu0 %vm14653_vm0, %v18168_v3  ;;  %12756 = vmatpush3.bf16.msra.mxu0 %v14254_v50  ;;  %v3138_v50 = vld [vmem:[#allocation2 + $0x59] sm:$0xff] }
 0x2b6   : > { %12724 = vmatmul.mubr.bf16.gmra.mrb[0].mxu1 %v3364_v5  ;;  %12757 = vmatprep.subr.bf16.mxu0 %v18168_v3 }
 0x2b7   : > { %12727 = vmatprep.mubr.msk.bf16.mxu1 %vm14653_vm0, %v18168_v3  ;;  %v1981_v33 = vpop.f32.mrb[148].mxu0  ;;  %12812 = vmatpush3.bf16.msra.mxu1 %v14262_v40 }
 0x2b8   : > { %v2040_v24 = vadd.f32 %v1981_v33, %v15644_v7  ;;  %v12361_v48 = vpop.f32.mrb[149].mxu0  ;;  %12813 = vmatprep.subr.bf16.mxu1 %v18168_v3 }
 0x2b9   : > { %v2204_v25 = vpop.f32.mrb[152].mxu1  ;;  %v1984_v36 = vpop.f32.mrb[150].mxu0  ;;  %12758 = vmatpush3.bf16.msra.mxu0 %v14255_v6  ;;  %v3355_v6 = vld [vmem:[#allocation2 + $0x6a] sm:$0xff] }
 0x2ba   : > { %v12417_v1 = vpop.f32.mrb[153].mxu1  ;;  %v2041_v28 = vadd.f32 %v1984_v36, %v15647_v51  ;;  %v12362_v29 = vpop.f32.mrb[151].mxu0  ;;  %v15788_v7 = vadd.f32 %v2196_v19, %v2040_v24  ;;  %12759 = vmatprep.subr.bf16.mxu0 %v18168_v3  ;;  %v14265_v51 = vld [vmem:[%s18145_s2 + $0x2f0] sm:$0xff]   ;;  %v3354_v36 = vld [vmem:[#allocation2 + $0x62] sm:$0xff] }
 0x2bb   : > { %v2207_v53 = vpop.f32.mrb[154].mxu1  ;;  %12814 = vmatpush3.bf16.msra.mxu1 %v14264_v41  ;;  %v3137_v41 = vld [vmem:[#allocation2 + $0x51] sm:$0xff]  ;;  %v3140_v29 = vld [vmem:[#allocation2 + $0x69] sm:$0xff] }
 0x2bc   : > { %v12418_v43 = vpop.f32.mrb[155].mxu1  ;;  %12672 = vmatmul.mubr.bf16.gmra.mrb[0].mxu0 %v3149_v54  ;;  %12815 = vmatprep.subr.bf16.mxu1 %v18168_v3  ;;  %v15795_v59 = vadd.f32 %v2199_v13, %v2041_v28  ;;  %v3366_v13 = vpack.c.bf16 %v3353_v45, %v3352_v8  ;;  %v3151_v17 = vpack.c.bf16 %v3138_v50, %v3137_v41  ;;  %v3141_v8 = vld [vmem:[#allocation2 + $0x71] sm:$0xff] }
 0x2bd   : > { %12675 = vmatprep.mubr.msk.bf16.mxu0 %vm14653_vm0, %v18168_v3  ;;  %12760 = vmatpush3.bf16.msra.mxu0 %v14257_v30  ;;  %v3367_v28 = vpack.c.bf16 %v3355_v6, %v3354_v36  ;;  %v3357_v30 = vld [vmem:[#allocation2 + $0x7a] sm:$0xff]  ;;  %v3360_v41 = vld [vmem:[#allocation2 + $0x92] sm:$0xff] }
 0x2be   : > { %12728 = vmatmul.mubr.bf16.gmra.mrb[4].mxu1 %v3365_v16  ;;  %12761 = vmatprep.subr.bf16.mxu0 %v18168_v3 }
 0x2bf   : > { %12731 = vmatprep.mubr.msk.bf16.mxu1 %vm14653_vm0, %v18168_v3  ;;  %v1989_v11 = vpop.f32.mrb[152].mxu0  ;;  %12816 = vmatpush3.bf16.msra.mxu1 %v14265_v51  ;;  %v3139_v51 = vld [vmem:[#allocation2 + $0x61] sm:$0xff] }
 0x2c0   : > { %v2042_v10 = vadd.f32 %v1989_v11, %v15668_v38  ;;  %v12365_v58 = vpop.f32.mrb[153].mxu0  ;;  %12817 = vmatprep.subr.bf16.mxu1 %v18168_v3 }
 0x2c1   : > { %v2212_v44 = vpop.f32.mrb[156].mxu1  ;;  %v1992_v22 = vpop.f32.mrb[154].mxu0  ;;  %12762 = vmatpush3.bf16.msra.mxu0 %v14260_v60 }
 0x2c2   : > { %v12421_v52 = vpop.f32.mrb[157].mxu1  ;;  %v2043_v19 = vadd.f32 %v1992_v22, %v15671_v62  ;;  %v12366_v49 = vpop.f32.mrb[155].mxu0  ;;  %v15814_v38 = vadd.f32 %v2204_v25, %v2042_v10  ;;  %12763 = vmatprep.subr.bf16.mxu0 %v18168_v3  ;;  %v14267_v62 = vld [vmem:[%s18145_s2 + $0x2b8] sm:$0xff]  }
 0x2c3   : > { %v2215_v46 = vpop.f32.mrb[158].mxu1  ;;  %12818 = vmatpush3.bf16.msra.mxu1 %v14266_v21  ;;  %v3152_v21 = vpack.c.bf16 %v3140_v29, %v3139_v51  ;;  %v3356_v10 = vld [vmem:[#allocation2 + $0x72] sm:$0xff]  ;;  %v3359_v49 = vld [vmem:[#allocation2 + $0x8a] sm:$0xff] }
 0x2c4   : > { %v12422_v32 = vpop.f32.mrb[159].mxu1  ;;  %12676 = vmatmul.mubr.bf16.gmra.mrb[4].mxu0 %v3150_v56  ;;  %v15817_v0 = vadd.f32 %v2207_v53, %v2043_v19  ;;  %12907 = vmatprep.subr.bf16.mxu1 %v18168_v3  ;;  %v3368_v45 = vpack.c.bf16 %v3357_v30, %v3356_v10  ;;  %v3145_v30 = vld [vmem:[#allocation2 + $0x91] sm:$0xff] }
 0x2c5   : > { %12679 = vmatprep.mubr.msk.bf16.mxu0 %vm14653_vm0, %v18168_v3  ;;  %12764 = vmatpush3.bf16.msra.mxu0 %v14263_v34 }
 0x2c6   : > { %12732 = vmatmul.mubr.bf16.gmra.mrb[8].mxu1 %v3366_v13  ;;  %12765 = vmatprep.subr.bf16.mxu0 %v18168_v3 }
 0x2c7   : > { %12735 = vmatprep.mubr.msk.bf16.mxu1 %vm14653_vm0, %v18168_v3  ;;  %v1997_v2 = vpop.f32.mrb[156].mxu0 }
 0x2c8   : > { %v2044_v4 = vadd.f32 %v1997_v2, %v15686_v20  ;;  %v12369_v5 = vpop.f32.mrb[157].mxu0  ;;  %v3358_v2 = vld [vmem:[#allocation2 + $0x82] sm:$0xff] }
 0x2c9   : > { %v2220_v40 = vpop.f32.mrb[160].mxu1  ;;  %v2000_v33 = vpop.f32.mrb[158].mxu0  ;;  %12766 = vmatpush3.bf16.msra.mxu0 %v14267_v62  ;;  %v3369_v5 = vpack.c.bf16 %v3359_v49, %v3358_v2  ;;  %v14268_v2 = vld [vmem:[%s18145_s2 + $0x300] sm:$0xff]  }
 0x2ca   : > { %v12425_v37 = vpop.f32.mrb[161].mxu1  ;;  %v2045_v24 = vadd.f32 %v2000_v33, %v15688_v35  ;;  %v12370_v48 = vpop.f32.mrb[159].mxu0  ;;  %v15830_v1 = vadd.f32 %v2212_v44, %v2044_v4  ;;  %12855 = vmatprep.subr.bf16.mxu0 %v18168_v3 }
 0x2cb   : > { %v2223_v25 = vpop.f32.mrb[162].mxu1 }
 0x2cc   : > { %v12426_v18 = vpop.f32.mrb[163].mxu1  ;;  %12680 = vmatmul.mubr.bf16.gmra.mrb[8].mxu0 %v3151_v17  ;;  %v15833_v20 = vadd.f32 %v2215_v46, %v2045_v24  ;;  %v3361_v24 = vld [vmem:[#allocation2 + $0x9a] sm:$0xf]  ;;  %v3143_v17 = vld [vmem:[#allocation2 + $0x81] sm:$0xff] }
 0x2cd   : > { %12683 = vmatprep.mubr.msk.bf16.mxu0 %vm14653_vm0, %v18168_v3 }
 0x2ce   : > { %12736 = vmatmul.mubr.bf16.gmra.mrb[12].mxu1 %v3367_v28 }
 0x2cf   : > { %12739 = vmatprep.mubr.msk.bf16.mxu1 %vm14653_vm0, %v18168_v3  ;;  %v2005_v35 = vpop.f32.mrb[160].mxu0 }
 0x2d0   : > { %v2046_v53 = vadd.f32 %v2005_v35, %v15695_v27  ;;  %v12373_v54 = vpop.f32.mrb[161].mxu0 }
 0x2d1   : > { %v2228_v55 = vpop.f32.mrb[164].mxu1  ;;  %v2008_v43 = vpop.f32.mrb[162].mxu0  ;;  %v3370_v54 = vpack.c.bf16 %v3361_v24, %v3360_v41  ;;  %v14275_v41 = vld [vmem:[%s18145_s2 + $0x350] sm:$0xff]  }
 0x2d2   : > { %v12429_v16 = vpop.f32.mrb[165].mxu1  ;;  %v2047_v60 = vadd.f32 %v2008_v43, %v15697_v47  ;;  %v12374_v11 = vpop.f32.mrb[163].mxu0  ;;  %v15841_v58 = vadd.f32 %v2220_v40, %v2046_v53  ;;  %v3142_v47 = vld [vmem:[#allocation2 + $0x79] sm:$0xff]  ;;  %v3775_v43 = vld [vmem:[#allocation2 + $0x25] sm:$0xff] }
 0x2d3   : > { %v2231_v14 = vpop.f32.mrb[166].mxu1  ;;  %v3153_v62 = vpack.c.bf16 %v3142_v47, %v3141_v8 }
 0x2d4   : > { %v12430_v44 = vpop.f32.mrb[167].mxu1  ;;  %12684 = vmatmul.mubr.bf16.gmra.mrb[12].mxu0 %v3152_v21  ;;  %v15843_v22 = vadd.f32 %v2223_v25, %v2047_v60  ;;  %v3774_v21 = vld [vmem:[#allocation2 + $0x1d] sm:$0xff] }
 0x2d5   : > { %12687 = vmatprep.mubr.msk.bf16.mxu0 %vm14653_vm0, %v18168_v3 }
 0x2d6   : > { %12740 = vmatmul.mubr.bf16.gmra.mrb[16].mxu1 %v3368_v45 }
 0x2d7   : > { %12743 = vmatprep.mubr.msk.bf16.mxu1 %vm14653_vm0, %v18168_v3  ;;  %v2013_v27 = vpop.f32.mrb[164].mxu0 }
 0x2d8   : > { %v2048_v52 = vadd.f32 %v2013_v27, %v15703_v57  ;;  %v12377_v31 = vpop.f32.mrb[165].mxu0  ;;  %v14272_v27 = vld [vmem:[%s18145_s2 + $0x340] sm:$0xff]  }
 0x2d9   : > { %v2236_v19 = vpop.f32.mrb[168].mxu1  ;;  %v2016_v46 = vpop.f32.mrb[166].mxu0 }
 0x2da   : > { %v12433_v56 = vpop.f32.mrb[169].mxu1  ;;  %v2049_v34 = vadd.f32 %v2016_v46, %v15705_v61  ;;  %v12378_v32 = vpop.f32.mrb[167].mxu0  ;;  %v15851_v50 = vadd.f32 %v2228_v55, %v2048_v52  ;;  %v3144_v61 = vld [vmem:[#allocation2 + $0x89] sm:$0xff]  ;;  %v3792_v52 = vpack.c.bf16 %v3775_v43, %v3774_v21  ;;  %v14278_v21 = vld [vmem:[%s18145_s2 + $0x360] sm:$0xff]  }
 0x2db   : > { %v2239_v13 = vpop.f32.mrb[170].mxu1  ;;  %v3154_v35 = vpack.c.bf16 %v3144_v61, %v3143_v17  ;;  %v3559_v32 = vld [vmem:[#allocation2 + $0x1c] sm:$0xff] }
 0x2dc   : > { %v12434_v4 = vpop.f32.mrb[171].mxu1  ;;  %12688 = vmatmul.mubr.bf16.gmra.mrb[16].mxu0 %v3153_v62  ;;  %v15853_v40 = vadd.f32 %v2231_v14, %v2049_v34  ;;  %v3777_v34 = vld [vmem:[#allocation2 + $0x35] sm:$0xff] }
 0x2dd   : > { %12691 = vmatprep.mubr.msk.bf16.mxu0 %vm14653_vm0, %v18168_v3  ;;  %v14277_v17 = vld [vmem:[%s18145_s2 + $0x358] sm:$0xff]  }
 0x2de   : > { %12744 = vmatmul.mubr.bf16.gmra.mrb[20].mxu1 %v3369_v5 }
 0x2df   : > { %12747 = vmatprep.mubr.msk.bf16.mxu1 %vm14653_vm0, %v18168_v3  ;;  %v2021_v57 = vpop.f32.mrb[168].mxu0 }
 0x2e0   : > { %v2050_v6 = vadd.f32 %v2021_v57, %v15711_v9  ;;  %v12381_v33 = vpop.f32.mrb[169].mxu0 }
 0x2e1   : > { %v2244_v37 = vpop.f32.mrb[172].mxu1  ;;  %v2024_v48 = vpop.f32.mrb[170].mxu0 }
 0x2e2   : > { %v12437_v25 = vpop.f32.mrb[173].mxu1  ;;  %v2051_v36 = vadd.f32 %v2024_v48, %v15713_v23  ;;  %v12382_v18 = vpop.f32.mrb[171].mxu0  ;;  %v15861_v29 = vadd.f32 %v2236_v19, %v2050_v6  ;;  %v3146_v23 = vld [vmem:[#allocation2 + $0x99] sm:$0xf]  ;;  %v3560_v19 = vld [vmem:[#allocation2 + $0x24] sm:$0xff]  ;;  %v3776_v6 = vld [vmem:[#allocation2 + $0x2d] sm:$0xff] }
 0x2e3   : > { %v2247_v28 = vpop.f32.mrb[174].mxu1  ;;  %v3155_v45 = vpack.c.bf16 %v3146_v23, %v3145_v30  ;;  %v3577_v4 = vpack.c.bf16 %v3560_v19, %v3559_v32  ;;  %v3562_v25 = vld [vmem:[#allocation2 + $0x34] sm:$0xff] }
 0x2e4   : > { %v12438_v53 = vpop.f32.mrb[175].mxu1  ;;  %12692 = vmatmul.mubr.bf16.gmra.mrb[20].mxu0 %v3154_v35  ;;  %v15863_v55 = vadd.f32 %v2239_v13, %v2051_v36  ;;  %v3779_v35 = vld [vmem:[#allocation2 + $0x45] sm:$0xff]  ;;  %v3781_v19 = vld [vmem:[#allocation2 + $0x55] sm:$0xff] }
 0x2e5   : > { %12695 = vmatprep.mubr.msk.bf16.mxu0 %vm14653_vm0, %v18168_v3 }
 0x2e6   : > { %12748 = vmatmul.mubr.bf16.gmra.mrb[24].mxu1 %v3370_v54 }
 0x2e7   : > { %12819 = vmatprep.mubr.msk.bf16.mxu1 %vm14653_vm0, %v18168_v3  ;;  %v2029_v9 = vpop.f32.mrb[172].mxu0 }
 0x2e8   : > { %v2052_v16 = vadd.f32 %v2029_v9, %v15719_v42  ;;  %v12385_v51 = vpop.f32.mrb[173].mxu0  ;;  %v14274_v42 = vld [vmem:[%s18145_s2 + $0x348] sm:$0xff]  }
 0x2e9   : > { %v2610_v60 = vpop.f32.mrb[176].mxu1  ;;  %v2032_v11 = vpop.f32.mrb[174].mxu0  ;;  %v3561_v9 = vld [vmem:[#allocation2 + $0x2c] sm:$0xff]  ;;  %v3778_v51 = vld [vmem:[#allocation2 + $0x3d] sm:$0xff] }
 0x2ea   : > { %v12509_v14 = vpop.f32.mrb[177].mxu1  ;;  %v12386_v10 = vpop.f32.mrb[175].mxu0  ;;  %v15873_v47 = vadd.f32 %v2244_v37, %v2052_v16  ;;  %v3793_v37 = vpack.c.bf16 %v3777_v34, %v3776_v6  ;;  %v3578_v16 = vpack.c.bf16 %v3562_v25, %v3561_v9  ;;  %v3783_v25 = vld [vmem:[#allocation2 + $0x65] sm:$0xff]  ;;  %v3782_v9 = vld [vmem:[#allocation2 + $0x5d] sm:$0xff] }
 0x2eb   : > { %v2613_v44 = vpop.f32.mrb[178].mxu1  ;;  %v3794_v14 = vpack.c.bf16 %v3779_v35, %v3778_v51  ;;  %v14271_v10 = vld [vmem:[%s18145_s2 + $0x318] sm:$0xff]  }
 0x2ec   : > { %v12510_v31 = vpop.f32.mrb[179].mxu1  ;;  %12696 = vmatmul.mubr.bf16.gmra.mrb[24].mxu0 %v3155_v45  ;;  %v3564_v45 = vld [vmem:[#allocation2 + $0x44] sm:$0xff] }
 0x2ed   : > { %12767 = vmatprep.mubr.msk.bf16.mxu0 %vm14653_vm0, %v18168_v3 }
 0x2ee   : > { %12820 = vmatmul.mubr.bf16.vlgmr.msra.gmra.mrb[28].mxu1 %v3792_v52 }
 0x2ef   : > { %12823 = vmatprep.mubr.msk.bf16.mxu1 %vm14653_vm0, %v18168_v3  ;;  %12908 = vmatpush3.bf16.msra.mxu1 %v14272_v27  ;;  %v2395_v49 = vpop.f32.mrb[176].mxu0  ;;  %v14280_v27 = vld [vmem:[%s18145_s2 + $0x368] sm:$0xff]  }
 0x2f0   : > { %12909 = vmatprep.subr.bf16.mxu1 %v18168_v3  ;;  %v2466_v46 = vadd.f32 %v2395_v49, %v15737_v12  ;;  %v12457_v56 = vpop.f32.mrb[177].mxu0 }
 0x2f1   : > { %v2618_v8 = vpop.f32.mrb[180].mxu1  ;;  %v2398_v13 = vpop.f32.mrb[178].mxu0  ;;  %v3563_v56 = vld [vmem:[#allocation2 + $0x3c] sm:$0xff] }
 0x2f2   : > { %v12513_v62 = vpop.f32.mrb[181].mxu1  ;;  %v2467_v5 = vadd.f32 %v2398_v13, %v15743_v26  ;;  %v12458_v57 = vpop.f32.mrb[179].mxu0  ;;  %v15888_v33 = vadd.f32 %v2610_v60, %v2466_v46  ;;  %v14269_v26 = vld [vmem:[%s18145_s2 + $0x308] sm:$0xff]   ;;  %v3579_v13 = vpack.c.bf16 %v3564_v45, %v3563_v56 }
 0x2f3   : > { %v2621_v61 = vpop.f32.mrb[182].mxu1  ;;  %12910 = vmatpush3.bf16.msra.mxu1 %v14274_v42  ;;  %v3780_v62 = vld [vmem:[#allocation2 + $0x4d] sm:$0xff] }
 0x2f4   : > { %v12514_v12 = vpop.f32.mrb[183].mxu1  ;;  %12911 = vmatprep.subr.bf16.mxu1 %v18168_v3  ;;  %12768 = vmatmul.mubr.bf16.vlgmr.msra.gmra.mrb[28].mxu0 %v3577_v4  ;;  %v15894_v24 = vadd.f32 %v2613_v44, %v2467_v5  ;;  %v3795_v5 = vpack.c.bf16 %v3781_v19, %v3780_v62 }
 0x2f5   : > { %12856 = vmatpush3.bf16.msra.mxu0 %v14268_v2  ;;  %12771 = vmatprep.mubr.msk.bf16.mxu0 %vm14653_vm0, %v18168_v3  ;;  %v14273_v2 = vld [vmem:[%s18145_s2 + $0x320] sm:$0xff]   ;;  %v3566_v12 = vld [vmem:[#allocation2 + $0x54] sm:$0xff] }
 0x2f6   : > { %12824 = vmatmul.mubr.bf16.gmra.mrb[32].mxu1 %v3793_v37  ;;  %12857 = vmatprep.subr.bf16.mxu0 %v18168_v3  ;;  %v14282_v37 = vld [vmem:[%s18145_s2 + $0x378] sm:$0xff]  }
 0x2f7   : > { %12827 = vmatprep.mubr.msk.bf16.mxu1 %vm14653_vm0, %v18168_v3  ;;  %v2403_v48 = vpop.f32.mrb[180].mxu0  ;;  %12912 = vmatpush3.bf16.msra.mxu1 %v14275_v41 }
 0x2f8   : > { %v2468_v36 = vadd.f32 %v2403_v48, %v15763_v39  ;;  %v12461_v18 = vpop.f32.mrb[181].mxu0  ;;  %12913 = vmatprep.subr.bf16.mxu1 %v18168_v3  ;;  %v14270_v39 = vld [vmem:[%s18145_s2 + $0x310] sm:$0xff]  }
 0x2f9   : > { %v2626_v28 = vpop.f32.mrb[184].mxu1  ;;  %v2406_v53 = vpop.f32.mrb[182].mxu0  ;;  %12858 = vmatpush3.bf16.msra.mxu0 %v14269_v26  ;;  %v3565_v18 = vld [vmem:[#allocation2 + $0x4c] sm:$0xff] }
 0x2fa   : > { %v12517_v54 = vpop.f32.mrb[185].mxu1  ;;  %v2469_v30 = vadd.f32 %v2406_v53, %v15769_v63  ;;  %v12462_v23 = vpop.f32.mrb[183].mxu0  ;;  %12859 = vmatprep.subr.bf16.mxu0 %v18168_v3  ;;  %v15914_v60 = vadd.f32 %v2618_v8, %v2468_v36 }
 0x2fb   : > { %v2629_v43 = vpop.f32.mrb[186].mxu1  ;;  %12914 = vmatpush3.bf16.msra.mxu1 %v14277_v17  ;;  %v3580_v54 = vpack.c.bf16 %v3566_v12, %v3565_v18 }
 0x2fc   : > { %v12518_v11 = vpop.f32.mrb[187].mxu1  ;;  %12772 = vmatmul.mubr.bf16.gmra.mrb[32].mxu0 %v3578_v16  ;;  %12915 = vmatprep.subr.bf16.mxu1 %v18168_v3  ;;  %v15920_v63 = vadd.f32 %v2621_v61, %v2469_v30  ;;  %v14276_v61 = vld [vmem:[%s18145_s2 + $0x328] sm:$0xff]   ;;  %v14279_v30 = vld [vmem:[%s18145_s2 + $0x330] sm:$0xff]  }
 0x2fd   : > { %12775 = vmatprep.mubr.msk.bf16.mxu0 %vm14653_vm0, %v18168_v3  ;;  %12860 = vmatpush3.bf16.msra.mxu0 %v14270_v39  ;;  %v3568_v39 = vld [vmem:[#allocation2 + $0x64] sm:$0xff] }
 0x2fe   : > { %12828 = vmatmul.mubr.bf16.gmra.mrb[36].mxu1 %v3794_v14  ;;  %12861 = vmatprep.subr.bf16.mxu0 %v18168_v3 }
 0x2ff   : > { %12831 = vmatprep.mubr.msk.bf16.mxu1 %vm14653_vm0, %v18168_v3  ;;  %v2411_v44 = vpop.f32.mrb[184].mxu0  ;;  %12916 = vmatpush3.bf16.msra.mxu1 %v14278_v21 }
 0x300   : > { %v2470_v52 = vadd.f32 %v2411_v44, %v15788_v7  ;;  %v12465_v31 = vpop.f32.mrb[185].mxu0  ;;  %12917 = vmatprep.subr.bf16.mxu1 %v18168_v3 }
 0x301   : > { %v2634_v42 = vpop.f32.mrb[188].mxu1  ;;  %v2414_v49 = vpop.f32.mrb[186].mxu0  ;;  %12862 = vmatpush3.bf16.msra.mxu0 %v14271_v10  ;;  %v3785_v10 = vld [vmem:[#allocation2 + $0x75] sm:$0xff] }
 0x302   : > { %v12521_v46 = vpop.f32.mrb[189].mxu1  ;;  %v2471_v8 = vadd.f32 %v2414_v49, %v15795_v59  ;;  %v12466_v34 = vpop.f32.mrb[187].mxu0  ;;  %v15939_v7 = vadd.f32 %v2626_v28, %v2470_v52  ;;  %12863 = vmatprep.subr.bf16.mxu0 %v18168_v3  ;;  %v14281_v59 = vld [vmem:[%s18145_s2 + $0x370] sm:$0xff]  }
 0x303   : > { %v2637_v32 = vpop.f32.mrb[190].mxu1  ;;  %12918 = vmatpush3.bf16.msra.mxu1 %v14280_v27  ;;  %v3567_v27 = vld [vmem:[#allocation2 + $0x5c] sm:$0xff]  ;;  %v3784_v49 = vld [vmem:[#allocation2 + $0x6d] sm:$0xff] }
 0x304   : > { %v12522_v4 = vpop.f32.mrb[191].mxu1  ;;  %12776 = vmatmul.mubr.bf16.gmra.mrb[36].mxu0 %v3579_v13  ;;  %12919 = vmatprep.subr.bf16.mxu1 %v18168_v3  ;;  %v15946_v57 = vadd.f32 %v2629_v43, %v2471_v8  ;;  %v3796_v43 = vpack.c.bf16 %v3783_v25, %v3782_v9  ;;  %v3581_v19 = vpack.c.bf16 %v3568_v39, %v3567_v27  ;;  %v3570_v34 = vld [vmem:[#allocation2 + $0x74] sm:$0xff]  ;;  %v3571_v9 = vld [vmem:[#allocation2 + $0x7c] sm:$0xff]  ;;  %v3791_v27 = vld [vmem:[#allocation2 + $0xa5] sm:$0xf] }
 0x305   : > { %12779 = vmatprep.mubr.msk.bf16.mxu0 %vm14653_vm0, %v18168_v3  ;;  %12864 = vmatpush3.bf16.msra.mxu0 %v14273_v2  ;;  %v3797_v8 = vpack.c.bf16 %v3785_v10, %v3784_v49  ;;  %v3787_v2 = vld [vmem:[#allocation2 + $0x85] sm:$0xff] }
 0x306   : > { %12832 = vmatmul.mubr.bf16.gmra.mrb[40].mxu1 %v3795_v5  ;;  %12865 = vmatprep.subr.bf16.mxu0 %v18168_v3 }
 0x307   : > { %12835 = vmatprep.mubr.msk.bf16.mxu1 %vm14653_vm0, %v18168_v3  ;;  %v2419_v6 = vpop.f32.mrb[188].mxu0  ;;  %12920 = vmatpush3.bf16.msra.mxu1 %v14281_v59  ;;  %v3569_v59 = vld [vmem:[#allocation2 + $0x6c] sm:$0xff] }
 0x308   : > { %v2472_v41 = vadd.f32 %v2419_v6, %v15814_v38  ;;  %v12469_v26 = vpop.f32.mrb[189].mxu0  ;;  %12921 = vmatprep.subr.bf16.mxu1 %v18168_v3 }
 0x309   : > { %v2642_v48 = vpop.f32.mrb[192].mxu1  ;;  %v2422_v17 = vpop.f32.mrb[190].mxu0  ;;  %12866 = vmatpush3.bf16.msra.mxu0 %v14276_v61 }
 0x30a   : > { %v12525_v36 = vpop.f32.mrb[193].mxu1  ;;  %v2473_v28 = vadd.f32 %v2422_v17, %v15817_v0  ;;  %v12470_v35 = vpop.f32.mrb[191].mxu0  ;;  %v15965_v38 = vadd.f32 %v2634_v42, %v2472_v41  ;;  %12867 = vmatprep.subr.bf16.mxu0 %v18168_v3  ;;  %v14283_v0 = vld [vmem:[%s18145_s2 + $0x338] sm:$0xff]  }
 0x30b   : > { %v2645_v53 = vpop.f32.mrb[194].mxu1  ;;  %12922 = vmatpush3.bf16.msra.mxu1 %v14282_v37  ;;  %v3582_v37 = vpack.c.bf16 %v3570_v34, %v3569_v59  ;;  %v3786_v41 = vld [vmem:[#allocation2 + $0x7d] sm:$0xff]  ;;  %v3789_v35 = vld [vmem:[#allocation2 + $0x95] sm:$0xff] }
 0x30c   : > { %v12526_v23 = vpop.f32.mrb[195].mxu1  ;;  %12780 = vmatmul.mubr.bf16.gmra.mrb[40].mxu0 %v3580_v54  ;;  %v15968_v16 = vadd.f32 %v2637_v32, %v2473_v28  ;;  %13011 = vmatprep.subr.bf16.mxu1 %v18168_v3  ;;  %v3798_v25 = vpack.c.bf16 %v3787_v2, %v3786_v41  ;;  %v3576_v2 = vld [vmem:[#allocation2 + $0xa4] sm:$0xf] }
 0x30d   : > { %12783 = vmatprep.mubr.msk.bf16.mxu0 %vm14653_vm0, %v18168_v3  ;;  %12868 = vmatpush3.bf16.msra.mxu0 %v14279_v30 }
 0x30e   : > { %12836 = vmatmul.mubr.bf16.gmra.mrb[44].mxu1 %v3796_v43  ;;  %12869 = vmatprep.subr.bf16.mxu0 %v18168_v3 }
 0x30f   : > { %12839 = vmatprep.mubr.msk.bf16.mxu1 %vm14653_vm0, %v18168_v3  ;;  %v2427_v51 = vpop.f32.mrb[192].mxu0 }
 0x310   : > { %v2474_v11 = vadd.f32 %v2427_v51, %v15830_v1  ;;  %v12473_v14 = vpop.f32.mrb[193].mxu0  ;;  %v3788_v51 = vld [vmem:[#allocation2 + $0x8d] sm:$0xff] }
 0x311   : > { %v2650_v21 = vpop.f32.mrb[196].mxu1  ;;  %v2430_v44 = vpop.f32.mrb[194].mxu0  ;;  %12870 = vmatpush3.bf16.msra.mxu0 %v14283_v0  ;;  %v3799_v14 = vpack.c.bf16 %v3789_v35, %v3788_v51  ;;  %v14284_v51 = vld [vmem:[%s18145_s2 + $0x380] sm:$0xff]  }
 0x312   : > { %v12529_v45 = vpop.f32.mrb[197].mxu1  ;;  %v2475_v52 = vadd.f32 %v2430_v44, %v15833_v20  ;;  %v12474_v31 = vpop.f32.mrb[195].mxu0  ;;  %v15981_v46 = vadd.f32 %v2642_v48, %v2474_v11  ;;  %12959 = vmatprep.subr.bf16.mxu0 %v18168_v3 }
 0x313   : > { %v2653_v42 = vpop.f32.mrb[198].mxu1 }
 0x314   : > { %v12530_v56 = vpop.f32.mrb[199].mxu1  ;;  %12784 = vmatmul.mubr.bf16.gmra.mrb[44].mxu0 %v3581_v19  ;;  %v15984_v1 = vadd.f32 %v2645_v53, %v2475_v52 }
 0x315   : > { %12787 = vmatprep.mubr.msk.bf16.mxu0 %vm14653_vm0, %v18168_v3 }
 0x316   : > { %12840 = vmatmul.mubr.bf16.gmra.mrb[48].mxu1 %v3797_v8 }
 0x317   : > { %12843 = vmatprep.mubr.msk.bf16.mxu1 %vm14653_vm0, %v18168_v3  ;;  %v2435_v20 = vpop.f32.mrb[196].mxu0 }
 0x318   : > { %v2476_v32 = vadd.f32 %v2435_v20, %v15841_v58  ;;  %v12477_v13 = vpop.f32.mrb[197].mxu0  ;;  %v3790_v20 = vld [vmem:[#allocation2 + $0x9d] sm:$0xff] }
 0x319   : > { %v2658_v62 = vpop.f32.mrb[200].mxu1  ;;  %v2438_v4 = vpop.f32.mrb[198].mxu0  ;;  %v3800_v13 = vpack.c.bf16 %v3791_v27, %v3790_v20  ;;  %v14291_v27 = vld [vmem:[%s18145_s2 + $0x3d0] sm:$0xff]   ;;  %v4209_v20 = vld [vmem:[#allocation2 + $0x47] sm:$0xff] }
 0x31a   : > { %v12533_v5 = vpop.f32.mrb[201].mxu1  ;;  %v2477_v61 = vadd.f32 %v2438_v4, %v15843_v22  ;;  %v12478_v6 = vpop.f32.mrb[199].mxu0  ;;  %v15992_v26 = vadd.f32 %v2650_v21, %v2476_v32  ;;  %v3572_v22 = vld [vmem:[#allocation2 + $0x84] sm:$0xff] }
 0x31b   : > { %v2661_v12 = vpop.f32.mrb[202].mxu1  ;;  %v3583_v0 = vpack.c.bf16 %v3572_v22, %v3571_v9  ;;  %v4205_v4 = vld [vmem:[#allocation2 + $0x27] sm:$0xff] }
 0x31c   : > { %v12534_v48 = vpop.f32.mrb[203].mxu1  ;;  %12788 = vmatmul.mubr.bf16.gmra.mrb[48].mxu0 %v3582_v37  ;;  %v15994_v17 = vadd.f32 %v2653_v42, %v2477_v61  ;;  %v3573_v42 = vld [vmem:[#allocation2 + $0x8c] sm:$0xff]  ;;  %v4204_v37 = vld [vmem:[#allocation2 + $0x1f] sm:$0xff] }
 0x31d   : > { %12791 = vmatprep.mubr.msk.bf16.mxu0 %vm14653_vm0, %v18168_v3 }
 0x31e   : > { %12844 = vmatmul.mubr.bf16.gmra.mrb[52].mxu1 %v3798_v25 }
 0x31f   : > { %12847 = vmatprep.mubr.msk.bf16.mxu1 %vm14653_vm0, %v18168_v3  ;;  %v2443_v58 = vpop.f32.mrb[200].mxu0 }
 0x320   : > { %v2478_v36 = vadd.f32 %v2443_v58, %v15851_v50  ;;  %v12481_v18 = vpop.f32.mrb[201].mxu0  ;;  %v14288_v58 = vld [vmem:[%s18145_s2 + $0x3c0] sm:$0xff]  }
 0x321   : > { %v2666_v28 = vpop.f32.mrb[204].mxu1  ;;  %v2446_v53 = vpop.f32.mrb[202].mxu0 }
 0x322   : > { %v12537_v54 = vpop.f32.mrb[205].mxu1  ;;  %v2479_v30 = vadd.f32 %v2446_v53, %v15853_v40  ;;  %v12482_v23 = vpop.f32.mrb[203].mxu0  ;;  %v16002_v39 = vadd.f32 %v2658_v62, %v2478_v36  ;;  %v3574_v40 = vld [vmem:[#allocation2 + $0x94] sm:$0xff]  ;;  %v4222_v36 = vpack.c.bf16 %v4205_v4, %v4204_v37  ;;  %v14294_v37 = vld [vmem:[%s18145_s2 + $0x3e0] sm:$0xff]  }
 0x323   : > { %v2669_v43 = vpop.f32.mrb[206].mxu1  ;;  %v3584_v8 = vpack.c.bf16 %v3574_v40, %v3573_v42  ;;  %v3989_v23 = vld [vmem:[#allocation2 + $0x1e] sm:$0xff]  ;;  %v3992_v42 = vld [vmem:[#allocation2 + $0x36] sm:$0xff] }
 0x324   : > { %v12538_v11 = vpop.f32.mrb[207].mxu1  ;;  %12792 = vmatmul.mubr.bf16.gmra.mrb[52].mxu0 %v3583_v0  ;;  %v16004_v21 = vadd.f32 %v2661_v12, %v2479_v30  ;;  %v4207_v30 = vld [vmem:[#allocation2 + $0x37] sm:$0xff] }
 0x325   : > { %12795 = vmatprep.mubr.msk.bf16.mxu0 %vm14653_vm0, %v18168_v3 }
 0x326   : > { %12848 = vmatmul.mubr.bf16.gmra.mrb[56].mxu1 %v3799_v14 }
 0x327   : > { %12851 = vmatprep.mubr.msk.bf16.mxu1 %vm14653_vm0, %v18168_v3  ;;  %v2451_v50 = vpop.f32.mrb[204].mxu0 }
 0x328   : > { %v2480_v10 = vadd.f32 %v2451_v50, %v15861_v29  ;;  %v12485_v44 = vpop.f32.mrb[205].mxu0 }
 0x329   : > { %v2674_v45 = vpop.f32.mrb[208].mxu1  ;;  %v2454_v52 = vpop.f32.mrb[206].mxu0 }
 0x32a   : > { %v12541_v31 = vpop.f32.mrb[209].mxu1  ;;  %v2481_v19 = vadd.f32 %v2454_v52, %v15863_v55  ;;  %v12486_v49 = vpop.f32.mrb[207].mxu0  ;;  %v16012_v34 = vadd.f32 %v2666_v28, %v2480_v10  ;;  %v3575_v55 = vld [vmem:[#allocation2 + $0x9c] sm:$0xff]  ;;  %v3990_v28 = vld [vmem:[#allocation2 + $0x26] sm:$0xff]  ;;  %v4206_v10 = vld [vmem:[#allocation2 + $0x2f] sm:$0xff] }
 0x32b   : > { %v2677_v56 = vpop.f32.mrb[210].mxu1  ;;  %v3585_v25 = vpack.c.bf16 %v3576_v2, %v3575_v55  ;;  %v4007_v11 = vpack.c.bf16 %v3990_v28, %v3989_v23  ;;  %v4211_v28 = vld [vmem:[#allocation2 + $0x57] sm:$0xff] }
 0x32c   : > { %v12542_v32 = vpop.f32.mrb[211].mxu1  ;;  %12796 = vmatmul.mubr.bf16.gmra.mrb[56].mxu0 %v3584_v8  ;;  %v16014_v62 = vadd.f32 %v2669_v43, %v2481_v19  ;;  %v14293_v19 = vld [vmem:[%s18145_s2 + $0x3d8] sm:$0xff]  }
 0x32d   : > { %12799 = vmatprep.mubr.msk.bf16.mxu0 %vm14653_vm0, %v18168_v3 }
 0x32e   : > { %12852 = vmatmul.mubr.bf16.gmra.mrb[60].mxu1 %v3800_v13 }
 0x32f   : > { %12923 = vmatprep.mubr.msk.bf16.mxu1 %vm14653_vm0, %v18168_v3  ;;  %v2459_v29 = vpop.f32.mrb[208].mxu0 }
 0x330   : > { %v2482_v5 = vadd.f32 %v2459_v29, %v15873_v47  ;;  %v12489_v59 = vpop.f32.mrb[209].mxu0  ;;  %v14290_v47 = vld [vmem:[%s18145_s2 + $0x3c8] sm:$0xff]  }
 0x331   : > { %v3040_v61 = vpop.f32.mrb[212].mxu1  ;;  %v2462_v6 = vpop.f32.mrb[210].mxu0  ;;  %v3991_v29 = vld [vmem:[#allocation2 + $0x2e] sm:$0xff]  ;;  %v4208_v59 = vld [vmem:[#allocation2 + $0x3f] sm:$0xff] }
 0x332   : > { %v12613_v12 = vpop.f32.mrb[213].mxu1  ;;  %v12490_v41 = vpop.f32.mrb[211].mxu0  ;;  %v16024_v22 = vadd.f32 %v2674_v45, %v2482_v5  ;;  %v4223_v45 = vpack.c.bf16 %v4207_v30, %v4206_v10  ;;  %v4008_v5 = vpack.c.bf16 %v3992_v42, %v3991_v29  ;;  %v4213_v42 = vld [vmem:[#allocation2 + $0x67] sm:$0xff]  ;;  %v4212_v29 = vld [vmem:[#allocation2 + $0x5f] sm:$0xff] }
 0x333   : > { %v3043_v48 = vpop.f32.mrb[214].mxu1  ;;  %v4224_v12 = vpack.c.bf16 %v4209_v20, %v4208_v59  ;;  %v14287_v41 = vld [vmem:[%s18145_s2 + $0x398] sm:$0xff]  }
 0x334   : > { %v12614_v18 = vpop.f32.mrb[215].mxu1  ;;  %12800 = vmatmul.mubr.bf16.gmra.mrb[60].mxu0 %v3585_v25  ;;  %v3994_v25 = vld [vmem:[#allocation2 + $0x46] sm:$0xff] }
 0x335   : > { %12871 = vmatprep.mubr.msk.bf16.mxu0 %vm14653_vm0, %v18168_v3 }
 0x336   : > { %12924 = vmatmul.mubr.bf16.vlgmr.msra.gmra.mrb[64].mxu1 %v4222_v36 }
 0x337   : > { %12927 = vmatprep.mubr.msk.bf16.mxu1 %vm14653_vm0, %v18168_v3  ;;  %13012 = vmatpush3.bf16.msra.mxu1 %v14288_v58  ;;  %v2825_v35 = vpop.f32.mrb[212].mxu0  ;;  %v14296_v58 = vld [vmem:[%s18145_s2 + $0x3e8] sm:$0xff]  }
 0x338   : > { %13013 = vmatprep.subr.bf16.mxu1 %v18168_v3  ;;  %v2896_v53 = vadd.f32 %v2825_v35, %v15888_v33  ;;  %v12561_v54 = vpop.f32.mrb[213].mxu0 }
 0x339   : > { %v3048_v9 = vpop.f32.mrb[216].mxu1  ;;  %v2828_v43 = vpop.f32.mrb[214].mxu0  ;;  %v3993_v54 = vld [vmem:[#allocation2 + $0x3e] sm:$0xff] }
 0x33a   : > { %v12617_v0 = vpop.f32.mrb[217].mxu1  ;;  %v2897_v14 = vadd.f32 %v2828_v43, %v15894_v24  ;;  %v12562_v50 = vpop.f32.mrb[215].mxu0  ;;  %v16039_v44 = vadd.f32 %v3040_v61, %v2896_v53  ;;  %v14285_v24 = vld [vmem:[%s18145_s2 + $0x388] sm:$0xff]   ;;  %v4009_v43 = vpack.c.bf16 %v3994_v25, %v3993_v54 }
 0x33b   : > { %v3051_v40 = vpop.f32.mrb[218].mxu1  ;;  %13014 = vmatpush3.bf16.msra.mxu1 %v14290_v47  ;;  %v4210_v0 = vld [vmem:[#allocation2 + $0x4f] sm:$0xff] }
 0x33c   : > { %v12618_v33 = vpop.f32.mrb[219].mxu1  ;;  %13015 = vmatprep.subr.bf16.mxu1 %v18168_v3  ;;  %12872 = vmatmul.mubr.bf16.vlgmr.msra.gmra.mrb[64].mxu0 %v4007_v11  ;;  %v16045_v52 = vadd.f32 %v3043_v48, %v2897_v14  ;;  %v4225_v14 = vpack.c.bf16 %v4211_v28, %v4210_v0 }
 0x33d   : > { %12960 = vmatpush3.bf16.msra.mxu0 %v14284_v51  ;;  %12875 = vmatprep.mubr.msk.bf16.mxu0 %vm14653_vm0, %v18168_v3  ;;  %v14289_v51 = vld [vmem:[%s18145_s2 + $0x3a0] sm:$0xff]   ;;  %v3996_v33 = vld [vmem:[#allocation2 + $0x56] sm:$0xff] }
 0x33e   : > { %12928 = vmatmul.mubr.bf16.gmra.mrb[68].mxu1 %v4223_v45  ;;  %12961 = vmatprep.subr.bf16.mxu0 %v18168_v3  ;;  %v14298_v45 = vld [vmem:[%s18145_s2 + $0x3f8] sm:$0xff]  }
 0x33f   : > { %12931 = vmatprep.mubr.msk.bf16.mxu1 %vm14653_vm0, %v18168_v3  ;;  %v2833_v31 = vpop.f32.mrb[216].mxu0  ;;  %13016 = vmatpush3.bf16.msra.mxu1 %v14291_v27 }
 0x340   : > { %v2898_v49 = vadd.f32 %v2833_v31, %v15914_v60  ;;  %v12565_v56 = vpop.f32.mrb[217].mxu0  ;;  %13017 = vmatprep.subr.bf16.mxu1 %v18168_v3  ;;  %v14286_v60 = vld [vmem:[%s18145_s2 + $0x390] sm:$0xff]  }
 0x341   : > { %v3056_v8 = vpop.f32.mrb[220].mxu1  ;;  %v2836_v32 = vpop.f32.mrb[218].mxu0  ;;  %12962 = vmatpush3.bf16.msra.mxu0 %v14285_v24  ;;  %v3995_v56 = vld [vmem:[#allocation2 + $0x4e] sm:$0xff] }
 0x342   : > { %v12621_v13 = vpop.f32.mrb[221].mxu1  ;;  %v2899_v55 = vadd.f32 %v2836_v32, %v15920_v63  ;;  %v12566_v2 = vpop.f32.mrb[219].mxu0  ;;  %12963 = vmatprep.subr.bf16.mxu0 %v18168_v3  ;;  %v16065_v61 = vadd.f32 %v3048_v9, %v2898_v49 }
 0x343   : > { %v3059_v4 = vpop.f32.mrb[222].mxu1  ;;  %13018 = vmatpush3.bf16.msra.mxu1 %v14293_v19  ;;  %v4010_v13 = vpack.c.bf16 %v3996_v33, %v3995_v56 }
 0x344   : > { %v12622_v6 = vpop.f32.mrb[223].mxu1  ;;  %12876 = vmatmul.mubr.bf16.gmra.mrb[68].mxu0 %v4008_v5  ;;  %13019 = vmatprep.subr.bf16.mxu1 %v18168_v3  ;;  %v16071_v63 = vadd.f32 %v3051_v40, %v2899_v55  ;;  %v14292_v40 = vld [vmem:[%s18145_s2 + $0x3a8] sm:$0xff]   ;;  %v14295_v55 = vld [vmem:[%s18145_s2 + $0x3b0] sm:$0xff]  }
 0x345   : > { %12879 = vmatprep.mubr.msk.bf16.mxu0 %vm14653_vm0, %v18168_v3  ;;  %12964 = vmatpush3.bf16.msra.mxu0 %v14286_v60  ;;  %v3998_v60 = vld [vmem:[#allocation2 + $0x66] sm:$0xff] }
 0x346   : > { %12932 = vmatmul.mubr.bf16.gmra.mrb[72].mxu1 %v4224_v12  ;;  %12965 = vmatprep.subr.bf16.mxu0 %v18168_v3 }
 0x347   : > { %12935 = vmatprep.mubr.msk.bf16.mxu1 %vm14653_vm0, %v18168_v3  ;;  %v2841_v48 = vpop.f32.mrb[220].mxu0  ;;  %13020 = vmatpush3.bf16.msra.mxu1 %v14294_v37 }
 0x348   : > { %v2900_v36 = vadd.f32 %v2841_v48, %v15939_v7  ;;  %v12569_v18 = vpop.f32.mrb[221].mxu0  ;;  %13021 = vmatprep.subr.bf16.mxu1 %v18168_v3 }
 0x349   : > { %v3064_v47 = vpop.f32.mrb[224].mxu1  ;;  %v2844_v35 = vpop.f32.mrb[222].mxu0  ;;  %12966 = vmatpush3.bf16.msra.mxu0 %v14287_v41  ;;  %v4215_v41 = vld [vmem:[#allocation2 + $0x77] sm:$0xff] }
 0x34a   : > { %v12625_v53 = vpop.f32.mrb[225].mxu1  ;;  %v2901_v9 = vadd.f32 %v2844_v35, %v15946_v57  ;;  %v12570_v30 = vpop.f32.mrb[223].mxu0  ;;  %v16090_v7 = vadd.f32 %v3056_v8, %v2900_v36  ;;  %12967 = vmatprep.subr.bf16.mxu0 %v18168_v3  ;;  %v14297_v57 = vld [vmem:[%s18145_s2 + $0x3f0] sm:$0xff]  }
 0x34b   : > { %v3067_v23 = vpop.f32.mrb[226].mxu1  ;;  %13022 = vmatpush3.bf16.msra.mxu1 %v14296_v58  ;;  %v3997_v58 = vld [vmem:[#allocation2 + $0x5e] sm:$0xff]  ;;  %v4214_v35 = vld [vmem:[#allocation2 + $0x6f] sm:$0xff] }
 0x34c   : > { %v12626_v11 = vpop.f32.mrb[227].mxu1  ;;  %12880 = vmatmul.mubr.bf16.gmra.mrb[72].mxu0 %v4009_v43  ;;  %13023 = vmatprep.subr.bf16.mxu1 %v18168_v3  ;;  %v16097_v50 = vadd.f32 %v3059_v4, %v2901_v9  ;;  %v4226_v4 = vpack.c.bf16 %v4213_v42, %v4212_v29  ;;  %v4011_v28 = vpack.c.bf16 %v3998_v60, %v3997_v58  ;;  %v4000_v30 = vld [vmem:[#allocation2 + $0x76] sm:$0xff]  ;;  %v4001_v29 = vld [vmem:[#allocation2 + $0x7e] sm:$0xff]  ;;  %v4221_v58 = vld [vmem:[#allocation2 + $0xa7] sm:$0xf] }
 0x34d   : > { %12883 = vmatprep.mubr.msk.bf16.mxu0 %vm14653_vm0, %v18168_v3  ;;  %12968 = vmatpush3.bf16.msra.mxu0 %v14289_v51  ;;  %v4227_v9 = vpack.c.bf16 %v4215_v41, %v4214_v35  ;;  %v4217_v51 = vld [vmem:[#allocation2 + $0x87] sm:$0xff] }
 0x34e   : > { %12936 = vmatmul.mubr.bf16.gmra.mrb[76].mxu1 %v4225_v14  ;;  %12969 = vmatprep.subr.bf16.mxu0 %v18168_v3 }
 0x34f   : > { %12939 = vmatprep.mubr.msk.bf16.mxu1 %vm14653_vm0, %v18168_v3  ;;  %v2849_v10 = vpop.f32.mrb[224].mxu0  ;;  %13024 = vmatpush3.bf16.msra.mxu1 %v14297_v57  ;;  %v3999_v57 = vld [vmem:[#allocation2 + $0x6e] sm:$0xff] }
 0x350   : > { %v2902_v27 = vadd.f32 %v2849_v10, %v15965_v38  ;;  %v12573_v24 = vpop.f32.mrb[225].mxu0  ;;  %13025 = vmatprep.subr.bf16.mxu1 %v18168_v3 }
 0x351   : > { %v3072_v31 = vpop.f32.mrb[228].mxu1  ;;  %v2852_v19 = vpop.f32.mrb[226].mxu0  ;;  %12970 = vmatpush3.bf16.msra.mxu0 %v14292_v40 }
 0x352   : > { %v12629_v49 = vpop.f32.mrb[229].mxu1  ;;  %v2903_v8 = vadd.f32 %v2852_v19, %v15968_v16  ;;  %v12574_v20 = vpop.f32.mrb[227].mxu0  ;;  %v16116_v38 = vadd.f32 %v3064_v47, %v2902_v27  ;;  %12971 = vmatprep.subr.bf16.mxu0 %v18168_v3  ;;  %v14299_v16 = vld [vmem:[%s18145_s2 + $0x3b8] sm:$0xff]  }
 0x353   : > { %v3075_v32 = vpop.f32.mrb[230].mxu1  ;;  %13026 = vmatpush3.bf16.msra.mxu1 %v14298_v45  ;;  %v4012_v45 = vpack.c.bf16 %v4000_v30, %v3999_v57  ;;  %v4216_v27 = vld [vmem:[#allocation2 + $0x7f] sm:$0xff]  ;;  %v4219_v20 = vld [vmem:[#allocation2 + $0x97] sm:$0xff] }
 0x354   : > { %v12630_v2 = vpop.f32.mrb[231].mxu1  ;;  %12884 = vmatmul.mubr.bf16.gmra.mrb[76].mxu0 %v4010_v13  ;;  %v16119_v5 = vadd.f32 %v3067_v23, %v2903_v8  ;;  %13115 = vmatprep.subr.bf16.mxu1 %v18168_v3  ;;  %v4228_v42 = vpack.c.bf16 %v4217_v51, %v4216_v27  ;;  %v4635_v57 = vld [vmem:[#allocation2 + $0x32] sm:$0xff] }
 0x355   : > { %12887 = vmatprep.mubr.msk.bf16.mxu0 %vm14653_vm0, %v18168_v3  ;;  %12972 = vmatpush3.bf16.msra.mxu0 %v14295_v55 }
 0x356   : > { %12940 = vmatmul.mubr.bf16.gmra.mrb[80].mxu1 %v4226_v4  ;;  %12973 = vmatprep.subr.bf16.mxu0 %v18168_v3 }
 0x357   : > { %12943 = vmatprep.mubr.msk.bf16.mxu1 %vm14653_vm0, %v18168_v3  ;;  %v2857_v59 = vpop.f32.mrb[228].mxu0 }
 0x358   : > { %v2904_v6 = vadd.f32 %v2857_v59, %v15981_v46  ;;  %v12577_v12 = vpop.f32.mrb[229].mxu0  ;;  %v4218_v59 = vld [vmem:[#allocation2 + $0x8f] sm:$0xff] }
 0x359   : > { %v3080_v37 = vpop.f32.mrb[232].mxu1  ;;  %v2860_v48 = vpop.f32.mrb[230].mxu0  ;;  %12974 = vmatpush3.bf16.msra.mxu0 %v14299_v16  ;;  %v4229_v12 = vpack.c.bf16 %v4219_v20, %v4218_v59 }
 0x35a   : > { %v12633_v25 = vpop.f32.mrb[233].mxu1  ;;  %v2905_v36 = vadd.f32 %v2860_v48, %v15984_v1  ;;  %v12578_v18 = vpop.f32.mrb[231].mxu0  ;;  %v16132_v53 = vadd.f32 %v3072_v31, %v2904_v6  ;;  %13063 = vmatprep.subr.bf16.mxu0 %v18168_v3 }
 0x35b   : > { %v3083_v47 = vpop.f32.mrb[234].mxu1 }
 0x35c   : > { %v12634_v54 = vpop.f32.mrb[235].mxu1  ;;  %12888 = vmatmul.mubr.bf16.gmra.mrb[80].mxu0 %v4011_v28  ;;  %v16135_v46 = vadd.f32 %v3075_v32, %v2905_v36 }
 0x35d   : > { %12891 = vmatprep.mubr.msk.bf16.mxu0 %vm14653_vm0, %v18168_v3 }
 0x35e   : > { %12944 = vmatmul.mubr.bf16.gmra.mrb[84].mxu1 %v4227_v9 }
 0x35f   : > { %12947 = vmatprep.mubr.msk.bf16.mxu1 %vm14653_vm0, %v18168_v3  ;;  %v2865_v1 = vpop.f32.mrb[232].mxu0 }
 0x360   : > { %v2906_v23 = vadd.f32 %v2865_v1, %v15992_v26  ;;  %v12581_v43 = vpop.f32.mrb[233].mxu0  ;;  %v4220_v1 = vld [vmem:[#allocation2 + $0x9f] sm:$0xff] }
 0x361   : > { %v3088_v0 = vpop.f32.mrb[236].mxu1  ;;  %v2868_v11 = vpop.f32.mrb[234].mxu0  ;;  %v4230_v43 = vpack.c.bf16 %v4221_v58, %v4220_v1  ;;  %v4422_v58 = vld [vmem:[#allocation2 + $0x38] sm:$0xff] }
 0x362   : > { %v12637_v14 = vpop.f32.mrb[237].mxu1  ;;  %v2907_v40 = vadd.f32 %v2868_v11, %v15994_v17  ;;  %v12582_v10 = vpop.f32.mrb[235].mxu0  ;;  %v16143_v24 = vadd.f32 %v3080_v37, %v2906_v23  ;;  %v4002_v17 = vld [vmem:[#allocation2 + $0x86] sm:$0xff] }
 0x363   : > { %v3091_v33 = vpop.f32.mrb[238].mxu1  ;;  %v4013_v16 = vpack.c.bf16 %v4002_v17, %v4001_v29  ;;  %v4637_v29 = vld [vmem:[#allocation2 + $0x42] sm:$0xff] }
 0x364   : > { %v12638_v31 = vpop.f32.mrb[239].mxu1  ;;  %12892 = vmatmul.mubr.bf16.gmra.mrb[84].mxu0 %v4012_v45  ;;  %v16145_v19 = vadd.f32 %v3083_v47, %v2907_v40  ;;  %v4003_v47 = vld [vmem:[#allocation2 + $0x8e] sm:$0xff] }
 0x365   : > { %12895 = vmatprep.mubr.msk.bf16.mxu0 %vm14653_vm0, %v18168_v3 }
 0x366   : > { %12948 = vmatmul.mubr.bf16.gmra.mrb[88].mxu1 %v4228_v42  ;;  %v4634_v42 = vld [vmem:[#allocation2 + $0x2a] sm:$0xff] }
 0x367   : > { %12951 = vmatprep.mubr.msk.bf16.mxu1 %vm14653_vm0, %v18168_v3  ;;  %v2873_v26 = vpop.f32.mrb[236].mxu0 }
 0x368   : > { %v2908_v49 = vadd.f32 %v2873_v26, %v16002_v39  ;;  %v12585_v56 = vpop.f32.mrb[237].mxu0  ;;  %v14304_v26 = vld [vmem:[%s18145_s2 + $0x440] sm:$0xff]  }
 0x369   : > { %v3096_v8 = vpop.f32.mrb[240].mxu1  ;;  %v2876_v32 = vpop.f32.mrb[238].mxu0  ;;  %v4652_v56 = vpack.c.bf16 %v4635_v57, %v4634_v42  ;;  %v14310_v57 = vld [vmem:[%s18145_s2 + $0x460] sm:$0xff]  }
 0x36a   : > { %v12641_v13 = vpop.f32.mrb[241].mxu1  ;;  %v2909_v55 = vadd.f32 %v2876_v32, %v16004_v21  ;;  %v12586_v2 = vpop.f32.mrb[239].mxu0  ;;  %v16153_v60 = vadd.f32 %v3088_v0, %v2908_v49  ;;  %v4004_v21 = vld [vmem:[#allocation2 + $0x96] sm:$0xff] }
 0x36b   : > { %v3099_v4 = vpop.f32.mrb[242].mxu1  ;;  %v4014_v9 = vpack.c.bf16 %v4004_v21, %v4003_v47 }
 0x36c   : > { %v12642_v6 = vpop.f32.mrb[243].mxu1  ;;  %12896 = vmatmul.mubr.bf16.gmra.mrb[88].mxu0 %v4013_v16  ;;  %v16155_v37 = vadd.f32 %v3091_v33, %v2909_v55  ;;  %v4005_v33 = vld [vmem:[#allocation2 + $0x9e] sm:$0xff] }
 0x36d   : > { %12899 = vmatprep.mubr.msk.bf16.mxu0 %vm14653_vm0, %v18168_v3 }
 0x36e   : > { %12952 = vmatmul.mubr.bf16.gmra.mrb[92].mxu1 %v4229_v12  ;;  %v4636_v12 = vld [vmem:[#allocation2 + $0x3a] sm:$0xff] }
 0x36f   : > { %12955 = vmatprep.mubr.msk.bf16.mxu1 %vm14653_vm0, %v18168_v3  ;;  %v2881_v39 = vpop.f32.mrb[240].mxu0 }
 0x370   : > { %v2910_v41 = vadd.f32 %v2881_v39, %v16012_v34  ;;  %v12589_v48 = vpop.f32.mrb[241].mxu0 }
 0x371   : > { %v3104_v25 = vpop.f32.mrb[244].mxu1  ;;  %v2884_v36 = vpop.f32.mrb[242].mxu0 }
 0x372   : > { %v12645_v18 = vpop.f32.mrb[245].mxu1  ;;  %v2911_v28 = vadd.f32 %v2884_v36, %v16014_v62  ;;  %v12590_v35 = vpop.f32.mrb[243].mxu0  ;;  %v16163_v30 = vadd.f32 %v3096_v8, %v2910_v41  ;;  %v4006_v62 = vld [vmem:[#allocation2 + $0xa6] sm:$0xf]  ;;  %v4653_v41 = vpack.c.bf16 %v4637_v29, %v4636_v12  ;;  %v4640_v29 = vld [vmem:[#allocation2 + $0x5a] sm:$0xff] }
 0x373   : > { %v3107_v54 = vpop.f32.mrb[246].mxu1  ;;  %v4015_v31 = vpack.c.bf16 %v4006_v62, %v4005_v33  ;;  %v4638_v62 = vld [vmem:[#allocation2 + $0x4a] sm:$0xff]  ;;  %v4426_v12 = vld [vmem:[#allocation2 + $0x58] sm:$0xff] }
 0x374   : > { %v12646_v23 = vpop.f32.mrb[247].mxu1  ;;  %12900 = vmatmul.mubr.bf16.gmra.mrb[92].mxu0 %v4014_v9  ;;  %v16165_v0 = vadd.f32 %v3099_v4, %v2911_v28  ;;  %v14300_v4 = vld [vmem:[%s18145_s2 + $0x400] sm:$0xff]   ;;  %v4639_v28 = vld [vmem:[#allocation2 + $0x52] sm:$0xff]  ;;  %v4424_v33 = vld [vmem:[#allocation2 + $0x48] sm:$0xff] }
 0x375   : > { %12903 = vmatprep.mubr.msk.bf16.mxu0 %vm14653_vm0, %v18168_v3  ;;  %v4421_v9 = vld [vmem:[#allocation2 + $0x30] sm:$0xff] }
 0x376   : > { %12956 = vmatmul.mubr.bf16.gmra.mrb[96].mxu1 %v4230_v43 }
 0x377   : > { %13027 = vmatprep.mubr.msk.bf16.mxu1 %vm14653_vm0, %v18168_v3  ;;  %v2889_v34 = vpop.f32.mrb[244].mxu0 }
 0x378   : > { %v2912_v51 = vadd.f32 %v2889_v34, %v16024_v22  ;;  %v12593_v11 = vpop.f32.mrb[245].mxu0  ;;  %v14306_v22 = vld [vmem:[%s18145_s2 + $0x448] sm:$0xff]   ;;  %v4438_v34 = vpack.c.bf16 %v4422_v58, %v4421_v9  ;;  %v14311_v9 = vld [vmem:[%s18145_s2 + $0x430] sm:$0xff]  }
 0x379   : > { %v3470_v14 = vpop.f32.mrb[248].mxu1  ;;  %v2892_v40 = vpop.f32.mrb[246].mxu0 }
 0x37a   : > { %v12717_v10 = vpop.f32.mrb[249].mxu1  ;;  %v12594_v45 = vpop.f32.mrb[247].mxu0  ;;  %v16175_v17 = vadd.f32 %v3104_v25, %v2912_v51  ;;  %v14303_v40 = vld [vmem:[%s18145_s2 + $0x418] sm:$0xff]  }
 0x37b   : > { %v3473_v27 = vpop.f32.mrb[250].mxu1  ;;  %v14312_v45 = vld [vmem:[%s18145_s2 + $0x468] sm:$0xff]  }
 0x37c   : > { %v12718_v49 = vpop.f32.mrb[251].mxu1  ;;  %12904 = vmatmul.mubr.bf16.gmra.mrb[96].mxu0 %v4015_v31 }
 0x37d   : > { %12975 = vmatprep.mubr.msk.bf16.mxu0 %vm14653_vm0, %v18168_v3 }
 0x37e   : > { %13028 = vmatmul.mubr.bf16.vlgmr.msra.gmra.mrb[100].mxu1 %v4652_v56 }
 0x37f   : > { %13031 = vmatprep.mubr.msk.bf16.mxu1 %vm14653_vm0, %v18168_v3  ;;  %13116 = vmatpush3.bf16.msra.mxu1 %v14304_v26  ;;  %v3255_v8 = vpop.f32.mrb[248].mxu0  ;;  %v4641_v26 = vld [vmem:[#allocation2 + $0x62] sm:$0xff] }
 0x380   : > { %13117 = vmatprep.subr.bf16.mxu1 %v18168_v3  ;;  %v3326_v20 = vadd.f32 %v3255_v8, %v16039_v44  ;;  %v12665_v32 = vpop.f32.mrb[249].mxu0  ;;  %v14307_v44 = vld [vmem:[%s18145_s2 + $0x450] sm:$0xff]  }
 0x381   : > { %v3478_v13 = vpop.f32.mrb[252].mxu1  ;;  %v3258_v55 = vpop.f32.mrb[250].mxu0 }
 0x382   : > { %v12721_v2 = vpop.f32.mrb[253].mxu1  ;;  %v3327_v16 = vadd.f32 %v3258_v55, %v16045_v52  ;;  %v12666_v59 = vpop.f32.mrb[251].mxu0  ;;  %v16190_v39 = vadd.f32 %v3470_v14, %v3326_v20  ;;  %v14301_v52 = vld [vmem:[%s18145_s2 + $0x408] sm:$0xff]   ;;  %v4654_v14 = vpack.c.bf16 %v4639_v28, %v4638_v62  ;;  %v14305_v55 = vld [vmem:[%s18145_s2 + $0x420] sm:$0xff]  }
 0x383   : > { %v3481_v6 = vpop.f32.mrb[254].mxu1  ;;  %13118 = vmatpush3.bf16.msra.mxu1 %v14306_v22  ;;  %v4423_v22 = vld [vmem:[#allocation2 + $0x40] sm:$0xff]  ;;  %v14308_v59 = vld [vmem:[%s18145_s2 + $0x428] sm:$0xff]  }
 0x384   : > { %v12722_v21 = vpop.f32.mrb[255].mxu1  ;;  %13119 = vmatprep.subr.bf16.mxu1 %v18168_v3  ;;  %12976 = vmatmul.mubr.bf16.vlgmr.msra.gmra.mrb[100].mxu0 %v15238_v15  ;;  %v16197_v48 = vadd.f32 %v3473_v27, %v3327_v16  ;;  %v14309_v15 = vld [vmem:[%s18145_s2 + $0x458] sm:$0xff]   ;;  %v4428_v62 = vld [vmem:[#allocation2 + $0x68] sm:$0xff] }
 0x385   : > { %13064 = vmatpush3.bf16.msra.mxu0 %v14300_v4  ;;  %12979 = vmatprep.mubr.msk.bf16.mxu0 %vm14653_vm0, %v18168_v3  ;;  %v4655_v4 = vpack.c.bf16 %v4641_v26, %v4640_v29  ;;  %v14314_v21 = vld [vmem:[%s18145_s2 + $0x478] sm:$0xff]  }
 0x386   : > { %13032 = vmatmul.mubr.bf16.gmra.mrb[104].mxu1 %v4653_v41  ;;  %13065 = vmatprep.subr.bf16.mxu0 %v18168_v3  ;;  %v4644_v26 = vld [vmem:[#allocation2 + $0x7a] sm:$0xff]  ;;  %v4647_v29 = vld [vmem:[#allocation2 + $0x92] sm:$0xff] }
 0x387   : > { %13035 = vmatprep.mubr.msk.bf16.mxu1 %vm14653_vm0, %v18168_v3  ;;  %v3263_v25 = vpop.f32.mrb[252].mxu0  ;;  %13120 = vmatpush3.bf16.msra.mxu1 %v14307_v44 }
 0x388   : > { %v3328_v36 = vadd.f32 %v3263_v25, %v16065_v61  ;;  %v12669_v18 = vpop.f32.mrb[253].mxu0  ;;  %13121 = vmatprep.subr.bf16.mxu1 %v18168_v3  ;;  %v14302_v61 = vld [vmem:[%s18145_s2 + $0x410] sm:$0xff]  }
 0x389   : > { %v3486_v47 = vpop.f32.mrb[0].mxu1  ;;  %v3266_v35 = vpop.f32.mrb[254].mxu0  ;;  %13066 = vmatpush3.bf16.msra.mxu0 %v14301_v52  ;;  %v4643_v25 = vld [vmem:[#allocation2 + $0x72] sm:$0xff] }
 0x38a   : > { %v12725_v54 = vpop.f32.mrb[1].mxu1  ;;  %v3329_v1 = vadd.f32 %v3266_v35, %v16071_v63  ;;  %v12670_v23 = vpop.f32.mrb[255].mxu0  ;;  %13067 = vmatprep.subr.bf16.mxu0 %v18168_v3  ;;  %v16217_v51 = vadd.f32 %v3478_v13, %v3328_v36  ;;  %v4439_v13 = vpack.c.bf16 %v4424_v33, %v4423_v22  ;;  %v4425_v36 = vld [vmem:[#allocation2 + $0x50] sm:$0xff]  ;;  %v4427_v33 = vld [vmem:[#allocation2 + $0x60] sm:$0xff] }
 0x38b   : > { %v3489_v43 = vpop.f32.mrb[2].mxu1  ;;  %13122 = vmatpush3.bf16.msra.mxu1 %v14309_v15  ;;  %v4440_v35 = vpack.c.bf16 %v4426_v12, %v4425_v36  ;;  %v4642_v54 = vld [vmem:[#allocation2 + $0x6a] sm:$0xff] }
 0x38c   : > { %v12726_v11 = vpop.f32.mrb[3].mxu1  ;;  %12980 = vmatmul.mubr.bf16.gmra.mrb[104].mxu0 %v4438_v34  ;;  %13123 = vmatprep.subr.bf16.mxu1 %v18168_v3  ;;  %v16223_v63 = vadd.f32 %v3481_v6, %v3329_v1  ;;  %v4656_v23 = vpack.c.bf16 %v4643_v25, %v4642_v54 }
 0x38d   : > { %12983 = vmatprep.mubr.msk.bf16.mxu0 %vm14653_vm0, %v18168_v3  ;;  %13068 = vmatpush3.bf16.msra.mxu0 %v14302_v61 }
 0x38e   : > { %13036 = vmatmul.mubr.bf16.gmra.mrb[108].mxu1 %v4654_v14  ;;  %13069 = vmatprep.subr.bf16.mxu0 %v18168_v3 }
 0x38f   : > { %13039 = vmatprep.mubr.msk.bf16.mxu1 %vm14653_vm0, %v18168_v3  ;;  %v3271_v10 = vpop.f32.mrb[0].mxu0  ;;  %13124 = vmatpush3.bf16.msra.mxu1 %v14310_v57  ;;  %v4645_v57 = vld [vmem:[#allocation2 + $0x82] sm:$0xff] }
 0x390   : > { %v3330_v27 = vadd.f32 %v3271_v10, %v16090_v7  ;;  %v12673_v31 = vpop.f32.mrb[1].mxu0  ;;  %13125 = vmatprep.subr.bf16.mxu1 %v18168_v3  ;;  %v4657_v22 = vpack.c.bf16 %v4645_v57, %v4644_v26 }
 0x391   : > { %v3494_v42 = vpop.f32.mrb[4].mxu1  ;;  %v3274_v49 = vpop.f32.mrb[2].mxu0  ;;  %13070 = vmatpush3.bf16.msra.mxu0 %v14303_v40 }
 0x392   : > { %v12729_v56 = vpop.f32.mrb[5].mxu1  ;;  %v3331_v8 = vadd.f32 %v3274_v49, %v16097_v50  ;;  %v12674_v20 = vpop.f32.mrb[3].mxu0  ;;  %v16242_v7 = vadd.f32 %v3486_v47, %v3330_v27  ;;  %13071 = vmatprep.subr.bf16.mxu0 %v18168_v3  ;;  %v14313_v50 = vld [vmem:[%s18145_s2 + $0x470] sm:$0xff]  }
 0x393   : > { %v3497_v32 = vpop.f32.mrb[6].mxu1  ;;  %13126 = vmatpush3.bf16.msra.mxu1 %v14312_v45 }
 0x394   : > { %v12730_v2 = vpop.f32.mrb[7].mxu1  ;;  %12984 = vmatmul.mubr.bf16.gmra.mrb[108].mxu0 %v4439_v13  ;;  %13127 = vmatprep.subr.bf16.mxu1 %v18168_v3  ;;  %v16249_v16 = vadd.f32 %v3489_v43, %v3331_v8  ;;  %v4430_v8 = vld [vmem:[#allocation2 + $0x78] sm:$0xff] }
 0x395   : > { %12987 = vmatprep.mubr.msk.bf16.mxu0 %vm14653_vm0, %v18168_v3  ;;  %13072 = vmatpush3.bf16.msra.mxu0 %v14305_v55 }
 0x396   : > { %13040 = vmatmul.mubr.bf16.gmra.mrb[112].mxu1 %v4655_v4  ;;  %13073 = vmatprep.subr.bf16.mxu0 %v18168_v3  ;;  %v4429_v4 = vld [vmem:[#allocation2 + $0x70] sm:$0xff] }
 0x397   : > { %13043 = vmatprep.mubr.msk.bf16.mxu1 %vm14653_vm0, %v18168_v3  ;;  %v3279_v6 = vpop.f32.mrb[4].mxu0  ;;  %13128 = vmatpush3.bf16.msra.mxu1 %v14313_v50  ;;  %v4442_v12 = vpack.c.bf16 %v4430_v8, %v4429_v4 }
 0x398   : > { %v3332_v41 = vadd.f32 %v3279_v6, %v16116_v38  ;;  %v12677_v44 = vpop.f32.mrb[5].mxu0  ;;  %13129 = vmatprep.subr.bf16.mxu1 %v18168_v3 }
 0x399   : > { %v3502_v52 = vpop.f32.mrb[8].mxu1  ;;  %v3282_v58 = vpop.f32.mrb[6].mxu0  ;;  %13074 = vmatpush3.bf16.msra.mxu0 %v14308_v59 }
 0x39a   : > { %v12733_v15 = vpop.f32.mrb[9].mxu1  ;;  %v3333_v18 = vadd.f32 %v3282_v58, %v16119_v5  ;;  %v12678_v47 = vpop.f32.mrb[7].mxu0  ;;  %v16268_v38 = vadd.f32 %v3494_v42, %v3332_v41  ;;  %13075 = vmatprep.subr.bf16.mxu0 %v18168_v3  ;;  %v14315_v5 = vld [vmem:[%s18145_s2 + $0x438] sm:$0xff]   ;;  %v4441_v42 = vpack.c.bf16 %v4428_v62, %v4427_v33  ;;  %v4651_v33 = vld [vmem:[#allocation2 + $0xb2] sm:$0xf] }
 0x39b   : > { %v3505_v28 = vpop.f32.mrb[10].mxu1  ;;  %13130 = vmatpush3.bf16.msra.mxu1 %v14314_v21  ;;  %v4646_v21 = vld [vmem:[#allocation2 + $0x8a] sm:$0xff] }
 0x39c   : > { %v12734_v1 = vpop.f32.mrb[11].mxu1  ;;  %12988 = vmatmul.mubr.bf16.gmra.mrb[112].mxu0 %v4440_v35  ;;  %v16271_v43 = vadd.f32 %v3497_v32, %v3333_v18  ;;  %13219 = vmatprep.subr.bf16.mxu1 %v18168_v3  ;;  %v4649_v18 = vld [vmem:[#allocation2 + $0xa2] sm:$0xff] }
 0x39d   : > { %12991 = vmatprep.mubr.msk.bf16.mxu0 %vm14653_vm0, %v18168_v3  ;;  %13076 = vmatpush3.bf16.msra.mxu0 %v14311_v9  ;;  %v4431_v35 = vld [vmem:[#allocation2 + $0x80] sm:$0xff] }
 0x39e   : > { %13044 = vmatmul.mubr.bf16.gmra.mrb[116].mxu1 %v4656_v23  ;;  %13077 = vmatprep.subr.bf16.mxu0 %v18168_v3 }
 0x39f   : > { %13047 = vmatprep.mubr.msk.bf16.mxu1 %vm14653_vm0, %v18168_v3  ;;  %v3287_v34 = vpop.f32.mrb[8].mxu0 }
 0x3a0   : > { %v3334_v61 = vadd.f32 %v3287_v34, %v16132_v53  ;;  %v12681_v11 = vpop.f32.mrb[9].mxu0 }
 0x3a1   : > { %v3510_v14 = vpop.f32.mrb[12].mxu1  ;;  %v3290_v40 = vpop.f32.mrb[10].mxu0  ;;  %13078 = vmatpush3.bf16.msra.mxu0 %v14315_v5  ;;  %v4648_v5 = vld [vmem:[#allocation2 + $0x9a] sm:$0xff] }
 0x3a2   : > { %v12737_v10 = vpop.f32.mrb[13].mxu1  ;;  %v3335_v45 = vadd.f32 %v3290_v40, %v16135_v46  ;;  %v12682_v27 = vpop.f32.mrb[11].mxu0  ;;  %v16284_v49 = vadd.f32 %v3502_v52, %v3334_v61  ;;  %13167 = vmatprep.subr.bf16.mxu0 %v18168_v3  ;;  %v4658_v52 = vpack.c.bf16 %v4647_v29, %v4646_v21  ;;  %v4659_v61 = vpack.c.bf16 %v4649_v18, %v4648_v5 }
 0x3a3   : > { %v3513_v31 = vpop.f32.mrb[14].mxu1  ;;  %v4650_v10 = vld [vmem:[#allocation2 + $0xaa] sm:$0xff] }
 0x3a4   : > { %v12738_v56 = vpop.f32.mrb[15].mxu1  ;;  %12992 = vmatmul.mubr.bf16.gmra.mrb[116].mxu0 %v4441_v42  ;;  %v16287_v53 = vadd.f32 %v3505_v28, %v3335_v45 }
 0x3a5   : > { %12995 = vmatprep.mubr.msk.bf16.mxu0 %vm14653_vm0, %v18168_v3 }
 0x3a6   : > { %13048 = vmatmul.mubr.bf16.gmra.mrb[120].mxu1 %v4657_v22 }
 0x3a7   : > { %13051 = vmatprep.mubr.msk.bf16.mxu1 %vm14653_vm0, %v18168_v3  ;;  %v3295_v46 = vpop.f32.mrb[12].mxu0 }
 0x3a8   : > { %v3336_v20 = vadd.f32 %v3295_v46, %v16143_v24  ;;  %v12685_v32 = vpop.f32.mrb[13].mxu0 }
 0x3a9   : > { %v3518_v13 = vpop.f32.mrb[16].mxu1  ;;  %v3298_v55 = vpop.f32.mrb[14].mxu0 }
 0x3aa   : > { %v12741_v2 = vpop.f32.mrb[17].mxu1  ;;  %v3337_v50 = vadd.f32 %v3298_v55, %v16145_v19  ;;  %v12686_v59 = vpop.f32.mrb[15].mxu0  ;;  %v16295_v41 = vadd.f32 %v3510_v14, %v3336_v20  ;;  %v4432_v19 = vld [vmem:[#allocation2 + $0x88] sm:$0xff]  ;;  %v4660_v20 = vpack.c.bf16 %v4651_v33, %v4650_v10 }
 0x3ab   : > { %v3521_v6 = vpop.f32.mrb[18].mxu1  ;;  %v4443_v23 = vpack.c.bf16 %v4432_v19, %v4431_v35  ;;  %v5065_v2 = vld [vmem:[#allocation2 + $0x34] sm:$0xff]  ;;  %v4435_v59 = vld [vmem:[#allocation2 + $0xa0] sm:$0xff] }
 0x3ac   : > { %v12742_v44 = vpop.f32.mrb[19].mxu1  ;;  %12996 = vmatmul.mubr.bf16.gmra.mrb[120].mxu0 %v4442_v12  ;;  %v16297_v25 = vadd.f32 %v3513_v31, %v3337_v50  ;;  %v4433_v31 = vld [vmem:[#allocation2 + $0x90] sm:$0xff]  ;;  %v5067_v35 = vld [vmem:[#allocation2 + $0x44] sm:$0xff] }
 0x3ad   : > { %12999 = vmatprep.mubr.msk.bf16.mxu0 %vm14653_vm0, %v18168_v3  ;;  %v5064_v44 = vld [vmem:[#allocation2 + $0x2c] sm:$0xff] }
 0x3ae   : > { %13052 = vmatmul.mubr.bf16.gmra.mrb[124].mxu1 %v4658_v52  ;;  %v14320_v52 = vld [vmem:[%s18145_s2 + $0x4c0] sm:$0xff]  }
 0x3af   : > { %13055 = vmatprep.mubr.msk.bf16.mxu1 %vm14653_vm0, %v18168_v3  ;;  %v3303_v24 = vpop.f32.mrb[16].mxu0 }
 0x3b0   : > { %v3338_v58 = vadd.f32 %v3303_v24, %v16153_v60  ;;  %v12689_v15 = vpop.f32.mrb[17].mxu0 }
 0x3b1   : > { %v3526_v36 = vpop.f32.mrb[20].mxu1  ;;  %v3306_v47 = vpop.f32.mrb[18].mxu0 }
 0x3b2   : > { %v12745_v28 = vpop.f32.mrb[21].mxu1  ;;  %v3339_v54 = vadd.f32 %v3306_v47, %v16155_v37  ;;  %v12690_v9 = vpop.f32.mrb[19].mxu0  ;;  %v16305_v34 = vadd.f32 %v3518_v13, %v3338_v58  ;;  %v4434_v37 = vld [vmem:[#allocation2 + $0x98] sm:$0xff]  ;;  %v4436_v13 = vld [vmem:[#allocation2 + $0xa8] sm:$0xf]  ;;  %v5082_v58 = vpack.c.bf16 %v5065_v2, %v5064_v44 }
 0x3b3   : > { %v3529_v1 = vpop.f32.mrb[22].mxu1  ;;  %v4444_v22 = vpack.c.bf16 %v4434_v37, %v4433_v31  ;;  %v4445_v21 = vpack.c.bf16 %v4436_v13, %v4435_v59  ;;  %v5066_v37 = vld [vmem:[#allocation2 + $0x3c] sm:$0xff]  ;;  %v14328_v44 = vld [vmem:[%s18145_s2 + $0x4e8] sm:$0xff]  }
 0x3b4   : > { %v12746_v62 = vpop.f32.mrb[23].mxu1  ;;  %13000 = vmatmul.mubr.bf16.gmra.mrb[124].mxu0 %v4443_v23  ;;  %v16307_v11 = vadd.f32 %v3521_v6, %v3339_v54  ;;  %v14316_v23 = vld [vmem:[%s18145_s2 + $0x480] sm:$0xff]  }
 0x3b5   : > { %13003 = vmatprep.mubr.msk.bf16.mxu0 %vm14653_vm0, %v18168_v3  ;;  %v14326_v59 = vld [vmem:[%s18145_s2 + $0x4e0] sm:$0xff]  }
 0x3b6   : > { %13056 = vmatmul.mubr.bf16.gmra.mrb[128].mxu1 %v4659_v61 }
 0x3b7   : > { %13059 = vmatprep.mubr.msk.bf16.mxu1 %vm14653_vm0, %v18168_v3  ;;  %v3311_v60 = vpop.f32.mrb[20].mxu0 }
 0x3b8   : > { %v3340_v14 = vadd.f32 %v3311_v60, %v16163_v30  ;;  %v12693_v57 = vpop.f32.mrb[21].mxu0 }
 0x3b9   : > { %v3534_v40 = vpop.f32.mrb[24].mxu1  ;;  %v3314_v45 = vpop.f32.mrb[22].mxu0  ;;  %v5083_v57 = vpack.c.bf16 %v5067_v35, %v5066_v37  ;;  %v4856_v37 = vld [vmem:[#allocation2 + $0x63] sm:$0xff] }
 0x3ba   : > { %v12749_v27 = vpop.f32.mrb[25].mxu1  ;;  %v3341_v42 = vadd.f32 %v3314_v45, %v16165_v0  ;;  %v12694_v26 = vpop.f32.mrb[23].mxu0  ;;  %v16315_v46 = vadd.f32 %v3526_v36, %v3340_v14  ;;  %v4850_v36 = vld [vmem:[#allocation2 + $0x33] sm:$0xff]  ;;  %v4852_v45 = vld [vmem:[#allocation2 + $0x43] sm:$0xff] }
 0x3bb   : > { %v3537_v56 = vpop.f32.mrb[26].mxu1  ;;  %v14325_v27 = vld [vmem:[%s18145_s2 + $0x4d8] sm:$0xff]  }
 0x3bc   : > { %v12750_v8 = vpop.f32.mrb[27].mxu1  ;;  %13004 = vmatmul.mubr.bf16.gmra.mrb[128].mxu0 %v4444_v22  ;;  %v16317_v32 = vadd.f32 %v3529_v1, %v3341_v42  ;;  %v4849_v1 = vld [vmem:[#allocation2 + $0x2b] sm:$0xff]  ;;  %v5069_v56 = vld [vmem:[#allocation2 + $0x54] sm:$0xff] }
 0x3bd   : > { %13007 = vmatprep.mubr.msk.bf16.mxu0 %vm14653_vm0, %v18168_v3  ;;  %v4867_v60 = vpack.c.bf16 %v4850_v36, %v4849_v1  ;;  %v14321_v1 = vld [vmem:[%s18145_s2 + $0x4a0] sm:$0xff]  }
 0x3be   : > { %13060 = vmatmul.mubr.bf16.gmra.mrb[132].mxu1 %v4660_v20  ;;  %v4851_v20 = vld [vmem:[#allocation2 + $0x3b] sm:$0xff] }
 0x3bf   : > { %13131 = vmatprep.mubr.msk.bf16.mxu1 %vm14653_vm0, %v18168_v3  ;;  %v3319_v30 = vpop.f32.mrb[24].mxu0 }
 0x3c0   : > { %v3342_v0 = vadd.f32 %v3319_v30, %v16175_v17  ;;  %v12697_v29 = vpop.f32.mrb[25].mxu0  ;;  %v14322_v17 = vld [vmem:[%s18145_s2 + $0x4c8] sm:$0xff]  }
 0x3c1   : > { %v3900_v55 = vpop.f32.mrb[28].mxu1  ;;  %v3322_v4 = vpop.f32.mrb[26].mxu0  ;;  %v4868_v29 = vpack.c.bf16 %v4852_v45, %v4851_v20  ;;  %v14327_v20 = vld [vmem:[%s18145_s2 + $0x4b0] sm:$0xff]  }
 0x3c2   : > { %v12821_v50 = vpop.f32.mrb[29].mxu1  ;;  %v12698_v6 = vpop.f32.mrb[27].mxu0  ;;  %v16327_v24 = vadd.f32 %v3534_v40, %v3342_v0  ;;  %v14323_v40 = vld [vmem:[%s18145_s2 + $0x4d0] sm:$0xff]  }
 0x3c3   : > { %v3903_v12 = vpop.f32.mrb[30].mxu1  ;;  %v14319_v6 = vld [vmem:[%s18145_s2 + $0x498] sm:$0xff]  }
 0x3c4   : > { %v12822_v19 = vpop.f32.mrb[31].mxu1  ;;  %13008 = vmatmul.mubr.bf16.gmra.mrb[132].mxu0 %v4445_v21  ;;  %v4854_v21 = vld [vmem:[#allocation2 + $0x53] sm:$0xff] }
 0x3c5   : > { %13079 = vmatprep.mubr.msk.bf16.mxu0 %vm14653_vm0, %v18168_v3 }
 0x3c6   : > { %13132 = vmatmul.mubr.bf16.vlgmr.msra.gmra.mrb[136].mxu1 %v5082_v58 }
 0x3c7   : > { %13135 = vmatprep.mubr.msk.bf16.mxu1 %vm14653_vm0, %v18168_v3  ;;  %13220 = vmatpush3.bf16.msra.mxu1 %v14320_v52  ;;  %v3685_v15 = vpop.f32.mrb[28].mxu0 }
 0x3c8   : > { %13221 = vmatprep.subr.bf16.mxu1 %v18168_v3  ;;  %v3756_v18 = vadd.f32 %v3685_v15, %v16190_v39  ;;  %v12769_v47 = vpop.f32.mrb[29].mxu0 }
 0x3c9   : > { %v3908_v28 = vpop.f32.mrb[32].mxu1  ;;  %v3688_v54 = vpop.f32.mrb[30].mxu0 }
 0x3ca   : > { %v12825_v9 = vpop.f32.mrb[33].mxu1  ;;  %v3757_v5 = vadd.f32 %v3688_v54, %v16197_v48  ;;  %v12770_v62 = vpop.f32.mrb[31].mxu0  ;;  %v16342_v14 = vadd.f32 %v3900_v55, %v3756_v18  ;;  %v14317_v48 = vld [vmem:[%s18145_s2 + $0x488] sm:$0xff]  }
 0x3cb   : > { %v3911_v61 = vpop.f32.mrb[34].mxu1  ;;  %13222 = vmatpush3.bf16.msra.mxu1 %v14322_v17  ;;  %v5068_v55 = vld [vmem:[#allocation2 + $0x4c] sm:$0xff]  ;;  %v5071_v17 = vld [vmem:[#allocation2 + $0x64] sm:$0xff]  ;;  %v5070_v9 = vld [vmem:[#allocation2 + $0x5c] sm:$0xff] }
 0x3cc   : > { %v12826_v39 = vpop.f32.mrb[35].mxu1  ;;  %13223 = vmatprep.subr.bf16.mxu1 %v18168_v3  ;;  %13080 = vmatmul.mubr.bf16.vlgmr.msra.gmra.mrb[136].mxu0 %v4867_v60  ;;  %v16348_v10 = vadd.f32 %v3903_v12, %v3757_v5  ;;  %v5084_v50 = vpack.c.bf16 %v5069_v56, %v5068_v55  ;;  %v4853_v18 = vld [vmem:[#allocation2 + $0x4b] sm:$0xff]  ;;  %v5085_v5 = vpack.c.bf16 %v5071_v17, %v5070_v9  ;;  %v4858_v55 = vld [vmem:[#allocation2 + $0x73] sm:$0xff]  ;;  %v5074_v17 = vld [vmem:[#allocation2 + $0x7c] sm:$0xff] }
 0x3cd   : > { %13168 = vmatpush3.bf16.msra.mxu0 %v14316_v23  ;;  %13083 = vmatprep.mubr.msk.bf16.mxu0 %vm14653_vm0, %v18168_v3  ;;  %v4869_v54 = vpack.c.bf16 %v4854_v21, %v4853_v18  ;;  %v14330_v39 = vld [vmem:[%s18145_s2 + $0x4f8] sm:$0xff]   ;;  %v4857_v21 = vld [vmem:[#allocation2 + $0x6b] sm:$0xff] }
 0x3ce   : > { %13136 = vmatmul.mubr.bf16.gmra.mrb[140].mxu1 %v5083_v57  ;;  %13169 = vmatprep.subr.bf16.mxu0 %v18168_v3  ;;  %v5077_v9 = vld [vmem:[#allocation2 + $0x94] sm:$0xff] }
 0x3cf   : > { %13139 = vmatprep.mubr.msk.bf16.mxu1 %vm14653_vm0, %v18168_v3  ;;  %v3693_v33 = vpop.f32.mrb[32].mxu0  ;;  %13224 = vmatpush3.bf16.msra.mxu1 %v14323_v40 }
 0x3d0   : > { %v3758_v31 = vadd.f32 %v3693_v33, %v16217_v51  ;;  %v12773_v42 = vpop.f32.mrb[33].mxu0  ;;  %13225 = vmatprep.subr.bf16.mxu1 %v18168_v3  ;;  %v14318_v51 = vld [vmem:[%s18145_s2 + $0x490] sm:$0xff]  }
 0x3d1   : > { %v3916_v26 = vpop.f32.mrb[36].mxu1  ;;  %v3696_v22 = vpop.f32.mrb[34].mxu0  ;;  %13170 = vmatpush3.bf16.msra.mxu0 %v14317_v48  ;;  %v5073_v33 = vld [vmem:[#allocation2 + $0x74] sm:$0xff] }
 0x3d2   : > { %v12829_v8 = vpop.f32.mrb[37].mxu1  ;;  %v3759_v30 = vadd.f32 %v3696_v22, %v16223_v63  ;;  %v12774_v13 = vpop.f32.mrb[35].mxu0  ;;  %13171 = vmatprep.subr.bf16.mxu0 %v18168_v3  ;;  %v16368_v2 = vadd.f32 %v3908_v28, %v3758_v31  ;;  %v4855_v31 = vld [vmem:[#allocation2 + $0x5b] sm:$0xff] }
 0x3d3   : > { %v3919_v0 = vpop.f32.mrb[38].mxu1  ;;  %13226 = vmatpush3.bf16.msra.mxu1 %v14325_v27  ;;  %v4870_v22 = vpack.c.bf16 %v4856_v37, %v4855_v31  ;;  %v5072_v8 = vld [vmem:[#allocation2 + $0x6c] sm:$0xff] }
 0x3d4   : > { %v12830_v4 = vpop.f32.mrb[39].mxu1  ;;  %13084 = vmatmul.mubr.bf16.gmra.mrb[140].mxu0 %v4868_v29  ;;  %13227 = vmatprep.subr.bf16.mxu1 %v18168_v3  ;;  %v16374_v63 = vadd.f32 %v3911_v61, %v3759_v30  ;;  %v14324_v61 = vld [vmem:[%s18145_s2 + $0x4a8] sm:$0xff]   ;;  %v5086_v13 = vpack.c.bf16 %v5073_v33, %v5072_v8 }
 0x3d5   : > { %13087 = vmatprep.mubr.msk.bf16.mxu0 %vm14653_vm0, %v18168_v3  ;;  %13172 = vmatpush3.bf16.msra.mxu0 %v14318_v51 }
 0x3d6   : > { %13140 = vmatmul.mubr.bf16.gmra.mrb[144].mxu1 %v5084_v50  ;;  %13173 = vmatprep.subr.bf16.mxu0 %v18168_v3 }
 0x3d7   : > { %13143 = vmatprep.mubr.msk.bf16.mxu1 %vm14653_vm0, %v18168_v3  ;;  %v3701_v12 = vpop.f32.mrb[36].mxu0  ;;  %13228 = vmatpush3.bf16.msra.mxu1 %v14326_v59  ;;  %v5075_v59 = vld [vmem:[#allocation2 + $0x84] sm:$0xff] }
 0x3d8   : > { %v3760_v52 = vadd.f32 %v3701_v12, %v16242_v7  ;;  %v12777_v19 = vpop.f32.mrb[37].mxu0  ;;  %13229 = vmatprep.subr.bf16.mxu1 %v18168_v3  ;;  %v5087_v18 = vpack.c.bf16 %v5075_v59, %v5074_v17 }
 0x3d9   : > { %v3924_v58 = vpop.f32.mrb[40].mxu1  ;;  %v3704_v15 = vpop.f32.mrb[38].mxu0  ;;  %13174 = vmatpush3.bf16.msra.mxu0 %v14319_v6 }
 0x3da   : > { %v12833_v36 = vpop.f32.mrb[41].mxu1  ;;  %v3761_v47 = vadd.f32 %v3704_v15, %v16249_v16  ;;  %v12778_v28 = vpop.f32.mrb[39].mxu0  ;;  %v16393_v7 = vadd.f32 %v3916_v26, %v3760_v52  ;;  %13175 = vmatprep.subr.bf16.mxu0 %v18168_v3  ;;  %v14329_v16 = vld [vmem:[%s18145_s2 + $0x4f0] sm:$0xff]  }
 0x3db   : > { %v3927_v35 = vpop.f32.mrb[42].mxu1  ;;  %13230 = vmatpush3.bf16.msra.mxu1 %v14328_v44 }
 0x3dc   : > { %v12834_v23 = vpop.f32.mrb[43].mxu1  ;;  %13088 = vmatmul.mubr.bf16.gmra.mrb[144].mxu0 %v4869_v54  ;;  %13231 = vmatprep.subr.bf16.mxu1 %v18168_v3  ;;  %v16400_v62 = vadd.f32 %v3919_v0, %v3761_v47  ;;  %v4860_v47 = vld [vmem:[#allocation2 + $0x83] sm:$0xff] }
 0x3dd   : > { %13091 = vmatprep.mubr.msk.bf16.mxu0 %vm14653_vm0, %v18168_v3  ;;  %13176 = vmatpush3.bf16.msra.mxu0 %v14321_v1 }
 0x3de   : > { %13144 = vmatmul.mubr.bf16.gmra.mrb[148].mxu1 %v5085_v5  ;;  %13177 = vmatprep.subr.bf16.mxu0 %v18168_v3  ;;  %v4859_v5 = vld [vmem:[#allocation2 + $0x7b] sm:$0xff] }
 0x3df   : > { %13147 = vmatprep.mubr.msk.bf16.mxu1 %vm14653_vm0, %v18168_v3  ;;  %v3709_v60 = vpop.f32.mrb[40].mxu0  ;;  %13232 = vmatpush3.bf16.msra.mxu1 %v14329_v16  ;;  %v4872_v37 = vpack.c.bf16 %v4860_v47, %v4859_v5  ;;  %v5495_v5 = vld [vmem:[#allocation2 + $0x36] sm:$0xff] }
 0x3e0   : > { %v3762_v57 = vadd.f32 %v3709_v60, %v16268_v38  ;;  %v12781_v40 = vpop.f32.mrb[41].mxu0  ;;  %13233 = vmatprep.subr.bf16.mxu1 %v18168_v3 }
 0x3e1   : > { %v3932_v48 = vpop.f32.mrb[44].mxu1  ;;  %v3712_v45 = vpop.f32.mrb[42].mxu0  ;;  %13178 = vmatpush3.bf16.msra.mxu0 %v14324_v61 }
 0x3e2   : > { %v12837_v27 = vpop.f32.mrb[45].mxu1  ;;  %v3763_v42 = vadd.f32 %v3712_v45, %v16271_v43  ;;  %v12782_v26 = vpop.f32.mrb[43].mxu0  ;;  %v16419_v38 = vadd.f32 %v3924_v58, %v3762_v57  ;;  %13179 = vmatprep.subr.bf16.mxu0 %v18168_v3  ;;  %v14331_v43 = vld [vmem:[%s18145_s2 + $0x4b8] sm:$0xff]   ;;  %v4871_v58 = vpack.c.bf16 %v4858_v55, %v4857_v21  ;;  %v5081_v21 = vld [vmem:[#allocation2 + $0xb4] sm:$0xf] }
 0x3e3   : > { %v3935_v56 = vpop.f32.mrb[46].mxu1  ;;  %13234 = vmatpush3.bf16.msra.mxu1 %v14330_v39  ;;  %v5076_v39 = vld [vmem:[#allocation2 + $0x8c] sm:$0xff] }
 0x3e4   : > { %v12838_v30 = vpop.f32.mrb[47].mxu1  ;;  %13092 = vmatmul.mubr.bf16.gmra.mrb[148].mxu0 %v4870_v22  ;;  %v16422_v0 = vadd.f32 %v3927_v35, %v3763_v42  ;;  %13323 = vmatprep.subr.bf16.mxu1 %v18168_v3  ;;  %v5079_v42 = vld [vmem:[#allocation2 + $0xa4] sm:$0xff] }
 0x3e5   : > { %13095 = vmatprep.mubr.msk.bf16.mxu0 %vm14653_vm0, %v18168_v3  ;;  %13180 = vmatpush3.bf16.msra.mxu0 %v14327_v20  ;;  %v4861_v22 = vld [vmem:[#allocation2 + $0x8b] sm:$0xff] }
 0x3e6   : > { %13148 = vmatmul.mubr.bf16.gmra.mrb[152].mxu1 %v5086_v13  ;;  %13181 = vmatprep.subr.bf16.mxu0 %v18168_v3 }
 0x3e7   : > { %13151 = vmatprep.mubr.msk.bf16.mxu1 %vm14653_vm0, %v18168_v3  ;;  %v3717_v29 = vpop.f32.mrb[44].mxu0 }
 0x3e8   : > { %v3764_v51 = vadd.f32 %v3717_v29, %v16284_v49  ;;  %v12785_v4 = vpop.f32.mrb[45].mxu0 }
 0x3e9   : > { %v3940_v50 = vpop.f32.mrb[48].mxu1  ;;  %v3720_v6 = vpop.f32.mrb[46].mxu0  ;;  %13182 = vmatpush3.bf16.msra.mxu0 %v14331_v43  ;;  %v5078_v43 = vld [vmem:[#allocation2 + $0x9c] sm:$0xff] }
 0x3ea   : > { %v12841_v12 = vpop.f32.mrb[49].mxu1  ;;  %v3765_v44 = vadd.f32 %v3720_v6, %v16287_v53  ;;  %v12786_v52 = vpop.f32.mrb[47].mxu0  ;;  %v16435_v15 = vadd.f32 %v3932_v48, %v3764_v51  ;;  %13271 = vmatprep.subr.bf16.mxu0 %v18168_v3  ;;  %v5088_v48 = vpack.c.bf16 %v5077_v9, %v5076_v39  ;;  %v5089_v51 = vpack.c.bf16 %v5079_v42, %v5078_v43 }
 0x3eb   : > { %v3943_v19 = vpop.f32.mrb[50].mxu1  ;;  %v5080_v12 = vld [vmem:[#allocation2 + $0xac] sm:$0xff] }
 0x3ec   : > { %v12842_v36 = vpop.f32.mrb[51].mxu1  ;;  %13096 = vmatmul.mubr.bf16.gmra.mrb[152].mxu0 %v4871_v58  ;;  %v16438_v49 = vadd.f32 %v3935_v56, %v3765_v44 }
 0x3ed   : > { %13099 = vmatprep.mubr.msk.bf16.mxu0 %vm14653_vm0, %v18168_v3 }
 0x3ee   : > { %13152 = vmatmul.mubr.bf16.gmra.mrb[156].mxu1 %v5087_v18 }
 0x3ef   : > { %13155 = vmatprep.mubr.msk.bf16.mxu1 %vm14653_vm0, %v18168_v3  ;;  %v3725_v53 = vpop.f32.mrb[48].mxu0 }
 0x3f0   : > { %v3766_v28 = vadd.f32 %v3725_v53, %v16295_v41  ;;  %v12789_v35 = vpop.f32.mrb[49].mxu0 }
 0x3f1   : > { %v3948_v54 = vpop.f32.mrb[52].mxu1  ;;  %v3728_v1 = vpop.f32.mrb[50].mxu0 }
 0x3f2   : > { %v12845_v23 = vpop.f32.mrb[53].mxu1  ;;  %v3767_v16 = vadd.f32 %v3728_v1, %v16297_v25  ;;  %v12790_v61 = vpop.f32.mrb[51].mxu0  ;;  %v16446_v57 = vadd.f32 %v3940_v50, %v3766_v28  ;;  %v4862_v25 = vld [vmem:[#allocation2 + $0x93] sm:$0xff]  ;;  %v5090_v28 = vpack.c.bf16 %v5081_v21, %v5080_v12 }
 0x3f3   : > { %v3951_v60 = vpop.f32.mrb[54].mxu1  ;;  %v4873_v13 = vpack.c.bf16 %v4862_v25, %v4861_v22  ;;  %v5497_v22 = vld [vmem:[#allocation2 + $0x46] sm:$0xff] }
 0x3f4   : > { %v12846_v40 = vpop.f32.mrb[55].mxu1  ;;  %13100 = vmatmul.mubr.bf16.gmra.mrb[156].mxu0 %v4872_v37  ;;  %v16448_v33 = vadd.f32 %v3943_v19, %v3767_v16  ;;  %v4863_v19 = vld [vmem:[#allocation2 + $0x9b] sm:$0xff] }
 0x3f5   : > { %13103 = vmatprep.mubr.msk.bf16.mxu0 %vm14653_vm0, %v18168_v3  ;;  %v5494_v40 = vld [vmem:[#allocation2 + $0x2e] sm:$0xff] }
 0x3f6   : > { %13156 = vmatmul.mubr.bf16.gmra.mrb[160].mxu1 %v5088_v48  ;;  %v14336_v48 = vld [vmem:[%s18145_s2 + $0x540] sm:$0xff]  }
 0x3f7   : > { %13159 = vmatprep.mubr.msk.bf16.mxu1 %vm14653_vm0, %v18168_v3  ;;  %v3733_v41 = vpop.f32.mrb[52].mxu0 }
 0x3f8   : > { %v3768_v45 = vadd.f32 %v3733_v41, %v16305_v34  ;;  %v12793_v27 = vpop.f32.mrb[53].mxu0 }
 0x3f9   : > { %v3956_v31 = vpop.f32.mrb[56].mxu1  ;;  %v3736_v26 = vpop.f32.mrb[54].mxu0 }
 0x3fa   : > { %v12849_v56 = vpop.f32.mrb[57].mxu1  ;;  %v3769_v8 = vadd.f32 %v3736_v26, %v16307_v11  ;;  %v12794_v20 = vpop.f32.mrb[55].mxu0  ;;  %v16456_v29 = vadd.f32 %v3948_v54, %v3768_v45  ;;  %v4864_v11 = vld [vmem:[#allocation2 + $0xa3] sm:$0xff]  ;;  %v4865_v54 = vld [vmem:[#allocation2 + $0xab] sm:$0xff]  ;;  %v5512_v45 = vpack.c.bf16 %v5495_v5, %v5494_v40 }
 0x3fb   : > { %v3959_v30 = vpop.f32.mrb[58].mxu1  ;;  %v4874_v18 = vpack.c.bf16 %v4864_v11, %v4863_v19  ;;  %v5496_v11 = vld [vmem:[#allocation2 + $0x3e] sm:$0xff]  ;;  %v14344_v40 = vld [vmem:[%s18145_s2 + $0x568] sm:$0xff]  }
 0x3fc   : > { %v12850_v55 = vpop.f32.mrb[59].mxu1  ;;  %13104 = vmatmul.mubr.bf16.gmra.mrb[160].mxu0 %v4873_v13  ;;  %v16458_v4 = vadd.f32 %v3951_v60, %v3769_v8  ;;  %v14332_v13 = vld [vmem:[%s18145_s2 + $0x500] sm:$0xff]  }
 0x3fd   : > { %13107 = vmatprep.mubr.msk.bf16.mxu0 %vm14653_vm0, %v18168_v3 }
 0x3fe   : > { %13160 = vmatmul.mubr.bf16.gmra.mrb[164].mxu1 %v5089_v51 }
 0x3ff   : > { %13163 = vmatprep.mubr.msk.bf16.mxu1 %vm14653_vm0, %v18168_v3  ;;  %v3741_v34 = vpop.f32.mrb[56].mxu0 }
 0x400   : > { %v3770_v50 = vadd.f32 %v3741_v34, %v16315_v46  ;;  %v12797_v59 = vpop.f32.mrb[57].mxu0 }
 0x401   : > { %v3964_v6 = vpop.f32.mrb[60].mxu1  ;;  %v3744_v44 = vpop.f32.mrb[58].mxu0  ;;  %v5513_v59 = vpack.c.bf16 %v5497_v22, %v5496_v11  ;;  %v5286_v11 = vld [vmem:[#allocation2 + $0x65] sm:$0xff] }
 0x402   : > { %v12853_v52 = vpop.f32.mrb[61].mxu1  ;;  %v3771_v58 = vadd.f32 %v3744_v44, %v16317_v32  ;;  %v12798_v17 = vpop.f32.mrb[59].mxu0  ;;  %v16466_v53 = vadd.f32 %v3956_v31, %v3770_v50  ;;  %v4866_v32 = vld [vmem:[#allocation2 + $0xb3] sm:$0xf]  ;;  %v5282_v44 = vld [vmem:[#allocation2 + $0x45] sm:$0xff] }
 0x403   : > { %v3967_v36 = vpop.f32.mrb[62].mxu1  ;;  %v4875_v39 = vpack.c.bf16 %v4866_v32, %v4865_v54  ;;  %v5280_v31 = vld [vmem:[#allocation2 + $0x35] sm:$0xff] }
 0x404   : > { %v12854_v47 = vpop.f32.mrb[63].mxu1  ;;  %13108 = vmatmul.mubr.bf16.gmra.mrb[164].mxu0 %v4874_v18  ;;  %v16468_v35 = vadd.f32 %v3959_v30, %v3771_v58  ;;  %v5279_v30 = vld [vmem:[#allocation2 + $0x2d] sm:$0xff]  ;;  %v14341_v52 = vld [vmem:[%s18145_s2 + $0x558] sm:$0xff]  }
 0x405   : > { %13111 = vmatprep.mubr.msk.bf16.mxu0 %vm14653_vm0, %v18168_v3  ;;  %v5297_v34 = vpack.c.bf16 %v5280_v31, %v5279_v30  ;;  %v5499_v36 = vld [vmem:[#allocation2 + $0x56] sm:$0xff]  ;;  %v14337_v30 = vld [vmem:[%s18145_s2 + $0x520] sm:$0xff]  }
 0x406   : > { %13164 = vmatmul.mubr.bf16.gmra.mrb[168].mxu1 %v5090_v28  ;;  %v5281_v28 = vld [vmem:[#allocation2 + $0x3d] sm:$0xff] }
 0x407   : > { %13235 = vmatprep.mubr.msk.bf16.mxu1 %vm14653_vm0, %v18168_v3  ;;  %v3749_v46 = vpop.f32.mrb[60].mxu0 }
 0x408   : > { %v3772_v9 = vadd.f32 %v3749_v46, %v16327_v24  ;;  %v12801_v1 = vpop.f32.mrb[61].mxu0  ;;  %v14338_v24 = vld [vmem:[%s18145_s2 + $0x548] sm:$0xff]  }
 0x409   : > { %v4330_v23 = vpop.f32.mrb[64].mxu1  ;;  %v3752_v16 = vpop.f32.mrb[62].mxu0  ;;  %v5498_v1 = vld [vmem:[#allocation2 + $0x4e] sm:$0xff] }
 0x40a   : > { %v12925_v61 = vpop.f32.mrb[65].mxu1  ;;  %v12802_v60 = vpop.f32.mrb[63].mxu0  ;;  %v16478_v41 = vadd.f32 %v3964_v6, %v3772_v9  ;;  %v14339_v6 = vld [vmem:[%s18145_s2 + $0x550] sm:$0xff]   ;;  %v5298_v9 = vpack.c.bf16 %v5282_v44, %v5281_v28  ;;  %v5514_v16 = vpack.c.bf16 %v5499_v36, %v5498_v1 }
 0x40b   : > { %v4333_v37 = vpop.f32.mrb[66].mxu1  ;;  %v14342_v61 = vld [vmem:[%s18145_s2 + $0x560] sm:$0xff]   ;;  %v14335_v60 = vld [vmem:[%s18145_s2 + $0x518] sm:$0xff]   ;;  %v14343_v28 = vld [vmem:[%s18145_s2 + $0x530] sm:$0xff]  }
 0x40c   : > { %v12926_v25 = vpop.f32.mrb[67].mxu1  ;;  %13112 = vmatmul.mubr.bf16.gmra.mrb[168].mxu0 %v4875_v39  ;;  %v5284_v39 = vld [vmem:[#allocation2 + $0x55] sm:$0xff] }
 0x40d   : > { %13183 = vmatprep.mubr.msk.bf16.mxu0 %vm14653_vm0, %v18168_v3  ;;  %v5288_v1 = vld [vmem:[#allocation2 + $0x75] sm:$0xff] }
 0x40e   : > { %13236 = vmatmul.mubr.bf16.vlgmr.msra.gmra.mrb[172].mxu1 %v5512_v45 }
 0x40f   : > { %13239 = vmatprep.mubr.msk.bf16.mxu1 %vm14653_vm0, %v18168_v3  ;;  %13324 = vmatpush3.bf16.msra.mxu1 %v14336_v48  ;;  %v4115_v27 = vpop.f32.mrb[64].mxu0 }
 0x410   : > { %13325 = vmatprep.subr.bf16.mxu1 %v18168_v3  ;;  %v4186_v42 = vadd.f32 %v4115_v27, %v16342_v14  ;;  %v12873_v26 = vpop.f32.mrb[65].mxu0 }
 0x411   : > { %v4338_v56 = vpop.f32.mrb[68].mxu1  ;;  %v4118_v8 = vpop.f32.mrb[66].mxu0 }
 0x412   : > { %v12929_v20 = vpop.f32.mrb[69].mxu1  ;;  %v4187_v43 = vadd.f32 %v4118_v8, %v16348_v10  ;;  %v12874_v55 = vpop.f32.mrb[67].mxu0  ;;  %v16493_v50 = vadd.f32 %v4330_v23, %v4186_v42  ;;  %v14333_v10 = vld [vmem:[%s18145_s2 + $0x508] sm:$0xff]  }
 0x413   : > { %v4341_v51 = vpop.f32.mrb[70].mxu1  ;;  %13326 = vmatpush3.bf16.msra.mxu1 %v14338_v24  ;;  %v5501_v24 = vld [vmem:[#allocation2 + $0x66] sm:$0xff]  ;;  %v5500_v20 = vld [vmem:[#allocation2 + $0x5e] sm:$0xff] }
 0x414   : > { %v12930_v14 = vpop.f32.mrb[71].mxu1  ;;  %13327 = vmatprep.subr.bf16.mxu1 %v18168_v3  ;;  %13184 = vmatmul.mubr.bf16.vlgmr.msra.gmra.mrb[172].mxu0 %v5297_v34  ;;  %v16499_v12 = vadd.f32 %v4333_v37, %v4187_v43  ;;  %v5283_v42 = vld [vmem:[#allocation2 + $0x4d] sm:$0xff]  ;;  %v5515_v43 = vpack.c.bf16 %v5501_v24, %v5500_v20  ;;  %v5504_v24 = vld [vmem:[#allocation2 + $0x7e] sm:$0xff]  ;;  %v5507_v20 = vld [vmem:[#allocation2 + $0x96] sm:$0xff] }
 0x415   : > { %13272 = vmatpush3.bf16.msra.mxu0 %v14332_v13  ;;  %13187 = vmatprep.mubr.msk.bf16.mxu0 %vm14653_vm0, %v18168_v3  ;;  %v5299_v8 = vpack.c.bf16 %v5284_v39, %v5283_v42  ;;  %v14346_v14 = vld [vmem:[%s18145_s2 + $0x578] sm:$0xff]   ;;  %v5287_v39 = vld [vmem:[#allocation2 + $0x6d] sm:$0xff] }
 0x416   : > { %13240 = vmatmul.mubr.bf16.gmra.mrb[176].mxu1 %v5513_v59  ;;  %13273 = vmatprep.subr.bf16.mxu0 %v18168_v3 }
 0x417   : > { %13243 = vmatprep.mubr.msk.bf16.mxu1 %vm14653_vm0, %v18168_v3  ;;  %v4123_v21 = vpop.f32.mrb[68].mxu0  ;;  %13328 = vmatpush3.bf16.msra.mxu1 %v14339_v6 }
 0x418   : > { %v4188_v19 = vadd.f32 %v4123_v21, %v16368_v2  ;;  %v12877_v58 = vpop.f32.mrb[69].mxu0  ;;  %13329 = vmatprep.subr.bf16.mxu1 %v18168_v3  ;;  %v14334_v2 = vld [vmem:[%s18145_s2 + $0x510] sm:$0xff]  }
 0x419   : > { %v4346_v17 = vpop.f32.mrb[72].mxu1  ;;  %v4126_v18 = vpop.f32.mrb[70].mxu0  ;;  %13274 = vmatpush3.bf16.msra.mxu0 %v14333_v10  ;;  %v5503_v21 = vld [vmem:[#allocation2 + $0x76] sm:$0xff] }
 0x41a   : > { %v12933_v47 = vpop.f32.mrb[73].mxu1  ;;  %v4189_v46 = vadd.f32 %v4126_v18, %v16374_v63  ;;  %v12878_v54 = vpop.f32.mrb[71].mxu0  ;;  %13275 = vmatprep.subr.bf16.mxu0 %v18168_v3  ;;  %v16519_v23 = vadd.f32 %v4338_v56, %v4188_v19  ;;  %v5285_v19 = vld [vmem:[#allocation2 + $0x5d] sm:$0xff] }
 0x41b   : > { %v4349_v32 = vpop.f32.mrb[74].mxu1  ;;  %13330 = vmatpush3.bf16.msra.mxu1 %v14341_v52  ;;  %v5300_v18 = vpack.c.bf16 %v5286_v11, %v5285_v19  ;;  %v5502_v47 = vld [vmem:[#allocation2 + $0x6e] sm:$0xff] }
 0x41c   : > { %v12934_v5 = vpop.f32.mrb[75].mxu1  ;;  %13188 = vmatmul.mubr.bf16.gmra.mrb[176].mxu0 %v5298_v9  ;;  %13331 = vmatprep.subr.bf16.mxu1 %v18168_v3  ;;  %v16525_v63 = vadd.f32 %v4341_v51, %v4189_v46  ;;  %v14340_v51 = vld [vmem:[%s18145_s2 + $0x528] sm:$0xff]   ;;  %v5516_v54 = vpack.c.bf16 %v5503_v21, %v5502_v47 }
 0x41d   : > { %13191 = vmatprep.mubr.msk.bf16.mxu0 %vm14653_vm0, %v18168_v3  ;;  %13276 = vmatpush3.bf16.msra.mxu0 %v14334_v2 }
 0x41e   : > { %13244 = vmatmul.mubr.bf16.gmra.mrb[180].mxu1 %v5514_v16  ;;  %13277 = vmatprep.subr.bf16.mxu0 %v18168_v3 }
 0x41f   : > { %13247 = vmatprep.mubr.msk.bf16.mxu1 %vm14653_vm0, %v18168_v3  ;;  %v4131_v37 = vpop.f32.mrb[72].mxu0  ;;  %13332 = vmatpush3.bf16.msra.mxu1 %v14342_v61  ;;  %v5505_v61 = vld [vmem:[#allocation2 + $0x86] sm:$0xff] }
 0x420   : > { %v4190_v48 = vadd.f32 %v4131_v37, %v16393_v7  ;;  %v12881_v25 = vpop.f32.mrb[73].mxu0  ;;  %13333 = vmatprep.subr.bf16.mxu1 %v18168_v3  ;;  %v5517_v42 = vpack.c.bf16 %v5505_v61, %v5504_v24 }
 0x421   : > { %v4354_v45 = vpop.f32.mrb[76].mxu1  ;;  %v4134_v27 = vpop.f32.mrb[74].mxu0  ;;  %13278 = vmatpush3.bf16.msra.mxu0 %v14335_v60 }
 0x422   : > { %v12937_v31 = vpop.f32.mrb[77].mxu1  ;;  %v4191_v26 = vadd.f32 %v4134_v27, %v16400_v62  ;;  %v12882_v56 = vpop.f32.mrb[75].mxu0  ;;  %v16544_v7 = vadd.f32 %v4346_v17, %v4190_v48  ;;  %13279 = vmatprep.subr.bf16.mxu0 %v18168_v3  ;;  %v14345_v62 = vld [vmem:[%s18145_s2 + $0x570] sm:$0xff]  }
 0x423   : > { %v4357_v22 = vpop.f32.mrb[78].mxu1  ;;  %13334 = vmatpush3.bf16.msra.mxu1 %v14344_v40 }
 0x424   : > { %v12938_v13 = vpop.f32.mrb[79].mxu1  ;;  %13192 = vmatmul.mubr.bf16.gmra.mrb[180].mxu0 %v5299_v8  ;;  %13335 = vmatprep.subr.bf16.mxu1 %v18168_v3  ;;  %v16551_v55 = vadd.f32 %v4349_v32, %v4191_v26  ;;  %v5290_v26 = vld [vmem:[#allocation2 + $0x85] sm:$0xff] }
 0x425   : > { %13195 = vmatprep.mubr.msk.bf16.mxu0 %vm14653_vm0, %v18168_v3  ;;  %13280 = vmatpush3.bf16.msra.mxu0 %v14337_v30 }
 0x426   : > { %13248 = vmatmul.mubr.bf16.gmra.mrb[184].mxu1 %v5515_v43  ;;  %13281 = vmatprep.subr.bf16.mxu0 %v18168_v3  ;;  %v5289_v43 = vld [vmem:[#allocation2 + $0x7d] sm:$0xff] }
 0x427   : > { %13251 = vmatprep.mubr.msk.bf16.mxu1 %vm14653_vm0, %v18168_v3  ;;  %v4139_v34 = vpop.f32.mrb[76].mxu0  ;;  %13336 = vmatpush3.bf16.msra.mxu1 %v14345_v62  ;;  %v5302_v11 = vpack.c.bf16 %v5290_v26, %v5289_v43 }
 0x428   : > { %v4192_v59 = vadd.f32 %v4139_v34, %v16419_v38  ;;  %v12885_v6 = vpop.f32.mrb[77].mxu0  ;;  %13337 = vmatprep.subr.bf16.mxu1 %v18168_v3 }
 0x429   : > { %v4362_v10 = vpop.f32.mrb[80].mxu1  ;;  %v4142_v44 = vpop.f32.mrb[78].mxu0  ;;  %13282 = vmatpush3.bf16.msra.mxu0 %v14340_v51 }
 0x42a   : > { %v12941_v52 = vpop.f32.mrb[81].mxu1  ;;  %v4193_v58 = vadd.f32 %v4142_v44, %v16422_v0  ;;  %v12886_v17 = vpop.f32.mrb[79].mxu0  ;;  %v16570_v38 = vadd.f32 %v4354_v45, %v4192_v59  ;;  %13283 = vmatprep.subr.bf16.mxu0 %v18168_v3  ;;  %v14347_v0 = vld [vmem:[%s18145_s2 + $0x538] sm:$0xff]   ;;  %v5301_v45 = vpack.c.bf16 %v5288_v1, %v5287_v39 }
 0x42b   : > { %v4365_v36 = vpop.f32.mrb[82].mxu1  ;;  %13338 = vmatpush3.bf16.msra.mxu1 %v14346_v14  ;;  %v5506_v14 = vld [vmem:[#allocation2 + $0x8e] sm:$0xff] }
 0x42c   : > { %v12942_v46 = vpop.f32.mrb[83].mxu1  ;;  %13196 = vmatmul.mubr.bf16.gmra.mrb[184].mxu0 %v5300_v18  ;;  %v16573_v32 = vadd.f32 %v4357_v22, %v4193_v58  ;;  %13427 = vmatprep.subr.bf16.mxu1 %v18168_v3  ;;  %v5509_v58 = vld [vmem:[#allocation2 + $0xa6] sm:$0xff] }
 0x42d   : > { %13199 = vmatprep.mubr.msk.bf16.mxu0 %vm14653_vm0, %v18168_v3  ;;  %13284 = vmatpush3.bf16.msra.mxu0 %v14343_v28  ;;  %v5291_v18 = vld [vmem:[#allocation2 + $0x8d] sm:$0xff] }
 0x42e   : > { %13252 = vmatmul.mubr.bf16.gmra.mrb[188].mxu1 %v5516_v54  ;;  %13285 = vmatprep.subr.bf16.mxu0 %v18168_v3 }
 0x42f   : > { %13255 = vmatprep.mubr.msk.bf16.mxu1 %vm14653_vm0, %v18168_v3  ;;  %v4147_v9 = vpop.f32.mrb[80].mxu0 }
 0x430   : > { %v4194_v2 = vadd.f32 %v4147_v9, %v16435_v15  ;;  %v12889_v5 = vpop.f32.mrb[81].mxu0 }
 0x431   : > { %v4370_v16 = vpop.f32.mrb[84].mxu1  ;;  %v4150_v60 = vpop.f32.mrb[82].mxu0  ;;  %13286 = vmatpush3.bf16.msra.mxu0 %v14347_v0  ;;  %v5508_v0 = vld [vmem:[#allocation2 + $0x9e] sm:$0xff] }
 0x432   : > { %v12945_v37 = vpop.f32.mrb[85].mxu1  ;;  %v4195_v40 = vadd.f32 %v4150_v60, %v16438_v49  ;;  %v12890_v48 = vpop.f32.mrb[83].mxu0  ;;  %v16586_v27 = vadd.f32 %v4362_v10, %v4194_v2  ;;  %13375 = vmatprep.subr.bf16.mxu0 %v18168_v3  ;;  %v5518_v10 = vpack.c.bf16 %v5507_v20, %v5506_v14  ;;  %v5519_v2 = vpack.c.bf16 %v5509_v58, %v5508_v0 }
 0x433   : > { %v4373_v25 = vpop.f32.mrb[86].mxu1  ;;  %v5511_v37 = vld [vmem:[#allocation2 + $0xb6] sm:$0xf]  ;;  %v5293_v48 = vld [vmem:[#allocation2 + $0x9d] sm:$0xff] }
 0x434   : > { %v12946_v31 = vpop.f32.mrb[87].mxu1  ;;  %13200 = vmatmul.mubr.bf16.gmra.mrb[188].mxu0 %v5301_v45  ;;  %v16589_v15 = vadd.f32 %v4365_v36, %v4195_v40 }
 0x435   : > { %13203 = vmatprep.mubr.msk.bf16.mxu0 %vm14653_vm0, %v18168_v3 }
 0x436   : > { %13256 = vmatmul.mubr.bf16.gmra.mrb[192].mxu1 %v5517_v42  ;;  %v5510_v42 = vld [vmem:[#allocation2 + $0xae] sm:$0xff] }
 0x437   : > { %13259 = vmatprep.mubr.msk.bf16.mxu1 %vm14653_vm0, %v18168_v3  ;;  %v4155_v49 = vpop.f32.mrb[84].mxu0 }
 0x438   : > { %v4196_v56 = vadd.f32 %v4155_v49, %v16446_v57  ;;  %v12893_v22 = vpop.f32.mrb[85].mxu0 }
 0x439   : > { %v4378_v8 = vpop.f32.mrb[88].mxu1  ;;  %v4158_v30 = vpop.f32.mrb[86].mxu0 }
 0x43a   : > { %v12949_v13 = vpop.f32.mrb[89].mxu1  ;;  %v4197_v62 = vadd.f32 %v4158_v30, %v16448_v33  ;;  %v12894_v51 = vpop.f32.mrb[87].mxu0  ;;  %v16597_v59 = vadd.f32 %v4370_v16, %v4196_v56  ;;  %v5292_v33 = vld [vmem:[#allocation2 + $0x95] sm:$0xff]  ;;  %v5520_v56 = vpack.c.bf16 %v5511_v37, %v5510_v42 }
 0x43b   : > { %v4381_v34 = vpop.f32.mrb[90].mxu1  ;;  %v5303_v54 = vpack.c.bf16 %v5292_v33, %v5291_v18  ;;  %v5925_v13 = vld [vmem:[#allocation2 + $0x41] sm:$0xff]  ;;  %v5295_v51 = vld [vmem:[#allocation2 + $0xad] sm:$0xff] }
 0x43c   : > { %v12950_v6 = vpop.f32.mrb[91].mxu1  ;;  %13204 = vmatmul.mubr.bf16.gmra.mrb[192].mxu0 %v5302_v11  ;;  %v16599_v21 = vadd.f32 %v4373_v25, %v4197_v62  ;;  %v5927_v18 = vld [vmem:[#allocation2 + $0x51] sm:$0xff] }
 0x43d   : > { %13207 = vmatprep.mubr.msk.bf16.mxu0 %vm14653_vm0, %v18168_v3  ;;  %v5924_v6 = vld [vmem:[#allocation2 + $0x39] sm:$0xff] }
 0x43e   : > { %13260 = vmatmul.mubr.bf16.gmra.mrb[196].mxu1 %v5518_v10  ;;  %v14352_v10 = vld [vmem:[%s18145_s2 + $0x5c0] sm:$0xff]  }
 0x43f   : > { %13263 = vmatprep.mubr.msk.bf16.mxu1 %vm14653_vm0, %v18168_v3  ;;  %v4163_v57 = vpop.f32.mrb[88].mxu0 }
 0x440   : > { %v4198_v44 = vadd.f32 %v4163_v57, %v16456_v29  ;;  %v12897_v52 = vpop.f32.mrb[89].mxu0 }
 0x441   : > { %v4386_v19 = vpop.f32.mrb[92].mxu1  ;;  %v4166_v17 = vpop.f32.mrb[90].mxu0 }
 0x442   : > { %v12953_v36 = vpop.f32.mrb[93].mxu1  ;;  %v4199_v47 = vadd.f32 %v4166_v17, %v16458_v4  ;;  %v12898_v28 = vpop.f32.mrb[91].mxu0  ;;  %v16607_v9 = vadd.f32 %v4378_v8, %v4198_v44  ;;  %v5294_v4 = vld [vmem:[#allocation2 + $0xa5] sm:$0xff]  ;;  %v5942_v44 = vpack.c.bf16 %v5925_v13, %v5924_v6 }
 0x443   : > { %v4389_v46 = vpop.f32.mrb[94].mxu1  ;;  %v5304_v31 = vpack.c.bf16 %v5294_v4, %v5293_v48  ;;  %v5926_v4 = vld [vmem:[#allocation2 + $0x49] sm:$0xff]  ;;  %v14357_v48 = vld [vmem:[%s18145_s2 + $0x5d8] sm:$0xff]  }
 0x444   : > { %v12954_v1 = vpop.f32.mrb[95].mxu1  ;;  %13208 = vmatmul.mubr.bf16.gmra.mrb[196].mxu0 %v5303_v54  ;;  %v16609_v5 = vadd.f32 %v4381_v34, %v4199_v47  ;;  %v14348_v54 = vld [vmem:[%s18145_s2 + $0x580] sm:$0xff]   ;;  %v14360_v6 = vld [vmem:[%s18145_s2 + $0x5e8] sm:$0xff]  }
 0x445   : > { %13211 = vmatprep.mubr.msk.bf16.mxu0 %vm14653_vm0, %v18168_v3 }
 0x446   : > { %13264 = vmatmul.mubr.bf16.gmra.mrb[200].mxu1 %v5519_v2 }
 0x447   : > { %13267 = vmatprep.mubr.msk.bf16.mxu1 %vm14653_vm0, %v18168_v3  ;;  %v4171_v29 = vpop.f32.mrb[92].mxu0 }
 0x448   : > { %v4200_v16 = vadd.f32 %v4171_v29, %v16466_v53  ;;  %v12901_v61 = vpop.f32.mrb[93].mxu0 }
 0x449   : > { %v4394_v60 = vpop.f32.mrb[96].mxu1  ;;  %v4174_v39 = vpop.f32.mrb[94].mxu0  ;;  %v5943_v61 = vpack.c.bf16 %v5927_v18, %v5926_v4  ;;  %v5716_v4 = vld [vmem:[#allocation2 + $0x70] sm:$0xff] }
 0x44a   : > { %v12957_v40 = vpop.f32.mrb[97].mxu1  ;;  %v4201_v25 = vadd.f32 %v4174_v39, %v16468_v35  ;;  %v12902_v45 = vpop.f32.mrb[95].mxu0  ;;  %v16617_v49 = vadd.f32 %v4386_v19, %v4200_v16  ;;  %v5296_v35 = vld [vmem:[#allocation2 + $0xb5] sm:$0xf]  ;;  %v5710_v19 = vld [vmem:[#allocation2 + $0x40] sm:$0xff] }
 0x44b   : > { %v4397_v24 = vpop.f32.mrb[98].mxu1  ;;  %v5305_v14 = vpack.c.bf16 %v5296_v35, %v5295_v51  ;;  %v5712_v40 = vld [vmem:[#allocation2 + $0x50] sm:$0xff]  ;;  %v14358_v51 = vld [vmem:[%s18145_s2 + $0x5e0] sm:$0xff]  }
 0x44c   : > { %v12958_v26 = vpop.f32.mrb[99].mxu1  ;;  %13212 = vmatmul.mubr.bf16.gmra.mrb[200].mxu0 %v5304_v31  ;;  %v16619_v22 = vadd.f32 %v4389_v46, %v4201_v25  ;;  %v5709_v46 = vld [vmem:[#allocation2 + $0x38] sm:$0xff]  ;;  %v5929_v31 = vld [vmem:[#allocation2 + $0x61] sm:$0xff] }
 0x44d   : > { %13215 = vmatprep.mubr.msk.bf16.mxu0 %vm14653_vm0, %v18168_v3  ;;  %v5727_v29 = vpack.c.bf16 %v5710_v19, %v5709_v46  ;;  %v14353_v46 = vld [vmem:[%s18145_s2 + $0x5a0] sm:$0xff]  }
 0x44e   : > { %13268 = vmatmul.mubr.bf16.gmra.mrb[204].mxu1 %v5520_v56  ;;  %v5711_v56 = vld [vmem:[#allocation2 + $0x48] sm:$0xff] }
 0x44f   : > { %13339 = vmatprep.mubr.msk.bf16.mxu1 %vm14653_vm0, %v18168_v3  ;;  %v4179_v53 = vpop.f32.mrb[96].mxu0 }
 0x450   : > { %v4202_v8 = vadd.f32 %v4179_v53, %v16478_v41  ;;  %v12905_v20 = vpop.f32.mrb[97].mxu0  ;;  %v14354_v41 = vld [vmem:[%s18145_s2 + $0x5c8] sm:$0xff]  }
 0x451   : > { %v4760_v30 = vpop.f32.mrb[100].mxu1  ;;  %v4182_v43 = vpop.f32.mrb[98].mxu0  ;;  %v5728_v20 = vpack.c.bf16 %v5712_v40, %v5711_v56  ;;  %v14359_v56 = vld [vmem:[%s18145_s2 + $0x5b0] sm:$0xff]  }
 0x452   : > { %v13029_v62 = vpop.f32.mrb[101].mxu1  ;;  %v12906_v34 = vpop.f32.mrb[99].mxu0  ;;  %v16629_v57 = vadd.f32 %v4394_v60, %v4202_v8  ;;  %v14355_v60 = vld [vmem:[%s18145_s2 + $0x5d0] sm:$0xff]  }
 0x453   : > { %v4763_v11 = vpop.f32.mrb[102].mxu1  ;;  %v14351_v34 = vld [vmem:[%s18145_s2 + $0x598] sm:$0xff]  }
 0x454   : > { %v13030_v33 = vpop.f32.mrb[103].mxu1  ;;  %13216 = vmatmul.mubr.bf16.gmra.mrb[204].mxu0 %v5305_v14  ;;  %v5714_v14 = vld [vmem:[#allocation2 + $0x60] sm:$0xff] }
 0x455   : > { %13287 = vmatprep.mubr.msk.bf16.mxu0 %vm14653_vm0, %v18168_v3 }
 0x456   : > { %13340 = vmatmul.mubr.bf16.vlgmr.msra.gmra.mrb[208].mxu1 %v5942_v44 }
 0x457   : > { %13343 = vmatprep.mubr.msk.bf16.mxu1 %vm14653_vm0, %v18168_v3  ;;  %13428 = vmatpush3.bf16.msra.mxu1 %v14352_v10  ;;  %v4545_v52 = vpop.f32.mrb[100].mxu0 }
 0x458   : > { %13429 = vmatprep.subr.bf16.mxu1 %v18168_v3  ;;  %v4616_v58 = vadd.f32 %v4545_v52, %v16493_v50  ;;  %v12977_v17 = vpop.f32.mrb[101].mxu0 }
 0x459   : > { %v4768_v36 = vpop.f32.mrb[104].mxu1  ;;  %v4548_v47 = vpop.f32.mrb[102].mxu0 }
 0x45a   : > { %v13033_v28 = vpop.f32.mrb[105].mxu1  ;;  %v4617_v0 = vadd.f32 %v4548_v47, %v16499_v12  ;;  %v12978_v1 = vpop.f32.mrb[103].mxu0  ;;  %v16644_v16 = vadd.f32 %v4760_v30, %v4616_v58  ;;  %v14349_v12 = vld [vmem:[%s18145_s2 + $0x588] sm:$0xff]   ;;  %v5928_v30 = vld [vmem:[#allocation2 + $0x59] sm:$0xff] }
 0x45b   : > { %v4771_v2 = vpop.f32.mrb[106].mxu1  ;;  %13430 = vmatpush3.bf16.msra.mxu1 %v14354_v41  ;;  %v5944_v62 = vpack.c.bf16 %v5929_v31, %v5928_v30  ;;  %v5931_v41 = vld [vmem:[#allocation2 + $0x71] sm:$0xff]  ;;  %v5930_v28 = vld [vmem:[#allocation2 + $0x69] sm:$0xff]  ;;  %v5718_v30 = vld [vmem:[#allocation2 + $0x80] sm:$0xff] }
 0x45c   : > { %v13034_v50 = vpop.f32.mrb[107].mxu1  ;;  %13431 = vmatprep.subr.bf16.mxu1 %v18168_v3  ;;  %13288 = vmatmul.mubr.bf16.vlgmr.msra.gmra.mrb[208].mxu0 %v5727_v29  ;;  %v16650_v37 = vadd.f32 %v4763_v11, %v4617_v0  ;;  %v5713_v58 = vld [vmem:[#allocation2 + $0x58] sm:$0xff]  ;;  %v5945_v0 = vpack.c.bf16 %v5931_v41, %v5930_v28  ;;  %v5934_v41 = vld [vmem:[#allocation2 + $0x89] sm:$0xff]  ;;  %v5937_v28 = vld [vmem:[#allocation2 + $0xa1] sm:$0xff] }
 0x45d   : > { %13376 = vmatpush3.bf16.msra.mxu0 %v14348_v54  ;;  %13291 = vmatprep.mubr.msk.bf16.mxu0 %vm14653_vm0, %v18168_v3  ;;  %v5729_v47 = vpack.c.bf16 %v5714_v14, %v5713_v58  ;;  %v14362_v50 = vld [vmem:[%s18145_s2 + $0x5f8] sm:$0xff]  }
 0x45e   : > { %13344 = vmatmul.mubr.bf16.gmra.mrb[212].mxu1 %v5943_v61  ;;  %13377 = vmatprep.subr.bf16.mxu0 %v18168_v3  ;;  %v5717_v14 = vld [vmem:[#allocation2 + $0x78] sm:$0xff] }
 0x45f   : > { %13347 = vmatprep.mubr.msk.bf16.mxu1 %vm14653_vm0, %v18168_v3  ;;  %v4553_v39 = vpop.f32.mrb[104].mxu0  ;;  %13432 = vmatpush3.bf16.msra.mxu1 %v14355_v60 }
 0x460   : > { %v4618_v25 = vadd.f32 %v4553_v39, %v16519_v23  ;;  %v12981_v45 = vpop.f32.mrb[105].mxu0  ;;  %13433 = vmatprep.subr.bf16.mxu1 %v18168_v3  ;;  %v14350_v23 = vld [vmem:[%s18145_s2 + $0x590] sm:$0xff]   ;;  %v5933_v39 = vld [vmem:[#allocation2 + $0x81] sm:$0xff] }
 0x461   : > { %v4776_v24 = vpop.f32.mrb[108].mxu1  ;;  %v4556_v42 = vpop.f32.mrb[106].mxu0  ;;  %13378 = vmatpush3.bf16.msra.mxu0 %v14349_v12 }
 0x462   : > { %v13037_v26 = vpop.f32.mrb[109].mxu1  ;;  %v4619_v53 = vadd.f32 %v4556_v42, %v16525_v63  ;;  %v12982_v35 = vpop.f32.mrb[107].mxu0  ;;  %13379 = vmatprep.subr.bf16.mxu0 %v18168_v3  ;;  %v16670_v13 = vadd.f32 %v4768_v36, %v4618_v25  ;;  %v5715_v25 = vld [vmem:[#allocation2 + $0x68] sm:$0xff] }
 0x463   : > { %v4779_v8 = vpop.f32.mrb[110].mxu1  ;;  %13434 = vmatpush3.bf16.msra.mxu1 %v14357_v48  ;;  %v5730_v42 = vpack.c.bf16 %v5716_v4, %v5715_v25  ;;  %v5932_v26 = vld [vmem:[#allocation2 + $0x79] sm:$0xff] }
 0x464   : > { %v13038_v43 = vpop.f32.mrb[111].mxu1  ;;  %13292 = vmatmul.mubr.bf16.gmra.mrb[212].mxu0 %v5728_v20  ;;  %13435 = vmatprep.subr.bf16.mxu1 %v18168_v3  ;;  %v16676_v63 = vadd.f32 %v4771_v2, %v4619_v53  ;;  %v14356_v2 = vld [vmem:[%s18145_s2 + $0x5a8] sm:$0xff]   ;;  %v5946_v35 = vpack.c.bf16 %v5933_v39, %v5932_v26 }
 0x465   : > { %13295 = vmatprep.mubr.msk.bf16.mxu0 %vm14653_vm0, %v18168_v3  ;;  %13380 = vmatpush3.bf16.msra.mxu0 %v14350_v23 }
 0x466   : > { %13348 = vmatmul.mubr.bf16.gmra.mrb[216].mxu1 %v5944_v62  ;;  %13381 = vmatprep.subr.bf16.mxu0 %v18168_v3 }
 0x467   : > { %13351 = vmatprep.mubr.msk.bf16.mxu1 %vm14653_vm0, %v18168_v3  ;;  %v4561_v11 = vpop.f32.mrb[108].mxu0  ;;  %13436 = vmatpush3.bf16.msra.mxu1 %v14358_v51  ;;  %v5935_v51 = vld [vmem:[#allocation2 + $0x91] sm:$0xff] }
 0x468   : > { %v4620_v10 = vadd.f32 %v4561_v11, %v16544_v7  ;;  %v12985_v33 = vpop.f32.mrb[109].mxu0  ;;  %13437 = vmatprep.subr.bf16.mxu1 %v18168_v3  ;;  %v5947_v58 = vpack.c.bf16 %v5935_v51, %v5934_v41 }
 0x469   : > { %v4784_v44 = vpop.f32.mrb[112].mxu1  ;;  %v4564_v52 = vpop.f32.mrb[110].mxu0  ;;  %13382 = vmatpush3.bf16.msra.mxu0 %v14351_v34 }
 0x46a   : > { %v13041_v19 = vpop.f32.mrb[113].mxu1  ;;  %v4621_v17 = vadd.f32 %v4564_v52, %v16551_v55  ;;  %v12986_v36 = vpop.f32.mrb[111].mxu0  ;;  %v16695_v7 = vadd.f32 %v4776_v24, %v4620_v10  ;;  %13383 = vmatprep.subr.bf16.mxu0 %v18168_v3  ;;  %v14361_v55 = vld [vmem:[%s18145_s2 + $0x5f0] sm:$0xff]  }
 0x46b   : > { %v4787_v18 = vpop.f32.mrb[114].mxu1  ;;  %13438 = vmatpush3.bf16.msra.mxu1 %v14360_v6 }
 0x46c   : > { %v13042_v54 = vpop.f32.mrb[115].mxu1  ;;  %13296 = vmatmul.mubr.bf16.gmra.mrb[216].mxu0 %v5729_v47  ;;  %13439 = vmatprep.subr.bf16.mxu1 %v18168_v3  ;;  %v16702_v1 = vadd.f32 %v4779_v8, %v4621_v17  ;;  %v5720_v17 = vld [vmem:[#allocation2 + $0x90] sm:$0xff] }
 0x46d   : > { %13299 = vmatprep.mubr.msk.bf16.mxu0 %vm14653_vm0, %v18168_v3  ;;  %13384 = vmatpush3.bf16.msra.mxu0 %v14353_v46 }
 0x46e   : > { %13352 = vmatmul.mubr.bf16.gmra.mrb[220].mxu1 %v5945_v0  ;;  %13385 = vmatprep.subr.bf16.mxu0 %v18168_v3  ;;  %v5719_v0 = vld [vmem:[#allocation2 + $0x88] sm:$0xff] }
 0x46f   : > { %13355 = vmatprep.mubr.msk.bf16.mxu1 %vm14653_vm0, %v18168_v3  ;;  %v4569_v29 = vpop.f32.mrb[112].mxu0  ;;  %13440 = vmatpush3.bf16.msra.mxu1 %v14361_v55  ;;  %v5732_v4 = vpack.c.bf16 %v5720_v17, %v5719_v0 }
 0x470   : > { %v4622_v61 = vadd.f32 %v4569_v29, %v16570_v38  ;;  %v12989_v60 = vpop.f32.mrb[113].mxu0  ;;  %13441 = vmatprep.subr.bf16.mxu1 %v18168_v3 }
 0x471   : > { %v4792_v12 = vpop.f32.mrb[116].mxu1  ;;  %v4572_v40 = vpop.f32.mrb[114].mxu0  ;;  %13386 = vmatpush3.bf16.msra.mxu0 %v14356_v2 }
 0x472   : > { %v13045_v48 = vpop.f32.mrb[117].mxu1  ;;  %v4623_v45 = vadd.f32 %v4572_v40, %v16573_v32  ;;  %v12990_v24 = vpop.f32.mrb[115].mxu0  ;;  %v16721_v38 = vadd.f32 %v4784_v44, %v4622_v61  ;;  %13387 = vmatprep.subr.bf16.mxu0 %v18168_v3  ;;  %v14363_v32 = vld [vmem:[%s18145_s2 + $0x5b8] sm:$0xff]   ;;  %v5731_v44 = vpack.c.bf16 %v5718_v30, %v5717_v14  ;;  %v5941_v14 = vld [vmem:[#allocation2 + $0xc1] sm:$0xf] }
 0x473   : > { %v4795_v31 = vpop.f32.mrb[118].mxu1  ;;  %13442 = vmatpush3.bf16.msra.mxu1 %v14362_v50  ;;  %v5936_v50 = vld [vmem:[#allocation2 + $0x99] sm:$0xff] }
 0x474   : > { %v13046_v53 = vpop.f32.mrb[119].mxu1  ;;  %13300 = vmatmul.mubr.bf16.gmra.mrb[220].mxu0 %v5730_v42  ;;  %v16724_v8 = vadd.f32 %v4787_v18, %v4623_v45  ;;  %13531 = vmatprep.subr.bf16.mxu1 %v18168_v3  ;;  %v5939_v45 = vld [vmem:[#allocation2 + $0xb1] sm:$0xff] }
 0x475   : > { %13303 = vmatprep.mubr.msk.bf16.mxu0 %vm14653_vm0, %v18168_v3  ;;  %13388 = vmatpush3.bf16.msra.mxu0 %v14359_v56  ;;  %v5721_v42 = vld [vmem:[#allocation2 + $0x98] sm:$0xff] }
 0x476   : > { %13356 = vmatmul.mubr.bf16.gmra.mrb[224].mxu1 %v5946_v35  ;;  %13389 = vmatprep.subr.bf16.mxu0 %v18168_v3 }
 0x477   : > { %13359 = vmatprep.mubr.msk.bf16.mxu1 %vm14653_vm0, %v18168_v3  ;;  %v4577_v20 = vpop.f32.mrb[116].mxu0 }
 0x478   : > { %v4624_v23 = vadd.f32 %v4577_v20, %v16586_v27  ;;  %v12993_v43 = vpop.f32.mrb[117].mxu0 }
 0x479   : > { %v4800_v62 = vpop.f32.mrb[120].mxu1  ;;  %v4580_v34 = vpop.f32.mrb[118].mxu0  ;;  %13390 = vmatpush3.bf16.msra.mxu0 %v14363_v32  ;;  %v5938_v32 = vld [vmem:[#allocation2 + $0xa9] sm:$0xff] }
 0x47a   : > { %v13049_v11 = vpop.f32.mrb[121].mxu1  ;;  %v4625_v6 = vadd.f32 %v4580_v34, %v16589_v15  ;;  %v12994_v10 = vpop.f32.mrb[119].mxu0  ;;  %v16737_v52 = vadd.f32 %v4792_v12, %v4624_v23  ;;  %13479 = vmatprep.subr.bf16.mxu0 %v18168_v3  ;;  %v5948_v12 = vpack.c.bf16 %v5937_v28, %v5936_v50  ;;  %v5949_v23 = vpack.c.bf16 %v5939_v45, %v5938_v32 }
 0x47b   : > { %v4803_v33 = vpop.f32.mrb[122].mxu1  ;;  %v5940_v11 = vld [vmem:[#allocation2 + $0xb9] sm:$0xff] }
 0x47c   : > { %v13050_v19 = vpop.f32.mrb[123].mxu1  ;;  %13304 = vmatmul.mubr.bf16.gmra.mrb[224].mxu0 %v5731_v44  ;;  %v16740_v27 = vadd.f32 %v4795_v31, %v4625_v6 }
 0x47d   : > { %13307 = vmatprep.mubr.msk.bf16.mxu0 %vm14653_vm0, %v18168_v3 }
 0x47e   : > { %13360 = vmatmul.mubr.bf16.gmra.mrb[228].mxu1 %v5947_v58 }
 0x47f   : > { %13363 = vmatprep.mubr.msk.bf16.mxu1 %vm14653_vm0, %v18168_v3  ;;  %v4585_v15 = vpop.f32.mrb[120].mxu0 }
 0x480   : > { %v4626_v36 = vadd.f32 %v4585_v15, %v16597_v59  ;;  %v12997_v18 = vpop.f32.mrb[121].mxu0 }
 0x481   : > { %v4808_v47 = vpop.f32.mrb[124].mxu1  ;;  %v4588_v46 = vpop.f32.mrb[122].mxu0 }
 0x482   : > { %v13053_v54 = vpop.f32.mrb[125].mxu1  ;;  %v4627_v55 = vadd.f32 %v4588_v46, %v16599_v21  ;;  %v12998_v2 = vpop.f32.mrb[123].mxu0  ;;  %v16748_v61 = vadd.f32 %v4800_v62, %v4626_v36  ;;  %v5722_v21 = vld [vmem:[#allocation2 + $0xa0] sm:$0xff]  ;;  %v5950_v36 = vpack.c.bf16 %v5941_v14, %v5940_v11 }
 0x483   : > { %v4811_v29 = vpop.f32.mrb[126].mxu1  ;;  %v5733_v35 = vpack.c.bf16 %v5722_v21, %v5721_v42  ;;  %v6355_v54 = vld [vmem:[#allocation2 + $0x43] sm:$0xff]  ;;  %v5725_v2 = vld [vmem:[#allocation2 + $0xb8] sm:$0xff] }
 0x484   : > { %v13054_v60 = vpop.f32.mrb[127].mxu1  ;;  %13308 = vmatmul.mubr.bf16.gmra.mrb[228].mxu0 %v5732_v4  ;;  %v16750_v39 = vadd.f32 %v4803_v33, %v4627_v55  ;;  %v5723_v33 = vld [vmem:[#allocation2 + $0xa8] sm:$0xff] }
 0x485   : > { %13311 = vmatprep.mubr.msk.bf16.mxu0 %vm14653_vm0, %v18168_v3  ;;  %v6354_v60 = vld [vmem:[#allocation2 + $0x3b] sm:$0xff] }
 0x486   : > { %13364 = vmatmul.mubr.bf16.gmra.mrb[232].mxu1 %v5948_v12  ;;  %v6372_v21 = vpack.c.bf16 %v6355_v54, %v6354_v60 }
 0x487   : > { %13367 = vmatprep.mubr.msk.bf16.mxu1 %vm14653_vm0, %v18168_v3  ;;  %v4593_v59 = vpop.f32.mrb[124].mxu0 }
 0x488   : > { %v4628_v40 = vadd.f32 %v4593_v59, %v16607_v9  ;;  %v13001_v48 = vpop.f32.mrb[125].mxu0 }
 0x489   : > { %v4816_v25 = vpop.f32.mrb[128].mxu1  ;;  %v4596_v24 = vpop.f32.mrb[126].mxu0 }
 0x48a   : > { %v13057_v31 = vpop.f32.mrb[129].mxu1  ;;  %v4629_v26 = vadd.f32 %v4596_v24, %v16609_v5  ;;  %v13002_v56 = vpop.f32.mrb[127].mxu0  ;;  %v16758_v20 = vadd.f32 %v4808_v47, %v4628_v40  ;;  %v5724_v5 = vld [vmem:[#allocation2 + $0xb0] sm:$0xff]  ;;  %v5726_v47 = vld [vmem:[#allocation2 + $0xc0] sm:$0xf] }
 0x48b   : > { %v4819_v53 = vpop.f32.mrb[130].mxu1  ;;  %v5734_v58 = vpack.c.bf16 %v5724_v5, %v5723_v33  ;;  %v5735_v50 = vpack.c.bf16 %v5726_v47, %v5725_v2  ;;  %v6140_v40 = vld [vmem:[#allocation2 + $0x42] sm:$0xff]  ;;  %v6357_v24 = vld [vmem:[#allocation2 + $0x53] sm:$0xff] }
 0x48c   : > { %v13058_v30 = vpop.f32.mrb[131].mxu1  ;;  %13312 = vmatmul.mubr.bf16.gmra.mrb[232].mxu0 %v5733_v35  ;;  %v16760_v43 = vadd.f32 %v4811_v29, %v4629_v26  ;;  %v6139_v26 = vld [vmem:[#allocation2 + $0x3a] sm:$0xff]  ;;  %v14366_v47 = vld [vmem:[%s18145_s2 + $0x610] sm:$0xff]  }
 0x48d   : > { %13315 = vmatprep.mubr.msk.bf16.mxu0 %vm14653_vm0, %v18168_v3  ;;  %v14364_v56 = vld [vmem:[%s18145_s2 + $0x600] sm:$0xff]   ;;  %v6157_v30 = vpack.c.bf16 %v6140_v40, %v6139_v26 }
 0x48e   : > { %13368 = vmatmul.mubr.bf16.gmra.mrb[236].mxu1 %v5949_v23  ;;  %v6356_v23 = vld [vmem:[#allocation2 + $0x4b] sm:$0xff] }
 0x48f   : > { %13371 = vmatprep.mubr.msk.bf16.mxu1 %vm14653_vm0, %v18168_v3  ;;  %v4601_v9 = vpop.f32.mrb[128].mxu0 }
 0x490   : > { %v4630_v62 = vadd.f32 %v4601_v9, %v16617_v49  ;;  %v13005_v51 = vpop.f32.mrb[129].mxu0 }
 0x491   : > { %v4824_v34 = vpop.f32.mrb[132].mxu1  ;;  %v4604_v6 = vpop.f32.mrb[130].mxu0  ;;  %v14365_v51 = vld [vmem:[%s18145_s2 + $0x608] sm:$0xff]  }
 0x492   : > { %v13061_v10 = vpop.f32.mrb[133].mxu1  ;;  %v4631_v44 = vadd.f32 %v4604_v6, %v16619_v22  ;;  %v13006_v41 = vpop.f32.mrb[131].mxu0  ;;  %v16768_v15 = vadd.f32 %v4816_v25, %v4630_v62 }
 0x493   : > { %v4827_v19 = vpop.f32.mrb[134].mxu1  ;;  %v6359_v10 = vld [vmem:[#allocation2 + $0x63] sm:$0xff] }
 0x494   : > { %v13062_v17 = vpop.f32.mrb[135].mxu1  ;;  %13316 = vmatmul.mubr.bf16.gmra.mrb[236].mxu0 %v5734_v58  ;;  %v16770_v18 = vadd.f32 %v4819_v53, %v4631_v44  ;;  %v6141_v41 = vld [vmem:[#allocation2 + $0x4a] sm:$0xff] }
 0x495   : > { %13319 = vmatprep.mubr.msk.bf16.mxu0 %vm14653_vm0, %v18168_v3 }
 0x496   : > { %13372 = vmatmul.mubr.bf16.gmra.mrb[240].mxu1 %v5950_v36 }
 0x497   : > { %13443 = vmatprep.mubr.msk.bf16.mxu1 %vm14653_vm0, %v18168_v3  ;;  %v4609_v49 = vpop.f32.mrb[132].mxu0 }
 0x498   : > { %v4632_v22 = vadd.f32 %v4609_v49, %v16629_v57  ;;  %v13009_v28 = vpop.f32.mrb[133].mxu0  ;;  %v6358_v49 = vld [vmem:[#allocation2 + $0x5b] sm:$0xff] }
 0x499   : > { %v5190_v46 = vpop.f32.mrb[136].mxu1  ;;  %v4612_v0 = vpop.f32.mrb[134].mxu0  ;;  %v6374_v28 = vpack.c.bf16 %v6359_v10, %v6358_v49  ;;  %v6365_v49 = vld [vmem:[#allocation2 + $0x93] sm:$0xff] }
 0x49a   : > { %v13133_v55 = vpop.f32.mrb[137].mxu1  ;;  %v13010_v29 = vpop.f32.mrb[135].mxu0  ;;  %v16777_v12 = vadd.f32 %v4824_v34, %v4632_v22  ;;  %v6142_v34 = vld [vmem:[#allocation2 + $0x52] sm:$0xff]  ;;  %v6144_v0 = vld [vmem:[#allocation2 + $0x62] sm:$0xff] }
 0x49b   : > { %v5193_v4 = vpop.f32.mrb[138].mxu1  ;;  %v6158_v36 = vpack.c.bf16 %v6142_v34, %v6141_v41 }
 0x49c   : > { %v13134_v59 = vpop.f32.mrb[139].mxu1  ;;  %13320 = vmatmul.mubr.bf16.gmra.mrb[240].mxu0 %v5735_v50 }
 0x49d   : > { %13391 = vmatprep.mubr.msk.bf16.mxu0 %vm14653_vm0, %v18168_v3  ;;  %v6143_v59 = vld [vmem:[#allocation2 + $0x5a] sm:$0xff] }
 0x49e   : > { %13444 = vmatmul.mubr.bf16.vlgmr.msra.gmra.mrb[244].mxu1 %v6372_v21 }
 0x49f   : > { %13447 = vmatprep.mubr.msk.bf16.mxu1 %vm14653_vm0, %v18168_v3  ;;  %v4975_v57 = vpop.f32.mrb[136].mxu0 }
 0x4a0   : > { %v5046_v48 = vadd.f32 %v4975_v57, %v16644_v16  ;;  %v13081_v25 = vpop.f32.mrb[137].mxu0  ;;  %v6373_v16 = vpack.c.bf16 %v6357_v24, %v6356_v23 }
 0x4a1   : > { %v5198_v45 = vpop.f32.mrb[140].mxu1  ;;  %v4978_v31 = vpop.f32.mrb[138].mxu0  ;;  %v6360_v25 = vld [vmem:[#allocation2 + $0x6b] sm:$0xff] }
 0x4a2   : > { %v13137_v42 = vpop.f32.mrb[141].mxu1  ;;  %v5047_v53 = vadd.f32 %v4978_v31, %v16650_v37  ;;  %v13082_v35 = vpop.f32.mrb[139].mxu0  ;;  %v16788_v9 = vadd.f32 %v5190_v46, %v5046_v48  ;;  %v6159_v48 = vpack.c.bf16 %v6144_v0, %v6143_v59 }
 0x4a3   : > { %v5201_v32 = vpop.f32.mrb[142].mxu1 }
 0x4a4   : > { %v13138_v5 = vpop.f32.mrb[143].mxu1  ;;  %13392 = vmatmul.mubr.bf16.vlgmr.msra.gmra.mrb[244].mxu0 %v6157_v30  ;;  %v16790_v62 = vadd.f32 %v5193_v4, %v5047_v53  ;;  %v6361_v4 = vld [vmem:[#allocation2 + $0x73] sm:$0xff]  ;;  %v6363_v30 = vld [vmem:[#allocation2 + $0x83] sm:$0xff] }
 0x4a5   : > { %13480 = vmatpush3.bf16.msra.mxu0 %v14364_v56  ;;  %13395 = vmatprep.mubr.msk.bf16.mxu0 %vm14653_vm0, %v18168_v3  ;;  %v6375_v31 = vpack.c.bf16 %v6361_v4, %v6360_v25  ;;  %v6146_v56 = vld [vmem:[#allocation2 + $0x72] sm:$0xff] }
 0x4a6   : > { %13448 = vmatmul.mubr.bf16.gmra.mrb[248].mxu1 %v6373_v16  ;;  %13481 = vmatprep.subr.bf16.mxu0 %v18168_v3  ;;  %v6145_v16 = vld [vmem:[#allocation2 + $0x6a] sm:$0xff] }
 0x4a7   : > { %13451 = vmatprep.mubr.msk.bf16.mxu1 %vm14653_vm0, %v18168_v3  ;;  %v4983_v37 = vpop.f32.mrb[140].mxu0 }
 0x4a8   : > { %v5048_v11 = vadd.f32 %v4983_v37, %v16670_v13  ;;  %v13085_v14 = vpop.f32.mrb[141].mxu0 }
 0x4a9   : > { %v5206_v6 = vpop.f32.mrb[144].mxu1  ;;  %v4986_v33 = vpop.f32.mrb[142].mxu0  ;;  %13482 = vmatpush3.bf16.msra.mxu0 %v14365_v51  ;;  %v6362_v14 = vld [vmem:[#allocation2 + $0x7b] sm:$0xff] }
 0x4aa   : > { %v13141_v44 = vpop.f32.mrb[145].mxu1  ;;  %v5049_v19 = vadd.f32 %v4986_v33, %v16676_v63  ;;  %v13086_v58 = vpop.f32.mrb[143].mxu0  ;;  %13483 = vmatprep.subr.bf16.mxu0 %v18168_v3  ;;  %v16806_v13 = vadd.f32 %v5198_v45, %v5048_v11  ;;  %v14367_v63 = vld [vmem:[%s18145_s2 + $0x618] sm:$0xff]   ;;  %v14368_v45 = vld [vmem:[%s18145_s2 + $0x620] sm:$0xff]   ;;  %v6160_v11 = vpack.c.bf16 %v6146_v56, %v6145_v16  ;;  %v6376_v33 = vpack.c.bf16 %v6363_v30, %v6362_v14 }
 0x4ab   : > { %v5209_v17 = vpop.f32.mrb[146].mxu1  ;;  %v6366_v56 = vld [vmem:[#allocation2 + $0x9b] sm:$0xff] }
 0x4ac   : > { %v13142_v22 = vpop.f32.mrb[147].mxu1  ;;  %13396 = vmatmul.mubr.bf16.gmra.mrb[248].mxu0 %v6158_v36  ;;  %v16808_v46 = vadd.f32 %v5201_v32, %v5049_v19  ;;  %v6148_v19 = vld [vmem:[#allocation2 + $0x82] sm:$0xff] }
 0x4ad   : > { %13399 = vmatprep.mubr.msk.bf16.mxu0 %vm14653_vm0, %v18168_v3  ;;  %13484 = vmatpush3.bf16.msra.mxu0 %v14366_v47 }
 0x4ae   : > { %13452 = vmatmul.mubr.bf16.gmra.mrb[252].mxu1 %v6374_v28  ;;  %13485 = vmatprep.subr.bf16.mxu0 %v18168_v3  ;;  %v6147_v28 = vld [vmem:[#allocation2 + $0x7a] sm:$0xff] }
 0x4af   : > { %13455 = vmatprep.mubr.msk.bf16.mxu1 %vm14653_vm0, %v18168_v3  ;;  %v4991_v54 = vpop.f32.mrb[144].mxu0 }
 0x4b0   : > { %v5050_v55 = vadd.f32 %v4991_v54, %v16695_v7  ;;  %v13089_v2 = vpop.f32.mrb[145].mxu0 }
 0x4b1   : > { %v5214_v29 = vpop.f32.mrb[148].mxu1  ;;  %v4994_v50 = vpop.f32.mrb[146].mxu0  ;;  %13486 = vmatpush3.bf16.msra.mxu0 %v14367_v63  ;;  %v6364_v2 = vld [vmem:[#allocation2 + $0x8b] sm:$0xff] }
 0x4b2   : > { %v13145_v60 = vpop.f32.mrb[149].mxu1  ;;  %v5051_v21 = vadd.f32 %v4994_v50, %v16702_v1  ;;  %v13090_v57 = vpop.f32.mrb[147].mxu0  ;;  %v16823_v24 = vadd.f32 %v5206_v6, %v5050_v55  ;;  %13487 = vmatprep.subr.bf16.mxu0 %v18168_v3  ;;  %v14369_v1 = vld [vmem:[%s18145_s2 + $0x628] sm:$0xff]   ;;  %v14370_v6 = vld [vmem:[%s18145_s2 + $0x630] sm:$0xff]   ;;  %v6161_v55 = vpack.c.bf16 %v6148_v19, %v6147_v28  ;;  %v6377_v50 = vpack.c.bf16 %v6365_v49, %v6364_v2  ;;  %v6371_v28 = vld [vmem:[#allocation2 + $0xc3] sm:$0xf] }
 0x4b3   : > { %v5217_v40 = vpop.f32.mrb[150].mxu1  ;;  %v6150_v60 = vld [vmem:[#allocation2 + $0x92] sm:$0xff] }
 0x4b4   : > { %v13146_v7 = vpop.f32.mrb[151].mxu1  ;;  %13400 = vmatmul.mubr.bf16.gmra.mrb[252].mxu0 %v6159_v48  ;;  %v16826_v42 = vadd.f32 %v5209_v17, %v5051_v21 }
 0x4b5   : > { %13403 = vmatprep.mubr.msk.bf16.mxu0 %vm14653_vm0, %v18168_v3  ;;  %13488 = vmatpush3.bf16.msra.mxu0 %v14368_v45  ;;  %v6149_v45 = vld [vmem:[#allocation2 + $0x8a] sm:$0xff] }
 0x4b6   : > { %13456 = vmatmul.mubr.bf16.gmra.mrb[0].mxu1 %v6375_v31  ;;  %13489 = vmatprep.subr.bf16.mxu0 %v18168_v3 }
 0x4b7   : > { %13459 = vmatprep.mubr.msk.bf16.mxu1 %vm14653_vm0, %v18168_v3  ;;  %v4999_v26 = vpop.f32.mrb[148].mxu0 }
 0x4b8   : > { %v5052_v53 = vadd.f32 %v4999_v26, %v16721_v38  ;;  %v13093_v35 = vpop.f32.mrb[149].mxu0  ;;  %v6162_v26 = vpack.c.bf16 %v6150_v60, %v6149_v45 }
 0x4b9   : > { %v5222_v32 = vpop.f32.mrb[152].mxu1  ;;  %v5002_v23 = vpop.f32.mrb[150].mxu0  ;;  %13490 = vmatpush3.bf16.msra.mxu0 %v14369_v1 }
 0x4ba   : > { %v13149_v5 = vpop.f32.mrb[153].mxu1  ;;  %v5053_v51 = vadd.f32 %v5002_v23, %v16724_v8  ;;  %v13094_v37 = vpop.f32.mrb[151].mxu0  ;;  %v16841_v10 = vadd.f32 %v5214_v29, %v5052_v53  ;;  %13491 = vmatprep.subr.bf16.mxu0 %v18168_v3  ;;  %v14371_v8 = vld [vmem:[%s18145_s2 + $0x638] sm:$0xff]  }
 0x4bb   : > { %v5225_v34 = vpop.f32.mrb[154].mxu1 }
 0x4bc   : > { %v13150_v38 = vpop.f32.mrb[155].mxu1  ;;  %13404 = vmatmul.mubr.bf16.gmra.mrb[0].mxu0 %v6160_v11  ;;  %v16844_v44 = vadd.f32 %v5217_v40, %v5053_v51  ;;  %v6367_v40 = vld [vmem:[#allocation2 + $0xa3] sm:$0xff]  ;;  %v6369_v51 = vld [vmem:[#allocation2 + $0xb3] sm:$0xff] }
 0x4bd   : > { %13407 = vmatprep.mubr.msk.bf16.mxu0 %vm14653_vm0, %v18168_v3  ;;  %13492 = vmatpush3.bf16.msra.mxu0 %v14370_v6  ;;  %v6151_v11 = vld [vmem:[#allocation2 + $0x9a] sm:$0xff] }
 0x4be   : > { %13460 = vmatmul.mubr.bf16.gmra.mrb[4].mxu1 %v6376_v33  ;;  %13493 = vmatprep.subr.bf16.mxu0 %v18168_v3 }
 0x4bf   : > { %13463 = vmatprep.mubr.msk.bf16.mxu1 %vm14653_vm0, %v18168_v3  ;;  %v5007_v41 = vpop.f32.mrb[152].mxu0 }
 0x4c0   : > { %v5054_v58 = vadd.f32 %v5007_v41, %v16737_v52  ;;  %v13097_v17 = vpop.f32.mrb[153].mxu0 }
 0x4c1   : > { %v5230_v36 = vpop.f32.mrb[156].mxu1  ;;  %v5010_v47 = vpop.f32.mrb[154].mxu0  ;;  %13494 = vmatpush3.bf16.msra.mxu0 %v14371_v8  ;;  %v6368_v8 = vld [vmem:[#allocation2 + $0xab] sm:$0xff] }
 0x4c2   : > { %v13153_v22 = vpop.f32.mrb[157].mxu1  ;;  %v5055_v63 = vadd.f32 %v5010_v47, %v16740_v27  ;;  %v13098_v54 = vpop.f32.mrb[155].mxu0  ;;  %v16856_v29 = vadd.f32 %v5222_v32, %v5054_v58  ;;  %13591 = vmatprep.subr.bf16.mxu0 %v18168_v3  ;;  %v6378_v32 = vpack.c.bf16 %v6367_v40, %v6366_v56  ;;  %v6379_v58 = vpack.c.bf16 %v6369_v51, %v6368_v8  ;;  %v6569_v51 = vld [vmem:[#allocation2 + $0x3c] sm:$0xff]  ;;  %v6572_v8 = vld [vmem:[#allocation2 + $0x54] sm:$0xff] }
 0x4c3   : > { %v5233_v0 = vpop.f32.mrb[158].mxu1  ;;  %v6370_v22 = vld [vmem:[#allocation2 + $0xbb] sm:$0xff] }
 0x4c4   : > { %v13154_v4 = vpop.f32.mrb[159].mxu1  ;;  %13408 = vmatmul.mubr.bf16.gmra.mrb[4].mxu0 %v6161_v55  ;;  %v16859_v52 = vadd.f32 %v5225_v34, %v5055_v63 }
 0x4c5   : > { %13411 = vmatprep.mubr.msk.bf16.mxu0 %vm14653_vm0, %v18168_v3 }
 0x4c6   : > { %13464 = vmatmul.mubr.bf16.gmra.mrb[8].mxu1 %v6377_v50 }
 0x4c7   : > { %13467 = vmatprep.mubr.msk.bf16.mxu1 %vm14653_vm0, %v18168_v3  ;;  %v5015_v27 = vpop.f32.mrb[156].mxu0 }
 0x4c8   : > { %v5056_v59 = vadd.f32 %v5015_v27, %v16748_v61  ;;  %v13101_v21 = vpop.f32.mrb[157].mxu0 }
 0x4c9   : > { %v5238_v57 = vpop.f32.mrb[160].mxu1  ;;  %v5018_v48 = vpop.f32.mrb[158].mxu0 }
 0x4ca   : > { %v13157_v25 = vpop.f32.mrb[161].mxu1  ;;  %v5057_v7 = vadd.f32 %v5018_v48, %v16750_v39  ;;  %v13102_v31 = vpop.f32.mrb[159].mxu0  ;;  %v16867_v53 = vadd.f32 %v5230_v36, %v5056_v59  ;;  %v6152_v39 = vld [vmem:[#allocation2 + $0xa2] sm:$0xff]  ;;  %v6380_v59 = vpack.c.bf16 %v6371_v28, %v6370_v22 }
 0x4cb   : > { %v5241_v1 = vpop.f32.mrb[162].mxu1  ;;  %v6163_v33 = vpack.c.bf16 %v6152_v39, %v6151_v11 }
 0x4cc   : > { %v13158_v35 = vpop.f32.mrb[163].mxu1  ;;  %13412 = vmatmul.mubr.bf16.gmra.mrb[8].mxu0 %v6162_v26  ;;  %v16869_v30 = vadd.f32 %v5233_v0, %v5057_v7  ;;  %v6153_v0 = vld [vmem:[#allocation2 + $0xaa] sm:$0xff] }
 0x4cd   : > { %13415 = vmatprep.mubr.msk.bf16.mxu0 %vm14653_vm0, %v18168_v3 }
 0x4ce   : > { %13468 = vmatmul.mubr.bf16.gmra.mrb[12].mxu1 %v6378_v32 }
 0x4cf   : > { %13471 = vmatprep.mubr.msk.bf16.mxu1 %vm14653_vm0, %v18168_v3  ;;  %v5023_v61 = vpop.f32.mrb[160].mxu0 }
 0x4d0   : > { %v5058_v23 = vadd.f32 %v5023_v61, %v16758_v20  ;;  %v13105_v5 = vpop.f32.mrb[161].mxu0  ;;  %v6570_v61 = vld [vmem:[#allocation2 + $0x44] sm:$0xff] }
 0x4d1   : > { %v5246_v16 = vpop.f32.mrb[164].mxu1  ;;  %v5026_v37 = vpop.f32.mrb[162].mxu0 }
 0x4d2   : > { %v13161_v34 = vpop.f32.mrb[165].mxu1  ;;  %v5059_v14 = vadd.f32 %v5026_v37, %v16760_v43  ;;  %v13106_v6 = vpop.f32.mrb[163].mxu0  ;;  %v16877_v41 = vadd.f32 %v5238_v57, %v5058_v23  ;;  %v6154_v43 = vld [vmem:[#allocation2 + $0xb2] sm:$0xff]  ;;  %v6155_v57 = vld [vmem:[#allocation2 + $0xba] sm:$0xff] }
 0x4d3   : > { %v5249_v38 = vpop.f32.mrb[166].mxu1  ;;  %v6164_v50 = vpack.c.bf16 %v6154_v43, %v6153_v0 }
 0x4d4   : > { %v13162_v19 = vpop.f32.mrb[167].mxu1  ;;  %13416 = vmatmul.mubr.bf16.gmra.mrb[12].mxu0 %v6163_v33  ;;  %v16879_v17 = vadd.f32 %v5241_v1, %v5059_v14  ;;  %v6587_v14 = vpack.c.bf16 %v6570_v61, %v6569_v51 }
 0x4d5   : > { %13419 = vmatprep.mubr.msk.bf16.mxu0 %vm14653_vm0, %v18168_v3 }
 0x4d6   : > { %13472 = vmatmul.mubr.bf16.gmra.mrb[16].mxu1 %v6379_v58 }
 0x4d7   : > { %13475 = vmatprep.mubr.msk.bf16.mxu1 %vm14653_vm0, %v18168_v3  ;;  %v5031_v20 = vpop.f32.mrb[164].mxu0 }
 0x4d8   : > { %v5060_v36 = vadd.f32 %v5031_v20, %v16768_v15  ;;  %v13109_v49 = vpop.f32.mrb[165].mxu0 }
 0x4d9   : > { %v5254_v47 = vpop.f32.mrb[168].mxu1  ;;  %v5034_v63 = vpop.f32.mrb[166].mxu0 }
 0x4da   : > { %v13165_v54 = vpop.f32.mrb[169].mxu1  ;;  %v5061_v55 = vadd.f32 %v5034_v63, %v16770_v18  ;;  %v13110_v2 = vpop.f32.mrb[167].mxu0  ;;  %v16887_v27 = vadd.f32 %v5246_v16, %v5060_v36  ;;  %v6156_v18 = vld [vmem:[#allocation2 + $0xc2] sm:$0xf]  ;;  %v6571_v36 = vld [vmem:[#allocation2 + $0x4c] sm:$0xff] }
 0x4db   : > { %v5257_v4 = vpop.f32.mrb[170].mxu1  ;;  %v6165_v26 = vpack.c.bf16 %v6156_v18, %v6155_v57  ;;  %v6588_v28 = vpack.c.bf16 %v6572_v8, %v6571_v36 }
 0x4dc   : > { %v13166_v60 = vpop.f32.mrb[171].mxu1  ;;  %13420 = vmatmul.mubr.bf16.gmra.mrb[16].mxu0 %v6164_v50  ;;  %v16889_v21 = vadd.f32 %v5249_v38, %v5061_v55  ;;  %v6574_v55 = vld [vmem:[#allocation2 + $0x64] sm:$0xff] }
 0x4dd   : > { %13423 = vmatprep.mubr.msk.bf16.mxu0 %vm14653_vm0, %v18168_v3 }
 0x4de   : > { %13476 = vmatmul.mubr.bf16.gmra.mrb[20].mxu1 %v6380_v59  ;;  %v6573_v59 = vld [vmem:[#allocation2 + $0x5c] sm:$0xff] }
 0x4df   : > { %13547 = vmatprep.mubr.msk.bf16.mxu1 %vm14653_vm0, %v18168_v3  ;;  %v5039_v15 = vpop.f32.mrb[168].mxu0 }
 0x4e0   : > { %v5062_v40 = vadd.f32 %v5039_v15, %v16777_v12  ;;  %v13113_v48 = vpop.f32.mrb[169].mxu0 }
 0x4e1   : > { %v5620_v25 = vpop.f32.mrb[172].mxu1  ;;  %v5042_v45 = vpop.f32.mrb[170].mxu0 }
 0x4e2   : > { %v13237_v7 = vpop.f32.mrb[173].mxu1  ;;  %v13114_v31 = vpop.f32.mrb[171].mxu0  ;;  %v16896_v56 = vadd.f32 %v5254_v47, %v5062_v40  ;;  %v6589_v40 = vpack.c.bf16 %v6574_v55, %v6573_v59 }
 0x4e3   : > { %v5623_v1 = vpop.f32.mrb[174].mxu1  ;;  %v6576_v7 = vld [vmem:[#allocation2 + $0x74] sm:$0xff] }
 0x4e4   : > { %v13238_v35 = vpop.f32.mrb[175].mxu1  ;;  %13424 = vmatmul.mubr.bf16.gmra.mrb[20].mxu0 %v6165_v26 }
 0x4e5   : > { %13495 = vmatprep.mubr.msk.bf16.mxu0 %vm14653_vm0, %v18168_v3 }
 0x4e7   : > { %v5405_v32 = vpop.f32.mrb[172].mxu0 }
 0x4e8   : > { %v5476_v39 = vadd.f32 %v5405_v32, %v16788_v9  ;;  %v13185_v23 = vpop.f32.mrb[173].mxu0  ;;  %v6575_v32 = vld [vmem:[#allocation2 + $0x6c] sm:$0xff] }
 0x4e9   : > { %v5628_v12 = vpop.f32.mrb[176].mxu1  ;;  %v5408_v5 = vpop.f32.mrb[174].mxu0 }
 0x4ea   : > { %v13241_v16 = vpop.f32.mrb[177].mxu1  ;;  %v5477_v37 = vadd.f32 %v5408_v5, %v16790_v62  ;;  %v13186_v34 = vpop.f32.mrb[175].mxu0  ;;  %v16902_v6 = vadd.f32 %v5620_v25, %v5476_v39 }
 0x4eb   : > { %v5631_v11 = vpop.f32.mrb[178].mxu1 }
 0x4ec   : > { %v13242_v38 = vpop.f32.mrb[179].mxu1  ;;  %13496 = vmatmul.mubr.bf16.vlgmr.msra.gmra.mrb[24].mxu0 %v6587_v14  ;;  %v16904_v33 = vadd.f32 %v5623_v1, %v5477_v37  ;;  %v6578_v37 = vld [vmem:[#allocation2 + $0x84] sm:$0xff] }
 0x4ed   : > { %13499 = vmatprep.mubr.msk.bf16.mxu0 %vm14653_vm0, %v18168_v3 }
 0x4ef   : > { %v5413_v9 = vpop.f32.mrb[176].mxu0 }
 0x4f0   : > { %v5478_v19 = vadd.f32 %v5413_v9, %v16806_v13  ;;  %v13189_v58 = vpop.f32.mrb[177].mxu0  ;;  %v6577_v9 = vld [vmem:[#allocation2 + $0x7c] sm:$0xff] }
 0x4f1   : > { %v5636_v20 = vpop.f32.mrb[180].mxu1  ;;  %v5416_v43 = vpop.f32.mrb[178].mxu0 }
 0x4f2   : > { %v13245_v62 = vpop.f32.mrb[181].mxu1  ;;  %v5479_v49 = vadd.f32 %v5416_v43, %v16808_v46  ;;  %v13190_v47 = vpop.f32.mrb[179].mxu0  ;;  %v16910_v63 = vadd.f32 %v5628_v12, %v5478_v19  ;;  %v6590_v12 = vpack.c.bf16 %v6576_v7, %v6575_v32  ;;  %v14372_v32 = vld [vmem:[%s18146_s3 + $0x40] sm:$0xff]  }
 0x4f3   : > { %v5639_v22 = vpop.f32.mrb[182].mxu1  ;;  %13532 = vmatpush3.bf16.msra.mxu1 %v14372_v32 }
 0x4f4   : > { %v13246_v54 = vpop.f32.mrb[183].mxu1  ;;  %13500 = vmatmul.mubr.bf16.gmra.mrb[28].mxu0 %v6588_v28  ;;  %v16912_v0 = vadd.f32 %v5631_v11, %v5479_v49  ;;  %v6580_v49 = vld [vmem:[#allocation2 + $0x94] sm:$0xff]  ;;  %13533 = vmatprep.subr.bf16.mxu1 %v18168_v3 }
 0x4f5   : > { %13503 = vmatprep.mubr.msk.bf16.mxu0 %vm14653_vm0, %v18168_v3 }
 0x4f7   : > { %v5421_v13 = vpop.f32.mrb[180].mxu0 }
 0x4f8   : > { %v5480_v2 = vadd.f32 %v5421_v13, %v16823_v24  ;;  %v13193_v4 = vpop.f32.mrb[181].mxu0  ;;  %v6579_v13 = vld [vmem:[#allocation2 + $0x8c] sm:$0xff] }
 0x4f9   : > { %v5644_v50 = vpop.f32.mrb[184].mxu1  ;;  %v5424_v60 = vpop.f32.mrb[182].mxu0 }
 0x4fa   : > { %v13249_v46 = vpop.f32.mrb[185].mxu1  ;;  %v5481_v15 = vadd.f32 %v5424_v60, %v16826_v42  ;;  %v13194_v57 = vpop.f32.mrb[183].mxu0  ;;  %v16918_v48 = vadd.f32 %v5636_v20, %v5480_v2  ;;  %v6591_v20 = vpack.c.bf16 %v6578_v37, %v6577_v9  ;;  %v6583_v37 = vld [vmem:[#allocation2 + $0xac] sm:$0xff] }
 0x4fb   : > { %v5647_v18 = vpop.f32.mrb[186].mxu1 }
 0x4fc   : > { %v13250_v25 = vpop.f32.mrb[187].mxu1  ;;  %13504 = vmatmul.mubr.bf16.gmra.mrb[32].mxu0 %v6589_v40  ;;  %v16920_v45 = vadd.f32 %v5639_v22, %v5481_v15  ;;  %v6582_v15 = vld [vmem:[#allocation2 + $0xa4] sm:$0xff] }
 0x4fd   : > { %13507 = vmatprep.mubr.msk.bf16.mxu0 %vm14653_vm0, %v18168_v3 }
 0x4ff   : > { %v5429_v24 = vpop.f32.mrb[184].mxu0 }
 0x500   : > { %v5482_v31 = vadd.f32 %v5429_v24, %v16841_v10  ;;  %v13197_v1 = vpop.f32.mrb[185].mxu0  ;;  %v6581_v24 = vld [vmem:[#allocation2 + $0x9c] sm:$0xff] }
 0x501   : > { %v5652_v26 = vpop.f32.mrb[188].mxu1  ;;  %v5432_v35 = vpop.f32.mrb[186].mxu0 }
 0x502   : > { %v13253_v42 = vpop.f32.mrb[189].mxu1  ;;  %v5483_v61 = vadd.f32 %v5432_v35, %v16844_v44  ;;  %v13198_v39 = vpop.f32.mrb[187].mxu0  ;;  %v16926_v5 = vadd.f32 %v5644_v50, %v5482_v31  ;;  %v6592_v50 = vpack.c.bf16 %v6580_v49, %v6579_v13 }
 0x503   : > { %v5655_v23 = vpop.f32.mrb[190].mxu1 }
 0x504   : > { %v13254_v16 = vpop.f32.mrb[191].mxu1  ;;  %13508 = vmatmul.mubr.bf16.gmra.mrb[36].mxu0 %v6590_v12  ;;  %v16928_v51 = vadd.f32 %v5647_v18, %v5483_v61 }
 0x505   : > { %13511 = vmatprep.mubr.msk.bf16.mxu0 %vm14653_vm0, %v18168_v3 }
 0x507   : > { %v5437_v10 = vpop.f32.mrb[188].mxu0 }
 0x508   : > { %v5484_v34 = vadd.f32 %v5437_v10, %v16856_v29  ;;  %v13201_v11 = vpop.f32.mrb[189].mxu0 }
 0x509   : > { %v5660_v14 = vpop.f32.mrb[192].mxu1  ;;  %v5440_v38 = vpop.f32.mrb[190].mxu0 }
 0x50a   : > { %v13257_v44 = vpop.f32.mrb[193].mxu1  ;;  %v5485_v8 = vadd.f32 %v5440_v38, %v16859_v52  ;;  %v13202_v19 = vpop.f32.mrb[191].mxu0  ;;  %v16934_v43 = vadd.f32 %v5652_v26, %v5484_v34  ;;  %v6593_v26 = vpack.c.bf16 %v6582_v15, %v6581_v24 }
 0x50b   : > { %v5663_v58 = vpop.f32.mrb[194].mxu1 }
 0x50c   : > { %v13258_v62 = vpop.f32.mrb[195].mxu1  ;;  %13512 = vmatmul.mubr.bf16.gmra.mrb[40].mxu0 %v6591_v20  ;;  %v16936_v36 = vadd.f32 %v5655_v23, %v5485_v8  ;;  %v14373_v8 = vld [vmem:[%s18146_s3 + $0x48] sm:$0xff]  }
 0x50d   : > { %13515 = vmatprep.mubr.msk.bf16.mxu0 %vm14653_vm0, %v18168_v3  ;;  %13534 = vmatpush3.bf16.msra.mxu1 %v14373_v8 }
 0x50e   : > { %13535 = vmatprep.subr.bf16.mxu1 %v18168_v3 }
 0x50f   : > { %v5445_v29 = vpop.f32.mrb[192].mxu0 }
 0x510   : > { %v5486_v47 = vadd.f32 %v5445_v29, %v16867_v53  ;;  %v13205_v22 = vpop.f32.mrb[193].mxu0 }
 0x511   : > { %v5668_v28 = vpop.f32.mrb[196].mxu1  ;;  %v5448_v54 = vpop.f32.mrb[194].mxu0 }
 0x512   : > { %v13261_v52 = vpop.f32.mrb[197].mxu1  ;;  %v5487_v55 = vadd.f32 %v5448_v54, %v16869_v30  ;;  %v13206_v2 = vpop.f32.mrb[195].mxu0  ;;  %v16942_v60 = vadd.f32 %v5660_v14, %v5486_v47 }
 0x513   : > { %v5671_v4 = vpop.f32.mrb[198].mxu1 }
 0x514   : > { %v13262_v46 = vpop.f32.mrb[199].mxu1  ;;  %13516 = vmatmul.mubr.bf16.gmra.mrb[44].mxu0 %v6592_v50  ;;  %v16944_v59 = vadd.f32 %v5663_v58, %v5487_v55  ;;  %v6586_v58 = vld [vmem:[#allocation2 + $0xc4] sm:$0xf] }
 0x515   : > { %13519 = vmatprep.mubr.msk.bf16.mxu0 %vm14653_vm0, %v18168_v3 }
 0x517   : > { %v5453_v53 = vpop.f32.mrb[196].mxu0 }
 0x518   : > { %v5488_v57 = vadd.f32 %v5453_v53, %v16877_v41  ;;  %v13209_v18 = vpop.f32.mrb[197].mxu0 }
 0x519   : > { %v5676_v40 = vpop.f32.mrb[200].mxu1  ;;  %v5456_v25 = vpop.f32.mrb[198].mxu0 }
 0x51a   : > { %v13265_v30 = vpop.f32.mrb[201].mxu1  ;;  %v5489_v7 = vadd.f32 %v5456_v25, %v16879_v17  ;;  %v13210_v31 = vpop.f32.mrb[199].mxu0  ;;  %v16950_v35 = vadd.f32 %v5668_v28, %v5488_v57  ;;  %v6584_v17 = vld [vmem:[#allocation2 + $0xb4] sm:$0xff] }
 0x51b   : > { %v5679_v1 = vpop.f32.mrb[202].mxu1  ;;  %v6594_v38 = vpack.c.bf16 %v6584_v17, %v6583_v37 }
 0x51c   : > { %v13266_v42 = vpop.f32.mrb[203].mxu1  ;;  %13520 = vmatmul.mubr.bf16.gmra.mrb[48].mxu0 %v6593_v26  ;;  %v16955_v61 = vadd.f32 %v5671_v4, %v5489_v7 }
 0x51d   : > { %13523 = vmatprep.mubr.msk.bf16.mxu0 %vm14653_vm0, %v18168_v3 }
 0x51f   : > { %v5461_v41 = vpop.f32.mrb[200].mxu0 }
 0x520   : > { %v5490_v39 = vadd.f32 %v5461_v41, %v16887_v27  ;;  %v13213_v23 = vpop.f32.mrb[201].mxu0 }
 0x521   : > { %v5684_v12 = vpop.f32.mrb[204].mxu1  ;;  %v5464_v16 = vpop.f32.mrb[202].mxu0 }
 0x522   : > { %v13269_v10 = vpop.f32.mrb[205].mxu1  ;;  %v5491_v34 = vadd.f32 %v5464_v16, %v16889_v21  ;;  %v13214_v11 = vpop.f32.mrb[203].mxu0  ;;  %v16962_v44 = vadd.f32 %v5676_v40, %v5490_v39  ;;  %v6585_v21 = vld [vmem:[#allocation2 + $0xbc] sm:$0xff] }
 0x523   : > { %v5687_v14 = vpop.f32.mrb[206].mxu1  ;;  %v6595_v54 = vpack.c.bf16 %v6586_v58, %v6585_v21 }
 0x524   : > { %v13270_v9 = vpop.f32.mrb[207].mxu1  ;;  %13524 = vmatmul.mubr.bf16.gmra.mrb[52].mxu0 %v6594_v38  ;;  %v16967_v19 = vadd.f32 %v5679_v1, %v5491_v34  ;;  %v14375_v1 = vld [vmem:[%s18146_s3 + $0x58] sm:$0xff]  }
 0x525   : > { %13527 = vmatprep.mubr.msk.bf16.mxu0 %vm14653_vm0, %v18168_v3 }
 0x527   : > { %v5469_v27 = vpop.f32.mrb[204].mxu0 }
 0x528   : > { %v5492_v20 = vadd.f32 %v5469_v27, %v16896_v56  ;;  %v13217_v62 = vpop.f32.mrb[205].mxu0  ;;  %v14374_v56 = vld [vmem:[%s18146_s3 + $0x50] sm:$0xff]  }
 0x529   : > { %v6050_v29 = vpop.f32.mrb[208].mxu1  ;;  %v5472_v49 = vpop.f32.mrb[206].mxu0  ;;  %13536 = vmatpush3.bf16.msra.mxu1 %v14374_v56 }
 0x52a   : > { %v13341_v47 = vpop.f32.mrb[209].mxu1  ;;  %v13218_v22 = vpop.f32.mrb[207].mxu0  ;;  %v16973_v52 = vadd.f32 %v5684_v12, %v5492_v20  ;;  %13537 = vmatprep.subr.bf16.mxu1 %v18168_v3 }
 0x52b   : > { %v6053_v28 = vpop.f32.mrb[210].mxu1 }
 0x52c   : > { %v13342_v13 = vpop.f32.mrb[211].mxu1  ;;  %13528 = vmatmul.mubr.bf16.gmra.mrb[56].mxu0 %v6595_v54 }
 0x52d   : > { %13607 = vmatprep.mubr.msk.bf16.mxu0 %vm14653_vm0, %v18168_v3  ;;  %13538 = vmatpush3.bf16.msra.mxu1 %v14375_v1 }
 0x52e   : > { %13539 = vmatprep.subr.bf16.mxu1 %v18168_v3 }
 0x52f   : > { %v5835_v55 = vpop.f32.mrb[208].mxu0 }
 0x530   : > { %v5906_v2 = vadd.f32 %v5835_v55, %v16902_v6  ;;  %v13289_v4 = vpop.f32.mrb[209].mxu0 }
 0x531   : > { %v6058_v50 = vpop.f32.mrb[212].mxu1  ;;  %v5838_v46 = vpop.f32.mrb[210].mxu0 }
 0x532   : > { %v13345_v53 = vpop.f32.mrb[213].mxu1  ;;  %v5907_v15 = vadd.f32 %v5838_v46, %v16904_v33  ;;  %v13290_v57 = vpop.f32.mrb[211].mxu0  ;;  %v16982_v40 = vadd.f32 %v6050_v29, %v5906_v2 }
 0x533   : > { %v6061_v18 = vpop.f32.mrb[214].mxu1 }
 0x534   : > { %v13346_v25 = vpop.f32.mrb[215].mxu1  ;;  %v16985_v30 = vadd.f32 %v6053_v28, %v5907_v15 }
 0x537   : > { %v5843_v6 = vpop.f32.mrb[212].mxu0 }
 0x538   : > { %v5908_v24 = vadd.f32 %v5843_v6, %v16910_v63  ;;  %v13293_v7 = vpop.f32.mrb[213].mxu0 }
 0x539   : > { %v6066_v31 = vpop.f32.mrb[216].mxu1  ;;  %v5846_v33 = vpop.f32.mrb[214].mxu0 }
 0x53a   : > { %v13349_v26 = vpop.f32.mrb[217].mxu1  ;;  %v5909_v42 = vadd.f32 %v5846_v33, %v16912_v0  ;;  %v13294_v32 = vpop.f32.mrb[215].mxu0  ;;  %v16992_v17 = vadd.f32 %v6058_v50, %v5908_v24 }
 0x53b   : > { %v6069_v41 = vpop.f32.mrb[218].mxu1 }
 0x53c   : > { %v13350_v39 = vpop.f32.mrb[219].mxu1  ;;  %v16995_v23 = vadd.f32 %v6061_v18, %v5909_v42  ;;  %v14378_v42 = vld [vmem:[%s18146_s3 + $0xc8] sm:$0xff]  }
 0x53f   : > { %v5851_v63 = vpop.f32.mrb[216].mxu0 }
 0x540   : > { %v5910_v12 = vadd.f32 %v5851_v63, %v16918_v48  ;;  %v13297_v16 = vpop.f32.mrb[217].mxu0 }
 0x541   : > { %v6074_v10 = vpop.f32.mrb[220].mxu1  ;;  %v5854_v37 = vpop.f32.mrb[218].mxu0 }
 0x542   : > { %v13353_v34 = vpop.f32.mrb[221].mxu1  ;;  %v5911_v11 = vadd.f32 %v5854_v37, %v16920_v45  ;;  %v13298_v0 = vpop.f32.mrb[219].mxu0  ;;  %v16999_v38 = vadd.f32 %v6066_v31, %v5910_v12 }
 0x543   : > { %v6077_v14 = vpop.f32.mrb[222].mxu1 }
 0x544   : > { %v13354_v9 = vpop.f32.mrb[223].mxu1  ;;  %v17001_v8 = vadd.f32 %v6069_v41, %v5911_v11 }
 0x545   : > { %v14381_v9 = vld [vmem:[%s18146_s3 + $0xd8] sm:$0xff]  }
 0x547   : > { %v5859_v27 = vpop.f32.mrb[220].mxu0 }
 0x548   : > { %v5912_v21 = vadd.f32 %v5859_v27, %v16926_v5  ;;  %v13301_v58 = vpop.f32.mrb[221].mxu0  ;;  %v14376_v5 = vld [vmem:[%s18146_s3 + $0x60] sm:$0xff]  }
 0x549   : > { %v6082_v20 = vpop.f32.mrb[224].mxu1  ;;  %v5862_v62 = vpop.f32.mrb[222].mxu0  ;;  %13540 = vmatpush3.bf16.msra.mxu1 %v14376_v5 }
 0x54a   : > { %v13357_v48 = vpop.f32.mrb[225].mxu1  ;;  %v5913_v29 = vadd.f32 %v5862_v62, %v16928_v51  ;;  %v13302_v49 = vpop.f32.mrb[223].mxu0  ;;  %v17005_v22 = vadd.f32 %v6074_v10, %v5912_v21  ;;  %v14377_v51 = vld [vmem:[%s18146_s3 + $0xc0] sm:$0xff]   ;;  %13541 = vmatprep.subr.bf16.mxu1 %v18168_v3 }
 0x54b   : > { %v6085_v47 = vpop.f32.mrb[226].mxu1  ;;  %13592 = vmatpush3.bf16.msra.mxu0 %v14377_v51 }
 0x54c   : > { %v13358_v45 = vpop.f32.mrb[227].mxu1  ;;  %v17007_v28 = vadd.f32 %v6077_v14, %v5913_v29  ;;  %13593 = vmatprep.subr.bf16.mxu0 %v18168_v3 }
 0x54f   : > { %v5867_v54 = vpop.f32.mrb[224].mxu0  ;;  %13594 = vmatpush3.bf16.msra.mxu0 %v14378_v42 }
 0x550   : > { %v5914_v13 = vadd.f32 %v5867_v54, %v16934_v43  ;;  %v13305_v55 = vpop.f32.mrb[225].mxu0  ;;  %13595 = vmatprep.subr.bf16.mxu0 %v18168_v3 }
 0x551   : > { %v6090_v2 = vpop.f32.mrb[228].mxu1  ;;  %v5870_v4 = vpop.f32.mrb[226].mxu0  ;;  %v14384_v55 = vld [vmem:[%s18146_s3 + $0xe8] sm:$0xff]  }
 0x552   : > { %v13361_v50 = vpop.f32.mrb[229].mxu1  ;;  %v5915_v56 = vadd.f32 %v5870_v4, %v16936_v36  ;;  %v13306_v46 = vpop.f32.mrb[227].mxu0  ;;  %v17017_v15 = vadd.f32 %v6082_v20, %v5914_v13 }
 0x553   : > { %v6093_v53 = vpop.f32.mrb[230].mxu1 }
 0x554   : > { %v13362_v43 = vpop.f32.mrb[231].mxu1  ;;  %v17021_v57 = vadd.f32 %v6085_v47, %v5915_v56 }
 0x557   : > { %v5875_v18 = vpop.f32.mrb[228].mxu0 }
 0x558   : > { %v5916_v25 = vadd.f32 %v5875_v18, %v16942_v60  ;;  %v13309_v6 = vpop.f32.mrb[229].mxu0  ;;  %v14379_v60 = vld [vmem:[%s18146_s3 + $0x68] sm:$0xff]  }
 0x559   : > { %v6098_v24 = vpop.f32.mrb[232].mxu1  ;;  %v5878_v7 = vpop.f32.mrb[230].mxu0  ;;  %13542 = vmatpush3.bf16.msra.mxu1 %v14379_v60  ;;  %v14387_v6 = vld [vmem:[%s18146_s3 + $0xf8] sm:$0xff]  }
 0x55a   : > { %v13365_v36 = vpop.f32.mrb[233].mxu1  ;;  %v5917_v31 = vadd.f32 %v5878_v7, %v16944_v59  ;;  %v13310_v1 = vpop.f32.mrb[231].mxu0  ;;  %v17025_v26 = vadd.f32 %v6090_v2, %v5916_v25  ;;  %v14380_v59 = vld [vmem:[%s18146_s3 + $0xd0] sm:$0xff]   ;;  %13543 = vmatprep.subr.bf16.mxu1 %v18168_v3 }
 0x55b   : > { %v6101_v33 = vpop.f32.mrb[234].mxu1  ;;  %13596 = vmatpush3.bf16.msra.mxu0 %v14380_v59 }
 0x55c   : > { %v13366_v32 = vpop.f32.mrb[235].mxu1  ;;  %v17030_v41 = vadd.f32 %v6093_v53, %v5917_v31  ;;  %13597 = vmatprep.subr.bf16.mxu0 %v18168_v3 }
 0x55f   : > { %v5883_v39 = vpop.f32.mrb[232].mxu0  ;;  %13598 = vmatpush3.bf16.msra.mxu0 %v14381_v9 }
 0x560   : > { %v5918_v63 = vadd.f32 %v5883_v39, %v16950_v35  ;;  %v13313_v12 = vpop.f32.mrb[233].mxu0  ;;  %v14382_v35 = vld [vmem:[%s18146_s3 + $0x70] sm:$0xff]   ;;  %13599 = vmatprep.subr.bf16.mxu0 %v18168_v3 }
 0x561   : > { %v6106_v16 = vpop.f32.mrb[236].mxu1  ;;  %v5886_v10 = vpop.f32.mrb[234].mxu0  ;;  %13544 = vmatpush3.bf16.msra.mxu1 %v14382_v35 }
 0x562   : > { %v13369_v37 = vpop.f32.mrb[237].mxu1  ;;  %v5919_v34 = vadd.f32 %v5886_v10, %v16955_v61  ;;  %v13314_v11 = vpop.f32.mrb[235].mxu0  ;;  %v17043_v14 = vadd.f32 %v6098_v24, %v5918_v63  ;;  %v14383_v61 = vld [vmem:[%s18146_s3 + $0xe0] sm:$0xff]   ;;  %13545 = vmatprep.subr.bf16.mxu1 %v18168_v3 }
 0x563   : > { %v6109_v0 = vpop.f32.mrb[238].mxu1  ;;  %13600 = vmatpush3.bf16.msra.mxu0 %v14383_v61 }
 0x564   : > { %v13370_v27 = vpop.f32.mrb[239].mxu1  ;;  %v17048_v21 = vadd.f32 %v6101_v33, %v5919_v34  ;;  %13601 = vmatprep.subr.bf16.mxu0 %v18168_v3 }
 0x567   : > { %v5891_v58 = vpop.f32.mrb[236].mxu0  ;;  %13602 = vmatpush3.bf16.msra.mxu0 %v14384_v55 }
 0x568   : > { %v5920_v20 = vadd.f32 %v5891_v58, %v16962_v44  ;;  %v13317_v62 = vpop.f32.mrb[237].mxu0  ;;  %v14385_v44 = vld [vmem:[%s18146_s3 + $0x78] sm:$0xff]   ;;  %13603 = vmatprep.subr.bf16.mxu0 %v18168_v3 }
 0x569   : > { %v6114_v48 = vpop.f32.mrb[240].mxu1  ;;  %v5894_v29 = vpop.f32.mrb[238].mxu0  ;;  %13546 = vmatpush3.bf16.msra.mxu1 %v14385_v44 }
 0x56a   : > { %v13373_v49 = vpop.f32.mrb[241].mxu1  ;;  %v5921_v47 = vadd.f32 %v5894_v29, %v16967_v19  ;;  %v13318_v45 = vpop.f32.mrb[239].mxu0  ;;  %v17061_v13 = vadd.f32 %v6106_v16, %v5920_v20  ;;  %v14386_v19 = vld [vmem:[%s18146_s3 + $0xf0] sm:$0xff]   ;;  %13551 = vmatprep.subr.bf16.mxu1 %v18168_v3 }
 0x56b   : > { %v6117_v54 = vpop.f32.mrb[242].mxu1  ;;  %13604 = vmatpush3.bf16.msra.mxu0 %v14386_v19 }
 0x56c   : > { %v13374_v2 = vpop.f32.mrb[243].mxu1  ;;  %v17066_v5 = vadd.f32 %v6109_v0, %v5921_v47  ;;  %13605 = vmatprep.subr.bf16.mxu0 %v18168_v3 }
 0x56f   : > { %v5899_v51 = vpop.f32.mrb[240].mxu0  ;;  %13606 = vmatpush3.bf16.msra.mxu0 %v14387_v6 }
 0x570   : > { %v5922_v4 = vadd.f32 %v5899_v51, %v16973_v52  ;;  %v13321_v50 = vpop.f32.mrb[241].mxu0  ;;  %13631 = vmatprep.subr.bf16.mxu0 %v18168_v3 }
 0x571   : > { %v6480_v56 = vpop.f32.mrb[244].mxu1  ;;  %v5902_v46 = vpop.f32.mrb[242].mxu0 }
 0x572   : > { %v13445_v53 = vpop.f32.mrb[245].mxu1  ;;  %v13322_v43 = vpop.f32.mrb[243].mxu0  ;;  %v17078_v25 = vadd.f32 %v6114_v48, %v5922_v4 }
 0x573   : > { %v6483_v18 = vpop.f32.mrb[246].mxu1 }
 0x574   : > { %v13446_v24 = vpop.f32.mrb[247].mxu1 }
 0x577   : > { %v6265_v52 = vpop.f32.mrb[244].mxu0 }
 0x578   : > { %v6336_v7 = vadd.f32 %v6265_v52, %v16982_v40  ;;  %v13393_v36 = vpop.f32.mrb[245].mxu0 }
 0x579   : > { %v6488_v31 = vpop.f32.mrb[248].mxu1  ;;  %v6268_v1 = vpop.f32.mrb[246].mxu0 }
 0x57a   : > { %v13449_v33 = vpop.f32.mrb[249].mxu1  ;;  %v6337_v42 = vadd.f32 %v6268_v1, %v16985_v30  ;;  %v13394_v32 = vpop.f32.mrb[247].mxu0  ;;  %v17086_v59 = vadd.f32 %v6480_v56, %v6336_v7 }
 0x57b   : > { %v6491_v60 = vpop.f32.mrb[250].mxu1 }
 0x57c   : > { %v13450_v39 = vpop.f32.mrb[251].mxu1  ;;  %v17088_v63 = vadd.f32 %v6483_v18, %v6337_v42 }
 0x57f   : > { %v6273_v12 = vpop.f32.mrb[248].mxu0 }
 0x580   : > { %v6338_v16 = vadd.f32 %v6273_v12, %v16992_v17  ;;  %v13397_v10 = vpop.f32.mrb[249].mxu0 }
 0x581   : > { %v6496_v37 = vpop.f32.mrb[252].mxu1  ;;  %v6276_v34 = vpop.f32.mrb[250].mxu0 }
 0x582   : > { %v13453_v40 = vpop.f32.mrb[253].mxu1  ;;  %v6339_v11 = vadd.f32 %v6276_v34, %v16995_v23  ;;  %v13398_v0 = vpop.f32.mrb[251].mxu0  ;;  %v17092_v27 = vadd.f32 %v6488_v31, %v6338_v16 }
 0x583   : > { %v6499_v9 = vpop.f32.mrb[254].mxu1 }
 0x584   : > { %v13454_v30 = vpop.f32.mrb[255].mxu1  ;;  %v17094_v35 = vadd.f32 %v6491_v60, %v6339_v11 }
 0x587   : > { %v6281_v61 = vpop.f32.mrb[252].mxu0 }
 0x588   : > { %v6340_v58 = vadd.f32 %v6281_v61, %v16999_v38  ;;  %v13401_v20 = vpop.f32.mrb[253].mxu0 }
 0x589   : > { %v6504_v62 = vpop.f32.mrb[0].mxu1  ;;  %v6284_v48 = vpop.f32.mrb[254].mxu0 }
 0x58a   : > { %v13457_v17 = vpop.f32.mrb[1].mxu1  ;;  %v6341_v29 = vadd.f32 %v6284_v48, %v17001_v8  ;;  %v13402_v49 = vpop.f32.mrb[255].mxu0  ;;  %v17098_v45 = vadd.f32 %v6496_v37, %v6340_v58 }
 0x58b   : > { %v6507_v47 = vpop.f32.mrb[2].mxu1 }
 0x58c   : > { %v13458_v23 = vpop.f32.mrb[3].mxu1  ;;  %v17100_v54 = vadd.f32 %v6499_v9, %v6341_v29 }
 0x58f   : > { %v6289_v55 = vpop.f32.mrb[0].mxu0 }
 0x590   : > { %v6342_v2 = vadd.f32 %v6289_v55, %v17005_v22  ;;  %v13405_v44 = vpop.f32.mrb[1].mxu0 }
 0x591   : > { %v6512_v19 = vpop.f32.mrb[4].mxu1  ;;  %v6292_v51 = vpop.f32.mrb[2].mxu0 }
 0x592   : > { %v13461_v38 = vpop.f32.mrb[5].mxu1  ;;  %v6343_v4 = vadd.f32 %v6292_v51, %v17007_v28  ;;  %v13406_v50 = vpop.f32.mrb[3].mxu0  ;;  %v17104_v46 = vadd.f32 %v6504_v62, %v6342_v2 }
 0x593   : > { %v6515_v56 = vpop.f32.mrb[6].mxu1 }
 0x594   : > { %v13462_v8 = vpop.f32.mrb[7].mxu1  ;;  %v17106_v53 = vadd.f32 %v6507_v47, %v6343_v4 }
 0x597   : > { %v6297_v43 = vpop.f32.mrb[4].mxu0 }
 0x598   : > { %v6344_v18 = vadd.f32 %v6297_v43, %v17017_v15  ;;  %v13409_v6 = vpop.f32.mrb[5].mxu0 }
 0x599   : > { %v6520_v24 = vpop.f32.mrb[8].mxu1  ;;  %v6300_v52 = vpop.f32.mrb[6].mxu0 }
 0x59a   : > { %v13465_v22 = vpop.f32.mrb[9].mxu1  ;;  %v6345_v7 = vadd.f32 %v6300_v52, %v17021_v57  ;;  %v13410_v36 = vpop.f32.mrb[7].mxu0  ;;  %v17110_v1 = vadd.f32 %v6512_v19, %v6344_v18 }
 0x59b   : > { %v6523_v31 = vpop.f32.mrb[10].mxu1 }
 0x59c   : > { %v13466_v28 = vpop.f32.mrb[11].mxu1  ;;  %v17112_v33 = vadd.f32 %v6515_v56, %v6345_v7 }
 0x59f   : > { %v6305_v42 = vpop.f32.mrb[8].mxu0 }
 0x5a0   : > { %v6346_v32 = vadd.f32 %v6305_v42, %v17025_v26  ;;  %v13413_v60 = vpop.f32.mrb[9].mxu0 }
 0x5a1   : > { %v6528_v39 = vpop.f32.mrb[12].mxu1  ;;  %v6308_v12 = vpop.f32.mrb[10].mxu0 }
 0x5a2   : > { %v13469_v15 = vpop.f32.mrb[13].mxu1  ;;  %v6347_v16 = vadd.f32 %v6308_v12, %v17030_v41  ;;  %v13414_v10 = vpop.f32.mrb[11].mxu0  ;;  %v17116_v34 = vadd.f32 %v6520_v24, %v6346_v32 }
 0x5a3   : > { %v6531_v37 = vpop.f32.mrb[14].mxu1 }
 0x5a4   : > { %v13470_v57 = vpop.f32.mrb[15].mxu1  ;;  %v17118_v40 = vadd.f32 %v6523_v31, %v6347_v16 }
 0x5a7   : > { %v6313_v11 = vpop.f32.mrb[12].mxu0 }
 0x5a8   : > { %v6348_v0 = vadd.f32 %v6313_v11, %v17043_v14  ;;  %v13417_v9 = vpop.f32.mrb[13].mxu0 }
 0x5a9   : > { %v6536_v30 = vpop.f32.mrb[16].mxu1  ;;  %v6316_v61 = vpop.f32.mrb[14].mxu0 }
 0x5aa   : > { %v13473_v26 = vpop.f32.mrb[17].mxu1  ;;  %v6349_v58 = vadd.f32 %v6316_v61, %v17048_v21  ;;  %v13418_v20 = vpop.f32.mrb[15].mxu0  ;;  %v17122_v48 = vadd.f32 %v6528_v39, %v6348_v0 }
 0x5ab   : > { %v6539_v62 = vpop.f32.mrb[18].mxu1 }
 0x5ac   : > { %v13474_v41 = vpop.f32.mrb[19].mxu1  ;;  %v17124_v17 = vadd.f32 %v6531_v37, %v6349_v58 }
 0x5af   : > { %v6321_v29 = vpop.f32.mrb[16].mxu0 }
 0x5b0   : > { %v6350_v49 = vadd.f32 %v6321_v29, %v17061_v13  ;;  %v13421_v47 = vpop.f32.mrb[17].mxu0 }
 0x5b1   : > { %v6544_v23 = vpop.f32.mrb[20].mxu1  ;;  %v6324_v55 = vpop.f32.mrb[18].mxu0 }
 0x5b2   : > { %v13477_v14 = vpop.f32.mrb[21].mxu1  ;;  %v6351_v2 = vadd.f32 %v6324_v55, %v17066_v5  ;;  %v13422_v44 = vpop.f32.mrb[19].mxu0  ;;  %v17128_v51 = vadd.f32 %v6536_v30, %v6350_v49  ;;  %v17138_v5 = vld [vmem:[%s18149_s6 + $0x1] ss:$0 sm:$0xff] }
 0x5b3   : > { %v6547_v19 = vpop.f32.mrb[22].mxu1 }
 0x5b4   : > { %v13478_v21 = vpop.f32.mrb[23].mxu1  ;;  %v17130_v38 = vadd.f32 %v6539_v62, %v6351_v2 }
 0x5b7   : > { %v6329_v4 = vpop.f32.mrb[20].mxu0 }
 0x5b8   : > { %v6352_v50 = vadd.f32 %v6329_v4, %v17078_v25  ;;  %v13425_v56 = vpop.f32.mrb[21].mxu0 }
 0x5b9   : > { %v6332_v8 = vpop.f32.mrb[22].mxu0 }
 0x5ba   : > { %v13426_v43 = vpop.f32.mrb[23].mxu0  ;;  %v17133_v13 = vadd.f32 %v6544_v23, %v6352_v50 }
 0x5bf   : > { %v6695_v18 = vpop.f32.mrb[24].mxu0 }
 0x5c0   : > { %v6766_v6 = vadd.f32 %v6695_v18, %v17086_v59  ;;  %v13497_v24 = vpop.f32.mrb[25].mxu0 }
 0x5c1   : > { %v6698_v52 = vpop.f32.mrb[26].mxu0 }
 0x5c2   : > { %v6789_v22 = vadd.f32 %v17138_v5, %v6766_v6  ;;  %v6767_v7 = vadd.f32 %v6698_v52, %v17088_v63  ;;  %v13498_v25 = vpop.f32.mrb[27].mxu0 }
 0x5c4   : > { %v6807_v36 = vmax.f32 %v6789_v22, 0.0  ;;  %v6790_v31 = vadd.f32 %v17138_v5, %v6767_v7 }
 0x5c6   : > { %6825 = vst [vmem:[#allocation3] sm:$0xff] %v6807_v36  ;;  %v6808_v28 = vmax.f32 %v6790_v31, 0.0 }
 0x5c7   : > { %v6703_v42 = vpop.f32.mrb[28].mxu0 }
 0x5c8   : > { %6826 = vst [vmem:[#allocation3 + $0x8] sm:$0xff] %v6808_v28  ;;  %v6768_v32 = vadd.f32 %v6703_v42, %v17092_v27  ;;  %v13501_v60 = vpop.f32.mrb[29].mxu0 }
 0x5c9   : > { %v6706_v39 = vpop.f32.mrb[30].mxu0 }
 0x5ca   : > { %v6791_v59 = vadd.f32 %v17138_v5, %v6768_v32  ;;  %v6769_v12 = vadd.f32 %v6706_v39, %v17094_v35  ;;  %v13502_v15 = vpop.f32.mrb[31].mxu0 }
 0x5cc   : > { %v6809_v16 = vmax.f32 %v6791_v59, 0.0  ;;  %v6792_v63 = vadd.f32 %v17138_v5, %v6769_v12 }
 0x5ce   : > { %6827 = vst [vmem:[#allocation3 + $0x10] sm:$0xff] %v6809_v16  ;;  %v6810_v10 = vmax.f32 %v6792_v63, 0.0 }
 0x5cf   : > { %v6711_v37 = vpop.f32.mrb[32].mxu0  ;;  %v6859_v61 = vld [vmem:[#allocation3 + $0x1] sm:$0xff] }
 0x5d0   : > { %6828 = vst [vmem:[#allocation3 + $0x18] sm:$0xff] %v6810_v10  ;;  %v6770_v57 = vadd.f32 %v6711_v37, %v17098_v45  ;;  %v13505_v11 = vpop.f32.mrb[33].mxu0  ;;  %v6875_v41 = vmax.f32 %v6807_v36, %v6859_v61  ;;  %v14390_v37 = vld [vmem:[%s18146_s3 + $0x8] sm:$0xff]  }
 0x5d1   : > { %v6714_v0 = vpop.f32.mrb[34].mxu0 }
 0x5d2   : > { %v17150_v27 = vadd.f32 %v17138_v5, %v6770_v57  ;;  %v6771_v9 = vadd.f32 %v6714_v0, %v17100_v54  ;;  %v13506_v30 = vpop.f32.mrb[35].mxu0 }
 0x5d4   : > { %v6811_v35 = vmax.f32 %v17150_v27, 0.0  ;;  %v6794_v26 = vadd.f32 %v17138_v5, %v6771_v9  ;;  %v14391_v9 = vld [vmem:[%s18146_s3 + $0x148] sm:$0xff]  }
 0x5d5   : > { %v6860_v58 = vld [vmem:[#allocation3 + $0x9] sm:$0xff] }
 0x5d6   : > { %v6891_v20 = vld [vmem:[#allocation3 + $0xe] sm:$0xff]  ;;  %6829 = vst [vmem:[#allocation3 + $0x20] sm:$0xff] %v6811_v35  ;;  %v6812_v45 = vmax.f32 %v6794_v26, 0.0  ;;  %v6876_v55 = vmax.f32 %v6808_v28, %v6860_v58  ;;  %v14388_v28 = vld [vmem:[%s18146_s3] sm:$0xff]  }
 0x5d7   : > { %v6907_v62 = vld [vmem:[#allocation3 + $0xf] sm:$0xff]  ;;  %v6908_v47 = vld [vmem:[#allocation3 + $0x17] sm:$0xff]  ;;  %v6719_v23 = vpop.f32.mrb[36].mxu0 }
 0x5d8   : > { %v6923_v29 = vmax.f32 %v6891_v20, %v6907_v62  ;;  %v6892_v49 = vld [vmem:[#allocation3 + $0x16] sm:$0xff]  ;;  %6830 = vst [vmem:[#allocation3 + $0x28] sm:$0xff] %v6812_v45  ;;  %v6772_v54 = vadd.f32 %v6719_v23, %v17104_v46  ;;  %v13509_v44 = vpop.f32.mrb[37].mxu0  ;;  %v14392_v20 = vld [vmem:[%s18146_s3 + $0x10] sm:$0xff]  }
 0x5d9   : > { %v6924_v2 = vmax.f32 %v6892_v49, %v6908_v47  ;;  %v6722_v19 = vpop.f32.mrb[38].mxu0  ;;  %v14394_v47 = vld [vmem:[%s18146_s3 + $0x18] sm:$0xff]  }
 0x5da   : > { %v6939_v14 = vmax.f32 %v6875_v41, %v6923_v29  ;;  %v6795_v4 = vadd.f32 %v17138_v5, %v6772_v54  ;;  %v6773_v50 = vadd.f32 %v6722_v19, %v17106_v53  ;;  %v13510_v56 = vpop.f32.mrb[39].mxu0 }
 0x5db   : > { %v6940_v21 = vmax.f32 %v6876_v55, %v6924_v2  ;;  %v14395_v55 = vld [vmem:[%s18146_s3 + $0x158] sm:$0xff]   ;;  %v14396_v56 = vld [vmem:[%s18146_s3 + $0x20] sm:$0xff]  }
 0x5dc   : > { %6955 = vst [vmem:[#allocation4] sm:$0xff] %v6939_v14  ;;  %v6813_v8 = vmax.f32 %v6795_v4, 0.0  ;;  %v17159_v43 = vadd.f32 %v17138_v5, %v6773_v50 }
 0x5dd   : > { %6956 = vst [vmem:[#allocation4 + $0x8] sm:$0xff] %v6940_v21  ;;  %v6862_v18 = vld [vmem:[#allocation3 + $0x19] sm:$0xff] }
 0x5de   : > { %6831 = vst [vmem:[#allocation3 + $0x30] sm:$0xff] %v6813_v8  ;;  %v6814_v6 = vmax.f32 %v17159_v43, 0.0  ;;  %v6878_v22 = vmax.f32 %v6810_v10, %v6862_v18 }
 0x5df   : > { %v6894_v24 = vld [vmem:[#allocation3 + $0x26] sm:$0xff]  ;;  %v6727_v52 = vpop.f32.mrb[40].mxu0 }
 0x5e0   : > { %v6910_v46 = vld [vmem:[#allocation3 + $0x27] sm:$0xff]  ;;  %6832 = vst [vmem:[#allocation3 + $0x38] sm:$0xff] %v6814_v6  ;;  %v6774_v53 = vadd.f32 %v6727_v52, %v17110_v1  ;;  %v13513_v25 = vpop.f32.mrb[41].mxu0  ;;  %v14389_v1 = vld [vmem:[%s18146_s3 + $0x140] sm:$0xff]  }
 0x5e1   : > { %v6926_v7 = vmax.f32 %v6894_v24, %v6910_v46  ;;  %v6730_v36 = vpop.f32.mrb[42].mxu0  ;;  %v6863_v15 = vld [vmem:[#allocation3 + $0x21] sm:$0xff] }
 0x5e2   : > { %v17169_v60 = vadd.f32 %v17138_v5, %v6774_v53  ;;  %v6775_v39 = vadd.f32 %v6730_v36, %v17112_v33  ;;  %v13514_v59 = vpop.f32.mrb[43].mxu0  ;;  %v6879_v11 = vmax.f32 %v6811_v35, %v6863_v15 }
 0x5e3   : > { %v6989_v31 = vld [vmem:[#allocation4 + $0x2] sm:$0x1]  ;;  %v7292_v42 = vld [vmem:[#allocation4 + $0x6] sm:$0x1]  ;;  %v6942_v32 = vmax.f32 %v6878_v22, %v6926_v7  ;;  %v14398_v22 = vld [vmem:[%s18146_s3 + $0x28] sm:$0xff]  }
 0x5e4   : > { %v6990_v12 = vpack.c.bf16 %v6989_v31, %v6989_v31  ;;  %v7293_v16 = vpack.c.bf16 %v7292_v42, %v7292_v42  ;;  %v6815_v63 = vmax.f32 %v17169_v60, 0.0  ;;  %v6798_v10 = vadd.f32 %v17138_v5, %v6775_v39  ;;  %v14399_v31 = vld [vmem:[%s18146_s3 + $0x168] sm:$0xff]   ;;  %v14400_v59 = vld [vmem:[%s18146_s3 + $0x30] sm:$0xff]  }
 0x5e5   : > { %6958 = vst [vmem:[#allocation4 + $0x18] sm:$0xff] %v6942_v32  ;;  %v6895_v57 = vld [vmem:[#allocation3 + $0x2e] sm:$0xff] }
 0x5e6   : > { %13548 = vmatmul.mubr.bf16.vlgmr.msra.gmra.mrb[24].mxu1 %v6990_v12  ;;  %v6911_v33 = vld [vmem:[#allocation3 + $0x2f] sm:$0xff]  ;;  %13608 = vmatmul.mubr.bf16.vlgmr.msra.gmra.mrb[60].mxu0 %v7293_v16  ;;  %6833 = vst [vmem:[#allocation3 + $0x40] sm:$0xff] %v6815_v63  ;;  %v6816_v27 = vmax.f32 %v6798_v10, 0.0 }
 0x5e7   : > { %13552 = vmatpush3.bf16.msra.mxu1 %v14388_v28  ;;  %v6927_v0 = vmax.f32 %v6895_v57, %v6911_v33  ;;  %13632 = vmatpush3.bf16.msra.mxu0 %v14389_v1  ;;  %v6735_v30 = vpop.f32.mrb[44].mxu0 }
 0x5e8   : > { %13553 = vmatprep.subr.bf16.mxu1 %v18168_v3  ;;  %13633 = vmatprep.subr.bf16.mxu0 %v18168_v3  ;;  %6834 = vst [vmem:[#allocation3 + $0x48] sm:$0xff] %v6816_v27  ;;  %v6776_v35 = vadd.f32 %v6735_v30, %v17116_v34  ;;  %v13517_v26 = vpop.f32.mrb[45].mxu0  ;;  %v14393_v34 = vld [vmem:[%s18146_s3 + $0x150] sm:$0xff]   ;;  %v6971_v30 = vld [vmem:[#allocation4] sm:$0x1] }
 0x5e9   : > { %13567 = vmatprep.mubr.msk.bf16.mxu1 %vm14653_vm0, %v18168_v3  ;;  %v6943_v61 = vmax.f32 %v6879_v11, %v6927_v0  ;;  %13647 = vmatprep.mubr.msk.bf16.mxu0 %vm14653_vm0, %v18168_v3  ;;  %v6738_v58 = vpop.f32.mrb[46].mxu0 }
 0x5ea   : > { %v17196_v62 = vadd.f32 %v17138_v5, %v6776_v35  ;;  %v6777_v41 = vadd.f32 %v6738_v58, %v17118_v40  ;;  %v13518_v29 = vpop.f32.mrb[47].mxu0 }
 0x5eb   : > { %13554 = vmatpush3.bf16.msra.mxu1 %v14390_v37  ;;  %6959 = vst [vmem:[#allocation4 + $0x20] sm:$0xff] %v6943_v61  ;;  %13634 = vmatpush3.bf16.msra.mxu0 %v14391_v9  ;;  %v14402_v37 = vld [vmem:[%s18146_s3 + $0x38] sm:$0xff]  }
 0x5ec   : > { %13555 = vmatprep.subr.bf16.mxu1 %v18168_v3  ;;  %13635 = vmatprep.subr.bf16.mxu0 %v18168_v3  ;;  %v6817_v45 = vmax.f32 %v17196_v62, 0.0  ;;  %v17206_v49 = vadd.f32 %v17138_v5, %v6777_v41  ;;  %v14403_v9 = vld [vmem:[%s18146_s3 + $0x178] sm:$0xff]  }
 0x5ed   : > { %v6866_v23 = vld [vmem:[#allocation3 + $0x39] sm:$0xff] }
 0x5ee   : > { %6835 = vst [vmem:[#allocation3 + $0x50] sm:$0xff] %v6817_v45  ;;  %v6818_v40 = vmax.f32 %v17206_v49, 0.0  ;;  %v6882_v44 = vmax.f32 %v6814_v6, %v6866_v23  ;;  %v14404_v23 = vld [vmem:[%s18146_s3 + $0x80] sm:$0xff]  }
 0x5ef   : > { %13556 = vmatpush3.bf16.msra.mxu1 %v14392_v20  ;;  %13636 = vmatpush3.bf16.msra.mxu0 %v14393_v34  ;;  %v6898_v14 = vld [vmem:[#allocation3 + $0x46] sm:$0xff]  ;;  %v6743_v54 = vpop.f32.mrb[48].mxu0 }
 0x5f0   : > { %13557 = vmatprep.subr.bf16.mxu1 %v18168_v3  ;;  %v6914_v2 = vld [vmem:[#allocation3 + $0x47] sm:$0xff]  ;;  %13637 = vmatprep.subr.bf16.mxu0 %v18168_v3  ;;  %6836 = vst [vmem:[#allocation3 + $0x58] sm:$0xff] %v6818_v40  ;;  %v6778_v21 = vadd.f32 %v6743_v54, %v17122_v48  ;;  %v13521_v4 = vpop.f32.mrb[49].mxu0  ;;  %v14397_v48 = vld [vmem:[%s18146_s3 + $0x160] sm:$0xff]  }
 0x5f1   : > { %v6930_v19 = vmax.f32 %v6898_v14, %v6914_v2  ;;  %v6746_v50 = vpop.f32.mrb[50].mxu0  ;;  %v6867_v24 = vld [vmem:[#allocation3 + $0x41] sm:$0xff]  ;;  %v7508_v34 = vld [vmem:[#allocation4 + $0x1c] sm:$0x1] }
 0x5f2   : > { %v6801_v18 = vadd.f32 %v17138_v5, %v6778_v21  ;;  %v6779_v43 = vadd.f32 %v6746_v50, %v17124_v17  ;;  %v13522_v6 = vpop.f32.mrb[51].mxu0  ;;  %v6883_v53 = vmax.f32 %v6815_v63, %v6867_v24  ;;  %v14407_v54 = vld [vmem:[%s18146_s3 + $0x1c8] sm:$0xff]  }
 0x5f3   : > { %13558 = vmatpush3.bf16.msra.mxu1 %v14394_v47  ;;  %v6946_v8 = vmax.f32 %v6882_v44, %v6930_v19  ;;  %13638 = vmatpush3.bf16.msra.mxu0 %v14395_v55  ;;  %v6972_v47 = vpack.c.bf16 %v6971_v30, %v6971_v30  ;;  %v14408_v44 = vld [vmem:[%s18146_s3 + $0x90] sm:$0xff]  }
 0x5f4   : > { %13559 = vmatprep.subr.bf16.mxu1 %v18168_v3  ;;  %13639 = vmatprep.subr.bf16.mxu0 %v18168_v3  ;;  %v6819_v46 = vmax.f32 %v6801_v18, 0.0  ;;  %v6802_v52 = vadd.f32 %v17138_v5, %v6779_v43  ;;  %v14409_v19 = vld [vmem:[%s18146_s3 + $0x1d0] sm:$0xff]  }
 0x5f5   : > { %6962 = vst [vmem:[#allocation4 + $0x38] sm:$0xff] %v6946_v8  ;;  %v6899_v7 = vld [vmem:[#allocation3 + $0x4e] sm:$0xff] }
 0x5f6   : > { %v6915_v17 = vld [vmem:[#allocation3 + $0x4f] sm:$0xff]  ;;  %6837 = vst [vmem:[#allocation3 + $0x60] sm:$0xff] %v6819_v46  ;;  %v6820_v36 = vmax.f32 %v6802_v52, 0.0 }
 0x5f7   : > { %13560 = vmatpush3.bf16.msra.mxu1 %v14396_v56  ;;  %v6931_v25 = vmax.f32 %v6899_v7, %v6915_v17  ;;  %13640 = vmatpush3.bf16.msra.mxu0 %v14397_v48  ;;  %v6751_v28 = vpop.f32.mrb[52].mxu0  ;;  %v6869_v16 = vld [vmem:[#allocation3 + $0x51] sm:$0xff]  ;;  %v14433_v30 = vld [vmem:[%s18146_s3 + $0x270] sm:$0xff]  }
 0x5f8   : > { %13561 = vmatprep.subr.bf16.mxu1 %v18168_v3  ;;  %13641 = vmatprep.subr.bf16.mxu0 %v18168_v3  ;;  %6838 = vst [vmem:[#allocation3 + $0x68] sm:$0xff] %v6820_v36  ;;  %v6780_v32 = vadd.f32 %v6751_v28, %v17128_v51  ;;  %v13525_v39 = vpop.f32.mrb[53].mxu0  ;;  %v14401_v51 = vld [vmem:[%s18146_s3 + $0x170] sm:$0xff]   ;;  %v6885_v11 = vmax.f32 %v6817_v45, %v6869_v16  ;;  %v14410_v56 = vld [vmem:[%s18146_s3 + $0x98] sm:$0xff]   ;;  %v14414_v36 = vld [vmem:[%s18146_s3 + $0xa8] sm:$0xff]  }
 0x5f9   : > { %v6947_v42 = vmax.f32 %v6883_v53, %v6931_v25  ;;  %v6754_v60 = vpop.f32.mrb[54].mxu0  ;;  %v14411_v46 = vld [vmem:[%s18146_s3 + $0x1d8] sm:$0xff]   ;;  %v14412_v53 = vld [vmem:[%s18146_s3 + $0xa0] sm:$0xff]   ;;  %v14416_v28 = vld [vmem:[%s18146_s3 + $0xb0] sm:$0xff]  }
 0x5fa   : > { %v17250_v12 = vadd.f32 %v17138_v5, %v6780_v32  ;;  %v6781_v1 = vadd.f32 %v6754_v60, %v17130_v38  ;;  %v13526_v15 = vpop.f32.mrb[55].mxu0  ;;  %v14413_v25 = vld [vmem:[%s18146_s3 + $0x1e0] sm:$0xff]   ;;  %v14418_v32 = vld [vmem:[%s18146_s3 + $0xb8] sm:$0xff]   ;;  %v14422_v16 = vld [vmem:[%s18146_s3 + $0x108] sm:$0xff]  }
 0x5fb   : > { %13562 = vmatpush3.bf16.msra.mxu1 %v14398_v22  ;;  %6963 = vst [vmem:[#allocation4 + $0x40] sm:$0xff] %v6947_v42  ;;  %13642 = vmatpush3.bf16.msra.mxu0 %v14399_v31  ;;  %v14415_v31 = vld [vmem:[%s18146_s3 + $0x1e8] sm:$0xff]   ;;  %v14417_v42 = vld [vmem:[%s18146_s3 + $0x1f0] sm:$0xff]   ;;  %v14419_v39 = vld [vmem:[%s18146_s3 + $0x1f8] sm:$0xff]  }
 0x5fc   : > { %13563 = vmatprep.subr.bf16.mxu1 %v18168_v3  ;;  %13643 = vmatprep.subr.bf16.mxu0 %v18168_v3  ;;  %v6821_v63 = vmax.f32 %v17250_v12, 0.0  ;;  %v6804_v10 = vadd.f32 %v17138_v5, %v6781_v1  ;;  %v7184_v60 = vld [vmem:[#allocation4 + $0x4] sm:$0x1]  ;;  %v14420_v12 = vld [vmem:[%s18146_s3 + $0x100] sm:$0xff]  }
 0x5fd   : > { %v6870_v57 = vld [vmem:[#allocation3 + $0x59] sm:$0xff]  ;;  %v7185_v1 = vpack.c.bf16 %v7184_v60, %v7184_v60 }
 0x5fe   : > { %v6901_v38 = vld [vmem:[#allocation3 + $0x5e] sm:$0xff]  ;;  %6839 = vst [vmem:[#allocation3 + $0x70] sm:$0xff] %v6821_v63  ;;  %v6822_v27 = vmax.f32 %v6804_v10, 0.0  ;;  %v6886_v58 = vmax.f32 %v6818_v40, %v6870_v57  ;;  %v7509_v40 = vpack.c.bf16 %v7508_v34, %v7508_v34  ;;  %v14424_v10 = vld [vmem:[%s18146_s3 + $0x110] sm:$0xff]   ;;  %v14426_v57 = vld [vmem:[%s18146_s3 + $0x118] sm:$0xff]  }
 0x5ff   : > { %v6917_v33 = vld [vmem:[#allocation3 + $0x5f] sm:$0xff]  ;;  %13564 = vmatpush3.bf16.msra.mxu1 %v14400_v59  ;;  %13644 = vmatpush3.bf16.msra.mxu0 %v14401_v51  ;;  %v6918_v35 = vld [vmem:[#allocation3 + $0x67] sm:$0xff]  ;;  %v6759_v26 = vpop.f32.mrb[56].mxu0  ;;  %v7724_v59 = vld [vmem:[#allocation4 + $0x20] sm:$0x1] }
 0x600   : > { %v6933_v0 = vmax.f32 %v6901_v38, %v6917_v33  ;;  %13565 = vmatprep.subr.bf16.mxu1 %v18168_v3  ;;  %v6902_v61 = vld [vmem:[#allocation3 + $0x66] sm:$0xff]  ;;  %13645 = vmatprep.subr.bf16.mxu0 %v18168_v3  ;;  %6840 = vst [vmem:[#allocation3 + $0x78] sm:$0xff] %v6822_v27  ;;  %v6782_v41 = vadd.f32 %v6759_v26, %v17133_v13  ;;  %v13529_v29 = vpop.f32.mrb[57].mxu0  ;;  %v14405_v13 = vld [vmem:[%s18146_s3 + $0x1c0] sm:$0xff]   ;;  %v14427_v38 = vld [vmem:[%s18146_s3 + $0x258] sm:$0xff]  }
 0x601   : > { %v6934_v62 = vmax.f32 %v6902_v61, %v6918_v35  ;;  %v6762_v45 = vpop.f32.mrb[58].mxu0  ;;  %v14421_v15 = vld [vmem:[%s18146_s3 + $0x240] sm:$0xff]   ;;  %v7725_v51 = vpack.c.bf16 %v7724_v59, %v7724_v59  ;;  %v14431_v27 = vld [vmem:[%s18146_s3 + $0x268] sm:$0xff]   ;;  %v14434_v61 = vld [vmem:[%s18146_s3 + $0x138] sm:$0xff]  }
 0x602   : > { %v6949_v20 = vmax.f32 %v6885_v11, %v6933_v0  ;;  %v6805_v14 = vadd.f32 %v17138_v5, %v6782_v41  ;;  %v13530_v49 = vpop.f32.mrb[59].mxu0  ;;  %v14406_v5 = vld [vmem:[%s18146_s3 + $0x88] sm:$0xff]   ;;  %v14428_v33 = vld [vmem:[%s18146_s3 + $0x120] sm:$0xff]   ;;  %v14435_v35 = vld [vmem:[%s18146_s3 + $0x278] sm:$0xff]  }
 0x603   : > { %13566 = vmatpush3.bf16.msra.mxu1 %v14402_v37  ;;  %v6950_v55 = vmax.f32 %v6886_v58, %v6934_v62  ;;  %13646 = vmatpush3.bf16.msra.mxu0 %v14403_v9  ;;  %v14425_v37 = vld [vmem:[%s18146_s3 + $0x250] sm:$0xff]   ;;  %v14429_v11 = vld [vmem:[%s18146_s3 + $0x260] sm:$0xff]   ;;  %v14430_v0 = vld [vmem:[%s18146_s3 + $0x128] sm:$0xff]  }
 0x604   : > { %6965 = vst [vmem:[#allocation4 + $0x50] sm:$0xff] %v6949_v20  ;;  %13571 = vmatprep.subr.bf16.mxu1 %v18168_v3  ;;  %13671 = vmatprep.subr.bf16.mxu0 %v18168_v3  ;;  %v6823_v2 = vmax.f32 %v6805_v14, 0.0  ;;  %v14432_v9 = vld [vmem:[%s18146_s3 + $0x130] sm:$0xff]   ;;  %v7400_v26 = vld [vmem:[#allocation4 + $0x8] sm:$0x1]  ;;  %v14438_v34 = vld [vmem:[%s18146_s3 + $0x188] sm:$0xff]  }
 0x605   : > { %6966 = vst [vmem:[#allocation4 + $0x58] sm:$0xff] %v6950_v55  ;;  %v7940_v58 = vld [vmem:[#allocation4 + $0x24] sm:$0x1]  ;;  %v14436_v20 = vld [vmem:[%s18146_s3 + $0x180] sm:$0xff]   ;;  %v7401_v62 = vpack.c.bf16 %v7400_v26, %v7400_v26  ;;  %v14439_v45 = vld [vmem:[%s18146_s3 + $0x2c8] sm:$0xff]  }
 0x606   : > { %13568 = vmatmul.mubr.bf16.vlgmr.msra.gmra.mrb[28].mxu1 %v6972_v47  ;;  %13648 = vmatmul.mubr.bf16.vlgmr.msra.gmra.mrb[64].mxu0 %v7509_v40  ;;  %6841 = vst [vmem:[#allocation3 + $0x80] sm:$0xff] %v6823_v2  ;;  %v14437_v41 = vld [vmem:[%s18146_s3 + $0x2c0] sm:$0xff]   ;;  %v7941_v29 = vpack.c.bf16 %v7940_v58, %v7940_v58  ;;  %v14440_v47 = vld [vmem:[%s18146_s3 + $0x190] sm:$0xff]   ;;  %v14442_v55 = vld [vmem:[%s18146_s3 + $0x198] sm:$0xff]  }
 0x607   : > { %13572 = vmatpush3.bf16.msra.mxu1 %v14404_v23  ;;  %13672 = vmatpush3.bf16.msra.mxu0 %v14405_v13  ;;  %v6873_v21 = vld [vmem:[#allocation3 + $0x71] sm:$0xff]  ;;  %v6874_v50 = vld [vmem:[#allocation3 + $0x79] sm:$0x1]  ;;  %v14441_v23 = vld [vmem:[%s18146_s3 + $0x2d0] sm:$0xff]  }
 0x608   : > { %13573 = vmatprep.subr.bf16.mxu1 %v18168_v3  ;;  %13673 = vmatprep.subr.bf16.mxu0 %v18168_v3  ;;  %v6858_v4 = vld [vmem:[#allocation3 + $0x78] sm:$0x1]  ;;  %v6889_v6 = vmax.f32 %v6821_v63, %v6873_v21  ;;  %v14423_v63 = vld [vmem:[%s18146_s3 + $0x248] sm:$0xff]   ;;  %v14443_v14 = vld [vmem:[%s18146_s3 + $0x2d8] sm:$0xff]  }
 0x609   : > { %13587 = vmatprep.mubr.msk.bf16.mxu1 %vm14653_vm0, %v18168_v3  ;;  %13687 = vmatprep.mubr.msk.bf16.mxu0 %vm14653_vm0, %v18168_v3  ;;  %v6890_v52 = vmax.f32 %v6858_v4, %v6874_v50  ;;  %v14444_v49 = vld [vmem:[%s18146_s3 + $0x1a0] sm:$0xff]   ;;  %v14446_v40 = vld [vmem:[%s18146_s3 + $0x1a8] sm:$0xff]   ;;  %v7616_v21 = vld [vmem:[#allocation4 + $0x1e] sm:$0x1] }
 0x60a   : > { %v14445_v13 = vld [vmem:[%s18146_s3 + $0x2e0] sm:$0xff]   ;;  %v14447_v2 = vld [vmem:[%s18146_s3 + $0x2e8] sm:$0xff]   ;;  %v8156_v4 = vld [vmem:[#allocation4 + $0x3a] sm:$0x1] }
 0x60b   : > { %13574 = vmatpush3.bf16.msra.mxu1 %v14406_v5  ;;  %13674 = vmatpush3.bf16.msra.mxu0 %v14407_v54  ;;  %v14448_v5 = vld [vmem:[%s18146_s3 + $0x1b0] sm:$0xff]   ;;  %v14452_v50 = vld [vmem:[%s18146_s3 + $0x200] sm:$0xff]  }
 0x60c   : > { %13575 = vmatprep.subr.bf16.mxu1 %v18168_v3  ;;  %13675 = vmatprep.subr.bf16.mxu0 %v18168_v3  ;;  %v14449_v54 = vld [vmem:[%s18146_s3 + $0x2f0] sm:$0xff]   ;;  %v14469_v59 = vld [vmem:[%s18146_s3 + $0x3c0] sm:$0xff]  }
 0x60d   : > { %v6905_v8 = vld [vmem:[#allocation3 + $0x7e] sm:$0xff]  ;;  %v6906_v18 = vld [vmem:[#allocation3 + $0x86] sm:$0x1]  ;;  %v6922_v48 = vld [vmem:[#allocation3 + $0x87] sm:$0x1] }
 0x60e   : > { %v6921_v43 = vld [vmem:[#allocation3 + $0x7f] sm:$0xff]  ;;  %v6938_v22 = vmax.f32 %v6906_v18, %v6922_v48  ;;  %v8157_v18 = vpack.c.bf16 %v8156_v4, %v8156_v4  ;;  %v14456_v48 = vld [vmem:[%s18146_s3 + $0x210] sm:$0xff]  }
 0x60f   : > { %13576 = vmatpush3.bf16.msra.mxu1 %v14408_v44  ;;  %v6937_v24 = vmax.f32 %v6905_v8, %v6921_v43  ;;  %13676 = vmatpush3.bf16.msra.mxu0 %v14409_v19  ;;  %v14450_v44 = vld [vmem:[%s18146_s3 + $0x1b8] sm:$0xff]   ;;  %v14453_v8 = vld [vmem:[%s18146_s3 + $0x340] sm:$0xff]   ;;  %v14454_v43 = vld [vmem:[%s18146_s3 + $0x208] sm:$0xff]  }
 0x610   : > { %13577 = vmatprep.subr.bf16.mxu1 %v18168_v3  ;;  %13677 = vmatprep.subr.bf16.mxu0 %v18168_v3  ;;  %v6954_v17 = vmax.f32 %v6890_v52, %v6938_v22  ;;  %v14451_v19 = vld [vmem:[%s18146_s3 + $0x2f8] sm:$0xff]   ;;  %v14460_v22 = vld [vmem:[%s18146_s3 + $0x220] sm:$0xff]   ;;  %v14497_v4 = vld [vmem:[%s18146_s3 + $0x470] sm:$0xff]  }
 0x611   : > { %v6953_v7 = vmax.f32 %v6889_v6, %v6937_v24  ;;  %v14455_v6 = vld [vmem:[%s18146_s3 + $0x348] sm:$0xff]   ;;  %v14457_v24 = vld [vmem:[%s18146_s3 + $0x350] sm:$0xff]   ;;  %v14459_v52 = vld [vmem:[%s18146_s3 + $0x358] sm:$0xff]  }
 0x612   : > { %6970 = vst [vmem:[#allocation4 + $0x78] sm:$0x1] %v6954_v17  ;;  %v14462_v17 = vld [vmem:[%s18146_s3 + $0x228] sm:$0xff]   ;;  %v14485_v58 = vld [vmem:[%s18146_s3 + $0x440] sm:$0xff]  }
 0x613   : > { %13578 = vmatpush3.bf16.msra.mxu1 %v14410_v56  ;;  %6969 = vst [vmem:[#allocation4 + $0x70] sm:$0xff] %v6953_v7  ;;  %13678 = vmatpush3.bf16.msra.mxu0 %v14411_v46  ;;  %v7617_v56 = vpack.c.bf16 %v7616_v21, %v7616_v21  ;;  %v14458_v46 = vld [vmem:[%s18146_s3 + $0x218] sm:$0xff]   ;;  %v14461_v7 = vld [vmem:[%s18146_s3 + $0x360] sm:$0xff]  }
 0x614   : > { %13579 = vmatprep.subr.bf16.mxu1 %v18168_v3  ;;  %13679 = vmatprep.subr.bf16.mxu0 %v18168_v3 }
 0x617   : > { %13580 = vmatpush3.bf16.msra.mxu1 %v14412_v53  ;;  %13680 = vmatpush3.bf16.msra.mxu0 %v14413_v25  ;;  %v14463_v53 = vld [vmem:[%s18146_s3 + $0x368] sm:$0xff]   ;;  %v14464_v25 = vld [vmem:[%s18146_s3 + $0x230] sm:$0xff]  }
 0x618   : > { %13581 = vmatprep.subr.bf16.mxu1 %v18168_v3  ;;  %13681 = vmatprep.subr.bf16.mxu0 %v18168_v3 }
 0x61b   : > { %13582 = vmatpush3.bf16.msra.mxu1 %v14414_v36  ;;  %13682 = vmatpush3.bf16.msra.mxu0 %v14415_v31  ;;  %v14465_v36 = vld [vmem:[%s18146_s3 + $0x370] sm:$0xff]   ;;  %v14466_v31 = vld [vmem:[%s18146_s3 + $0x238] sm:$0xff]  }
 0x61c   : > { %13583 = vmatprep.subr.bf16.mxu1 %v18168_v3  ;;  %13683 = vmatprep.subr.bf16.mxu0 %v18168_v3 }
 0x61f   : > { %13584 = vmatpush3.bf16.msra.mxu1 %v14416_v28  ;;  %13684 = vmatpush3.bf16.msra.mxu0 %v14417_v42  ;;  %v14467_v28 = vld [vmem:[%s18146_s3 + $0x378] sm:$0xff]  }
 0x620   : > { %13585 = vmatprep.subr.bf16.mxu1 %v18168_v3  ;;  %13685 = vmatprep.subr.bf16.mxu0 %v18168_v3  ;;  %v7832_v42 = vld [vmem:[#allocation4 + $0x22] sm:$0x1] }
 0x621   : > { %v7833_v60 = vpack.c.bf16 %v7832_v42, %v7832_v42  ;;  %v14511_v42 = vld [vmem:[%s18146_s3 + $0x4e8] sm:$0xff]  }
 0x623   : > { %13586 = vmatpush3.bf16.msra.mxu1 %v14418_v32  ;;  %13686 = vmatpush3.bf16.msra.mxu0 %v14419_v39  ;;  %v8372_v32 = vld [vmem:[#allocation4 + $0x3e] sm:$0x1]  ;;  %v14468_v39 = vld [vmem:[%s18146_s3 + $0x280] sm:$0xff]  }
 0x624   : > { %13611 = vmatprep.subr.bf16.mxu1 %v18168_v3  ;;  %13711 = vmatprep.subr.bf16.mxu0 %v18168_v3 }
 0x626   : > { %13588 = vmatmul.mubr.bf16.vlgmr.msra.gmra.mrb[32].mxu1 %v7185_v1  ;;  %13688 = vmatmul.mubr.bf16.vlgmr.msra.gmra.mrb[68].mxu0 %v7725_v51  ;;  %v14470_v1 = vld [vmem:[%s18146_s3 + $0x288] sm:$0xff]   ;;  %v14472_v51 = vld [vmem:[%s18146_s3 + $0x290] sm:$0xff]  }
 0x627   : > { %13612 = vmatpush3.bf16.msra.mxu1 %v14420_v12  ;;  %13712 = vmatpush3.bf16.msra.mxu0 %v14421_v15  ;;  %v8373_v12 = vpack.c.bf16 %v8372_v32, %v8372_v32  ;;  %v14471_v15 = vld [vmem:[%s18146_s3 + $0x3c8] sm:$0xff]  }
 0x628   : > { %13613 = vmatprep.subr.bf16.mxu1 %v18168_v3  ;;  %13713 = vmatprep.subr.bf16.mxu0 %v18168_v3 }
 0x629   : > { %13627 = vmatprep.mubr.msk.bf16.mxu1 %vm14653_vm0, %v18168_v3  ;;  %13727 = vmatprep.mubr.msk.bf16.mxu0 %vm14653_vm0, %v18168_v3 }
 0x62b   : > { %13614 = vmatpush3.bf16.msra.mxu1 %v14422_v16  ;;  %13714 = vmatpush3.bf16.msra.mxu0 %v14423_v63  ;;  %v14473_v16 = vld [vmem:[%s18146_s3 + $0x3d0] sm:$0xff]   ;;  %v14474_v63 = vld [vmem:[%s18146_s3 + $0x298] sm:$0xff]  }
 0x62c   : > { %13615 = vmatprep.subr.bf16.mxu1 %v18168_v3  ;;  %13715 = vmatprep.subr.bf16.mxu0 %v18168_v3 }
 0x62f   : > { %13616 = vmatpush3.bf16.msra.mxu1 %v14424_v10  ;;  %13716 = vmatpush3.bf16.msra.mxu0 %v14425_v37  ;;  %v14475_v10 = vld [vmem:[%s18146_s3 + $0x3d8] sm:$0xff]   ;;  %v14476_v37 = vld [vmem:[%s18146_s3 + $0x2a0] sm:$0xff]  }
 0x630   : > { %13617 = vmatprep.subr.bf16.mxu1 %v18168_v3  ;;  %13717 = vmatprep.subr.bf16.mxu0 %v18168_v3 }
 0x633   : > { %13618 = vmatpush3.bf16.msra.mxu1 %v14426_v57  ;;  %13718 = vmatpush3.bf16.msra.mxu0 %v14427_v38  ;;  %v14477_v57 = vld [vmem:[%s18146_s3 + $0x3e0] sm:$0xff]   ;;  %v14478_v38 = vld [vmem:[%s18146_s3 + $0x2a8] sm:$0xff]  }
 0x634   : > { %13619 = vmatprep.subr.bf16.mxu1 %v18168_v3  ;;  %13719 = vmatprep.subr.bf16.mxu0 %v18168_v3 }
 0x637   : > { %13620 = vmatpush3.bf16.msra.mxu1 %v14428_v33  ;;  %13720 = vmatpush3.bf16.msra.mxu0 %v14429_v11  ;;  %v14479_v33 = vld [vmem:[%s18146_s3 + $0x3e8] sm:$0xff]   ;;  %v14480_v11 = vld [vmem:[%s18146_s3 + $0x2b0] sm:$0xff]  }
 0x638   : > { %13621 = vmatprep.subr.bf16.mxu1 %v18168_v3  ;;  %13721 = vmatprep.subr.bf16.mxu0 %v18168_v3 }
 0x63b   : > { %13622 = vmatpush3.bf16.msra.mxu1 %v14430_v0  ;;  %13722 = vmatpush3.bf16.msra.mxu0 %v14431_v27  ;;  %v14481_v0 = vld [vmem:[%s18146_s3 + $0x3f0] sm:$0xff]   ;;  %v14482_v27 = vld [vmem:[%s18146_s3 + $0x2b8] sm:$0xff]  }
 0x63c   : > { %13623 = vmatprep.subr.bf16.mxu1 %v18168_v3  ;;  %13723 = vmatprep.subr.bf16.mxu0 %v18168_v3 }
 0x63f   : > { %13624 = vmatpush3.bf16.msra.mxu1 %v14432_v9  ;;  %13724 = vmatpush3.bf16.msra.mxu0 %v14433_v30  ;;  %v14483_v9 = vld [vmem:[%s18146_s3 + $0x3f8] sm:$0xff]   ;;  %v8048_v30 = vld [vmem:[#allocation4 + $0x38] sm:$0x1] }
 0x640   : > { %13625 = vmatprep.subr.bf16.mxu1 %v18168_v3  ;;  %13725 = vmatprep.subr.bf16.mxu0 %v18168_v3  ;;  %v8049_v26 = vpack.c.bf16 %v8048_v30, %v8048_v30  ;;  %v14518_v30 = vld [vmem:[%s18146_s3 + $0x408] sm:$0xff]  }
 0x643   : > { %13626 = vmatpush3.bf16.msra.mxu1 %v14434_v61  ;;  %13726 = vmatpush3.bf16.msra.mxu0 %v14435_v35  ;;  %v8588_v61 = vld [vmem:[#allocation4 + $0x54] sm:$0x1]  ;;  %v14484_v35 = vld [vmem:[%s18146_s3 + $0x300] sm:$0xff]  }
 0x644   : > { %13651 = vmatprep.subr.bf16.mxu1 %v18168_v3  ;;  %13751 = vmatprep.subr.bf16.mxu0 %v18168_v3 }
 0x646   : > { %13628 = vmatmul.mubr.bf16.vlgmr.msra.gmra.mrb[36].mxu1 %v7401_v62  ;;  %13728 = vmatmul.mubr.bf16.vlgmr.msra.gmra.mrb[72].mxu0 %v7941_v29  ;;  %v14486_v62 = vld [vmem:[%s18146_s3 + $0x308] sm:$0xff]   ;;  %v14488_v29 = vld [vmem:[%s18146_s3 + $0x310] sm:$0xff]  }
 0x647   : > { %13652 = vmatpush3.bf16.msra.mxu1 %v14436_v20  ;;  %13752 = vmatpush3.bf16.msra.mxu0 %v14437_v41  ;;  %v8589_v20 = vpack.c.bf16 %v8588_v61, %v8588_v61  ;;  %v14487_v41 = vld [vmem:[%s18146_s3 + $0x448] sm:$0xff]  }
 0x648   : > { %13653 = vmatprep.subr.bf16.mxu1 %v18168_v3  ;;  %13753 = vmatprep.subr.bf16.mxu0 %v18168_v3  ;;  %v14519_v61 = vld [vmem:[%s18146_s3 + $0x548] sm:$0xff]  }
 0x649   : > { %13667 = vmatprep.mubr.msk.bf16.mxu1 %vm14653_vm0, %v18168_v3  ;;  %13767 = vmatprep.mubr.msk.bf16.mxu0 %vm14653_vm0, %v18168_v3 }
 0x64b   : > { %13654 = vmatpush3.bf16.msra.mxu1 %v14438_v34  ;;  %13754 = vmatpush3.bf16.msra.mxu0 %v14439_v45  ;;  %v14489_v34 = vld [vmem:[%s18146_s3 + $0x450] sm:$0xff]   ;;  %v14490_v45 = vld [vmem:[%s18146_s3 + $0x318] sm:$0xff]  }
 0x64c   : > { %13655 = vmatprep.subr.bf16.mxu1 %v18168_v3  ;;  %13755 = vmatprep.subr.bf16.mxu0 %v18168_v3 }
 0x64f   : > { %13656 = vmatpush3.bf16.msra.mxu1 %v14440_v47  ;;  %13756 = vmatpush3.bf16.msra.mxu0 %v14441_v23  ;;  %v14491_v47 = vld [vmem:[%s18146_s3 + $0x458] sm:$0xff]   ;;  %v14492_v23 = vld [vmem:[%s18146_s3 + $0x320] sm:$0xff]  }
 0x650   : > { %13657 = vmatprep.subr.bf16.mxu1 %v18168_v3  ;;  %13757 = vmatprep.subr.bf16.mxu0 %v18168_v3 }
 0x653   : > { %13658 = vmatpush3.bf16.msra.mxu1 %v14442_v55  ;;  %13758 = vmatpush3.bf16.msra.mxu0 %v14443_v14  ;;  %v14493_v55 = vld [vmem:[%s18146_s3 + $0x460] sm:$0xff]   ;;  %v14494_v14 = vld [vmem:[%s18146_s3 + $0x328] sm:$0xff]  }
 0x654   : > { %13659 = vmatprep.subr.bf16.mxu1 %v18168_v3  ;;  %13759 = vmatprep.subr.bf16.mxu0 %v18168_v3 }
 0x657   : > { %13660 = vmatpush3.bf16.msra.mxu1 %v14444_v49  ;;  %13760 = vmatpush3.bf16.msra.mxu0 %v14445_v13  ;;  %v14495_v49 = vld [vmem:[%s18146_s3 + $0x468] sm:$0xff]  }
 0x658   : > { %13661 = vmatprep.subr.bf16.mxu1 %v18168_v3  ;;  %13761 = vmatprep.subr.bf16.mxu0 %v18168_v3 }
 0x65b   : > { %13662 = vmatpush3.bf16.msra.mxu1 %v14446_v40  ;;  %13762 = vmatpush3.bf16.msra.mxu0 %v14447_v2 }
 0x65c   : > { %13663 = vmatprep.subr.bf16.mxu1 %v18168_v3  ;;  %13763 = vmatprep.subr.bf16.mxu0 %v18168_v3 }
 0x65f   : > { %13664 = vmatpush3.bf16.msra.mxu1 %v14448_v5  ;;  %13764 = vmatpush3.bf16.msra.mxu0 %v14449_v54 }
 0x660   : > { %13665 = vmatprep.subr.bf16.mxu1 %v18168_v3  ;;  %13765 = vmatprep.subr.bf16.mxu0 %v18168_v3 }
 0x663   : > { %13666 = vmatpush3.bf16.msra.mxu1 %v14450_v44  ;;  %13766 = vmatpush3.bf16.msra.mxu0 %v14451_v19  ;;  %v14496_v44 = vld [vmem:[%s18146_s3 + $0x330] sm:$0xff]  }
 0x664   : > { %13691 = vmatprep.subr.bf16.mxu1 %v18168_v3  ;;  %13791 = vmatprep.subr.bf16.mxu0 %v18168_v3 }
 0x666   : > { %13668 = vmatmul.mubr.bf16.vlgmr.msra.gmra.mrb[40].mxu1 %v7617_v56  ;;  %13768 = vmatmul.mubr.bf16.vlgmr.msra.gmra.mrb[76].mxu0 %v8157_v18  ;;  %v14498_v56 = vld [vmem:[%s18146_s3 + $0x338] sm:$0xff]   ;;  %v8264_v18 = vld [vmem:[#allocation4 + $0x3c] sm:$0x1] }
 0x667   : > { %13692 = vmatpush3.bf16.msra.mxu1 %v14452_v50  ;;  %13792 = vmatpush3.bf16.msra.mxu0 %v14453_v8  ;;  %v14499_v8 = vld [vmem:[%s18146_s3 + $0x478] sm:$0xff]  }
 0x668   : > { %13693 = vmatprep.subr.bf16.mxu1 %v18168_v3  ;;  %13793 = vmatprep.subr.bf16.mxu0 %v18168_v3 }
 0x669   : > { %13707 = vmatprep.mubr.msk.bf16.mxu1 %vm14653_vm0, %v18168_v3  ;;  %13807 = vmatprep.mubr.msk.bf16.mxu0 %vm14653_vm0, %v18168_v3 }
 0x66b   : > { %13694 = vmatpush3.bf16.msra.mxu1 %v14454_v43  ;;  %13794 = vmatpush3.bf16.msra.mxu0 %v14455_v6  ;;  %v8804_v43 = vld [vmem:[#allocation4 + $0x58] sm:$0x1]  ;;  %v14500_v6 = vld [vmem:[%s18146_s3 + $0x380] sm:$0xff]  }
 0x66c   : > { %13695 = vmatprep.subr.bf16.mxu1 %v18168_v3  ;;  %13795 = vmatprep.subr.bf16.mxu0 %v18168_v3 }
 0x66f   : > { %13696 = vmatpush3.bf16.msra.mxu1 %v14456_v48  ;;  %13796 = vmatpush3.bf16.msra.mxu0 %v14457_v24  ;;  %v8265_v48 = vpack.c.bf16 %v8264_v18, %v8264_v18  ;;  %v14501_v24 = vld [vmem:[%s18146_s3 + $0x4c0] sm:$0xff]  }
 0x670   : > { %13697 = vmatprep.subr.bf16.mxu1 %v18168_v3  ;;  %13797 = vmatprep.subr.bf16.mxu0 %v18168_v3  ;;  %v14533_v18 = vld [vmem:[%s18146_s3 + $0x5c0] sm:$0xff]  }
 0x673   : > { %13698 = vmatpush3.bf16.msra.mxu1 %v14458_v46  ;;  %13798 = vmatpush3.bf16.msra.mxu0 %v14459_v52  ;;  %v8805_v46 = vpack.c.bf16 %v8804_v43, %v8804_v43  ;;  %v14502_v52 = vld [vmem:[%s18146_s3 + $0x388] sm:$0xff]  }
 0x674   : > { %13699 = vmatprep.subr.bf16.mxu1 %v18168_v3  ;;  %13799 = vmatprep.subr.bf16.mxu0 %v18168_v3 }
 0x677   : > { %13700 = vmatpush3.bf16.msra.mxu1 %v14460_v22  ;;  %13800 = vmatpush3.bf16.msra.mxu0 %v14461_v7  ;;  %v14503_v22 = vld [vmem:[%s18146_s3 + $0x4c8] sm:$0xff]   ;;  %v14504_v7 = vld [vmem:[%s18146_s3 + $0x390] sm:$0xff]  }
 0x678   : > { %13701 = vmatprep.subr.bf16.mxu1 %v18168_v3  ;;  %13801 = vmatprep.subr.bf16.mxu0 %v18168_v3 }
 0x67b   : > { %13702 = vmatpush3.bf16.msra.mxu1 %v14462_v17  ;;  %13802 = vmatpush3.bf16.msra.mxu0 %v14463_v53  ;;  %v14505_v17 = vld [vmem:[%s18146_s3 + $0x4d0] sm:$0xff]   ;;  %v14506_v53 = vld [vmem:[%s18146_s3 + $0x398] sm:$0xff]  }
 0x67c   : > { %13703 = vmatprep.subr.bf16.mxu1 %v18168_v3  ;;  %13803 = vmatprep.subr.bf16.mxu0 %v18168_v3 }
 0x67f   : > { %13704 = vmatpush3.bf16.msra.mxu1 %v14464_v25  ;;  %13804 = vmatpush3.bf16.msra.mxu0 %v14465_v36  ;;  %v14507_v25 = vld [vmem:[%s18146_s3 + $0x4d8] sm:$0xff]   ;;  %v14508_v36 = vld [vmem:[%s18146_s3 + $0x3a0] sm:$0xff]  }
 0x680   : > { %13705 = vmatprep.subr.bf16.mxu1 %v18168_v3  ;;  %13805 = vmatprep.subr.bf16.mxu0 %v18168_v3 }
 0x683   : > { %13706 = vmatpush3.bf16.msra.mxu1 %v14466_v31  ;;  %13806 = vmatpush3.bf16.msra.mxu0 %v14467_v28  ;;  %v14509_v31 = vld [vmem:[%s18146_s3 + $0x4e0] sm:$0xff]   ;;  %v14510_v28 = vld [vmem:[%s18146_s3 + $0x3a8] sm:$0xff]  }
 0x684   : > { %13731 = vmatprep.subr.bf16.mxu1 %v18168_v3  ;;  %13831 = vmatprep.subr.bf16.mxu0 %v18168_v3 }
 0x686   : > { %13708 = vmatmul.mubr.bf16.vlgmr.msra.gmra.mrb[44].mxu1 %v7833_v60  ;;  %13808 = vmatmul.mubr.bf16.vlgmr.msra.gmra.mrb[80].mxu0 %v8373_v12 }
 0x687   : > { %13732 = vmatpush3.bf16.msra.mxu1 %v14468_v39  ;;  %13832 = vmatpush3.bf16.msra.mxu0 %v14469_v59 }
 0x688   : > { %13733 = vmatprep.subr.bf16.mxu1 %v18168_v3  ;;  %13833 = vmatprep.subr.bf16.mxu0 %v18168_v3 }
 0x689   : > { %13747 = vmatprep.mubr.msk.bf16.mxu1 %vm14653_vm0, %v18168_v3  ;;  %13847 = vmatprep.mubr.msk.bf16.mxu0 %vm14653_vm0, %v18168_v3 }
 0x68b   : > { %13734 = vmatpush3.bf16.msra.mxu1 %v14470_v1  ;;  %13834 = vmatpush3.bf16.msra.mxu0 %v14471_v15  ;;  %v14512_v15 = vld [vmem:[%s18146_s3 + $0x3b0] sm:$0xff]  }
 0x68c   : > { %13735 = vmatprep.subr.bf16.mxu1 %v18168_v3  ;;  %13835 = vmatprep.subr.bf16.mxu0 %v18168_v3 }
 0x68f   : > { %13736 = vmatpush3.bf16.msra.mxu1 %v14472_v51  ;;  %13836 = vmatpush3.bf16.msra.mxu0 %v14473_v16 }
 0x690   : > { %13737 = vmatprep.subr.bf16.mxu1 %v18168_v3  ;;  %13837 = vmatprep.subr.bf16.mxu0 %v18168_v3 }
 0x693   : > { %13738 = vmatpush3.bf16.msra.mxu1 %v14474_v63  ;;  %13838 = vmatpush3.bf16.msra.mxu0 %v14475_v10  ;;  %v14513_v63 = vld [vmem:[%s18146_s3 + $0x4f0] sm:$0xff]  }
 0x694   : > { %13739 = vmatprep.subr.bf16.mxu1 %v18168_v3  ;;  %13839 = vmatprep.subr.bf16.mxu0 %v18168_v3 }
 0x697   : > { %13740 = vmatpush3.bf16.msra.mxu1 %v14476_v37  ;;  %13840 = vmatpush3.bf16.msra.mxu0 %v14477_v57  ;;  %v14514_v37 = vld [vmem:[%s18146_s3 + $0x3b8] sm:$0xff]  }
 0x698   : > { %13741 = vmatprep.subr.bf16.mxu1 %v18168_v3  ;;  %13841 = vmatprep.subr.bf16.mxu0 %v18168_v3  ;;  %v14515_v57 = vld [vmem:[%s18146_s3 + $0x4f8] sm:$0xff]  }
 0x69b   : > { %13742 = vmatpush3.bf16.msra.mxu1 %v14478_v38  ;;  %13842 = vmatpush3.bf16.msra.mxu0 %v14479_v33  ;;  %v8480_v38 = vld [vmem:[#allocation4 + $0x40] sm:$0x1]  ;;  %v9020_v33 = vld [vmem:[#allocation4 + $0x5c] sm:$0x1] }
 0x69c   : > { %13743 = vmatprep.subr.bf16.mxu1 %v18168_v3  ;;  %13843 = vmatprep.subr.bf16.mxu0 %v18168_v3 }
 0x69f   : > { %13744 = vmatpush3.bf16.msra.mxu1 %v14480_v11  ;;  %13844 = vmatpush3.bf16.msra.mxu0 %v14481_v0  ;;  %v14516_v11 = vld [vmem:[%s18146_s3 + $0x400] sm:$0xff]   ;;  %v8481_v0 = vpack.c.bf16 %v8480_v38, %v8480_v38 }
 0x6a0   : > { %13745 = vmatprep.subr.bf16.mxu1 %v18168_v3  ;;  %13845 = vmatprep.subr.bf16.mxu0 %v18168_v3 }
 0x6a3   : > { %13746 = vmatpush3.bf16.msra.mxu1 %v14482_v27  ;;  %13846 = vmatpush3.bf16.msra.mxu0 %v14483_v9  ;;  %v14517_v27 = vld [vmem:[%s18146_s3 + $0x540] sm:$0xff]   ;;  %v9021_v9 = vpack.c.bf16 %v9020_v33, %v9020_v33 }
 0x6a4   : > { %13771 = vmatprep.subr.bf16.mxu1 %v18168_v3  ;;  %13871 = vmatprep.subr.bf16.mxu0 %v18168_v3 }
 0x6a6   : > { %13748 = vmatmul.mubr.bf16.vlgmr.msra.gmra.mrb[48].mxu1 %v8049_v26  ;;  %13848 = vmatmul.mubr.bf16.vlgmr.msra.gmra.mrb[84].mxu0 %v8589_v20  ;;  %v14521_v26 = vld [vmem:[%s18146_s3 + $0x550] sm:$0xff]   ;;  %v14523_v20 = vld [vmem:[%s18146_s3 + $0x558] sm:$0xff]  }
 0x6a7   : > { %13772 = vmatpush3.bf16.msra.mxu1 %v14484_v35  ;;  %13872 = vmatpush3.bf16.msra.mxu0 %v14485_v58  ;;  %v14520_v35 = vld [vmem:[%s18146_s3 + $0x410] sm:$0xff]   ;;  %v14522_v58 = vld [vmem:[%s18146_s3 + $0x418] sm:$0xff]  }
 0x6a8   : > { %13773 = vmatprep.subr.bf16.mxu1 %v18168_v3  ;;  %13873 = vmatprep.subr.bf16.mxu0 %v18168_v3 }
 0x6a9   : > { %13787 = vmatprep.mubr.msk.bf16.mxu1 %vm14653_vm0, %v18168_v3  ;;  %13887 = vmatprep.mubr.msk.bf16.mxu0 %vm14653_vm0, %v18168_v3 }
 0x6ab   : > { %13774 = vmatpush3.bf16.msra.mxu1 %v14486_v62  ;;  %13874 = vmatpush3.bf16.msra.mxu0 %v14487_v41  ;;  %v14524_v62 = vld [vmem:[%s18146_s3 + $0x420] sm:$0xff]  }
 0x6ac   : > { %13775 = vmatprep.subr.bf16.mxu1 %v18168_v3  ;;  %13875 = vmatprep.subr.bf16.mxu0 %v18168_v3  ;;  %v14525_v41 = vld [vmem:[%s18146_s3 + $0x560] sm:$0xff]  }
 0x6af   : > { %13776 = vmatpush3.bf16.msra.mxu1 %v14488_v29  ;;  %13876 = vmatpush3.bf16.msra.mxu0 %v14489_v34  ;;  %v14526_v29 = vld [vmem:[%s18146_s3 + $0x428] sm:$0xff]  }
 0x6b0   : > { %13777 = vmatprep.subr.bf16.mxu1 %v18168_v3  ;;  %13877 = vmatprep.subr.bf16.mxu0 %v18168_v3  ;;  %v14527_v34 = vld [vmem:[%s18146_s3 + $0x568] sm:$0xff]  }
 0x6b3   : > { %13778 = vmatpush3.bf16.msra.mxu1 %v14490_v45  ;;  %13878 = vmatpush3.bf16.msra.mxu0 %v14491_v47 }
 0x6b4   : > { %13779 = vmatprep.subr.bf16.mxu1 %v18168_v3  ;;  %13879 = vmatprep.subr.bf16.mxu0 %v18168_v3 }
 0x6b7   : > { %13780 = vmatpush3.bf16.msra.mxu1 %v14492_v23  ;;  %13880 = vmatpush3.bf16.msra.mxu0 %v14493_v55 }
 0x6b8   : > { %13781 = vmatprep.subr.bf16.mxu1 %v18168_v3  ;;  %13881 = vmatprep.subr.bf16.mxu0 %v18168_v3 }
 0x6b9   : > { %v17669_v13 = vpop.f32.mrb[24].mxu1  ;;  %v17672_v40 = vpop.f32.mrb[60].mxu0 }
 0x6ba   : > { %v13549_v2 = vpop.f32.mrb[25].mxu1  ;;  %v13609_v5 = vpop.f32.mrb[61].mxu0 }
 0x6bb   : > { %13782 = vmatpush3.bf16.msra.mxu1 %v14494_v14  ;;  %v7093_v54 = vpop.f32.mrb[26].mxu1  ;;  %13882 = vmatpush3.bf16.msra.mxu0 %v14495_v49  ;;  %v7396_v19 = vpop.f32.mrb[62].mxu0 }
 0x6bc   : > { %v13550_v21 = vpop.f32.mrb[27].mxu1  ;;  %13783 = vmatprep.subr.bf16.mxu1 %v18168_v3  ;;  %v13610_v50 = vpop.f32.mrb[63].mxu0  ;;  %13883 = vmatprep.subr.bf16.mxu0 %v18168_v3  ;;  %v14529_v54 = vld [vmem:[%s18146_s3 + $0x570] sm:$0xff]  }
 0x6bd   : > { %v14530_v21 = vld [vmem:[%s18146_s3 + $0x438] sm:$0xff]   ;;  %v8696_v50 = vld [vmem:[#allocation4 + $0x56] sm:$0x1] }
 0x6bf   : > { %13784 = vmatpush3.bf16.msra.mxu1 %v14496_v44  ;;  %13884 = vmatpush3.bf16.msra.mxu0 %v14497_v4  ;;  %v14531_v4 = vld [vmem:[%s18146_s3 + $0x578] sm:$0xff]  }
 0x6c0   : > { %13785 = vmatprep.subr.bf16.mxu1 %v18168_v3  ;;  %13885 = vmatprep.subr.bf16.mxu0 %v18168_v3 }
 0x6c3   : > { %13786 = vmatpush3.bf16.msra.mxu1 %v14498_v56  ;;  %13886 = vmatpush3.bf16.msra.mxu0 %v14499_v8  ;;  %v9236_v56 = vld [vmem:[#allocation4 + $0x72] sm:$0x1]  ;;  %v8697_v8 = vpack.c.bf16 %v8696_v50, %v8696_v50 }
 0x6c4   : > { %13811 = vmatprep.subr.bf16.mxu1 %v18168_v3  ;;  %13911 = vmatprep.subr.bf16.mxu0 %v18168_v3  ;;  %v9237_v43 = vpack.c.bf16 %v9236_v56, %v9236_v56 }
 0x6c6   : > { %13788 = vmatmul.mubr.bf16.vlgmr.msra.gmra.mrb[52].mxu1 %v8265_v48  ;;  %13888 = vmatmul.mubr.bf16.vlgmr.msra.gmra.mrb[88].mxu0 %v8805_v46  ;;  %v14535_v48 = vld [vmem:[%s18146_s3 + $0x5c8] sm:$0xff]   ;;  %v14537_v46 = vld [vmem:[%s18146_s3 + $0x5d0] sm:$0xff]  }
 0x6c7   : > { %13812 = vmatpush3.bf16.msra.mxu1 %v14500_v6  ;;  %13912 = vmatpush3.bf16.msra.mxu0 %v14501_v24  ;;  %v14534_v6 = vld [vmem:[%s18146_s3 + $0x488] sm:$0xff]   ;;  %v14536_v24 = vld [vmem:[%s18146_s3 + $0x490] sm:$0xff]  }
 0x6c8   : > { %13813 = vmatprep.subr.bf16.mxu1 %v18168_v3  ;;  %13913 = vmatprep.subr.bf16.mxu0 %v18168_v3 }
 0x6c9   : > { %13827 = vmatprep.mubr.msk.bf16.mxu1 %vm14653_vm0, %v18168_v3  ;;  %13927 = vmatprep.mubr.msk.bf16.mxu0 %vm14653_vm0, %v18168_v3 }
 0x6cb   : > { %13814 = vmatpush3.bf16.msra.mxu1 %v14502_v52  ;;  %13914 = vmatpush3.bf16.msra.mxu0 %v14503_v22  ;;  %v14538_v52 = vld [vmem:[%s18146_s3 + $0x498] sm:$0xff]  }
 0x6cc   : > { %13815 = vmatprep.subr.bf16.mxu1 %v18168_v3  ;;  %13915 = vmatprep.subr.bf16.mxu0 %v18168_v3  ;;  %v14539_v22 = vld [vmem:[%s18146_s3 + $0x5d8] sm:$0xff]  }
 0x6cf   : > { %13816 = vmatpush3.bf16.msra.mxu1 %v14504_v7  ;;  %13916 = vmatpush3.bf16.msra.mxu0 %v14505_v17  ;;  %v14540_v7 = vld [vmem:[%s18146_s3 + $0x4a0] sm:$0xff]  }
 0x6d0   : > { %13817 = vmatprep.subr.bf16.mxu1 %v18168_v3  ;;  %13917 = vmatprep.subr.bf16.mxu0 %v18168_v3  ;;  %v14541_v17 = vld [vmem:[%s18146_s3 + $0x5e0] sm:$0xff]  }
 0x6d3   : > { %13818 = vmatpush3.bf16.msra.mxu1 %v14506_v53  ;;  %13918 = vmatpush3.bf16.msra.mxu0 %v14507_v25  ;;  %v14542_v53 = vld [vmem:[%s18146_s3 + $0x4a8] sm:$0xff]  }
 0x6d4   : > { %13819 = vmatprep.subr.bf16.mxu1 %v18168_v3  ;;  %13919 = vmatprep.subr.bf16.mxu0 %v18168_v3  ;;  %v14543_v25 = vld [vmem:[%s18146_s3 + $0x5e8] sm:$0xff]  }
 0x6d7   : > { %13820 = vmatpush3.bf16.msra.mxu1 %v14508_v36  ;;  %13920 = vmatpush3.bf16.msra.mxu0 %v14509_v31 }
 0x6d8   : > { %13821 = vmatprep.subr.bf16.mxu1 %v18168_v3  ;;  %13921 = vmatprep.subr.bf16.mxu0 %v18168_v3 }
 0x6d9   : > { %v7178_v32 = vpop.f32.mrb[28].mxu1  ;;  %v17745_v60 = vpop.f32.mrb[64].mxu0 }
 0x6da   : > { %v17743_v39 = vadd.f32 %v7178_v32, %v17669_v13  ;;  %v13569_v59 = vpop.f32.mrb[29].mxu1  ;;  %v13649_v12 = vpop.f32.mrb[65].mxu0  ;;  %v14528_v13 = vld [vmem:[%s18146_s3 + $0x430] sm:$0xff]  }
 0x6db   : > { %v7181_v1 = vpop.f32.mrb[30].mxu1  ;;  %13822 = vmatpush3.bf16.msra.mxu1 %v14510_v28  ;;  %v7612_v51 = vpop.f32.mrb[66].mxu0  ;;  %13922 = vmatpush3.bf16.msra.mxu0 %v14511_v42  ;;  %v14544_v59 = vld [vmem:[%s18146_s3 + $0x4b0] sm:$0xff]  }
 0x6dc   : > { %v13570_v16 = vpop.f32.mrb[31].mxu1  ;;  %13823 = vmatprep.subr.bf16.mxu1 %v18168_v3  ;;  %v13650_v10 = vpop.f32.mrb[67].mxu0  ;;  %13923 = vmatprep.subr.bf16.mxu0 %v18168_v3 }
 0x6dd   : > { %v14547_v10 = vld [vmem:[%s18146_s3 + $0x5f8] sm:$0xff]  }
 0x6df   : > { %13824 = vmatpush3.bf16.msra.mxu1 %v14512_v15  ;;  %13924 = vmatpush3.bf16.msra.mxu0 %v14513_v63  ;;  %v14545_v15 = vld [vmem:[%s18146_s3 + $0x5f0] sm:$0xff]   ;;  %v14546_v63 = vld [vmem:[%s18146_s3 + $0x4b8] sm:$0xff]  }
 0x6e0   : > { %13825 = vmatprep.subr.bf16.mxu1 %v18168_v3  ;;  %13925 = vmatprep.subr.bf16.mxu0 %v18168_v3 }
 0x6e3   : > { %13826 = vmatpush3.bf16.msra.mxu1 %v14514_v37  ;;  %13926 = vmatpush3.bf16.msra.mxu0 %v14515_v57  ;;  %v8912_v37 = vld [vmem:[#allocation4 + $0x5a] sm:$0x1]  ;;  %v9452_v57 = vld [vmem:[#allocation4 + $0x76] sm:$0x1] }
 0x6e4   : > { %13851 = vmatprep.subr.bf16.mxu1 %v18168_v3  ;;  %13951 = vmatprep.subr.bf16.mxu0 %v18168_v3  ;;  %v8913_v38 = vpack.c.bf16 %v8912_v37, %v8912_v37  ;;  %v9453_v33 = vpack.c.bf16 %v9452_v57, %v9452_v57 }
 0x6e6   : > { %13828 = vmatmul.mubr.bf16.vlgmr.msra.gmra.mrb[56].mxu1 %v8481_v0  ;;  %13928 = vmatmul.mubr.bf16.vlgmr.msra.gmra.mrb[92].mxu0 %v9021_v9  ;;  %v14550_v0 = vld [vmem:[%s18146_s3 + $0x510] sm:$0xff]   ;;  %v14552_v9 = vld [vmem:[%s18146_s3 + $0x520] sm:$0xff]  }
 0x6e7   : > { %13852 = vmatpush3.bf16.msra.mxu1 %v14516_v11  ;;  %13952 = vmatpush3.bf16.msra.mxu0 %v14517_v27  ;;  %v14549_v11 = vld [vmem:[%s18146_s3 + $0x508] sm:$0xff]   ;;  %v14551_v27 = vld [vmem:[%s18146_s3 + $0x518] sm:$0xff]  }
 0x6e8   : > { %13853 = vmatprep.subr.bf16.mxu1 %v18168_v3  ;;  %13953 = vmatprep.subr.bf16.mxu0 %v18168_v3 }
 0x6e9   : > { %13867 = vmatprep.mubr.msk.bf16.mxu1 %vm14653_vm0, %v18168_v3  ;;  %13967 = vmatprep.mubr.msk.bf16.mxu0 %vm14653_vm0, %v18168_v3 }
 0x6eb   : > { %13854 = vmatpush3.bf16.msra.mxu1 %v14518_v30  ;;  %13954 = vmatpush3.bf16.msra.mxu0 %v14519_v61  ;;  %v14553_v30 = vld [vmem:[%s18146_s3 + $0x528] sm:$0xff]  }
 0x6ec   : > { %13855 = vmatprep.subr.bf16.mxu1 %v18168_v3  ;;  %13955 = vmatprep.subr.bf16.mxu0 %v18168_v3 }
 0x6ef   : > { %13856 = vmatpush3.bf16.msra.mxu1 %v14520_v35  ;;  %13956 = vmatpush3.bf16.msra.mxu0 %v14521_v26 }
 0x6f0   : > { %13857 = vmatprep.subr.bf16.mxu1 %v18168_v3  ;;  %13957 = vmatprep.subr.bf16.mxu0 %v18168_v3 }
 0x6f3   : > { %13858 = vmatpush3.bf16.msra.mxu1 %v14522_v58  ;;  %13958 = vmatpush3.bf16.msra.mxu0 %v14523_v20 }
 0x6f4   : > { %13859 = vmatprep.subr.bf16.mxu1 %v18168_v3  ;;  %13959 = vmatprep.subr.bf16.mxu0 %v18168_v3 }
 0x6f7   : > { %13860 = vmatpush3.bf16.msra.mxu1 %v14524_v62  ;;  %13960 = vmatpush3.bf16.msra.mxu0 %v14525_v41  ;;  %v14554_v41 = vld [vmem:[%s18146_s3 + $0x530] sm:$0xff]  }
 0x6f8   : > { %13861 = vmatprep.subr.bf16.mxu1 %v18168_v3  ;;  %13961 = vmatprep.subr.bf16.mxu0 %v18168_v3 }
 0x6f9   : > { %v7285_v45 = vpop.f32.mrb[32].mxu1  ;;  %v17816_v23 = vpop.f32.mrb[68].mxu0 }
 0x6fa   : > { %v7291_v47 = vadd.f32 %v7285_v45, %v17743_v39  ;;  %v13589_v55 = vpop.f32.mrb[33].mxu1  ;;  %v13689_v14 = vpop.f32.mrb[69].mxu0 }
 0x6fb   : > { %v7288_v49 = vpop.f32.mrb[34].mxu1  ;;  %13862 = vmatpush3.bf16.msra.mxu1 %v14526_v29  ;;  %v7828_v2 = vpop.f32.mrb[70].mxu0  ;;  %13962 = vmatpush3.bf16.msra.mxu0 %v14527_v34  ;;  %v14555_v55 = vld [vmem:[%s18146_s3 + $0x538] sm:$0xff]   ;;  %v9128_v14 = vld [vmem:[#allocation4 + $0x70] sm:$0x1] }
 0x6fc   : > { %v13590_v5 = vpop.f32.mrb[35].mxu1  ;;  %13863 = vmatprep.subr.bf16.mxu1 %v18168_v3  ;;  %v7399_v44 = vadd.f32 %v17672_v40, %v7291_v47  ;;  %v13690_v19 = vpop.f32.mrb[71].mxu0  ;;  %13963 = vmatprep.subr.bf16.mxu0 %v18168_v3  ;;  %v14532_v40 = vld [vmem:[%s18146_s3 + $0x480] sm:$0xff]   ;;  %v14558_v2 = vld [vmem:[%s18146_s3 + $0x590] sm:$0xff]  }
 0x6fd   : > { %v14556_v49 = vld [vmem:[%s18146_s3 + $0x580] sm:$0xff]   ;;  %v14559_v5 = vld [vmem:[%s18146_s3 + $0x598] sm:$0xff]  }
 0x6ff   : > { %13864 = vmatpush3.bf16.msra.mxu1 %v14528_v13  ;;  %13964 = vmatpush3.bf16.msra.mxu0 %v14529_v54  ;;  %v9129_v13 = vpack.c.bf16 %v9128_v14, %v9128_v14  ;;  %v14560_v54 = vld [vmem:[%s18146_s3 + $0x5a0] sm:$0xff]   ;;  %v14573_v14 = vld [vmem:[%s18147_s4 + $0x8] sm:$0xff]  }
 0x700   : > { %13865 = vmatprep.subr.bf16.mxu1 %v18168_v3  ;;  %13965 = vmatprep.subr.bf16.mxu0 %v18168_v3 }
 0x703   : > { %13866 = vmatpush3.bf16.msra.mxu1 %v14530_v21  ;;  %13966 = vmatpush3.bf16.msra.mxu0 %v14531_v4 }
 0x704   : > { %13891 = vmatprep.subr.bf16.mxu1 %v18168_v3  ;;  %13991 = vmatprep.subr.bf16.mxu0 %v18168_v3 }
 0x706   : > { %13868 = vmatmul.mubr.bf16.vlgmr.msra.gmra.mrb[60].mxu1 %v8697_v8  ;;  %13968 = vmatmul.mubr.bf16.vlgmr.msra.gmra.mrb[96].mxu0 %v9237_v43  ;;  %v14562_v8 = vld [vmem:[%s18146_s3 + $0x5b0] sm:$0xff]  }
 0x707   : > { %13892 = vmatpush3.bf16.msra.mxu1 %v14532_v40  ;;  %13992 = vmatpush3.bf16.msra.mxu0 %v14533_v18 }
 0x708   : > { %13893 = vmatprep.subr.bf16.mxu1 %v18168_v3  ;;  %13993 = vmatprep.subr.bf16.mxu0 %v18168_v3 }
 0x709   : > { %13907 = vmatprep.mubr.msk.bf16.mxu1 %vm14653_vm0, %v18168_v3  ;;  %14007 = vmatprep.mubr.msk.bf16.mxu0 %vm14653_vm0, %v18168_v3 }
 0x70b   : > { %13894 = vmatpush3.bf16.msra.mxu1 %v14534_v6  ;;  %13994 = vmatpush3.bf16.msra.mxu0 %v14535_v48 }
 0x70c   : > { %13895 = vmatprep.subr.bf16.mxu1 %v18168_v3  ;;  %13995 = vmatprep.subr.bf16.mxu0 %v18168_v3 }
 0x70f   : > { %13896 = vmatpush3.bf16.msra.mxu1 %v14536_v24  ;;  %13996 = vmatpush3.bf16.msra.mxu0 %v14537_v46  ;;  %v14563_v24 = vld [vmem:[%s18146_s3 + $0x5b8] sm:$0xff]   ;;  %v9344_v46 = vld [vmem:[#allocation4 + $0x74] sm:$0x1] }
 0x710   : > { %13897 = vmatprep.subr.bf16.mxu1 %v18168_v3  ;;  %13997 = vmatprep.subr.bf16.mxu0 %v18168_v3 }
 0x713   : > { %13898 = vmatpush3.bf16.msra.mxu1 %v14538_v52  ;;  %13998 = vmatpush3.bf16.msra.mxu0 %v14539_v22  ;;  %v14564_v52 = vld [vmem:[%s18146_s3 + $0x600] sm:$0xff]   ;;  %v9345_v22 = vpack.c.bf16 %v9344_v46, %v9344_v46  ;;  %v14583_v46 = vld [vmem:[%s18148_s5 + $0x18] sm:$0xff]  }
 0x714   : > { %13899 = vmatprep.subr.bf16.mxu1 %v18168_v3  ;;  %13999 = vmatprep.subr.bf16.mxu0 %v18168_v3 }
 0x717   : > { %13900 = vmatpush3.bf16.msra.mxu1 %v14540_v7  ;;  %14000 = vmatpush3.bf16.msra.mxu0 %v14541_v17  ;;  %v14565_v7 = vld [vmem:[%s18146_s3 + $0x608] sm:$0xff]   ;;  %v14566_v17 = vld [vmem:[%s18146_s3 + $0x610] sm:$0xff]  }
 0x718   : > { %13901 = vmatprep.subr.bf16.mxu1 %v18168_v3  ;;  %14001 = vmatprep.subr.bf16.mxu0 %v18168_v3 }
 0x719   : > { %v7501_v36 = vpop.f32.mrb[36].mxu1  ;;  %v17887_v28 = vpop.f32.mrb[72].mxu0 }
 0x71a   : > { %v7507_v31 = vadd.f32 %v7501_v36, %v7399_v44  ;;  %v13629_v42 = vpop.f32.mrb[37].mxu1  ;;  %v13729_v32 = vpop.f32.mrb[73].mxu0  ;;  %v14561_v44 = vld [vmem:[%s18146_s3 + $0x5a8] sm:$0xff]  }
 0x71b   : > { %v7504_v39 = vpop.f32.mrb[38].mxu1  ;;  %13902 = vmatpush3.bf16.msra.mxu1 %v14542_v53  ;;  %v8044_v12 = vpop.f32.mrb[74].mxu0  ;;  %14002 = vmatpush3.bf16.msra.mxu0 %v14543_v25  ;;  %v14567_v53 = vld [vmem:[%s18146_s3 + $0x618] sm:$0xff]   ;;  %v14568_v25 = vld [vmem:[%s18146_s3 + $0x620] sm:$0xff]   ;;  %v14569_v36 = vld [vmem:[%s18146_s3 + $0x628] sm:$0xff]  }
 0x71c   : > { %v13630_v1 = vpop.f32.mrb[39].mxu1  ;;  %13903 = vmatprep.subr.bf16.mxu1 %v18168_v3  ;;  %v7615_v51 = vadd.f32 %v17745_v60, %v7507_v31  ;;  %v13730_v16 = vpop.f32.mrb[75].mxu0  ;;  %14003 = vmatprep.subr.bf16.mxu0 %v18168_v3  ;;  %v14548_v60 = vld [vmem:[%s18146_s3 + $0x500] sm:$0xff]   ;;  %v14570_v12 = vld [vmem:[%s18146_s3 + $0x630] sm:$0xff]  }
 0x71f   : > { %13904 = vmatpush3.bf16.msra.mxu1 %v14544_v59  ;;  %14004 = vmatpush3.bf16.msra.mxu0 %v14545_v15 }
 0x720   : > { %13905 = vmatprep.subr.bf16.mxu1 %v18168_v3  ;;  %14005 = vmatprep.subr.bf16.mxu0 %v18168_v3 }
 0x723   : > { %13906 = vmatpush3.bf16.msra.mxu1 %v14546_v63  ;;  %14006 = vmatpush3.bf16.msra.mxu0 %v14547_v10  ;;  %v14571_v63 = vld [vmem:[%s18146_s3 + $0x638] sm:$0xff]   ;;  %v9560_v10 = vld [vmem:[#allocation4 + $0x78] sm:$0x1] }
 0x724   : > { %13931 = vmatprep.subr.bf16.mxu1 %v18168_v3  ;;  %14031 = vmatprep.subr.bf16.mxu0 %v18168_v3  ;;  %v9561_v37 = vpack.c.bf16 %v9560_v10, %v9560_v10 }
 0x726   : > { %13908 = vmatmul.mubr.bf16.vlgmr.msra.gmra.mrb[64].mxu1 %v8913_v38  ;;  %14008 = vmatmul.mubr.bf16.vlgmr.msra.gmra.mrb[100].mxu0 %v9453_v33 }
 0x727   : > { %13932 = vmatpush3.bf16.msra.mxu1 %v14548_v60  ;;  %13947 = vmatprep.mubr.msk.bf16.mxu1 %vm14653_vm0, %v18168_v3 }
 0x728   : > { %13933 = vmatprep.subr.bf16.mxu1 %v18168_v3  ;;  %14047 = vmatprep.mubr.msk.bf16.mxu0 %vm14653_vm0, %v18168_v3 }
 0x72b   : > { %13934 = vmatpush3.bf16.msra.mxu1 %v14549_v11 }
 0x72c   : > { %13935 = vmatprep.subr.bf16.mxu1 %v18168_v3 }
 0x72f   : > { %13936 = vmatpush3.bf16.msra.mxu1 %v14550_v0 }
 0x730   : > { %13937 = vmatprep.subr.bf16.mxu1 %v18168_v3 }
 0x733   : > { %13938 = vmatpush3.bf16.msra.mxu1 %v14551_v27 }
 0x734   : > { %13939 = vmatprep.subr.bf16.mxu1 %v18168_v3 }
 0x737   : > { %13940 = vmatpush3.bf16.msra.mxu1 %v14552_v9 }
 0x738   : > { %13941 = vmatprep.subr.bf16.mxu1 %v18168_v3 }
 0x739   : > { %v7717_v61 = vpop.f32.mrb[40].mxu1  ;;  %v17935_v26 = vpop.f32.mrb[76].mxu0 }
 0x73a   : > { %v7723_v35 = vadd.f32 %v7717_v61, %v7615_v51  ;;  %v13669_v58 = vpop.f32.mrb[41].mxu1  ;;  %v13769_v20 = vpop.f32.mrb[77].mxu0 }
 0x73b   : > { %v7720_v62 = vpop.f32.mrb[42].mxu1  ;;  %13942 = vmatpush3.bf16.msra.mxu1 %v14553_v30  ;;  %v8260_v29 = vpop.f32.mrb[78].mxu0 }
 0x73c   : > { %v13670_v34 = vpop.f32.mrb[43].mxu1  ;;  %13943 = vmatprep.subr.bf16.mxu1 %v18168_v3  ;;  %v7831_v45 = vadd.f32 %v17816_v23, %v7723_v35  ;;  %v13770_v47 = vpop.f32.mrb[79].mxu0  ;;  %v14557_v23 = vld [vmem:[%s18146_s3 + $0x588] sm:$0xff]  }
 0x73d   : > { %v14572_v47 = vld [vmem:[%s18147_s4] sm:$0xff]  }
 0x73e   : > { %14032 = vmatpush3.bf16.msra.mxu0 %v14572_v47 }
 0x73f   : > { %13944 = vmatpush3.bf16.msra.mxu1 %v14554_v41  ;;  %14033 = vmatprep.subr.bf16.mxu0 %v18168_v3 }
 0x740   : > { %13945 = vmatprep.subr.bf16.mxu1 %v18168_v3 }
 0x742   : > { %14034 = vmatpush3.bf16.msra.mxu0 %v14573_v14 }
 0x743   : > { %13946 = vmatpush3.bf16.msra.mxu1 %v14555_v55  ;;  %14035 = vmatprep.subr.bf16.mxu0 %v18168_v3 }
 0x744   : > { %13971 = vmatprep.subr.bf16.mxu1 %v18168_v3 }
 0x746   : > { %13948 = vmatmul.mubr.bf16.vlgmr.msra.gmra.mrb[68].mxu1 %v9129_v13  ;;  %v14575_v13 = vld [vmem:[%s18147_s4 + $0x18] sm:$0xff]  }
 0x747   : > { %13972 = vmatpush3.bf16.msra.mxu1 %v14556_v49  ;;  %13987 = vmatprep.mubr.msk.bf16.mxu1 %vm14653_vm0, %v18168_v3  ;;  %v14574_v49 = vld [vmem:[%s18147_s4 + $0x10] sm:$0xff]  }
 0x748   : > { %13973 = vmatprep.subr.bf16.mxu1 %v18168_v3  ;;  %14036 = vmatpush3.bf16.msra.mxu0 %v14574_v49  ;;  %v9795_v49 = vld [vmem:[%s18149_s6 + $0x4] sm:$0x1] }
 0x749   : > { %14037 = vmatprep.subr.bf16.mxu0 %v18168_v3 }
 0x74b   : > { %13974 = vmatpush3.bf16.msra.mxu1 %v14557_v23  ;;  %v14576_v23 = vld [vmem:[%s18147_s4 + $0x20] sm:$0xff]  }
 0x74c   : > { %13975 = vmatprep.subr.bf16.mxu1 %v18168_v3  ;;  %14038 = vmatpush3.bf16.msra.mxu0 %v14575_v13 }
 0x74d   : > { %14039 = vmatprep.subr.bf16.mxu0 %v18168_v3 }
 0x74f   : > { %13976 = vmatpush3.bf16.msra.mxu1 %v14558_v2  ;;  %v14577_v2 = vld [vmem:[%s18147_s4 + $0x28] sm:$0xff]  }
 0x750   : > { %13977 = vmatprep.subr.bf16.mxu1 %v18168_v3  ;;  %14040 = vmatpush3.bf16.msra.mxu0 %v14576_v23 }
 0x751   : > { %14041 = vmatprep.subr.bf16.mxu0 %v18168_v3 }
 0x753   : > { %13978 = vmatpush3.bf16.msra.mxu1 %v14559_v5 }
 0x754   : > { %13979 = vmatprep.subr.bf16.mxu1 %v18168_v3  ;;  %14042 = vmatpush3.bf16.msra.mxu0 %v14577_v2 }
 0x755   : > { %14043 = vmatprep.subr.bf16.mxu0 %v18168_v3 }
 0x757   : > { %13980 = vmatpush3.bf16.msra.mxu1 %v14560_v54 }
 0x758   : > { %13981 = vmatprep.subr.bf16.mxu1 %v18168_v3 }
 0x759   : > { %v7933_v19 = vpop.f32.mrb[44].mxu1  ;;  %v17972_v4 = vpop.f32.mrb[80].mxu0 }
 0x75a   : > { %v7939_v21 = vadd.f32 %v7933_v19, %v7831_v45  ;;  %v13709_v50 = vpop.f32.mrb[45].mxu1  ;;  %v13809_v56 = vpop.f32.mrb[81].mxu0 }
 0x75b   : > { %v7936_v40 = vpop.f32.mrb[46].mxu1  ;;  %13982 = vmatpush3.bf16.msra.mxu1 %v14561_v44  ;;  %v8476_v18 = vpop.f32.mrb[82].mxu0 }
 0x75c   : > { %v13710_v43 = vpop.f32.mrb[47].mxu1  ;;  %13983 = vmatprep.subr.bf16.mxu1 %v18168_v3  ;;  %v8047_v6 = vadd.f32 %v17887_v28, %v7939_v21  ;;  %v13810_v48 = vpop.f32.mrb[83].mxu0  ;;  %v14578_v18 = vld [vmem:[%s18147_s4 + $0x30] sm:$0xff]  }
 0x75d   : > { %14044 = vmatpush3.bf16.msra.mxu0 %v14578_v18  ;;  %v14579_v43 = vld [vmem:[%s18147_s4 + $0x38] sm:$0xff]   ;;  %v14581_v48 = vld [vmem:[%s18148_s5 + $0x8] sm:$0xff]  }
 0x75e   : > { %14045 = vmatprep.subr.bf16.mxu0 %v18168_v3 }
 0x75f   : > { %13984 = vmatpush3.bf16.msra.mxu1 %v14562_v8 }
 0x760   : > { %13985 = vmatprep.subr.bf16.mxu1 %v18168_v3 }
 0x761   : > { %14046 = vmatpush3.bf16.msra.mxu0 %v14579_v43 }
 0x763   : > { %13986 = vmatpush3.bf16.msra.mxu1 %v14563_v24  ;;  %v14582_v24 = vld [vmem:[%s18148_s5 + $0x10] sm:$0xff]  }
 0x764   : > { %14011 = vmatprep.subr.bf16.mxu1 %v18168_v3 }
 0x766   : > { %13988 = vmatmul.mubr.bf16.vlgmr.msra.gmra.mrb[72].mxu1 %v9345_v22  ;;  %v14585_v22 = vld [vmem:[%s18148_s5 + $0x28] sm:$0xff]  }
 0x767   : > { %14012 = vmatpush3.bf16.msra.mxu1 %v14564_v52  ;;  %14027 = vmatprep.mubr.msk.bf16.mxu1 %vm14653_vm0, %v18168_v3  ;;  %v14584_v52 = vld [vmem:[%s18148_s5 + $0x20] sm:$0xff]  }
 0x768   : > { %14013 = vmatprep.subr.bf16.mxu1 %v18168_v3 }
 0x76b   : > { %14014 = vmatpush3.bf16.msra.mxu1 %v14565_v7 }
 0x76c   : > { %14015 = vmatprep.subr.bf16.mxu1 %v18168_v3 }
 0x76f   : > { %14016 = vmatpush3.bf16.msra.mxu1 %v14566_v17 }
 0x770   : > { %14017 = vmatprep.subr.bf16.mxu1 %v18168_v3 }
 0x773   : > { %14018 = vmatpush3.bf16.msra.mxu1 %v14567_v53 }
 0x774   : > { %14019 = vmatprep.subr.bf16.mxu1 %v18168_v3 }
 0x777   : > { %14020 = vmatpush3.bf16.msra.mxu1 %v14568_v25 }
 0x778   : > { %14021 = vmatprep.subr.bf16.mxu1 %v18168_v3 }
 0x779   : > { %v8149_v31 = vpop.f32.mrb[48].mxu1  ;;  %v8689_v42 = vpop.f32.mrb[84].mxu0 }
 0x77a   : > { %v8155_v28 = vadd.f32 %v8149_v31, %v8047_v6  ;;  %v13749_v32 = vpop.f32.mrb[49].mxu1  ;;  %v13849_v39 = vpop.f32.mrb[85].mxu0  ;;  %v14580_v6 = vld [vmem:[%s18148_s5] sm:$0xff]  }
 0x77b   : > { %v8152_v59 = vpop.f32.mrb[50].mxu1  ;;  %14022 = vmatpush3.bf16.msra.mxu1 %v14569_v36  ;;  %v8692_v1 = vpop.f32.mrb[86].mxu0 }
 0x77c   : > { %v13750_v15 = vpop.f32.mrb[51].mxu1  ;;  %14023 = vmatprep.subr.bf16.mxu1 %v18168_v3  ;;  %v8263_v51 = vadd.f32 %v17935_v26, %v8155_v28  ;;  %v13850_v16 = vpop.f32.mrb[87].mxu0 }
 0x77f   : > { %14024 = vmatpush3.bf16.msra.mxu1 %v14570_v12 }
 0x780   : > { %14025 = vmatprep.subr.bf16.mxu1 %v18168_v3 }
 0x783   : > { %14026 = vmatpush3.bf16.msra.mxu1 %v14571_v63 }
 0x784   : > { %14051 = vmatprep.subr.bf16.mxu1 %v18168_v3 }
 0x786   : > { %14028 = vmatmul.mubr.bf16.vlgmr.msra.gmra.mrb[76].mxu1 %v9561_v37 }
 0x787   : > { %14067 = vmatprep.mubr.msk.bf16.mxu1 %vm14653_vm0, %v18168_v3  ;;  %14052 = vmatpush3.bf16.msra.mxu1 %v14580_v6 }
 0x788   : > { %14053 = vmatprep.subr.bf16.mxu1 %v18168_v3 }
 0x78b   : > { %14054 = vmatpush3.bf16.msra.mxu1 %v14581_v48 }
 0x78c   : > { %14055 = vmatprep.subr.bf16.mxu1 %v18168_v3 }
 0x78f   : > { %14056 = vmatpush3.bf16.msra.mxu1 %v14582_v24 }
 0x790   : > { %14057 = vmatprep.subr.bf16.mxu1 %v18168_v3 }
 0x793   : > { %14058 = vmatpush3.bf16.msra.mxu1 %v14583_v46 }
 0x794   : > { %14059 = vmatprep.subr.bf16.mxu1 %v18168_v3 }
 0x797   : > { %14060 = vmatpush3.bf16.msra.mxu1 %v14584_v52 }
 0x798   : > { %14061 = vmatprep.subr.bf16.mxu1 %v18168_v3 }
 0x799   : > { %v8365_v57 = vpop.f32.mrb[52].mxu1  ;;  %v8905_v38 = vpop.f32.mrb[88].mxu0 }
 0x79a   : > { %v8371_v60 = vadd.f32 %v8365_v57, %v8263_v51  ;;  %v13789_v33 = vpop.f32.mrb[53].mxu1  ;;  %v13889_v11 = vpop.f32.mrb[89].mxu0 }
 0x79b   : > { %v8368_v0 = vpop.f32.mrb[54].mxu1  ;;  %v8908_v27 = vpop.f32.mrb[90].mxu0  ;;  %14062 = vmatpush3.bf16.msra.mxu1 %v14585_v22  ;;  %v9668_v11 = vld [vmem:[%s18149_s6 + $0x2] sm:$0x1] }
 0x79c   : > { %v13790_v9 = vpop.f32.mrb[55].mxu1  ;;  %v8479_v30 = vadd.f32 %v17972_v4, %v8371_v60  ;;  %v13890_v61 = vpop.f32.mrb[91].mxu0  ;;  %14063 = vmatprep.subr.bf16.mxu1 %v18168_v3 }
 0x7b9   : > { %v8581_v35 = vpop.f32.mrb[56].mxu1  ;;  %v18022_v58 = vpop.f32.mrb[92].mxu0 }
 0x7ba   : > { %v8587_v26 = vadd.f32 %v8581_v35, %v8479_v30  ;;  %v13829_v20 = vpop.f32.mrb[57].mxu1  ;;  %v13929_v62 = vpop.f32.mrb[93].mxu0 }
 0x7bb   : > { %v8584_v41 = vpop.f32.mrb[58].mxu1  ;;  %v9124_v29 = vpop.f32.mrb[94].mxu0  ;;  %v14587_v20 = vld [vmem:[%s18148_s5 + $0x38] sm:$0xff]   ;;  %v9688_v62 = vld [vmem:[%s18149_s6 + $0x3] sm:$0x1] }
 0x7bc   : > { %v13830_v34 = vpop.f32.mrb[59].mxu1  ;;  %v8695_v45 = vadd.f32 %v8689_v42, %v8587_v26  ;;  %v13930_v55 = vpop.f32.mrb[95].mxu0 }
 0x7d9   : > { %v8797_v5 = vpop.f32.mrb[60].mxu1  ;;  %v9337_v44 = vpop.f32.mrb[96].mxu0 }
 0x7da   : > { %v8803_v54 = vadd.f32 %v8797_v5, %v8695_v45  ;;  %v13869_v19 = vpop.f32.mrb[61].mxu1  ;;  %v13969_v21 = vpop.f32.mrb[97].mxu0 }
 0x7db   : > { %v8800_v4 = vpop.f32.mrb[62].mxu1  ;;  %v9340_v50 = vpop.f32.mrb[98].mxu0 }
 0x7dc   : > { %v13870_v56 = vpop.f32.mrb[63].mxu1  ;;  %v8911_v40 = vadd.f32 %v8905_v38, %v8803_v54  ;;  %v13970_v8 = vpop.f32.mrb[99].mxu0 }
 0x7f9   : > { %v9013_v7 = vpop.f32.mrb[64].mxu1  ;;  %v9553_v53 = vpop.f32.mrb[100].mxu0 }
 0x7fa   : > { %v9019_v17 = vadd.f32 %v9013_v7, %v8911_v40  ;;  %v13909_v25 = vpop.f32.mrb[65].mxu1  ;;  %v14009_v36 = vpop.f32.mrb[101].mxu0 }
 0x7fb   : > { %v9016_v31 = vpop.f32.mrb[66].mxu1  ;;  %v9556_v28 = vpop.f32.mrb[102].mxu0 }
 0x7fc   : > { %v13910_v42 = vpop.f32.mrb[67].mxu1  ;;  %v9127_v32 = vadd.f32 %v18022_v58, %v9019_v17  ;;  %v14010_v39 = vpop.f32.mrb[103].mxu0  ;;  %v14586_v58 = vld [vmem:[%s18148_s5 + $0x30] sm:$0xff]  }
 0x7fd   : > { %14064 = vmatpush3.bf16.msra.mxu1 %v14586_v58 }
 0x7fe   : > { %14065 = vmatprep.subr.bf16.mxu1 %v18168_v3 }
 0x801   : > { %14066 = vmatpush3.bf16.msra.mxu1 %v14587_v20 }
 0x819   : > { %v9229_v59 = vpop.f32.mrb[68].mxu1 }
 0x81a   : > { %v9235_v12 = vadd.f32 %v9229_v59, %v9127_v32  ;;  %v13949_v1 = vpop.f32.mrb[69].mxu1 }
 0x81b   : > { %v9232_v15 = vpop.f32.mrb[70].mxu1 }
 0x81c   : > { %v13950_v51 = vpop.f32.mrb[71].mxu1  ;;  %v9343_v16 = vadd.f32 %v9337_v44, %v9235_v12 }
 0x839   : > { %v9445_v63 = vpop.f32.mrb[72].mxu1 }
 0x83a   : > { %v9451_v10 = vadd.f32 %v9445_v63, %v9343_v16  ;;  %v13989_v37 = vpop.f32.mrb[73].mxu1 }
 0x83b   : > { %v9448_v57 = vpop.f32.mrb[74].mxu1 }
 0x83c   : > { %v13990_v60 = vpop.f32.mrb[75].mxu1  ;;  %v9559_v38 = vadd.f32 %v9553_v53, %v9451_v10 }
 0x859   : > { %v9661_v33 = vpop.f32.mrb[76].mxu1 }
 0x85a   : > { %v9667_v0 = vadd.f32 %v9661_v33, %v9559_v38  ;;  %v14029_v27 = vpop.f32.mrb[77].mxu1 }
 0x85b   : > { %v9664_v9 = vpop.f32.mrb[78].mxu1 }
 0x85c   : > { %v9669_v30 = vadd.f32 %v9668_v11, %v9667_v0  ;;  %v14030_v61 = vpop.f32.mrb[79].mxu1 }
 0x85e   : > { %v9670_v35 = vmax.f32 %v9669_v30, 0.0 }
 0x860   : > { %v9671_v26 = vpack.c.bf16 %v9670_v35, %v9670_v35 }
 0x862   : > { %14048 = vmatmul.mubr.bf16.vlgmr.msra.gmra.mrb[104].mxu0 %v9671_v26 }
 0x935   : > { %v9771_v41 = vpop.f32.mrb[104].mxu0 }
 0x936   : > { %v9772_v29 = vadd.f32 %v9771_v41, %v9688_v62  ;;  %v14049_v34 = vpop.f32.mrb[105].mxu0 }
 0x937   : > { %v9774_v45 = vpop.f32.mrb[106].mxu0 }
 0x938   : > { %v9777_v47 = vmax.f32 %v9772_v29, 0.0  ;;  %v14050_v55 = vpop.f32.mrb[107].mxu0 }
 0x93a   : > { %v9778_v14 = vpack.c.bf16 %v9777_v47, %v9777_v47 }
 0x93c   : > { %14068 = vmatmul.mubr.bf16.vlgmr.msra.gmra.mrb[80].mxu1 %v9778_v14 }
 0xa0f   : > { %v9878_v3 = vpop.f32.mrb[80].mxu1 }
 0xa10   : > { %v9879_v13 = vadd.f32 %v9878_v3, %v9795_v49  ;;  %v14069_v23 = vpop.f32.mrb[81].mxu1 }
 0xa11   : > { %v9881_v2 = vpop.f32.mrb[82].mxu1 }
 0xa12   : > { %9884 = vst [vmem:[%s271_s9] sm:$0x1] %v9879_v13  ;;  %v14070_v5 = vpop.f32.mrb[83].mxu1 }
 0xa13   : > { %14601 = shalt.err (!%p14598_p3)
}
 0xa14   : > { %s14602_s21 = scalar_lea.hbm %s18101_s16, 16  ;;  %s14606_s23 = scalar_lea.hbm %s18150_s7, 32 }
 0xa15   : > { %p14603_p4 = scmp.ne.s32.totalorder %s18101_s16, %s14602_s21  ;;  %p14607_p9 = scmp.lt.u32.totalorder %s18101_s16, %s18150_s7 }
 0xa16   : > { %p14608_p10 = scmp.lt.u32.totalorder %s14606_s23, %s14602_s21  ;;  %p14610_p12 = scmp.lt.u32.totalorder %s14602_s21, %s18101_s16 }
 0xa17   : > { %p14604_p7 = pnand %p14603_p4, %p14733_p5 }
 0xa18   : > { %p14609_p11 = por %p14608_p10, %p14607_p9 }
 0xa19   : > { %p14605_p8 = pneg %p14604_p7 }
 0xa1a   : > { %p14611_p13 = por %p14610_p12, %p14609_p11 }
 0xa1c   : > { %p14612_p0 = pnand %p14611_p13, %p14605_p8 }
 0xa1e   : > { %14615 = shalt.err (!%p14612_p0)
}
 0xa1f   : > { %14071 = dma.vmem_to_hbm [thread:$0]  (%p14733_p5), %s18103_s13, 16, %s18101_s16, %s9886_s17  }
 0xa20 PF: > { %p14077_p1 = scmp.ge.s32.totalorder %s14650_s27, 2  ;;  %s9910_s14 = sand.u32 1, %s14638_s24  }
 0xa21   : > { %s9911_s15 = scalar_lea.sflag [#allocation6], %s9910_s14 }
 0xa22   : > { %p14074_p2 = pnand %p14077_p1, %p14737_p6 }
 0xa24   : > { %14633 = dma.done.wait (!%p14074_p2), %s9911_s15, 16  }
 0xa25   : > { %14635 = vsyncadd (!%p14074_p2), %s9911_s15, 4294967280  ;;  %p17_p3 = scmp.ge.s32.totalorder %s14720_s30, 4   ;;  %s18195_s24 = smov %s14642_s25 }
 0xa26   : > { %s18196_s25 = smov %s14646_s26  ;;  %s18197_s26 = smov %s14731_s10 }
 0xa27   : > { %s18198_s27 = smov %s14720_s30  ;;  %19 = sbr.rel (!%p17_p3) target bundleno = 3 (0x3), region = 131 }
 0xa2e   :  { %9915 = vsyncpa [#allocation6], 1 }
 0xa2f   :  { %9917 = vsyncpa [#allocation6 + $0x1], 1 }

</bundles_post_ra>
